<compile_context>
chip_gen: v5e
topology: v5e:2x2
jax: 0.10.0
libtpu: 0.0.40
codegen_flags: <defaults>
</compile_context>

<pallas_src>
import functools

import jax
import jax.numpy as jnp
from jax.experimental import pallas as pl
from jax.experimental.pallas import tpu as pltpu

PIX_TILE_CAP = 8192          # max rows of the (P, C) slab per grid step
MODE_VMEM_BUDGET = 8 << 20   # per-buffer budget for the spectral-mix mode tile


# ----------------------------------------------------------------------------
# Tiling / VMEM helpers
# ----------------------------------------------------------------------------
def _pick_pixel_tile(p, cap=PIX_TILE_CAP):
    """Largest tile <= cap that divides p, satisfies the sublane constraint and
    (when possible) leaves >= 2 grid steps so v7x's two TensorCores both work."""
    cap = min(cap, p)
    best = None
    for t in range(cap, 0, -1):
        if p % t == 0 and (t % 8 == 0 or t == p):
            if best is None:
                best = t                 # largest valid tile overall
            if p // t >= 2:
                return t                 # largest valid tile with >= 2 grid steps
    return best if best is not None else p


def _pick_mode_tile(m, bytes_per_mode, budget=MODE_VMEM_BUDGET):
    cap = max(1, min(m, budget // max(int(bytes_per_mode), 1)))
    for t in range(cap, 0, -1):
        if m % t == 0:
            return t
    return 1


@functools.lru_cache(maxsize=1)
def _vmem_cap_bytes():
    """~75% of physical VMEM: ~96 MiB on v5e/v6e (128 MiB), ~48 MiB on v7x (64 MiB)."""
    cap = 64 << 20
    try:
        info = pltpu.get_tpu_info()
        cap = int(getattr(info, "vmem_capacity_bytes", cap))
    except Exception:
        pass
    return (cap * 3) // 4


def _vmem_limit_bytes(*buf_bytes):
    # Double-buffered streams + slack, clamped to a safe fraction of physical VMEM.
    need = 2 * int(sum(buf_bytes)) + (4 << 20)
    return int(min(max(need, 16 << 20), _vmem_cap_bytes()))


# ----------------------------------------------------------------------------
# Pallas kernels
# ----------------------------------------------------------------------------
def _pointwise_conv_kernel(x_ref, w_ref, b_ref, o_ref):
    # 1x1 Conv2d == per-pixel matmul over channels (+ bias). bf16 MXU, f32 acc.
    acc = jnp.dot(x_ref[...].astype(jnp.bfloat16), w_ref[...],
                  preferred_element_type=jnp.float32)
    o_ref[...] = (acc + b_ref[...]).astype(o_ref.dtype)


def pointwise_conv(x_flat, w, b):
    """x_flat: (P, Cin) f32, w: (Cin, Cout) bf16, b: (Cout,) f32 -> (P, Cout) f32."""
    P, cin = x_flat.shape
    cout = w.shape[1]
    tp = _pick_pixel_tile(P)
    limit = _vmem_limit_bytes(tp * cin * 4, cin * cout * 2, cout * 4, tp * cout * 4)
    return pl.pallas_call(
        _pointwise_conv_kernel,
        out_shape=jax.ShapeDtypeStruct((P, cout), jnp.float32),
        grid=(P // tp,),
        in_specs=[
            pl.BlockSpec((tp, cin), lambda i: (i, 0)),
            pl.BlockSpec((cin, cout), lambda i: (0, 0)),
            pl.BlockSpec((1, cout), lambda i: (0, 0)),
        ],
        out_specs=pl.BlockSpec((tp, cout), lambda i: (i, 0)),
        compiler_params=pltpu.CompilerParams(
            dimension_semantics=("parallel",), vmem_limit_bytes=limit),
    )(x_flat, w, b.reshape(1, cout))


def _tail_core(x_ref, y_ref, ws_ref, vec_ref):
    """Skip 1x1 conv + add spectral branch + LayerNorm2d (over channel) + GELU.

    Matmul operands in bf16 (f32 MXU accumulation); all elementwise math in f32
    (v5e VPU/EUP have no bf16 path).
    """
    skip = jnp.dot(x_ref[...].astype(jnp.bfloat16), ws_ref[...],
                   preferred_element_type=jnp.float32)
    vec = vec_ref[...]                                # (3, Cout): [bias, gamma, beta]
    z = y_ref[...].astype(jnp.float32) + skip + vec[0:1, :]
    # TODO(synk): verify LayerNorm2d semantics (per-pixel channel LN assumed) against
    # the PyTorch reference; some codebases use GroupNorm(1, C)-style instance norm.
    mu = jnp.mean(z, axis=-1, keepdims=True)
    var = jnp.mean((z - mu) ** 2, axis=-1, keepdims=True)
    zn = (z - mu) * jax.lax.rsqrt(var + 1e-5)
    zn = zn * vec[1:2, :] + vec[2:3, :]
    # TODO(synk): nn.GELU() defaults to exact erf GELU; tanh approximation used in-kernel.
    return 0.5 * zn * (1.0 + jnp.tanh(0.7978845608028654 * (zn + 0.044715 * zn * zn * zn)))


def _block_tail_kernel(x_ref, y_ref, ws_ref, vec_ref, o_ref):
    o_ref[...] = _tail_core(x_ref, y_ref, ws_ref, vec_ref).astype(o_ref.dtype)


def _block_tail_proj_kernel(x_ref, y_ref, ws_ref, vec_ref, pw_ref, pb_ref, o_ref):
    # Final block: fuse the projection 1x1 conv so the (P, C_hidden) activation
    # never round-trips HBM before the (P, out_channels) output is produced.
    g = _tail_core(x_ref, y_ref, ws_ref, vec_ref)
    proj = jnp.dot(g.astype(jnp.bfloat16), pw_ref[...],
                   preferred_element_type=jnp.float32)
    o_ref[...] = (proj + pb_ref[...]).astype(o_ref.dtype)


def block_tail(x_flat, y_spec_flat, ws, vec):
    """x_flat: (P, Cin) f32, y_spec_flat: (P, Cout) f32, ws: (Cin,Cout) bf16, vec: (3,Cout)."""
    P, cin = x_flat.shape
    cout = ws.shape[1]
    tp = _pick_pixel_tile(P)
    limit = _vmem_limit_bytes(tp * cin * 4, tp * cout * 4, cin * cout * 2,
                              3 * cout * 4, tp * cout * 4)
    return pl.pallas_call(
        _block_tail_kernel,
        out_shape=jax.ShapeDtypeStruct((P, cout), jnp.float32),
        grid=(P // tp,),
        in_specs=[
            pl.BlockSpec((tp, cin), lambda i: (i, 0)),
            pl.BlockSpec((tp, cout), lambda i: (i, 0)),
            pl.BlockSpec((cin, cout), lambda i: (0, 0)),
            pl.BlockSpec((3, cout), lambda i: (0, 0)),
        ],
        out_specs=pl.BlockSpec((tp, cout), lambda i: (i, 0)),
        compiler_params=pltpu.CompilerParams(
            dimension_semantics=("parallel",), vmem_limit_bytes=limit),
    )(x_flat, y_spec_flat, ws, vec)


def block_tail_proj(x_flat, y_spec_flat, ws, vec, pw, pb):
    """Last block tail with the projection conv fused in: -> (P, out_channels) f32."""
    P, cin = x_flat.shape
    cout = ws.shape[1]
    co = pw.shape[1]
    tp = _pick_pixel_tile(P)
    limit = _vmem_limit_bytes(tp * cin * 4, tp * cout * 4, cin * cout * 2,
                              3 * cout * 4, cout * co * 2, co * 4, tp * co * 4)
    return pl.pallas_call(
        _block_tail_proj_kernel,
        out_shape=jax.ShapeDtypeStruct((P, co), jnp.float32),
        grid=(P // tp,),
        in_specs=[
            pl.BlockSpec((tp, cin), lambda i: (i, 0)),
            pl.BlockSpec((tp, cout), lambda i: (i, 0)),
            pl.BlockSpec((cin, cout), lambda i: (0, 0)),
            pl.BlockSpec((3, cout), lambda i: (0, 0)),
            pl.BlockSpec((cout, co), lambda i: (0, 0)),
            pl.BlockSpec((1, co), lambda i: (0, 0)),
        ],
        out_specs=pl.BlockSpec((tp, co), lambda i: (i, 0)),
        compiler_params=pltpu.CompilerParams(
            dimension_semantics=("parallel",), vmem_limit_bytes=limit),
    )(x_flat, y_spec_flat, ws, vec, pw, pb.reshape(1, co))


def _spectral_mix_kernel(x_ref, w_ref, y_ref):
    # Block-complex channel mixing: one bf16 matmul per retained Fourier mode.
    # x: (MT, B, 2*Cin) interleaved (re,im) channels; w: (MT, 2*Cin, 2*Cout).
    x = x_ref[...].astype(jnp.bfloat16)
    y = jnp.einsum('mbc,mcd->mbd', x, w_ref[...],
                   preferred_element_type=jnp.float32)
    y_ref[...] = y.astype(y_ref.dtype)


def spectral_mix(x2, w2):
    """x2: (M, B, 2*Cin) f32; w2: (M, 2*Cin, 2*Cout) bf16 -> (M, B, 2*Cout) f32."""
    M, B, c2in = x2.shape
    c2out = w2.shape[2]
    bytes_per_mode = c2in * c2out * 2 + B * (c2in + c2out) * 4
    mt = _pick_mode_tile(M, bytes_per_mode)
    limit = _vmem_limit_bytes(mt * B * c2in * 4, mt * c2in * c2out * 2,
                              mt * B * c2out * 4)
    return pl.pallas_call(
        _spectral_mix_kernel,
        out_shape=jax.ShapeDtypeStruct((M, B, c2out), jnp.float32),
        grid=(M // mt,),
        in_specs=[
            pl.BlockSpec((mt, B, c2in), lambda m: (m, 0, 0)),
            pl.BlockSpec((mt, c2in, c2out), lambda m: (m, 0, 0)),
        ],
        out_specs=pl.BlockSpec((mt, B, c2out), lambda m: (m, 0, 0)),
        compiler_params=pltpu.CompilerParams(
            dimension_semantics=("parallel",), vmem_limit_bytes=limit),
    )(x2, w2)


# ----------------------------------------------------------------------------
# Spectral convolution (FFT glue in plain JAX; channel mixing in Pallas)
# ----------------------------------------------------------------------------
def spectral_conv(x_nhwc, w2, m1, m2):
    """x_nhwc: (B, H, W, Cin) f32, w2: (2*m1*m2, 2*Cin, 2*Cout) bf16 -> (B,H,W,Cout) f32."""
    B, H, W, cin = x_nhwc.shape
    cout = w2.shape[2] // 2
    wf = W // 2 + 1
    assert 2 * m1 <= H and m2 <= wf, "modes exceed the spatial resolution"
    M = 2 * m1 * m2
    # TODO(synk): FFT has no Pallas TPU equivalent; rfft2/irfft2 run in plain JAX.
    x_ft = jnp.fft.rfft2(x_nhwc, axes=(1, 2))                       # (B,H,Wf,Cin) c64
    xm = jnp.concatenate([x_ft[:, :m1, :m2, :],                     # low +freqs
                          x_ft[:, H - m1:, :m2, :]], axis=1)        # low -freqs
    # Interleaved (re, im) channel slab matching the block-complex weight layout.
    x2 = jnp.stack([jnp.real(xm), jnp.imag(xm)], axis=-1).reshape(B, M, 2 * cin)
    x2 = jnp.transpose(x2, (1, 0, 2)).astype(jnp.float32)           # (M, B, 2*Cin)
    y2 = spectral_mix(x2, w2)                                       # (M, B, 2*Cout)
    y2 = jnp.transpose(y2, (1, 0, 2)).reshape(B, M, cout, 2)
    y = jax.lax.complex(y2[..., 0], y2[..., 1]).reshape(B, 2 * m1, m2, cout)
    # Build the padded spectrum with concat+pad (no zeros + full-tensor scatter).
    mid = jnp.zeros((B, H - 2 * m1, m2, cout), jnp.complex64)
    stacked = jnp.concatenate([y[:, :m1], mid, y[:, m1:]], axis=1)  # (B, H, m2, Cout)
    out_ft = jnp.pad(stacked, ((0, 0), (0, 0), (0, wf - m2), (0, 0)))
    return jnp.fft.irfft2(out_ft, s=(H, W), axes=(1, 2)).astype(jnp.float32)


# ----------------------------------------------------------------------------
# Parameter initialization (deterministic, synthetic)
# ----------------------------------------------------------------------------
def _block_complex_weight(wr, wi):
    """(M,Cin,Cout) real/imag -> (M, 2Cin, 2Cout) with interleaved (re,im) rows/cols."""
    t = jnp.stack([jnp.stack([wr, wi], axis=-1),
                   jnp.stack([-wi, wr], axis=-1)], axis=2)   # (M, Cin, 2, Cout, 2)
    M, cin, _, cout, _ = t.shape
    return t.reshape(M, 2 * cin, 2 * cout)


def init_fno_params(key, in_channels, out_channels, modes, hidden_channels):
    m1, m2 = modes
    n_blocks = len(hidden_channels)
    keys = jax.random.split(key, 2 + 3 * n_blocks)
    kit = iter(keys)
    c_lift_in = in_channels + 2  # fixed_pos_encoding adds 2 grid channels

    params = {
        "lift_w": (jax.random.normal(next(kit), (c_lift_in, hidden_channels[0]),
                                     jnp.float32) * (1.0 / c_lift_in) ** 0.5
                   ).astype(jnp.bfloat16),
        "lift_b": jnp.zeros((hidden_channels[0],), jnp.float32),
        "blocks": [],
    }
    for i, ch in enumerate(hidden_channels):
        cin = hidden_channels[0] if i == 0 else hidden_channels[i - 1]
        scale = 1.0 / (cin * ch)
        wr = jax.random.normal(next(kit), (2 * m1 * m2, cin, ch), jnp.float32) * scale
        wi = jax.random.normal(next(kit), (2 * m1 * m2, cin, ch), jnp.float32) * scale
        blk = {
            # block-complex spectral weight, bf16 (f32 MXU accumulation in-kernel)
            "w2": _block_complex_weight(wr, wi).astype(jnp.bfloat16),
            "ws": (jax.random.normal(next(kit), (cin, ch), jnp.float32)
                   * (1.0 / cin) ** 0.5).astype(jnp.bfloat16),
            # (3, ch): [skip-conv bias, LN gamma, LN beta]
            "vec": jnp.stack([jnp.zeros((ch,), jnp.float32),
                              jnp.ones((ch,), jnp.float32),
                              jnp.zeros((ch,), jnp.float32)], axis=0),
        }
        params["blocks"].append(blk)

    params["proj_w"] = (jax.random.normal(
        next(kit), (hidden_channels[-1], out_channels), jnp.float32
    ) * (1.0 / hidden_channels[-1]) ** 0.5).astype(jnp.bfloat16)
    params["proj_b"] = jnp.zeros((out_channels,), jnp.float32)
    return params


# ----------------------------------------------------------------------------
# Forward pass (channels-last internally; NCHW at the module boundary)
# ----------------------------------------------------------------------------
def fno_forward(params, x, modes):
    B, C, H, W = x.shape
    m1, m2 = modes
    P = B * H * W

    x = jnp.transpose(x, (0, 2, 3, 1))  # NCHW -> NHWC, once

    # CartesianEmbedding (fixed_pos_encoding=True): append normalized x/y grid channels.
    # TODO(synk): verify gx/gy channel ordering against the PyTorch CartesianEmbedding.
    gy, gx = jnp.meshgrid(jnp.linspace(0.0, 1.0, H), jnp.linspace(0.0, 1.0, W),
                          indexing="ij")
    grid = jnp.broadcast_to(jnp.stack([gx, gy], -1)[None], (B, H, W, 2)).astype(x.dtype)
    x = jnp.concatenate([x, grid], axis=-1)          # (B, H, W, C+2)
    x_flat = x.reshape(P, C + 2)                     # free reshape (no transpose)

    # Lifting 1x1 conv
    x_flat = pointwise_conv(x_flat, params["lift_w"], params["lift_b"])

    # FNO blocks (projection fused into the last block's tail kernel)
    blocks = params["blocks"]
    n_blocks = len(blocks)
    for i, blk in enumerate(blocks):
        cin, cout = blk["ws"].shape
        x_nhwc = x_flat.reshape(B, H, W, cin)
        y_spec = spectral_conv(x_nhwc, blk["w2"], m1, m2)          # (B,H,W,cout) f32
        y_flat = y_spec.reshape(P, cout)
        if i == n_blocks - 1:
            x_flat = block_tail_proj(x_flat, y_flat, blk["ws"], blk["vec"],
                                     params["proj_w"], params["proj_b"])
        else:
            x_flat = block_tail(x_flat, y_flat, blk["ws"], blk["vec"])

    if n_blocks == 0:  # degenerate config: projection directly on the lifted features
        x_flat = pointwise_conv(x_flat, params["proj_w"], params["proj_b"])

    out = x_flat.reshape(B, H, W, -1)
    return jnp.transpose(out, (0, 3, 1, 2))          # NHWC -> NCHW, once


# ----------------------------------------------------------------------------
if __name__ == "__main__":
    key = jax.random.PRNGKey(0)
    B, C, H, W = 2, 4, 16, 16
    out_channels = 3
    modes = (8, 8)
    hidden_channels = (32, 32)

    k_x, k_p = jax.random.split(key)
    x = jax.random.normal(k_x, (B, C, H, W), jnp.float32)
    params = init_fno_params(k_p, C, out_channels, modes, hidden_channels)

    fwd = jax.jit(functools.partial(fno_forward, modes=modes))
    y = fwd(params, x)
    jax.block_until_ready(y)
    assert y.shape == (B, out_channels, H, W), y.shape
    assert bool(jnp.all(jnp.isfinite(y)))
    print("KERNEL_OK")
</pallas_src>

<mosaic_0001>
module attributes {stable_mosaic.version = 11 : i64} {
  func.func @_pointwise_conv_kernel(%arg0: i32, %arg1: memref<256x6xf32, #tpu.memory_space<vmem>>, %arg2: memref<6x32xbf16, #tpu.memory_space<vmem>>, %arg3: memref<1x32xf32, #tpu.memory_space<vmem>>, %arg4: memref<256x32xf32, #tpu.memory_space<vmem>>) attributes {dimension_semantics = [#tpu.dimension_semantics<parallel>], iteration_bounds = array<i64: 2>, scalar_prefetch = 0 : i64, scratch_operands = 0 : i64, tpu.core_type = #tpu.core_type<tc>, window_params = [{transform_indices = @transform_0, window_bounds = array<i64: 256, 6>}, {pipeline_mode = #tpu.pipeline_mode<synchronous>, transform_indices = @transform_1, window_bounds = array<i64: 6, 32>}, {pipeline_mode = #tpu.pipeline_mode<synchronous>, transform_indices = @transform_2, window_bounds = array<i64: 1, 32>}, {transform_indices = @transform_3, window_bounds = array<i64: 256, 32>}]} {
    %c0 = arith.constant 0 : index
    %c0_0 = arith.constant 0 : index
    %0 = vector.load %arg1[%c0, %c0_0] : memref<256x6xf32, #tpu.memory_space<vmem>>, vector<256x6xf32>
    %1 = arith.truncf %0 : vector<256x6xf32> to vector<256x6xbf16>
    %c0_1 = arith.constant 0 : index
    %c0_2 = arith.constant 0 : index
    %2 = vector.load %arg2[%c0_1, %c0_2] : memref<6x32xbf16, #tpu.memory_space<vmem>>, vector<6x32xbf16>
    %cst = arith.constant dense<0.000000e+00> : vector<256x32xf32>
    %3 = tpu.matmul %1, %2, %cst {dimension_numbers = #tpu.dot_dimension_numbers<[1], [0], [0], [1], [0, 0, 1, 1], [], []>} : vector<256x6xbf16>, vector<6x32xbf16>, vector<256x32xf32> -> vector<256x32xf32>
    %c0_3 = arith.constant 0 : index
    %c0_4 = arith.constant 0 : index
    %4 = vector.load %arg3[%c0_3, %c0_4] : memref<1x32xf32, #tpu.memory_space<vmem>>, vector<1x32xf32>
    %5 = vector.broadcast %4 : vector<1x32xf32> to vector<256x32xf32>
    %6 = arith.addf %3, %5 : vector<256x32xf32>
    %c0_5 = arith.constant 0 : index
    %c0_6 = arith.constant 0 : index
    %7 = vector.load %arg4[%c0_5, %c0_6] : memref<256x32xf32, #tpu.memory_space<vmem>>, vector<256x32xf32>
    tpu.vector_store %arg4[%c0_5, %c0_6], %6 {strides = array<i32>} : memref<256x32xf32, #tpu.memory_space<vmem>>, vector<256x32xf32>,
    return
  }
  func.func @transform_0(%arg0: i32) -> (i32, i32) {
    %c0_i32 = arith.constant 0 : i32
    %c0_i32_0 = arith.constant 0 : i32
    return %arg0, %c0_i32 : i32, i32
  }
  func.func @transform_1(%arg0: i32) -> (i32, i32) {
    %c0_i32 = arith.constant 0 : i32
    %c0_i32_0 = arith.constant 0 : i32
    %c0_i32_1 = arith.constant 0 : i32
    return %c0_i32, %c0_i32_0 : i32, i32
  }
  func.func @transform_2(%arg0: i32) -> (i32, i32) {
    %c0_i32 = arith.constant 0 : i32
    %c0_i32_0 = arith.constant 0 : i32
    %c0_i32_1 = arith.constant 0 : i32
    return %c0_i32, %c0_i32_0 : i32, i32
  }
  func.func @transform_3(%arg0: i32) -> (i32, i32) {
    %c0_i32 = arith.constant 0 : i32
    %c0_i32_0 = arith.constant 0 : i32
    return %arg0, %c0_i32 : i32, i32
  }
}

module attributes {stable_mosaic.version = 11 : i64} {
  func.func @_spectral_mix_kernel(%arg0: i32, %arg1: memref<128x2x64xf32, #tpu.memory_space<vmem>>, %arg2: memref<128x64x64xbf16, #tpu.memory_space<vmem>>, %arg3: memref<128x2x64xf32, #tpu.memory_space<vmem>>) attributes {dimension_semantics = [#tpu.dimension_semantics<parallel>], iteration_bounds = array<i64: 1>, scalar_prefetch = 0 : i64, scratch_operands = 0 : i64, tpu.core_type = #tpu.core_type<tc>, window_params = [{transform_indices = @transform_0, window_bounds = array<i64: 128, 2, 64>}, {transform_indices = @transform_1, window_bounds = array<i64: 128, 64, 64>}, {transform_indices = @transform_2, window_bounds = array<i64: 128, 2, 64>}]} {
    %c0 = arith.constant 0 : index
    %c0_0 = arith.constant 0 : index
    %c0_1 = arith.constant 0 : index
    %0 = vector.load %arg1[%c0, %c0_0, %c0_1] : memref<128x2x64xf32, #tpu.memory_space<vmem>>, vector<128x2x64xf32>
    %1 = arith.truncf %0 : vector<128x2x64xf32> to vector<128x2x64xbf16>
    %c0_2 = arith.constant 0 : index
    %c0_3 = arith.constant 0 : index
    %c0_4 = arith.constant 0 : index
    %2 = vector.load %arg2[%c0_2, %c0_3, %c0_4] : memref<128x64x64xbf16, #tpu.memory_space<vmem>>, vector<128x64x64xbf16>
    "tpu.trace_start"() <{level = 10 : i32, message = "mbc,mcd->mbd"}> : () -> ()
    %cst = arith.constant dense<0.000000e+00> : vector<128x2x64xf32>
    %3 = tpu.matmul %1, %2, %cst {dimension_numbers = #tpu.dot_dimension_numbers<[2], [1], [1], [2], [0, 0, 0, 1, 1, 2], [0], [0]>} : vector<128x2x64xbf16>, vector<128x64x64xbf16>, vector<128x2x64xf32> -> vector<128x2x64xf32>
    "tpu.trace_stop"() : () -> ()
    %c0_5 = arith.constant 0 : index
    %c0_6 = arith.constant 0 : index
    %c0_7 = arith.constant 0 : index
    %4 = vector.load %arg3[%c0_5, %c0_6, %c0_7] : memref<128x2x64xf32, #tpu.memory_space<vmem>>, vector<128x2x64xf32>
    tpu.vector_store %arg3[%c0_5, %c0_6, %c0_7], %3 {strides = array<i32>} : memref<128x2x64xf32, #tpu.memory_space<vmem>>, vector<128x2x64xf32>,
    return
  }
  func.func @transform_0(%arg0: i32) -> (i32, i32, i32) {
    %c0_i32 = arith.constant 0 : i32
    %c0_i32_0 = arith.constant 0 : i32
    %c0_i32_1 = arith.constant 0 : i32
    return %arg0, %c0_i32, %c0_i32_0 : i32, i32, i32
  }
  func.func @transform_1(%arg0: i32) -> (i32, i32, i32) {
    %c0_i32 = arith.constant 0 : i32
    %c0_i32_0 = arith.constant 0 : i32
    %c0_i32_1 = arith.constant 0 : i32
    return %arg0, %c0_i32, %c0_i32_0 : i32, i32, i32
  }
  func.func @transform_2(%arg0: i32) -> (i32, i32, i32) {
    %c0_i32 = arith.constant 0 : i32
    %c0_i32_0 = arith.constant 0 : i32
    %c0_i32_1 = arith.constant 0 : i32
    return %arg0, %c0_i32, %c0_i32_0 : i32, i32, i32
  }
}

module attributes {stable_mosaic.version = 11 : i64} {
  func.func @_block_tail_kernel(%arg0: i32, %arg1: memref<256x32xf32, #tpu.memory_space<vmem>>, %arg2: memref<256x32xf32, #tpu.memory_space<vmem>>, %arg3: memref<32x32xbf16, #tpu.memory_space<vmem>>, %arg4: memref<3x32xf32, #tpu.memory_space<vmem>>, %arg5: memref<256x32xf32, #tpu.memory_space<vmem>>) attributes {dimension_semantics = [#tpu.dimension_semantics<parallel>], iteration_bounds = array<i64: 2>, scalar_prefetch = 0 : i64, scratch_operands = 0 : i64, tpu.core_type = #tpu.core_type<tc>, window_params = [{transform_indices = @transform_0, window_bounds = array<i64: 256, 32>}, {transform_indices = @transform_1, window_bounds = array<i64: 256, 32>}, {pipeline_mode = #tpu.pipeline_mode<synchronous>, transform_indices = @transform_2, window_bounds = array<i64: 32, 32>}, {pipeline_mode = #tpu.pipeline_mode<synchronous>, transform_indices = @transform_3, window_bounds = array<i64: 3, 32>}, {transform_indices = @transform_4, window_bounds = array<i64: 256, 32>}]} {
    %c0 = arith.constant 0 : index
    %c0_0 = arith.constant 0 : index
    %0 = vector.load %arg1[%c0, %c0_0] : memref<256x32xf32, #tpu.memory_space<vmem>>, vector<256x32xf32>
    %1 = arith.truncf %0 : vector<256x32xf32> to vector<256x32xbf16>
    %c0_1 = arith.constant 0 : index
    %c0_2 = arith.constant 0 : index
    %2 = vector.load %arg3[%c0_1, %c0_2] : memref<32x32xbf16, #tpu.memory_space<vmem>>, vector<32x32xbf16>
    %cst = arith.constant dense<0.000000e+00> : vector<256x32xf32>
    %3 = tpu.matmul %1, %2, %cst {dimension_numbers = #tpu.dot_dimension_numbers<[1], [0], [0], [1], [0, 0, 1, 1], [], []>} : vector<256x32xbf16>, vector<32x32xbf16>, vector<256x32xf32> -> vector<256x32xf32>
    %c0_3 = arith.constant 0 : index
    %c0_4 = arith.constant 0 : index
    %4 = vector.load %arg4[%c0_3, %c0_4] : memref<3x32xf32, #tpu.memory_space<vmem>>, vector<3x32xf32>
    %c0_5 = arith.constant 0 : index
    %c0_6 = arith.constant 0 : index
    %5 = vector.load %arg2[%c0_5, %c0_6] : memref<256x32xf32, #tpu.memory_space<vmem>>, vector<256x32xf32>
    %6 = arith.addf %5, %3 : vector<256x32xf32>
    %7 = vector.extract_strided_slice %4 {offsets = [0, 0], sizes = [1, 32], strides = [1, 1]} : vector<3x32xf32> to vector<1x32xf32>
    %8 = vector.broadcast %7 : vector<1x32xf32> to vector<256x32xf32>
    %9 = arith.addf %6, %8 : vector<256x32xf32>
    %cst_7 = arith.constant dense<0.000000e+00> : vector<256xf32>
    %10 = vector.multi_reduction <add>, %9, %cst_7 [1] : vector<256x32xf32> to vector<256xf32>
    %11 = vector.shape_cast %10 : vector<256xf32> to vector<256x1xf32>
    %cst_8 = arith.constant 3.200000e+01 : f32
    %12 = vector.broadcast %cst_8 : f32 to vector<256x1xf32>
    %13 = arith.divf %11, %12 : vector<256x1xf32>
    %14 = vector.broadcast %13 : vector<256x1xf32> to vector<256x32xf32>
    %15 = arith.subf %9, %14 : vector<256x32xf32>
    %16 = arith.mulf %15, %15 : vector<256x32xf32>
    %cst_9 = arith.constant dense<0.000000e+00> : vector<256xf32>
    %17 = vector.multi_reduction <add>, %16, %cst_9 [1] : vector<256x32xf32> to vector<256xf32>
    %18 = vector.shape_cast %17 : vector<256xf32> to vector<256x1xf32>
    %cst_10 = arith.constant 3.200000e+01 : f32
    %19 = vector.broadcast %cst_10 : f32 to vector<256x1xf32>
    %20 = arith.divf %18, %19 : vector<256x1xf32>
    %21 = vector.broadcast %13 : vector<256x1xf32> to vector<256x32xf32>
    %22 = arith.subf %9, %21 : vector<256x32xf32>
    %cst_11 = arith.constant 9.99999974E-6 : f32
    %23 = vector.broadcast %cst_11 : f32 to vector<256x1xf32>
    %24 = arith.addf %20, %23 : vector<256x1xf32>
    %25 = math.rsqrt %24 : vector<256x1xf32>
    %26 = vector.broadcast %25 : vector<256x1xf32> to vector<256x32xf32>
    %27 = arith.mulf %22, %26 : vector<256x32xf32>
    %28 = vector.extract_strided_slice %4 {offsets = [1, 0], sizes = [1, 32], strides = [1, 1]} : vector<3x32xf32> to vector<1x32xf32>
    %29 = vector.broadcast %28 : vector<1x32xf32> to vector<256x32xf32>
    %30 = arith.mulf %27, %29 : vector<256x32xf32>
    %31 = vector.extract_strided_slice %4 {offsets = [2, 0], sizes = [1, 32], strides = [1, 1]} : vector<3x32xf32> to vector<1x32xf32>
    %32 = vector.broadcast %31 : vector<1x32xf32> to vector<256x32xf32>
    %33 = arith.addf %30, %32 : vector<256x32xf32>
    %cst_12 = arith.constant 5.000000e-01 : f32
    %34 = vector.broadcast %cst_12 : f32 to vector<256x32xf32>
    %35 = arith.mulf %34, %33 : vector<256x32xf32>
    %cst_13 = arith.constant 4.471500e-02 : f32
    %36 = vector.broadcast %cst_13 : f32 to vector<256x32xf32>
    %37 = arith.mulf %36, %33 : vector<256x32xf32>
    %38 = arith.mulf %37, %33 : vector<256x32xf32>
    %39 = arith.mulf %38, %33 : vector<256x32xf32>
    %40 = arith.addf %33, %39 : vector<256x32xf32>
    %cst_14 = arith.constant 0.797884583 : f32
    %41 = vector.broadcast %cst_14 : f32 to vector<256x32xf32>
    %42 = arith.mulf %41, %40 : vector<256x32xf32>
    %43 = math.tanh %42 : vector<256x32xf32>
    %cst_15 = arith.constant 1.000000e+00 : f32
    %44 = vector.broadcast %cst_15 : f32 to vector<256x32xf32>
    %45 = arith.addf %44, %43 : vector<256x32xf32>
    %46 = arith.mulf %35, %45 : vector<256x32xf32>
    %c0_16 = arith.constant 0 : index
    %c0_17 = arith.constant 0 : index
    %47 = vector.load %arg5[%c0_16, %c0_17] : memref<256x32xf32, #tpu.memory_space<vmem>>, vector<256x32xf32>
    tpu.vector_store %arg5[%c0_16, %c0_17], %46 {strides = array<i32>} : memref<256x32xf32, #tpu.memory_space<vmem>>, vector<256x32xf32>,
    return
  }
  func.func @transform_0(%arg0: i32) -> (i32, i32) {
    %c0_i32 = arith.constant 0 : i32
    %c0_i32_0 = arith.constant 0 : i32
    return %arg0, %c0_i32 : i32, i32
  }
  func.func @transform_1(%arg0: i32) -> (i32, i32) {
    %c0_i32 = arith.constant 0 : i32
    %c0_i32_0 = arith.constant 0 : i32
    return %arg0, %c0_i32 : i32, i32
  }
  func.func @transform_2(%arg0: i32) -> (i32, i32) {
    %c0_i32 = arith.constant 0 : i32
    %c0_i32_0 = arith.constant 0 : i32
    %c0_i32_1 = arith.constant 0 : i32
    return %c0_i32, %c0_i32_0 : i32, i32
  }
  func.func @transform_3(%arg0: i32) -> (i32, i32) {
    %c0_i32 = arith.constant 0 : i32
    %c0_i32_0 = arith.constant 0 : i32
    %c0_i32_1 = arith.constant 0 : i32
    return %c0_i32, %c0_i32_0 : i32, i32
  }
  func.func @transform_4(%arg0: i32) -> (i32, i32) {
    %c0_i32 = arith.constant 0 : i32
    %c0_i32_0 = arith.constant 0 : i32
    return %arg0, %c0_i32 : i32, i32
  }
}

module attributes {stable_mosaic.version = 11 : i64} {
  func.func @_block_tail_proj_kernel(%arg0: i32, %arg1: memref<256x32xf32, #tpu.memory_space<vmem>>, %arg2: memref<256x32xf32, #tpu.memory_space<vmem>>, %arg3: memref<32x32xbf16, #tpu.memory_space<vmem>>, %arg4: memref<3x32xf32, #tpu.memory_space<vmem>>, %arg5: memref<32x3xbf16, #tpu.memory_space<vmem>>, %arg6: memref<1x3xf32, #tpu.memory_space<vmem>>, %arg7: memref<256x3xf32, #tpu.memory_space<vmem>>) attributes {dimension_semantics = [#tpu.dimension_semantics<parallel>], iteration_bounds = array<i64: 2>, scalar_prefetch = 0 : i64, scratch_operands = 0 : i64, tpu.core_type = #tpu.core_type<tc>, window_params = [{transform_indices = @transform_0, window_bounds = array<i64: 256, 32>}, {transform_indices = @transform_1, window_bounds = array<i64: 256, 32>}, {pipeline_mode = #tpu.pipeline_mode<synchronous>, transform_indices = @transform_2, window_bounds = array<i64: 32, 32>}, {pipeline_mode = #tpu.pipeline_mode<synchronous>, transform_indices = @transform_3, window_bounds = array<i64: 3, 32>}, {pipeline_mode = #tpu.pipeline_mode<synchronous>, transform_indices = @transform_4, window_bounds = array<i64: 32, 3>}, {pipeline_mode = #tpu.pipeline_mode<synchronous>, transform_indices = @transform_5, window_bounds = array<i64: 1, 3>}, {transform_indices = @transform_6, window_bounds = array<i64: 256, 3>}]} {
    %c0 = arith.constant 0 : index
    %c0_0 = arith.constant 0 : index
    %0 = vector.load %arg1[%c0, %c0_0] : memref<256x32xf32, #tpu.memory_space<vmem>>, vector<256x32xf32>
    %1 = arith.truncf %0 : vector<256x32xf32> to vector<256x32xbf16>
    %c0_1 = arith.constant 0 : index
    %c0_2 = arith.constant 0 : index
    %2 = vector.load %arg3[%c0_1, %c0_2] : memref<32x32xbf16, #tpu.memory_space<vmem>>, vector<32x32xbf16>
    %cst = arith.constant dense<0.000000e+00> : vector<256x32xf32>
    %3 = tpu.matmul %1, %2, %cst {dimension_numbers = #tpu.dot_dimension_numbers<[1], [0], [0], [1], [0, 0, 1, 1], [], []>} : vector<256x32xbf16>, vector<32x32xbf16>, vector<256x32xf32> -> vector<256x32xf32>
    %c0_3 = arith.constant 0 : index
    %c0_4 = arith.constant 0 : index
    %4 = vector.load %arg4[%c0_3, %c0_4] : memref<3x32xf32, #tpu.memory_space<vmem>>, vector<3x32xf32>
    %c0_5 = arith.constant 0 : index
    %c0_6 = arith.constant 0 : index
    %5 = vector.load %arg2[%c0_5, %c0_6] : memref<256x32xf32, #tpu.memory_space<vmem>>, vector<256x32xf32>
    %6 = arith.addf %5, %3 : vector<256x32xf32>
    %7 = vector.extract_strided_slice %4 {offsets = [0, 0], sizes = [1, 32], strides = [1, 1]} : vector<3x32xf32> to vector<1x32xf32>
    %8 = vector.broadcast %7 : vector<1x32xf32> to vector<256x32xf32>
    %9 = arith.addf %6, %8 : vector<256x32xf32>
    %cst_7 = arith.constant dense<0.000000e+00> : vector<256xf32>
    %10 = vector.multi_reduction <add>, %9, %cst_7 [1] : vector<256x32xf32> to vector<256xf32>
    %11 = vector.shape_cast %10 : vector<256xf32> to vector<256x1xf32>
    %cst_8 = arith.constant 3.200000e+01 : f32
    %12 = vector.broadcast %cst_8 : f32 to vector<256x1xf32>
    %13 = arith.divf %11, %12 : vector<256x1xf32>
    %14 = vector.broadcast %13 : vector<256x1xf32> to vector<256x32xf32>
    %15 = arith.subf %9, %14 : vector<256x32xf32>
    %16 = arith.mulf %15, %15 : vector<256x32xf32>
    %cst_9 = arith.constant dense<0.000000e+00> : vector<256xf32>
    %17 = vector.multi_reduction <add>, %16, %cst_9 [1] : vector<256x32xf32> to vector<256xf32>
    %18 = vector.shape_cast %17 : vector<256xf32> to vector<256x1xf32>
    %cst_10 = arith.constant 3.200000e+01 : f32
    %19 = vector.broadcast %cst_10 : f32 to vector<256x1xf32>
    %20 = arith.divf %18, %19 : vector<256x1xf32>
    %21 = vector.broadcast %13 : vector<256x1xf32> to vector<256x32xf32>
    %22 = arith.subf %9, %21 : vector<256x32xf32>
    %cst_11 = arith.constant 9.99999974E-6 : f32
    %23 = vector.broadcast %cst_11 : f32 to vector<256x1xf32>
    %24 = arith.addf %20, %23 : vector<256x1xf32>
    %25 = math.rsqrt %24 : vector<256x1xf32>
    %26 = vector.broadcast %25 : vector<256x1xf32> to vector<256x32xf32>
    %27 = arith.mulf %22, %26 : vector<256x32xf32>
    %28 = vector.extract_strided_slice %4 {offsets = [1, 0], sizes = [1, 32], strides = [1, 1]} : vector<3x32xf32> to vector<1x32xf32>
    %29 = vector.broadcast %28 : vector<1x32xf32> to vector<256x32xf32>
    %30 = arith.mulf %27, %29 : vector<256x32xf32>
    %31 = vector.extract_strided_slice %4 {offsets = [2, 0], sizes = [1, 32], strides = [1, 1]} : vector<3x32xf32> to vector<1x32xf32>
    %32 = vector.broadcast %31 : vector<1x32xf32> to vector<256x32xf32>
    %33 = arith.addf %30, %32 : vector<256x32xf32>
    %cst_12 = arith.constant 5.000000e-01 : f32
    %34 = vector.broadcast %cst_12 : f32 to vector<256x32xf32>
    %35 = arith.mulf %34, %33 : vector<256x32xf32>
    %cst_13 = arith.constant 4.471500e-02 : f32
    %36 = vector.broadcast %cst_13 : f32 to vector<256x32xf32>
    %37 = arith.mulf %36, %33 : vector<256x32xf32>
    %38 = arith.mulf %37, %33 : vector<256x32xf32>
    %39 = arith.mulf %38, %33 : vector<256x32xf32>
    %40 = arith.addf %33, %39 : vector<256x32xf32>
    %cst_14 = arith.constant 0.797884583 : f32
    %41 = vector.broadcast %cst_14 : f32 to vector<256x32xf32>
    %42 = arith.mulf %41, %40 : vector<256x32xf32>
    %43 = math.tanh %42 : vector<256x32xf32>
    %cst_15 = arith.constant 1.000000e+00 : f32
    %44 = vector.broadcast %cst_15 : f32 to vector<256x32xf32>
    %45 = arith.addf %44, %43 : vector<256x32xf32>
    %46 = arith.mulf %35, %45 : vector<256x32xf32>
    %47 = arith.truncf %46 : vector<256x32xf32> to vector<256x32xbf16>
    %c0_16 = arith.constant 0 : index
    %c0_17 = arith.constant 0 : index
    %48 = vector.load %arg5[%c0_16, %c0_17] : memref<32x3xbf16, #tpu.memory_space<vmem>>, vector<32x3xbf16>
    %cst_18 = arith.constant dense<0.000000e+00> : vector<256x3xf32>
    %49 = tpu.matmul %47, %48, %cst_18 {dimension_numbers = #tpu.dot_dimension_numbers<[1], [0], [0], [1], [0, 0, 1, 1], [], []>} : vector<256x32xbf16>, vector<32x3xbf16>, vector<256x3xf32> -> vector<256x3xf32>
    %c0_19 = arith.constant 0 : index
    %c0_20 = arith.constant 0 : index
    %50 = vector.load %arg6[%c0_19, %c0_20] : memref<1x3xf32, #tpu.memory_space<vmem>>, vector<1x3xf32>
    %51 = vector.broadcast %50 : vector<1x3xf32> to vector<256x3xf32>
    %52 = arith.addf %49, %51 : vector<256x3xf32>
    %c0_21 = arith.constant 0 : index
    %c0_22 = arith.constant 0 : index
    %53 = vector.load %arg7[%c0_21, %c0_22] : memref<256x3xf32, #tpu.memory_space<vmem>>, vector<256x3xf32>
    tpu.vector_store %arg7[%c0_21, %c0_22], %52 {strides = array<i32>} : memref<256x3xf32, #tpu.memory_space<vmem>>, vector<256x3xf32>,
    return
  }
  func.func @transform_0(%arg0: i32) -> (i32, i32) {
    %c0_i32 = arith.constant 0 : i32
    %c0_i32_0 = arith.constant 0 : i32
    return %arg0, %c0_i32 : i32, i32
  }
  func.func @transform_1(%arg0: i32) -> (i32, i32) {
    %c0_i32 = arith.constant 0 : i32
    %c0_i32_0 = arith.constant 0 : i32
    return %arg0, %c0_i32 : i32, i32
  }
  func.func @transform_2(%arg0: i32) -> (i32, i32) {
    %c0_i32 = arith.constant 0 : i32
    %c0_i32_0 = arith.constant 0 : i32
    %c0_i32_1 = arith.constant 0 : i32
    return %c0_i32, %c0_i32_0 : i32, i32
  }
  func.func @transform_3(%arg0: i32) -> (i32, i32) {
    %c0_i32 = arith.constant 0 : i32
    %c0_i32_0 = arith.constant 0 : i32
    %c0_i32_1 = arith.constant 0 : i32
    return %c0_i32, %c0_i32_0 : i32, i32
  }
  func.func @transform_4(%arg0: i32) -> (i32, i32) {
    %c0_i32 = arith.constant 0 : i32
    %c0_i32_0 = arith.constant 0 : i32
    %c0_i32_1 = arith.constant 0 : i32
    return %c0_i32, %c0_i32_0 : i32, i32
  }
  func.func @transform_5(%arg0: i32) -> (i32, i32) {
    %c0_i32 = arith.constant 0 : i32
    %c0_i32_0 = arith.constant 0 : i32
    %c0_i32_1 = arith.constant 0 : i32
    return %c0_i32, %c0_i32_0 : i32, i32
  }
  func.func @transform_6(%arg0: i32) -> (i32, i32) {
    %c0_i32 = arith.constant 0 : i32
    %c0_i32_0 = arith.constant 0 : i32
    return %arg0, %c0_i32 : i32, i32
  }
}

</mosaic_0001>

<bundles_post_ra>
// kernel: fno_forward.5
= control target key start
LH: loop header
LB: loop body
LE: loop exit
PB: predicated region body
PF: predicated region fallthrough
CT: control target
= control target key end

     0   :  { %8 = vsyncpa [#allocation3], 0  ;;  %s875_s0 = inlined_call_operand.vmem [shape: f32[512,6], index: 0, kind: input, shape index: {}]   ;;  %s876_s1 = inlined_call_operand.hbm [shape: bf16[6,32], index: 1, kind: input, shape index: {}]   ;;  %s877_s2 = inlined_call_operand.hbm [shape: f32[1,32], index: 2, kind: input, shape index: {}]   ;;  %s878_s3 = inlined_call_operand.vmem [shape: f32[512,32], index: 3, kind: output, shape index: {}]  }
   0x1   :  { %9 = vsyncpa [#allocation5], 0  ;;  %s673_s12 = smov 0  }
   0x2 LB: > { %s126_s15 = sshll.u32 %s876_s1, 4  ;;  %s511_s16 = sadd.s32 4294967295, %s649_s12   ;;  %s649_s12 = sphi %s673_s12, %s15_s12   ;;  %s127_s15 = int_to_ptr.hbm [resolvable:$true] %s126_s15 }
   0x3   : > { %p513_p0 = scmp.ge.s32.totalorder %s649_s12, 1  ;;  %p114_p1 = scmp.lt.s32.totalorder %s649_s12, 3 }
   0x4   : > { %p684_p2 = scmp.eq.s32.totalorder %s511_s16, 0  ;;  %s651_s19 = smov [#allocation2]  }
   0x5   : > { %p688_p3 = pnand %p513_p0, %p114_p1  ;;  %s128_s20 = sshll.u32 %s651_s19, 4  ;;  %s129_s20 = int_to_ptr.vmem [resolvable:$true] %s128_s20 }
   0x6   : > { %s138_s23 = sshll.u32 %s877_s2, 4  ;;  %s652_s24 = smov [#allocation4]   ;;  %s139_s23 = int_to_ptr.hbm [resolvable:$true] %s138_s23 }
   0x7   : > { %p553_p4 = pneg %p688_p3  ;;  %s140_s25 = sshll.u32 %s652_s24, 4  ;;  %s141_s25 = int_to_ptr.vmem [resolvable:$true] %s140_s25 }
   0x8   : > { %162 = sbr.rel (%p688_p3) target bundleno = 219 (0xdb), region = 32 }
   0x9   : > { %p554_p5 = pnand %p684_p2, %p553_p4 }
   0xb   : > { %556 = dma.hbm_to_vmem [thread:$0]  (!%p554_p5), %s127_s15, 64, %s129_s20, [#allocation3]  }
   0xc   : > { %559 = dma.hbm_to_vmem [thread:$0]  (!%p554_p5), %s139_s23, 16, %s141_s25, [#allocation5]  }
   0xd   : > { %640 = dma.done.wait (%p684_p2), [#allocation3], 64  }
   0xe   : > { %642 = vsyncadd (%p684_p2), [#allocation3], 4294967232 }
   0xf   : > { %644 = dma.done.wait (%p684_p2), [#allocation5], 16  }
  0x10   : > { %646 = vsyncadd (%p684_p2), [#allocation5], 4294967280  ;;  %s520_s26 = sshll.u32 %s511_s16, 5  ;;  %vm307_vm0 = vcmask 1042432   ;;  %v253_v0 = vld [vmem:[#allocation2] sm:$0x7] }
  0x11   : > { %p193_p6 = scmp.lt.s32.totalorder %s520_s26, 63  ;;  %v309_v3 = vsel %vm307_vm0, %v253_v0, 0  ;;  %vm258_vm1 = vcmask 48128   ;;  %v767_v50 = vld [vmem:[#allocation4] ss:$0 sm:$0xff]  ;;  %vm400_vm2 = vcmask 261120  }
  0x12   : > { %318 = vmatpush.bf16.msra.mxu0 %v309_v3  ;;  %542 = vmatpush.bf16.msra.mxu1 %v309_v3 }
  0x13   : > { %s882_s26 = smov (!%p193_p6, %s520_s26), 63  ;;  %543 = vmatpush.bf16.msra.mxu2 %v309_v3  ;;  %544 = vmatpush.bf16.msra.mxu3 %v309_v3 }
  0x14   : > { %s521_s27 = sshll.u32 %s882_s26, 3 }
  0x15   : > { %s717_s30 = scalar_lea.vmem %s875_s0, %s521_s27  ;;  %s774_s6 = scalar_lea.vmem %s878_s3, %s521_s27 }
  0x16   : > { %v205_v1 = vld [vmem:[%s717_s30] sm:$0xff]  ;;  %v206_v2 = vld [vmem:[%s717_s30 + $0x8] sm:$0xff]  ;;  %v207_v14 = vld [vmem:[%s717_s30 + $0x10] sm:$0xff] }
  0x17   : > { %v237_v4 = vpack.c.bf16 %v206_v2, %v205_v1  ;;  %v213_v5 = vld [vmem:[%s717_s30 + $0x40] sm:$0xff]  ;;  %v214_v6 = vld [vmem:[%s717_s30 + $0x48] sm:$0xff]  ;;  %v208_v15 = vld [vmem:[%s717_s30 + $0x18] sm:$0xff] }
  0x18   : > { %v221_v7 = vld [vmem:[%s717_s30 + $0x80] sm:$0xff]  ;;  %v241_v8 = vpack.c.bf16 %v214_v6, %v213_v5  ;;  %v222_v9 = vld [vmem:[%s717_s30 + $0x88] sm:$0xff]  ;;  %v215_v16 = vld [vmem:[%s717_s30 + $0x50] sm:$0xff]  ;;  %v238_v22 = vpack.c.bf16 %v208_v15, %v207_v14 }
  0x19   : > { %v229_v10 = vld [vmem:[%s717_s30 + $0xc0] sm:$0xff]  ;;  %v230_v11 = vld [vmem:[%s717_s30 + $0xc8] sm:$0xff]  ;;  %v245_v12 = vpack.c.bf16 %v222_v9, %v221_v7  ;;  %524 = vmatmul.msk.bf16.vlgmr.msra.gmra.mxu0 %vm258_vm1, %v237_v4  ;;  %v216_v17 = vld [vmem:[%s717_s30 + $0x58] sm:$0xff] }
  0x1a   : > { %v249_v13 = vpack.c.bf16 %v230_v11, %v229_v10  ;;  %528 = vmatmul.msk.bf16.vlgmr.msra.gmra.mxu1 %vm258_vm1, %v241_v8  ;;  %v223_v18 = vld [vmem:[%s717_s30 + $0x90] sm:$0xff]  ;;  %v224_v19 = vld [vmem:[%s717_s30 + $0x98] sm:$0xff]  ;;  %v242_v23 = vpack.c.bf16 %v216_v17, %v215_v16  ;;  %v209_v26 = vld [vmem:[%s717_s30 + $0x20] sm:$0xff] }
  0x1b   : > { %532 = vmatmul.msk.bf16.vlgmr.msra.gmra.mxu2 %vm258_vm1, %v245_v12  ;;  %v231_v20 = vld [vmem:[%s717_s30 + $0xd0] sm:$0xff]  ;;  %v232_v21 = vld [vmem:[%s717_s30 + $0xd8] sm:$0xff]  ;;  %v246_v24 = vpack.c.bf16 %v224_v19, %v223_v18  ;;  %v210_v27 = vld [vmem:[%s717_s30 + $0x28] sm:$0xff] }
  0x1c   : > { %536 = vmatmul.msk.bf16.vlgmr.msra.gmra.mxu3 %vm258_vm1, %v249_v13  ;;  %v250_v25 = vpack.c.bf16 %v232_v21, %v231_v20  ;;  %v217_v28 = vld [vmem:[%s717_s30 + $0x60] sm:$0xff]  ;;  %v218_v29 = vld [vmem:[%s717_s30 + $0x68] sm:$0xff]  ;;  %v239_v34 = vpack.c.bf16 %v210_v27, %v209_v26  ;;  %v211_v38 = vld [vmem:[%s717_s30 + $0x30] sm:$0xff] }
  0x1d   : > { %v225_v30 = vld [vmem:[%s717_s30 + $0xa0] sm:$0xff]  ;;  %v226_v31 = vld [vmem:[%s717_s30 + $0xa8] sm:$0xff]  ;;  %v243_v35 = vpack.c.bf16 %v218_v29, %v217_v28  ;;  %v212_v39 = vld [vmem:[%s717_s30 + $0x38] sm:$0xff] }
  0x1e   : > { %v233_v32 = vld [vmem:[%s717_s30 + $0xe0] sm:$0xff]  ;;  %v234_v33 = vld [vmem:[%s717_s30 + $0xe8] sm:$0xff]  ;;  %v247_v36 = vpack.c.bf16 %v226_v31, %v225_v30  ;;  %v219_v40 = vld [vmem:[%s717_s30 + $0x70] sm:$0xff]  ;;  %v240_v46 = vpack.c.bf16 %v212_v39, %v211_v38 }
  0x1f   : > { %v251_v37 = vpack.c.bf16 %v234_v33, %v233_v32  ;;  %v220_v41 = vld [vmem:[%s717_s30 + $0x78] sm:$0xff]  ;;  %v227_v42 = vld [vmem:[%s717_s30 + $0xb0] sm:$0xff] }
  0x20   : > { %v228_v43 = vld [vmem:[%s717_s30 + $0xb8] sm:$0xff]  ;;  %v235_v44 = vld [vmem:[%s717_s30 + $0xf0] sm:$0xff]  ;;  %v244_v47 = vpack.c.bf16 %v220_v41, %v219_v40 }
  0x21   : > { %v236_v45 = vld [vmem:[%s717_s30 + $0xf8] sm:$0xff]  ;;  %v248_v48 = vpack.c.bf16 %v228_v43, %v227_v42 }
  0x22   : > { %v252_v49 = vpack.c.bf16 %v236_v45, %v235_v44 }
  0x29   : > { %525 = vmatmul.msk.bf16.gmra.mxu0 %vm258_vm1, %v238_v22 }
  0x2a   : > { %529 = vmatmul.msk.bf16.gmra.mxu1 %vm258_vm1, %v242_v23 }
  0x2b   : > { %533 = vmatmul.msk.bf16.gmra.mxu2 %vm258_vm1, %v246_v24 }
  0x2c   : > { %537 = vmatmul.msk.bf16.gmra.mxu3 %vm258_vm1, %v250_v25 }
  0x39   : > { %526 = vmatmul.msk.bf16.gmra.mxu0 %vm258_vm1, %v239_v34 }
  0x3a   : > { %530 = vmatmul.msk.bf16.gmra.mxu1 %vm258_vm1, %v243_v35 }
  0x3b   : > { %534 = vmatmul.msk.bf16.gmra.mxu2 %vm258_vm1, %v247_v36 }
  0x3c   : > { %538 = vmatmul.msk.bf16.gmra.mxu3 %vm258_vm1, %v251_v37 }
  0x49   : > { %527 = vmatmul.msk.bf16.gmra.mxu0 %vm258_vm1, %v240_v46 }
  0x4a   : > { %531 = vmatmul.msk.bf16.gmra.mxu1 %vm258_vm1, %v244_v47 }
  0x4b   : > { %535 = vmatmul.msk.bf16.gmra.mxu2 %vm258_vm1, %v248_v48 }
  0x4c   : > { %539 = vmatmul.msk.bf16.gmra.mxu3 %vm258_vm1, %v252_v49 }
  0x96   : > { %v320_v51 = vpop.f32.mrf.mxu0 }
  0x97   : > { %v340_v52 = vpop.f32.mrf.mxu1  ;;  %v321_v53 = vadd.f32 %v767_v50, %v320_v51 }
  0x98   : > { %v341_v54 = vadd.f32 %v767_v50, %v340_v52 }
  0x99   : > { %401 = vst.msk [vmem:[%s774_s6] sm:$0xff] %vm400_vm2, %v321_v53 }
  0x9a   : > { %409 = vst.msk [vmem:[%s774_s6 + $0x40] sm:$0xff] %vm400_vm2, %v341_v54 }
  0x9e   : > { %v360_v55 = vpop.f32.mrf.mxu2  ;;  %v322_v59 = vpop.f32.mrf.mxu0 }
  0x9f   : > { %v380_v56 = vpop.f32.mrf.mxu3  ;;  %v361_v57 = vadd.f32 %v767_v50, %v360_v55  ;;  %v342_v60 = vpop.f32.mrf.mxu1  ;;  %v323_v61 = vadd.f32 %v767_v50, %v322_v59 }
  0xa0   : > { %v381_v58 = vadd.f32 %v767_v50, %v380_v56  ;;  %v343_v62 = vadd.f32 %v767_v50, %v342_v60 }
  0xa1   : > { %417 = vst.msk [vmem:[%s774_s6 + $0x80] sm:$0xff] %vm400_vm2, %v361_v57 }
  0xa2   : > { %425 = vst.msk [vmem:[%s774_s6 + $0xc0] sm:$0xff] %vm400_vm2, %v381_v58 }
  0xa3   : > { %402 = vst.msk [vmem:[%s774_s6 + $0x8] sm:$0xff] %vm400_vm2, %v323_v61 }
  0xa4   : > { %410 = vst.msk [vmem:[%s774_s6 + $0x48] sm:$0xff] %vm400_vm2, %v343_v62 }
  0xa6   : > { %v362_v63 = vpop.f32.mrf.mxu2  ;;  %v325_v3 = vpop.f32.mrf.mxu0 }
  0xa7   : > { %v382_v0 = vpop.f32.mrf.mxu3  ;;  %v363_v1 = vadd.f32 %v767_v50, %v362_v63  ;;  %v345_v4 = vpop.f32.mrf.mxu1  ;;  %v326_v5 = vadd.f32 %v767_v50, %v325_v3 }
  0xa8   : > { %v383_v2 = vadd.f32 %v767_v50, %v382_v0  ;;  %v346_v6 = vadd.f32 %v767_v50, %v345_v4 }
  0xa9   : > { %418 = vst.msk [vmem:[%s774_s6 + $0x88] sm:$0xff] %vm400_vm2, %v363_v1 }
  0xaa   : > { %426 = vst.msk [vmem:[%s774_s6 + $0xc8] sm:$0xff] %vm400_vm2, %v383_v2 }
  0xab   : > { %403 = vst.msk [vmem:[%s774_s6 + $0x10] sm:$0xff] %vm400_vm2, %v326_v5 }
  0xac   : > { %411 = vst.msk [vmem:[%s774_s6 + $0x50] sm:$0xff] %vm400_vm2, %v346_v6 }
  0xae   : > { %v365_v7 = vpop.f32.mrf.mxu2  ;;  %v327_v11 = vpop.f32.mrf.mxu0 }
  0xaf   : > { %v385_v8 = vpop.f32.mrf.mxu3  ;;  %v366_v9 = vadd.f32 %v767_v50, %v365_v7  ;;  %v347_v12 = vpop.f32.mrf.mxu1  ;;  %v328_v13 = vadd.f32 %v767_v50, %v327_v11 }
  0xb0   : > { %v386_v10 = vadd.f32 %v767_v50, %v385_v8  ;;  %v348_v14 = vadd.f32 %v767_v50, %v347_v12 }
  0xb1   : > { %419 = vst.msk [vmem:[%s774_s6 + $0x90] sm:$0xff] %vm400_vm2, %v366_v9 }
  0xb2   : > { %427 = vst.msk [vmem:[%s774_s6 + $0xd0] sm:$0xff] %vm400_vm2, %v386_v10 }
  0xb3   : > { %404 = vst.msk [vmem:[%s774_s6 + $0x18] sm:$0xff] %vm400_vm2, %v328_v13 }
  0xb4   : > { %412 = vst.msk [vmem:[%s774_s6 + $0x58] sm:$0xff] %vm400_vm2, %v348_v14 }
  0xb6   : > { %v367_v15 = vpop.f32.mrf.mxu2  ;;  %v330_v19 = vpop.f32.mrf.mxu0 }
  0xb7   : > { %v387_v16 = vpop.f32.mrf.mxu3  ;;  %v368_v17 = vadd.f32 %v767_v50, %v367_v15  ;;  %v350_v20 = vpop.f32.mrf.mxu1  ;;  %v331_v21 = vadd.f32 %v767_v50, %v330_v19 }
  0xb8   : > { %v388_v18 = vadd.f32 %v767_v50, %v387_v16  ;;  %v351_v22 = vadd.f32 %v767_v50, %v350_v20 }
  0xb9   : > { %420 = vst.msk [vmem:[%s774_s6 + $0x98] sm:$0xff] %vm400_vm2, %v368_v17 }
  0xba   : > { %428 = vst.msk [vmem:[%s774_s6 + $0xd8] sm:$0xff] %vm400_vm2, %v388_v18 }
  0xbb   : > { %405 = vst.msk [vmem:[%s774_s6 + $0x20] sm:$0xff] %vm400_vm2, %v331_v21 }
  0xbc   : > { %413 = vst.msk [vmem:[%s774_s6 + $0x60] sm:$0xff] %vm400_vm2, %v351_v22 }
  0xbe   : > { %v370_v23 = vpop.f32.mrf.mxu2  ;;  %v332_v27 = vpop.f32.mrf.mxu0 }
  0xbf   : > { %v390_v24 = vpop.f32.mrf.mxu3  ;;  %v371_v25 = vadd.f32 %v767_v50, %v370_v23  ;;  %v352_v28 = vpop.f32.mrf.mxu1  ;;  %v333_v29 = vadd.f32 %v767_v50, %v332_v27 }
  0xc0   : > { %v391_v26 = vadd.f32 %v767_v50, %v390_v24  ;;  %v353_v30 = vadd.f32 %v767_v50, %v352_v28 }
  0xc1   : > { %421 = vst.msk [vmem:[%s774_s6 + $0xa0] sm:$0xff] %vm400_vm2, %v371_v25 }
  0xc2   : > { %429 = vst.msk [vmem:[%s774_s6 + $0xe0] sm:$0xff] %vm400_vm2, %v391_v26 }
  0xc3   : > { %406 = vst.msk [vmem:[%s774_s6 + $0x28] sm:$0xff] %vm400_vm2, %v333_v29 }
  0xc4   : > { %414 = vst.msk [vmem:[%s774_s6 + $0x68] sm:$0xff] %vm400_vm2, %v353_v30 }
  0xc6   : > { %v372_v31 = vpop.f32.mrf.mxu2  ;;  %v335_v35 = vpop.f32.mrf.mxu0 }
  0xc7   : > { %v392_v32 = vpop.f32.mrf.mxu3  ;;  %v373_v33 = vadd.f32 %v767_v50, %v372_v31  ;;  %v355_v36 = vpop.f32.mrf.mxu1  ;;  %v336_v37 = vadd.f32 %v767_v50, %v335_v35 }
  0xc8   : > { %v393_v34 = vadd.f32 %v767_v50, %v392_v32  ;;  %v356_v38 = vadd.f32 %v767_v50, %v355_v36 }
  0xc9   : > { %422 = vst.msk [vmem:[%s774_s6 + $0xa8] sm:$0xff] %vm400_vm2, %v373_v33 }
  0xca   : > { %430 = vst.msk [vmem:[%s774_s6 + $0xe8] sm:$0xff] %vm400_vm2, %v393_v34 }
  0xcb   : > { %407 = vst.msk [vmem:[%s774_s6 + $0x30] sm:$0xff] %vm400_vm2, %v336_v37 }
  0xcc   : > { %415 = vst.msk [vmem:[%s774_s6 + $0x70] sm:$0xff] %vm400_vm2, %v356_v38 }
  0xce   : > { %v375_v39 = vpop.f32.mrf.mxu2  ;;  %v337_v43 = vpop.f32.mrf.mxu0 }
  0xcf   : > { %v395_v40 = vpop.f32.mrf.mxu3  ;;  %v376_v41 = vadd.f32 %v767_v50, %v375_v39  ;;  %v357_v44 = vpop.f32.mrf.mxu1  ;;  %v338_v45 = vadd.f32 %v767_v50, %v337_v43 }
  0xd0   : > { %v396_v42 = vadd.f32 %v767_v50, %v395_v40  ;;  %v358_v46 = vadd.f32 %v767_v50, %v357_v44 }
  0xd1   : > { %423 = vst.msk [vmem:[%s774_s6 + $0xb0] sm:$0xff] %vm400_vm2, %v376_v41 }
  0xd2   : > { %431 = vst.msk [vmem:[%s774_s6 + $0xf0] sm:$0xff] %vm400_vm2, %v396_v42 }
  0xd3   : > { %408 = vst.msk [vmem:[%s774_s6 + $0x38] sm:$0xff] %vm400_vm2, %v338_v45 }
  0xd4   : > { %416 = vst.msk [vmem:[%s774_s6 + $0x78] sm:$0xff] %vm400_vm2, %v358_v46 }
  0xd6   : > { %v377_v47 = vpop.f32.mrf.mxu2 }
  0xd7   : > { %v397_v48 = vpop.f32.mrf.mxu3  ;;  %v378_v49 = vadd.f32 %v767_v50, %v377_v47 }
  0xd8   : > { %v398_v51 = vadd.f32 %v767_v50, %v397_v48 }
  0xd9   : > { %424 = vst.msk [vmem:[%s774_s6 + $0xb8] sm:$0xff] %vm400_vm2, %v378_v49 }
  0xda   : > { %432 = vst.msk [vmem:[%s774_s6 + $0xf8] sm:$0xff] %vm400_vm2, %v398_v51 }
  0xdb PF: > { %s15_s12 = sadd.s32 1, %s649_s12  }
  0xdc   : > { %p12_p7 = scmp.ge.s32.totalorder %s15_s12, 4  }
  0xde   :  { %14 = sbr.rel (!%p12_p7) target bundleno = 2 (0x2), region = 71 }
  0xe3   :  { %455 = vsyncpa [#allocation3], 1 }
  0xe4   :  { %457 = vsyncpa [#allocation3 + $0x1], 1 }
  0xe5   :  { %458 = vsyncpa [#allocation5], 1 }

// kernel: reverse.4
= control target key start
LH: loop header
LB: loop body
LE: loop exit
PB: predicated region body
PF: predicated region fallthrough
CT: control target
= control target key end

     0   :  { %s344_s0 = inlined_call_operand.vmem [shape: f32[2,32,16,7], index: 0, kind: input, shape index: {}]   ;;  %s345_s1 = inlined_call_operand.vmem [shape: f32[2,32,16,7], index: 1, kind: output, shape index: {}]  }
   0x1   :  { %v112_v0 = vld [vmem:[%s344_s0 + $0x60] sm:$0xff]  ;;  %v113_v1 = vld [vmem:[%s344_s0 + $0xd0] sm:$0xff]  ;;  %v138_v14 = vld [vmem:[%s344_s0 + $0x68] sm:$0xff] }
   0x2   :  { %v115_v2 = vld [vmem:[%s344_s0 + $0x50] sm:$0xff]  ;;  %4 = vst [vmem:[%s345_s1] sm:$0xff] %v112_v0  ;;  %v117_v3 = vld [vmem:[%s344_s0 + $0xc0] sm:$0xff]  ;;  %v140_v15 = vld [vmem:[%s344_s0 + $0xd8] sm:$0xff] }
   0x3   :  { %114 = vst [vmem:[%s345_s1 + $0x70] sm:$0xff] %v113_v1  ;;  %v119_v4 = vld [vmem:[%s344_s0 + $0x40] sm:$0xff]  ;;  %v121_v5 = vld [vmem:[%s344_s0 + $0xb0] sm:$0xff]  ;;  %v142_v16 = vld [vmem:[%s344_s0 + $0x58] sm:$0xff] }
   0x4   :  { %116 = vst [vmem:[%s345_s1 + $0x10] sm:$0xff] %v115_v2  ;;  %v123_v6 = vld [vmem:[%s344_s0 + $0x30] sm:$0xff]  ;;  %v125_v7 = vld [vmem:[%s344_s0 + $0xa0] sm:$0xff]  ;;  %v144_v17 = vld [vmem:[%s344_s0 + $0xc8] sm:$0xff] }
   0x5   :  { %118 = vst [vmem:[%s345_s1 + $0x80] sm:$0xff] %v117_v3  ;;  %v127_v8 = vld [vmem:[%s344_s0 + $0x20] sm:$0xff]  ;;  %v129_v9 = vld [vmem:[%s344_s0 + $0x90] sm:$0xff]  ;;  %v146_v18 = vld [vmem:[%s344_s0 + $0x48] sm:$0xff] }
   0x6   :  { %120 = vst [vmem:[%s345_s1 + $0x20] sm:$0xff] %v119_v4  ;;  %v131_v10 = vld [vmem:[%s344_s0 + $0x10] sm:$0xff]  ;;  %v133_v11 = vld [vmem:[%s344_s0 + $0x80] sm:$0xff]  ;;  %v148_v19 = vld [vmem:[%s344_s0 + $0xb8] sm:$0xff] }
   0x7   :  { %122 = vst [vmem:[%s345_s1 + $0x90] sm:$0xff] %v121_v5  ;;  %v49_v12 = vld [vmem:[%s344_s0] sm:$0xff]  ;;  %v136_v13 = vld [vmem:[%s344_s0 + $0x70] sm:$0xff]  ;;  %v150_v20 = vld [vmem:[%s344_s0 + $0x38] sm:$0xff] }
   0x8   :  { %124 = vst [vmem:[%s345_s1 + $0x30] sm:$0xff] %v123_v6  ;;  %v152_v21 = vld [vmem:[%s344_s0 + $0xa8] sm:$0xff]  ;;  %v156_v23 = vld [vmem:[%s344_s0 + $0x98] sm:$0xff] }
   0x9   :  { %126 = vst [vmem:[%s345_s1 + $0xa0] sm:$0xff] %v125_v7  ;;  %v154_v22 = vld [vmem:[%s344_s0 + $0x28] sm:$0xff]  ;;  %v158_v24 = vld [vmem:[%s344_s0 + $0x18] sm:$0xff] }
   0xa   :  { %128 = vst [vmem:[%s345_s1 + $0x40] sm:$0xff] %v127_v8  ;;  %v160_v25 = vld [vmem:[%s344_s0 + $0x88] sm:$0xff]  ;;  %v164_v27 = vld [vmem:[%s344_s0 + $0x78] sm:$0xff] }
   0xb   :  { %130 = vst [vmem:[%s345_s1 + $0xb0] sm:$0xff] %v129_v9  ;;  %v162_v26 = vld [vmem:[%s344_s0 + $0x8] sm:$0xff] }
   0xc   :  { %132 = vst [vmem:[%s345_s1 + $0x50] sm:$0xff] %v131_v10 }
   0xd   :  { %134 = vst [vmem:[%s345_s1 + $0xc0] sm:$0xff] %v133_v11 }
   0xe   :  { %135 = vst [vmem:[%s345_s1 + $0x60] sm:$0xff] %v49_v12 }
   0xf   :  { %137 = vst [vmem:[%s345_s1 + $0xd0] sm:$0xff] %v136_v13 }
  0x10   :  { %139 = vst [vmem:[%s345_s1 + $0x8] sm:$0xff] %v138_v14 }
  0x11   :  { %141 = vst [vmem:[%s345_s1 + $0x78] sm:$0xff] %v140_v15 }
  0x12   :  { %143 = vst [vmem:[%s345_s1 + $0x18] sm:$0xff] %v142_v16 }
  0x13   :  { %145 = vst [vmem:[%s345_s1 + $0x88] sm:$0xff] %v144_v17 }
  0x14   :  { %147 = vst [vmem:[%s345_s1 + $0x28] sm:$0xff] %v146_v18 }
  0x15   :  { %149 = vst [vmem:[%s345_s1 + $0x98] sm:$0xff] %v148_v19 }
  0x16   :  { %151 = vst [vmem:[%s345_s1 + $0x38] sm:$0xff] %v150_v20 }
  0x17   :  { %153 = vst [vmem:[%s345_s1 + $0xa8] sm:$0xff] %v152_v21 }
  0x18   :  { %155 = vst [vmem:[%s345_s1 + $0x48] sm:$0xff] %v154_v22 }
  0x19   :  { %157 = vst [vmem:[%s345_s1 + $0xb8] sm:$0xff] %v156_v23 }
  0x1a   :  { %159 = vst [vmem:[%s345_s1 + $0x58] sm:$0xff] %v158_v24 }
  0x1b   :  { %161 = vst [vmem:[%s345_s1 + $0xc8] sm:$0xff] %v160_v25 }
  0x1c   :  { %163 = vst [vmem:[%s345_s1 + $0x68] sm:$0xff] %v162_v26 }
  0x1d   :  { %165 = vst [vmem:[%s345_s1 + $0xd8] sm:$0xff] %v164_v27 }

// kernel: fno_forward.6
= control target key start
LH: loop header
LB: loop body
LE: loop exit
PB: predicated region body
PF: predicated region fallthrough
CT: control target
= control target key end

     0   :  { %vm1316_vm0 = vcmask 523264   ;;  %vm6413_vm1 = vcmask 517120   ;;  %s11809_s1 = inlined_call_operand.vmem [shape: bf16[128,64,64], index: 1, kind: input, shape index: {}]   ;;  %s11810_s0 = inlined_call_operand.vmem [shape: f32[128,2,64], index: 0, kind: input, shape index: {}]   ;;  %s11811_s2 = inlined_call_operand.vmem [shape: f32[128,2,64], index: 2, kind: output, shape index: {}]  }
   0x1   :  { %v8725_v0 = vld [vmem:[%s11809_s1 + $0x18] sm:$0xff]  ;;  %v8724_v4 = vld [vmem:[%s11809_s1 + $0x10] sm:$0xff]  ;;  %v8723_v8 = vld [vmem:[%s11809_s1 + $0x8] sm:$0xff] }
   0x2   :  { %v8729_v1 = vld [vmem:[%s11809_s1 + $0x38] sm:$0xff]  ;;  %1324 = vmatpush.bf16.msra.mxu0 %v8725_v0  ;;  %v8728_v5 = vld [vmem:[%s11809_s1 + $0x30] sm:$0xff]  ;;  %v8727_v9 = vld [vmem:[%s11809_s1 + $0x28] sm:$0xff] }
   0x3   :  { %v8733_v2 = vld [vmem:[%s11809_s1 + $0x58] sm:$0xff]  ;;  %1364 = vmatpush.bf16.msra.mxu1 %v8729_v1  ;;  %v8732_v6 = vld [vmem:[%s11809_s1 + $0x50] sm:$0xff]  ;;  %v8731_v10 = vld [vmem:[%s11809_s1 + $0x48] sm:$0xff] }
   0x4   :  { %v8737_v3 = vld [vmem:[%s11809_s1 + $0x78] sm:$0xff]  ;;  %1404 = vmatpush.bf16.msra.mxu2 %v8733_v2  ;;  %v8736_v7 = vld [vmem:[%s11809_s1 + $0x70] sm:$0xff]  ;;  %v8735_v11 = vld [vmem:[%s11809_s1 + $0x68] sm:$0xff] }
   0x5   :  { %1444 = vmatpush.bf16.msra.mxu3 %v8737_v3  ;;  %v8722_v12 = vld [vmem:[%s11809_s1] sm:$0xff]  ;;  %v8749_v20 = vld [vmem:[%s11809_s1 + $0xd8] sm:$0xff]  ;;  %v8748_v28 = vld [vmem:[%s11809_s1 + $0xd0] sm:$0xff] }
   0x6   :  { %1325 = vmatpush.bf16.msra.mxu0 %v8724_v4  ;;  %v8726_v13 = vld [vmem:[%s11809_s1 + $0x20] sm:$0xff]  ;;  %v8753_v21 = vld [vmem:[%s11809_s1 + $0xf8] sm:$0xff]  ;;  %v8752_v29 = vld [vmem:[%s11809_s1 + $0xf0] sm:$0xff] }
   0x7   :  { %1365 = vmatpush.bf16.msra.mxu1 %v8728_v5  ;;  %v8730_v14 = vld [vmem:[%s11809_s1 + $0x40] sm:$0xff]  ;;  %v8741_v26 = vld [vmem:[%s11809_s1 + $0x98] sm:$0xff]  ;;  %v8740_v30 = vld [vmem:[%s11809_s1 + $0x90] sm:$0xff] }
   0x8   :  { %1405 = vmatpush.bf16.msra.mxu2 %v8732_v6  ;;  %v12_v15 = vld [vmem:[%s11810_s0] sm:$0x3]  ;;  %v13_v16 = vld [vmem:[%s11810_s0 + $0x2] sm:$0x3]  ;;  %v14_v18 = vld [vmem:[%s11810_s0 + $0x4] sm:$0x3] }
   0x9   :  { %1445 = vmatpush.bf16.msra.mxu3 %v8736_v7  ;;  %v8734_v17 = vld [vmem:[%s11809_s1 + $0x60] sm:$0xff]  ;;  %v140_v22 = vpack.c.bf16 %v12_v15, %v12_v15  ;;  %v141_v23 = vpack.c.bf16 %v13_v16, %v13_v16  ;;  %v142_v24 = vpack.c.bf16 %v14_v18, %v14_v18  ;;  %v8745_v27 = vld [vmem:[%s11809_s1 + $0xb8] sm:$0xff]  ;;  %v8744_v31 = vld [vmem:[%s11809_s1 + $0xb0] sm:$0xff] }
   0xa   :  { %1326 = vmatpush.bf16.msra.mxu0 %v8723_v8  ;;  %v15_v19 = vld [vmem:[%s11810_s0 + $0x6] sm:$0x3]  ;;  %v8747_v32 = vld [vmem:[%s11809_s1 + $0xc8] sm:$0xff]  ;;  %v8765_v38 = vld [vmem:[%s11809_s1 + $0x158] sm:$0xff] }
   0xb   :  { %1366 = vmatpush.bf16.msra.mxu1 %v8727_v9  ;;  %v143_v25 = vpack.c.bf16 %v15_v19, %v15_v19  ;;  %v8751_v33 = vld [vmem:[%s11809_s1 + $0xe8] sm:$0xff]  ;;  %v8746_v36 = vld [vmem:[%s11809_s1 + $0xc0] sm:$0xff]  ;;  %v8769_v39 = vld [vmem:[%s11809_s1 + $0x178] sm:$0xff] }
   0xc   :  { %1406 = vmatpush.bf16.msra.mxu2 %v8731_v10  ;;  %v8739_v34 = vld [vmem:[%s11809_s1 + $0x88] sm:$0xff]  ;;  %v8750_v37 = vld [vmem:[%s11809_s1 + $0xe0] sm:$0xff]  ;;  %v8757_v46 = vld [vmem:[%s11809_s1 + $0x118] sm:$0xff] }
   0xd   :  { %1446 = vmatpush.bf16.msra.mxu3 %v8735_v11  ;;  %v8743_v35 = vld [vmem:[%s11809_s1 + $0xa8] sm:$0xff]  ;;  %v8738_v40 = vld [vmem:[%s11809_s1 + $0x80] sm:$0xff]  ;;  %v8761_v47 = vld [vmem:[%s11809_s1 + $0x138] sm:$0xff] }
   0xe   :  { %1327 = vmatpush.bf16.msra.mxu0 %v8722_v12  ;;  %v8742_v41 = vld [vmem:[%s11809_s1 + $0xa0] sm:$0xff]  ;;  %v16_v42 = vld [vmem:[%s11810_s0 + $0x8] sm:$0x3]  ;;  %v17_v43 = vld [vmem:[%s11810_s0 + $0xa] sm:$0x3] }
   0xf   :  { %1367 = vmatpush.bf16.msra.mxu1 %v8726_v13  ;;  %v18_v44 = vld [vmem:[%s11810_s0 + $0xc] sm:$0x3]  ;;  %v19_v45 = vld [vmem:[%s11810_s0 + $0xe] sm:$0x3]  ;;  %v8764_v48 = vld [vmem:[%s11809_s1 + $0x150] sm:$0xff]  ;;  %v144_v50 = vpack.c.bf16 %v16_v42, %v16_v42  ;;  %v145_v51 = vpack.c.bf16 %v17_v43, %v17_v43 }
  0x10   :  { %1407 = vmatpush.bf16.msra.mxu2 %v8730_v14  ;;  %v8768_v49 = vld [vmem:[%s11809_s1 + $0x170] sm:$0xff]  ;;  %v146_v52 = vpack.c.bf16 %v18_v44, %v18_v44  ;;  %v147_v53 = vpack.c.bf16 %v19_v45, %v19_v45  ;;  %v8763_v56 = vld [vmem:[%s11809_s1 + $0x148] sm:$0xff]  ;;  %v8762_v60 = vld [vmem:[%s11809_s1 + $0x140] sm:$0xff] }
  0x11   :  { %1447 = vmatpush.bf16.msra.mxu3 %v8734_v17  ;;  %6562 = vmatmul.msk.bf16.vlgmr.msra.gmra.mxu0 %vm1316_vm0, %v140_v22  ;;  %v8756_v54 = vld [vmem:[%s11809_s1 + $0x110] sm:$0xff]  ;;  %v8767_v57 = vld [vmem:[%s11809_s1 + $0x168] sm:$0xff]  ;;  %v8766_v61 = vld [vmem:[%s11809_s1 + $0x160] sm:$0xff] }
  0x12   :  { %6579 = vmatmul.msk.bf16.vlgmr.msra.gmra.mxu1 %vm1316_vm0, %v141_v23  ;;  %1484 = vmatpush.bf16.msrb.mxu0 %v8741_v26  ;;  %v8760_v55 = vld [vmem:[%s11809_s1 + $0x130] sm:$0xff]  ;;  %v8755_v58 = vld [vmem:[%s11809_s1 + $0x108] sm:$0xff]  ;;  %v8781_v62 = vld [vmem:[%s11809_s1 + $0x1d8] sm:$0xff] }
  0x13   :  { %6596 = vmatmul.msk.bf16.vlgmr.msra.gmra.mxu2 %vm1316_vm0, %v142_v24  ;;  %1524 = vmatpush.bf16.msrb.mxu1 %v8745_v27  ;;  %v8759_v59 = vld [vmem:[%s11809_s1 + $0x128] sm:$0xff]  ;;  %v8785_v63 = vld [vmem:[%s11809_s1 + $0x1f8] sm:$0xff]  ;;  %v8754_v0 = vld [vmem:[%s11809_s1 + $0x100] sm:$0xff] }
  0x14   :  { %1564 = vmatpush.bf16.msrb.mxu2 %v8749_v20  ;;  %6613 = vmatmul.msk.bf16.vlgmr.msra.gmra.mxu3 %vm1316_vm0, %v143_v25  ;;  %v8758_v1 = vld [vmem:[%s11809_s1 + $0x120] sm:$0xff]  ;;  %v8773_v2 = vld [vmem:[%s11809_s1 + $0x198] sm:$0xff]  ;;  %v8780_v4 = vld [vmem:[%s11809_s1 + $0x1d0] sm:$0xff] }
  0x15   :  { %1604 = vmatpush.bf16.msrb.mxu3 %v8753_v21  ;;  %v8777_v3 = vld [vmem:[%s11809_s1 + $0x1b8] sm:$0xff]  ;;  %v8784_v5 = vld [vmem:[%s11809_s1 + $0x1f0] sm:$0xff]  ;;  %v8779_v16 = vld [vmem:[%s11809_s1 + $0x1c8] sm:$0xff] }
  0x16   :  { %1485 = vmatpush.bf16.msrb.mxu0 %v8740_v30  ;;  %v20_v6 = vld [vmem:[%s11810_s0 + $0x10] sm:$0x3]  ;;  %v21_v7 = vld [vmem:[%s11810_s0 + $0x12] sm:$0x3]  ;;  %v22_v8 = vld [vmem:[%s11810_s0 + $0x14] sm:$0x3] }
  0x17   :  { %1525 = vmatpush.bf16.msrb.mxu1 %v8744_v31  ;;  %v23_v9 = vld [vmem:[%s11810_s0 + $0x16] sm:$0x3]  ;;  %v148_v12 = vpack.c.bf16 %v20_v6, %v20_v6  ;;  %v149_v13 = vpack.c.bf16 %v21_v7, %v21_v7  ;;  %v150_v14 = vpack.c.bf16 %v22_v8, %v22_v8  ;;  %v8783_v17 = vld [vmem:[%s11809_s1 + $0x1e8] sm:$0xff]  ;;  %v8778_v20 = vld [vmem:[%s11809_s1 + $0x1c0] sm:$0xff] }
  0x18   :  { %1565 = vmatpush.bf16.msrb.mxu2 %v8748_v28  ;;  %v8772_v10 = vld [vmem:[%s11809_s1 + $0x190] sm:$0xff]  ;;  %v151_v15 = vpack.c.bf16 %v23_v9, %v23_v9  ;;  %v8771_v18 = vld [vmem:[%s11809_s1 + $0x188] sm:$0xff]  ;;  %v8782_v21 = vld [vmem:[%s11809_s1 + $0x1e0] sm:$0xff] }
  0x19   :  { %1605 = vmatpush.bf16.msrb.mxu3 %v8752_v29  ;;  %v8776_v11 = vld [vmem:[%s11809_s1 + $0x1b0] sm:$0xff]  ;;  %v8775_v19 = vld [vmem:[%s11809_s1 + $0x1a8] sm:$0xff]  ;;  %v8770_v22 = vld [vmem:[%s11809_s1 + $0x180] sm:$0xff] }
  0x1a   :  { %1486 = vmatpush.bf16.msrb.mxu0 %v8739_v34  ;;  %v8774_v23 = vld [vmem:[%s11809_s1 + $0x1a0] sm:$0xff]  ;;  %v8797_v24 = vld [vmem:[%s11809_s1 + $0x258] sm:$0xff]  ;;  %v8796_v29 = vld [vmem:[%s11809_s1 + $0x250] sm:$0xff] }
  0x1b   :  { %1526 = vmatpush.bf16.msrb.mxu1 %v8743_v35  ;;  %v8801_v25 = vld [vmem:[%s11809_s1 + $0x278] sm:$0xff]  ;;  %v8800_v30 = vld [vmem:[%s11809_s1 + $0x270] sm:$0xff]  ;;  %v8787_v42 = vld [vmem:[%s11809_s1 + $0x208] sm:$0xff] }
  0x1c   :  { %1566 = vmatpush.bf16.msrb.mxu2 %v8747_v32  ;;  %v8789_v26 = vld [vmem:[%s11809_s1 + $0x218] sm:$0xff]  ;;  %v8788_v32 = vld [vmem:[%s11809_s1 + $0x210] sm:$0xff]  ;;  %v8791_v43 = vld [vmem:[%s11809_s1 + $0x228] sm:$0xff] }
  0x1d   :  { %1606 = vmatpush.bf16.msrb.mxu3 %v8751_v33  ;;  %v8793_v27 = vld [vmem:[%s11809_s1 + $0x238] sm:$0xff]  ;;  %v8792_v33 = vld [vmem:[%s11809_s1 + $0x230] sm:$0xff]  ;;  %v8794_v44 = vld [vmem:[%s11809_s1 + $0x240] sm:$0xff] }
  0x1e   :  { %1487 = vmatpush.bf16.msrb.mxu0 %v8738_v40  ;;  %v24_v28 = vld [vmem:[%s11810_s0 + $0x18] sm:$0x3]  ;;  %v25_v31 = vld [vmem:[%s11810_s0 + $0x1a] sm:$0x3]  ;;  %v26_v34 = vld [vmem:[%s11810_s0 + $0x1c] sm:$0x3] }
  0x1f   :  { %1527 = vmatpush.bf16.msrb.mxu1 %v8742_v41  ;;  %v27_v35 = vld [vmem:[%s11810_s0 + $0x1e] sm:$0x3]  ;;  %v8795_v40 = vld [vmem:[%s11809_s1 + $0x248] sm:$0xff]  ;;  %v8798_v45 = vld [vmem:[%s11809_s1 + $0x260] sm:$0xff] }
  0x20   :  { %1567 = vmatpush.bf16.msrb.mxu2 %v8746_v36  ;;  %v152_v36 = vpack.c.bf16 %v24_v28, %v24_v28  ;;  %v8799_v41 = vld [vmem:[%s11809_s1 + $0x268] sm:$0xff]  ;;  %v8802_v6 = vld [vmem:[%s11809_s1 + $0x280] sm:$0xff]  ;;  %v8829_v8 = vld [vmem:[%s11809_s1 + $0x358] sm:$0xff] }
  0x21   :  { %1607 = vmatpush.bf16.msrb.mxu3 %v8750_v37  ;;  %6630 = vmatmul.msk.bf16.vlgmr.msrb.gmra.mxu0 %vm1316_vm0, %v144_v50  ;;  %v153_v37 = vpack.c.bf16 %v25_v31, %v25_v31  ;;  %v8805_v50 = vld [vmem:[%s11809_s1 + $0x298] sm:$0xff]  ;;  %v8806_v7 = vld [vmem:[%s11809_s1 + $0x2a0] sm:$0xff] }
  0x22   :  { %1644 = vmatpush.bf16.msra.mxu0 %v8757_v46  ;;  %6647 = vmatmul.msk.bf16.vlgmr.msrb.gmra.mxu1 %vm1316_vm0, %v145_v51  ;;  %v8786_v46 = vld [vmem:[%s11809_s1 + $0x200] sm:$0xff]  ;;  %v8809_v51 = vld [vmem:[%s11809_s1 + $0x2b8] sm:$0xff] }
  0x23   :  { %1684 = vmatpush.bf16.msra.mxu1 %v8761_v47  ;;  %6664 = vmatmul.msk.bf16.vlgmr.msrb.gmra.mxu2 %vm1316_vm0, %v146_v52  ;;  %v8790_v47 = vld [vmem:[%s11809_s1 + $0x220] sm:$0xff]  ;;  %v8833_v9 = vld [vmem:[%s11809_s1 + $0x378] sm:$0xff] }
  0x24   :  { %1724 = vmatpush.bf16.msra.mxu2 %v8765_v38  ;;  %6681 = vmatmul.msk.bf16.vlgmr.msrb.gmra.mxu3 %vm1316_vm0, %v147_v53  ;;  %v154_v38 = vpack.c.bf16 %v26_v34, %v26_v34  ;;  %v28_v52 = vld [vmem:[%s11810_s0 + $0x20] sm:$0x3]  ;;  %v8812_v53 = vld [vmem:[%s11809_s1 + $0x2d0] sm:$0xff]  ;;  %v8837_v34 = vld [vmem:[%s11809_s1 + $0x398] sm:$0xff] }
  0x25   :  { %1764 = vmatpush.bf16.msra.mxu3 %v8769_v39  ;;  %v155_v39 = vpack.c.bf16 %v27_v35, %v27_v35  ;;  %v8826_v28 = vld [vmem:[%s11809_s1 + $0x340] sm:$0xff]  ;;  %v8841_v35 = vld [vmem:[%s11809_s1 + $0x3b8] sm:$0xff] }
  0x26   :  { %1645 = vmatpush.bf16.msra.mxu0 %v8756_v54  ;;  %v8816_v54 = vld [vmem:[%s11809_s1 + $0x2f0] sm:$0xff]  ;;  %v8822_v31 = vld [vmem:[%s11809_s1 + $0x320] sm:$0xff] }
  0x27   :  { %1685 = vmatpush.bf16.msra.mxu1 %v8760_v55  ;;  %v29_v55 = vld [vmem:[%s11810_s0 + $0x22] sm:$0x3] }
  0x28   :  { %1725 = vmatpush.bf16.msra.mxu2 %v8764_v48  ;;  %v8813_v48 = vld [vmem:[%s11809_s1 + $0x2d8] sm:$0xff] }
  0x29   :  { %1765 = vmatpush.bf16.msra.mxu3 %v8768_v49  ;;  %v8817_v49 = vld [vmem:[%s11809_s1 + $0x2f8] sm:$0xff] }
  0x2a   :  { %1646 = vmatpush.bf16.msra.mxu0 %v8755_v58  ;;  %v30_v58 = vld [vmem:[%s11810_s0 + $0x24] sm:$0x3] }
  0x2b   :  { %1686 = vmatpush.bf16.msra.mxu1 %v8759_v59  ;;  %v31_v59 = vld [vmem:[%s11810_s0 + $0x26] sm:$0x3] }
  0x2c   :  { %1726 = vmatpush.bf16.msra.mxu2 %v8763_v56  ;;  %v8804_v56 = vld [vmem:[%s11809_s1 + $0x290] sm:$0xff] }
  0x2d   :  { %1766 = vmatpush.bf16.msra.mxu3 %v8767_v57  ;;  %v8808_v57 = vld [vmem:[%s11809_s1 + $0x2b0] sm:$0xff] }
  0x2e   :  { %1647 = vmatpush.bf16.msra.mxu0 %v8754_v0  ;;  %v8811_v0 = vld [vmem:[%s11809_s1 + $0x2c8] sm:$0xff] }
  0x2f   :  { %1687 = vmatpush.bf16.msra.mxu1 %v8758_v1  ;;  %v8815_v1 = vld [vmem:[%s11809_s1 + $0x2e8] sm:$0xff] }
  0x30   :  { %1727 = vmatpush.bf16.msra.mxu2 %v8762_v60  ;;  %v156_v60 = vpack.c.bf16 %v28_v52, %v28_v52  ;;  %v8842_v52 = vld [vmem:[%s11809_s1 + $0x3c0] sm:$0xff] }
  0x31   :  { %1767 = vmatpush.bf16.msra.mxu3 %v8766_v61  ;;  %6698 = vmatmul.msk.bf16.vlgmr.msra.gmra.mxu0 %vm1316_vm0, %v148_v12  ;;  %v157_v61 = vpack.c.bf16 %v29_v55, %v29_v55  ;;  %v32_v12 = vld [vmem:[%s11810_s0 + $0x28] sm:$0x3]  ;;  %v8838_v55 = vld [vmem:[%s11809_s1 + $0x3a0] sm:$0xff] }
  0x32   :  { %1804 = vmatpush.bf16.msrb.mxu0 %v8773_v2  ;;  %6715 = vmatmul.msk.bf16.vlgmr.msra.gmra.mxu1 %vm1316_vm0, %v149_v13  ;;  %v8803_v2 = vld [vmem:[%s11809_s1 + $0x288] sm:$0xff]  ;;  %v8828_v13 = vld [vmem:[%s11809_s1 + $0x350] sm:$0xff] }
  0x33   :  { %1844 = vmatpush.bf16.msrb.mxu1 %v8777_v3  ;;  %6732 = vmatmul.msk.bf16.vlgmr.msra.gmra.mxu2 %vm1316_vm0, %v150_v14  ;;  %v8807_v3 = vld [vmem:[%s11809_s1 + $0x2a8] sm:$0xff]  ;;  %v8832_v14 = vld [vmem:[%s11809_s1 + $0x370] sm:$0xff] }
  0x34   :  { %1884 = vmatpush.bf16.msrb.mxu2 %v8781_v62  ;;  %6749 = vmatmul.msk.bf16.vlgmr.msra.gmra.mxu3 %vm1316_vm0, %v151_v15  ;;  %v158_v62 = vpack.c.bf16 %v30_v58, %v30_v58  ;;  %v33_v15 = vld [vmem:[%s11810_s0 + $0x2a] sm:$0x3]  ;;  %v8853_v58 = vld [vmem:[%s11809_s1 + $0x418] sm:$0xff] }
  0x35   :  { %1924 = vmatpush.bf16.msrb.mxu3 %v8785_v63  ;;  %v159_v63 = vpack.c.bf16 %v31_v59, %v31_v59  ;;  %v8857_v59 = vld [vmem:[%s11809_s1 + $0x438] sm:$0xff] }
  0x36   :  { %1805 = vmatpush.bf16.msrb.mxu0 %v8772_v10  ;;  %v8821_v10 = vld [vmem:[%s11809_s1 + $0x318] sm:$0xff] }
  0x37   :  { %1845 = vmatpush.bf16.msrb.mxu1 %v8776_v11  ;;  %v8825_v11 = vld [vmem:[%s11809_s1 + $0x338] sm:$0xff] }
  0x38   :  { %1885 = vmatpush.bf16.msrb.mxu2 %v8780_v4  ;;  %v8810_v4 = vld [vmem:[%s11809_s1 + $0x2c0] sm:$0xff] }
  0x39   :  { %1925 = vmatpush.bf16.msrb.mxu3 %v8784_v5  ;;  %v8814_v5 = vld [vmem:[%s11809_s1 + $0x2e0] sm:$0xff] }
  0x3a   :  { %1806 = vmatpush.bf16.msrb.mxu0 %v8771_v18  ;;  %v34_v18 = vld [vmem:[%s11810_s0 + $0x2c] sm:$0x3] }
  0x3b   :  { %1846 = vmatpush.bf16.msrb.mxu1 %v8775_v19  ;;  %v35_v19 = vld [vmem:[%s11810_s0 + $0x2e] sm:$0x3] }
  0x3c   :  { %1886 = vmatpush.bf16.msrb.mxu2 %v8779_v16  ;;  %v8820_v16 = vld [vmem:[%s11809_s1 + $0x310] sm:$0xff] }
  0x3d   :  { %1926 = vmatpush.bf16.msrb.mxu3 %v8783_v17  ;;  %v8824_v17 = vld [vmem:[%s11809_s1 + $0x330] sm:$0xff] }
  0x3e   :  { %1807 = vmatpush.bf16.msrb.mxu0 %v8770_v22  ;;  %v162_v22 = vpack.c.bf16 %v34_v18, %v34_v18  ;;  %v8869_v18 = vld [vmem:[%s11809_s1 + $0x498] sm:$0xff] }
  0x3f   :  { %1847 = vmatpush.bf16.msrb.mxu1 %v8774_v23  ;;  %v163_v23 = vpack.c.bf16 %v35_v19, %v35_v19  ;;  %v8873_v19 = vld [vmem:[%s11809_s1 + $0x4b8] sm:$0xff] }
  0x40   :  { %1887 = vmatpush.bf16.msrb.mxu2 %v8778_v20  ;;  %v160_v20 = vpack.c.bf16 %v32_v12, %v32_v12  ;;  %v8858_v12 = vld [vmem:[%s11809_s1 + $0x440] sm:$0xff] }
  0x41   :  { %1927 = vmatpush.bf16.msrb.mxu3 %v8782_v21  ;;  %6766 = vmatmul.msk.bf16.vlgmr.msrb.gmra.mxu0 %vm1316_vm0, %v152_v36  ;;  %v161_v21 = vpack.c.bf16 %v33_v15, %v33_v15  ;;  %v36_v36 = vld [vmem:[%s11810_s0 + $0x30] sm:$0x3]  ;;  %v8854_v15 = vld [vmem:[%s11809_s1 + $0x420] sm:$0xff] }
  0x42   :  { %1964 = vmatpush.bf16.msra.mxu0 %v8789_v26  ;;  %6783 = vmatmul.msk.bf16.vlgmr.msrb.gmra.mxu1 %vm1316_vm0, %v153_v37  ;;  %v8819_v26 = vld [vmem:[%s11809_s1 + $0x308] sm:$0xff]  ;;  %v8844_v37 = vld [vmem:[%s11809_s1 + $0x3d0] sm:$0xff] }
  0x43   :  { %2004 = vmatpush.bf16.msra.mxu1 %v8793_v27  ;;  %6800 = vmatmul.msk.bf16.vlgmr.msrb.gmra.mxu2 %vm1316_vm0, %v154_v38  ;;  %v8823_v27 = vld [vmem:[%s11809_s1 + $0x328] sm:$0xff]  ;;  %v8848_v38 = vld [vmem:[%s11809_s1 + $0x3f0] sm:$0xff] }
  0x44   :  { %2044 = vmatpush.bf16.msra.mxu2 %v8797_v24  ;;  %6817 = vmatmul.msk.bf16.vlgmr.msrb.gmra.mxu3 %vm1316_vm0, %v155_v39  ;;  %v8827_v24 = vld [vmem:[%s11809_s1 + $0x348] sm:$0xff]  ;;  %v37_v39 = vld [vmem:[%s11810_s0 + $0x32] sm:$0x3] }
  0x45   :  { %2084 = vmatpush.bf16.msra.mxu3 %v8801_v25  ;;  %v8831_v25 = vld [vmem:[%s11809_s1 + $0x368] sm:$0xff] }
  0x46   :  { %1965 = vmatpush.bf16.msra.mxu0 %v8788_v32  ;;  %v8845_v32 = vld [vmem:[%s11809_s1 + $0x3d8] sm:$0xff] }
  0x47   :  { %2005 = vmatpush.bf16.msra.mxu1 %v8792_v33  ;;  %v8849_v33 = vld [vmem:[%s11809_s1 + $0x3f8] sm:$0xff] }
  0x48   :  { %2045 = vmatpush.bf16.msra.mxu2 %v8796_v29  ;;  %v8830_v29 = vld [vmem:[%s11809_s1 + $0x360] sm:$0xff] }
  0x49   :  { %2085 = vmatpush.bf16.msra.mxu3 %v8800_v30  ;;  %v8818_v30 = vld [vmem:[%s11809_s1 + $0x300] sm:$0xff] }
  0x4a   :  { %1966 = vmatpush.bf16.msra.mxu0 %v8787_v42  ;;  %v38_v42 = vld [vmem:[%s11810_s0 + $0x34] sm:$0x3] }
  0x4b   :  { %2006 = vmatpush.bf16.msra.mxu1 %v8791_v43  ;;  %v39_v43 = vld [vmem:[%s11810_s0 + $0x36] sm:$0x3] }
  0x4c   :  { %2046 = vmatpush.bf16.msra.mxu2 %v8795_v40  ;;  %v8836_v40 = vld [vmem:[%s11809_s1 + $0x390] sm:$0xff] }
  0x4d   :  { %2086 = vmatpush.bf16.msra.mxu3 %v8799_v41  ;;  %v8840_v41 = vld [vmem:[%s11809_s1 + $0x3b0] sm:$0xff] }
  0x4e   :  { %1967 = vmatpush.bf16.msra.mxu0 %v8786_v46  ;;  %v166_v46 = vpack.c.bf16 %v38_v42, %v38_v42  ;;  %v8866_v42 = vld [vmem:[%s11809_s1 + $0x480] sm:$0xff] }
  0x4f   :  { %2007 = vmatpush.bf16.msra.mxu1 %v8790_v47  ;;  %v167_v47 = vpack.c.bf16 %v39_v43, %v39_v43  ;;  %v8870_v43 = vld [vmem:[%s11809_s1 + $0x4a0] sm:$0xff] }
  0x50   :  { %2047 = vmatpush.bf16.msra.mxu2 %v8794_v44  ;;  %v164_v44 = vpack.c.bf16 %v36_v36, %v36_v36  ;;  %v8867_v36 = vld [vmem:[%s11809_s1 + $0x488] sm:$0xff] }
  0x51   :  { %2087 = vmatpush.bf16.msra.mxu3 %v8798_v45  ;;  %6834 = vmatmul.msk.bf16.vlgmr.msra.gmra.mxu0 %vm1316_vm0, %v156_v60  ;;  %v165_v45 = vpack.c.bf16 %v37_v39, %v37_v39  ;;  %v40_v60 = vld [vmem:[%s11810_s0 + $0x38] sm:$0x3]  ;;  %v8878_v39 = vld [vmem:[%s11809_s1 + $0x4e0] sm:$0xff] }
  0x52   :  { %2124 = vmatpush.bf16.msrb.mxu0 %v8805_v50  ;;  %6851 = vmatmul.msk.bf16.vlgmr.msra.gmra.mxu1 %vm1316_vm0, %v157_v61  ;;  %v8835_v50 = vld [vmem:[%s11809_s1 + $0x388] sm:$0xff]  ;;  %v8860_v61 = vld [vmem:[%s11809_s1 + $0x450] sm:$0xff] }
  0x53   :  { %2164 = vmatpush.bf16.msrb.mxu1 %v8809_v51  ;;  %6868 = vmatmul.msk.bf16.vlgmr.msra.gmra.mxu2 %vm1316_vm0, %v158_v62  ;;  %v8839_v51 = vld [vmem:[%s11809_s1 + $0x3a8] sm:$0xff]  ;;  %v8864_v62 = vld [vmem:[%s11809_s1 + $0x470] sm:$0xff] }
  0x54   :  { %2204 = vmatpush.bf16.msrb.mxu2 %v8813_v48  ;;  %6885 = vmatmul.msk.bf16.vlgmr.msra.gmra.mxu3 %vm1316_vm0, %v159_v63  ;;  %v8843_v48 = vld [vmem:[%s11809_s1 + $0x3c8] sm:$0xff]  ;;  %v41_v63 = vld [vmem:[%s11810_s0 + $0x3a] sm:$0x3] }
  0x55   :  { %2244 = vmatpush.bf16.msrb.mxu3 %v8817_v49  ;;  %v8847_v49 = vld [vmem:[%s11809_s1 + $0x3e8] sm:$0xff] }
  0x56   :  { %2125 = vmatpush.bf16.msrb.mxu0 %v8804_v56  ;;  %v8861_v56 = vld [vmem:[%s11809_s1 + $0x458] sm:$0xff] }
  0x57   :  { %2165 = vmatpush.bf16.msrb.mxu1 %v8808_v57  ;;  %v8865_v57 = vld [vmem:[%s11809_s1 + $0x478] sm:$0xff] }
  0x58   :  { %2205 = vmatpush.bf16.msrb.mxu2 %v8812_v53  ;;  %v8846_v53 = vld [vmem:[%s11809_s1 + $0x3e0] sm:$0xff] }
  0x59   :  { %2245 = vmatpush.bf16.msrb.mxu3 %v8816_v54  ;;  %v8834_v54 = vld [vmem:[%s11809_s1 + $0x380] sm:$0xff] }
  0x5a   :  { %2126 = vmatpush.bf16.msrb.mxu0 %v8803_v2  ;;  %v42_v2 = vld [vmem:[%s11810_s0 + $0x3c] sm:$0x3] }
  0x5b   :  { %2166 = vmatpush.bf16.msrb.mxu1 %v8807_v3  ;;  %v43_v3 = vld [vmem:[%s11810_s0 + $0x3e] sm:$0x3] }
  0x5c   :  { %2206 = vmatpush.bf16.msrb.mxu2 %v8811_v0  ;;  %v8852_v0 = vld [vmem:[%s11809_s1 + $0x410] sm:$0xff] }
  0x5d   :  { %2246 = vmatpush.bf16.msrb.mxu3 %v8815_v1  ;;  %v8856_v1 = vld [vmem:[%s11809_s1 + $0x430] sm:$0xff] }
  0x5e   :  { %2127 = vmatpush.bf16.msrb.mxu0 %v8802_v6  ;;  %v170_v6 = vpack.c.bf16 %v42_v2, %v42_v2  ;;  %v8891_v2 = vld [vmem:[%s11809_s1 + $0x548] sm:$0xff] }
  0x5f   :  { %2167 = vmatpush.bf16.msrb.mxu1 %v8806_v7  ;;  %v171_v7 = vpack.c.bf16 %v43_v3, %v43_v3  ;;  %v8895_v3 = vld [vmem:[%s11809_s1 + $0x568] sm:$0xff] }
  0x60   :  { %2207 = vmatpush.bf16.msrb.mxu2 %v8810_v4  ;;  %v168_v4 = vpack.c.bf16 %v40_v60, %v40_v60 }
  0x61   :  { %2247 = vmatpush.bf16.msrb.mxu3 %v8814_v5  ;;  %6902 = vmatmul.msk.bf16.vlgmr.msrb.gmra.mxu0 %vm1316_vm0, %v160_v20  ;;  %v169_v5 = vpack.c.bf16 %v41_v63, %v41_v63  ;;  %v44_v20 = vld [vmem:[%s11810_s0 + $0x40] sm:$0x3] }
  0x62   :  { %2284 = vmatpush.bf16.msra.mxu0 %v8821_v10  ;;  %6919 = vmatmul.msk.bf16.vlgmr.msrb.gmra.mxu1 %vm1316_vm0, %v161_v21  ;;  %v8851_v10 = vld [vmem:[%s11809_s1 + $0x408] sm:$0xff]  ;;  %v8876_v21 = vld [vmem:[%s11809_s1 + $0x4d0] sm:$0xff] }
  0x63   :  { %2324 = vmatpush.bf16.msra.mxu1 %v8825_v11  ;;  %6936 = vmatmul.msk.bf16.vlgmr.msrb.gmra.mxu2 %vm1316_vm0, %v162_v22  ;;  %v8855_v11 = vld [vmem:[%s11809_s1 + $0x428] sm:$0xff]  ;;  %v8880_v22 = vld [vmem:[%s11809_s1 + $0x4f0] sm:$0xff] }
  0x64   :  { %2364 = vmatpush.bf16.msra.mxu2 %v8829_v8  ;;  %6953 = vmatmul.msk.bf16.vlgmr.msrb.gmra.mxu3 %vm1316_vm0, %v163_v23  ;;  %v8859_v8 = vld [vmem:[%s11809_s1 + $0x448] sm:$0xff]  ;;  %v45_v23 = vld [vmem:[%s11810_s0 + $0x42] sm:$0x3] }
  0x65   :  { %2404 = vmatpush.bf16.msra.mxu3 %v8833_v9  ;;  %v8863_v9 = vld [vmem:[%s11809_s1 + $0x468] sm:$0xff] }
  0x66   :  { %2285 = vmatpush.bf16.msra.mxu0 %v8820_v16  ;;  %v8877_v16 = vld [vmem:[%s11809_s1 + $0x4d8] sm:$0xff] }
  0x67   :  { %2325 = vmatpush.bf16.msra.mxu1 %v8824_v17  ;;  %v8881_v17 = vld [vmem:[%s11809_s1 + $0x4f8] sm:$0xff] }
  0x68   :  { %2365 = vmatpush.bf16.msra.mxu2 %v8828_v13  ;;  %v8862_v13 = vld [vmem:[%s11809_s1 + $0x460] sm:$0xff] }
  0x69   :  { %2405 = vmatpush.bf16.msra.mxu3 %v8832_v14  ;;  %v8850_v14 = vld [vmem:[%s11809_s1 + $0x400] sm:$0xff] }
  0x6a   :  { %2286 = vmatpush.bf16.msra.mxu0 %v8819_v26  ;;  %v46_v26 = vld [vmem:[%s11810_s0 + $0x44] sm:$0x3] }
  0x6b   :  { %2326 = vmatpush.bf16.msra.mxu1 %v8823_v27  ;;  %v47_v27 = vld [vmem:[%s11810_s0 + $0x46] sm:$0x3] }
  0x6c   :  { %2366 = vmatpush.bf16.msra.mxu2 %v8827_v24  ;;  %v8868_v24 = vld [vmem:[%s11809_s1 + $0x490] sm:$0xff] }
  0x6d   :  { %2406 = vmatpush.bf16.msra.mxu3 %v8831_v25  ;;  %v8872_v25 = vld [vmem:[%s11809_s1 + $0x4b0] sm:$0xff] }
  0x6e   :  { %2287 = vmatpush.bf16.msra.mxu0 %v8818_v30  ;;  %v172_v30 = vpack.c.bf16 %v44_v20, %v44_v20  ;;  %v8912_v20 = vld [vmem:[%s11809_s1 + $0x5f0] sm:$0xff] }
  0x6f   :  { %2327 = vmatpush.bf16.msra.mxu1 %v8822_v31  ;;  %v173_v31 = vpack.c.bf16 %v45_v23, %v45_v23  ;;  %v8904_v23 = vld [vmem:[%s11809_s1 + $0x5b0] sm:$0xff] }
  0x70   :  { %2367 = vmatpush.bf16.msra.mxu2 %v8826_v28 }
  0x71   :  { %2407 = vmatpush.bf16.msra.mxu3 %v8830_v29  ;;  %6970 = vmatmul.msk.bf16.vlgmr.msra.gmra.mxu0 %vm1316_vm0, %v164_v44 }
  0x72   :  { %2444 = vmatpush.bf16.msrb.mxu0 %v8837_v34  ;;  %6987 = vmatmul.msk.bf16.vlgmr.msra.gmra.mxu1 %vm1316_vm0, %v165_v45  ;;  %v8875_v34 = vld [vmem:[%s11809_s1 + $0x4c8] sm:$0xff] }
  0x73   :  { %2484 = vmatpush.bf16.msrb.mxu1 %v8841_v35  ;;  %7004 = vmatmul.msk.bf16.vlgmr.msra.gmra.mxu2 %vm1316_vm0, %v166_v46  ;;  %v8879_v35 = vld [vmem:[%s11809_s1 + $0x4e8] sm:$0xff]  ;;  %v8893_v46 = vld [vmem:[%s11809_s1 + $0x558] sm:$0xff] }
  0x74   :  { %2524 = vmatpush.bf16.msrb.mxu2 %v8845_v32  ;;  %7021 = vmatmul.msk.bf16.vlgmr.msra.gmra.mxu3 %vm1316_vm0, %v167_v47  ;;  %v174_v32 = vpack.c.bf16 %v46_v26, %v46_v26  ;;  %v8897_v47 = vld [vmem:[%s11809_s1 + $0x578] sm:$0xff] }
  0x75   :  { %2564 = vmatpush.bf16.msrb.mxu3 %v8849_v33  ;;  %v175_v33 = vpack.c.bf16 %v47_v27, %v47_v27 }
  0x76   :  { %2445 = vmatpush.bf16.msrb.mxu0 %v8836_v40 }
  0x77   :  { %2485 = vmatpush.bf16.msrb.mxu1 %v8840_v41 }
  0x78   :  { %2525 = vmatpush.bf16.msrb.mxu2 %v8844_v37  ;;  %v8871_v37 = vld [vmem:[%s11809_s1 + $0x4a8] sm:$0xff] }
  0x79   :  { %2565 = vmatpush.bf16.msrb.mxu3 %v8848_v38  ;;  %v8874_v38 = vld [vmem:[%s11809_s1 + $0x4c0] sm:$0xff] }
  0x7a   :  { %2446 = vmatpush.bf16.msrb.mxu0 %v8835_v50  ;;  %v48_v50 = vld [vmem:[%s11810_s0 + $0x48] sm:$0x3] }
  0x7b   :  { %2486 = vmatpush.bf16.msrb.mxu1 %v8839_v51  ;;  %v8892_v51 = vld [vmem:[%s11809_s1 + $0x550] sm:$0xff]  ;;  %v176_v60 = vpack.c.bf16 %v48_v50, %v48_v50  ;;  %v56_v50 = vld [vmem:[%s11810_s0 + $0x58] sm:$0x3] }
  0x7c   :  { %2526 = vmatpush.bf16.msrb.mxu2 %v8843_v48  ;;  %v8885_v48 = vld [vmem:[%s11809_s1 + $0x518] sm:$0xff] }
  0x7d   :  { %2566 = vmatpush.bf16.msrb.mxu3 %v8847_v49  ;;  %v8889_v49 = vld [vmem:[%s11809_s1 + $0x538] sm:$0xff] }
  0x7e   :  { %2447 = vmatpush.bf16.msrb.mxu0 %v8834_v54  ;;  %v8884_v54 = vld [vmem:[%s11809_s1 + $0x510] sm:$0xff] }
  0x7f   :  { %2487 = vmatpush.bf16.msrb.mxu1 %v8838_v55  ;;  %v8888_v55 = vld [vmem:[%s11809_s1 + $0x530] sm:$0xff] }
  0x80   :  { %2527 = vmatpush.bf16.msrb.mxu2 %v8842_v52  ;;  %v8896_v52 = vld [vmem:[%s11809_s1 + $0x570] sm:$0xff] }
  0x81   :  { %2567 = vmatpush.bf16.msrb.mxu3 %v8846_v53  ;;  %7038 = vmatmul.msk.bf16.vlgmr.msrb.gmra.mxu0 %vm1316_vm0, %v168_v4  ;;  %v49_v53 = vld [vmem:[%s11810_s0 + $0x4a] sm:$0x3] }
  0x82   :  { %2604 = vmatpush.bf16.msra.mxu0 %v8853_v58  ;;  %7055 = vmatmul.msk.bf16.vlgmr.msrb.gmra.mxu1 %vm1316_vm0, %v169_v5  ;;  %v8883_v4 = vld [vmem:[%s11809_s1 + $0x508] sm:$0xff] }
  0x83   :  { %2644 = vmatpush.bf16.msra.mxu1 %v8857_v59  ;;  %7072 = vmatmul.msk.bf16.vlgmr.msrb.gmra.mxu2 %vm1316_vm0, %v170_v6  ;;  %v8887_v5 = vld [vmem:[%s11809_s1 + $0x528] sm:$0xff]  ;;  %v8890_v6 = vld [vmem:[%s11809_s1 + $0x540] sm:$0xff] }
  0x84   :  { %2684 = vmatpush.bf16.msra.mxu2 %v8861_v56  ;;  %7089 = vmatmul.msk.bf16.vlgmr.msrb.gmra.mxu3 %vm1316_vm0, %v171_v7  ;;  %v50_v56 = vld [vmem:[%s11810_s0 + $0x4c] sm:$0x3]  ;;  %v8894_v7 = vld [vmem:[%s11809_s1 + $0x560] sm:$0xff] }
  0x85   :  { %2724 = vmatpush.bf16.msra.mxu3 %v8865_v57  ;;  %v51_v57 = vld [vmem:[%s11810_s0 + $0x4e] sm:$0x3] }
  0x86   :  { %2605 = vmatpush.bf16.msra.mxu0 %v8852_v0  ;;  %v178_v0 = vpack.c.bf16 %v50_v56, %v50_v56  ;;  %v58_v56 = vld [vmem:[%s11810_s0 + $0x5c] sm:$0x3] }
  0x87   :  { %2645 = vmatpush.bf16.msra.mxu1 %v8856_v1  ;;  %v179_v1 = vpack.c.bf16 %v51_v57, %v51_v57  ;;  %v59_v57 = vld [vmem:[%s11810_s0 + $0x5e] sm:$0x3] }
  0x88   :  { %2685 = vmatpush.bf16.msra.mxu2 %v8860_v61  ;;  %v177_v61 = vpack.c.bf16 %v49_v53, %v49_v53  ;;  %v57_v53 = vld [vmem:[%s11810_s0 + $0x5a] sm:$0x3] }
  0x89   :  { %2725 = vmatpush.bf16.msra.mxu3 %v8864_v62 }
  0x8a   :  { %2606 = vmatpush.bf16.msra.mxu0 %v8851_v10 }
  0x8b   :  { %2646 = vmatpush.bf16.msra.mxu1 %v8855_v11 }
  0x8c   :  { %2686 = vmatpush.bf16.msra.mxu2 %v8859_v8  ;;  %v8882_v8 = vld [vmem:[%s11809_s1 + $0x500] sm:$0xff] }
  0x8d   :  { %2726 = vmatpush.bf16.msra.mxu3 %v8863_v9  ;;  %v8886_v9 = vld [vmem:[%s11809_s1 + $0x520] sm:$0xff] }
  0x8e   :  { %2607 = vmatpush.bf16.msra.mxu0 %v8850_v14  ;;  %v1329_v28 = vpop.f32.mrf.mxu0 }
  0x8f   :  { %2647 = vmatpush.bf16.msra.mxu1 %v8854_v15  ;;  %v1369_v29 = vpop.f32.mrf.mxu1  ;;  %6414 = vst.msk [vmem:[%s11811_s2] sm:$0x3] %vm6413_vm1, %v1329_v28 }
  0x90   :  { %2687 = vmatpush.bf16.msra.mxu2 %v8858_v12  ;;  %6415 = vst.msk [vmem:[%s11811_s2 + $0x2] sm:$0x3] %vm6413_vm1, %v1369_v29  ;;  %v8909_v12 = vld [vmem:[%s11809_s1 + $0x5d8] sm:$0xff] }
  0x91   :  { %2727 = vmatpush.bf16.msra.mxu3 %v8862_v13  ;;  %7106 = vmatmul.msk.bf16.vlgmr.msra.gmra.mxu0 %vm1316_vm0, %v172_v30  ;;  %v8913_v13 = vld [vmem:[%s11809_s1 + $0x5f8] sm:$0xff] }
  0x92   :  { %2764 = vmatpush.bf16.msrb.mxu0 %v8869_v18  ;;  %7123 = vmatmul.msk.bf16.vlgmr.msra.gmra.mxu1 %vm1316_vm0, %v173_v31  ;;  %v52_v18 = vld [vmem:[%s11810_s0 + $0x50] sm:$0x3] }
  0x93   :  { %2804 = vmatpush.bf16.msrb.mxu1 %v8873_v19  ;;  %7140 = vmatmul.msk.bf16.vlgmr.msra.gmra.mxu2 %vm1316_vm0, %v174_v32  ;;  %v8908_v19 = vld [vmem:[%s11809_s1 + $0x5d0] sm:$0xff]  ;;  %v180_v28 = vpack.c.bf16 %v52_v18, %v52_v18  ;;  %v60_v18 = vld [vmem:[%s11810_s0 + $0x60] sm:$0x3] }
  0x94   :  { %2844 = vmatpush.bf16.msrb.mxu2 %v8877_v16  ;;  %7157 = vmatmul.msk.bf16.vlgmr.msra.gmra.mxu3 %vm1316_vm0, %v175_v33  ;;  %v8901_v16 = vld [vmem:[%s11809_s1 + $0x598] sm:$0xff] }
  0x95   :  { %2884 = vmatpush.bf16.msrb.mxu3 %v8881_v17  ;;  %v8905_v17 = vld [vmem:[%s11809_s1 + $0x5b8] sm:$0xff] }
  0x96   :  { %2765 = vmatpush.bf16.msrb.mxu0 %v8868_v24  ;;  %v1409_v40 = vpop.f32.mrf.mxu2  ;;  %v1331_v44 = vpop.f32.mrf.mxu0  ;;  %v54_v24 = vld [vmem:[%s11810_s0 + $0x54] sm:$0x3] }
  0x97   :  { %2805 = vmatpush.bf16.msrb.mxu1 %v8872_v25  ;;  %v1449_v41 = vpop.f32.mrf.mxu3  ;;  %6416 = vst.msk [vmem:[%s11811_s2 + $0x4] sm:$0x3] %vm6413_vm1, %v1409_v40  ;;  %v1371_v45 = vpop.f32.mrf.mxu1  ;;  %v55_v25 = vld [vmem:[%s11810_s0 + $0x56] sm:$0x3]  ;;  %v182_v32 = vpack.c.bf16 %v54_v24, %v54_v24  ;;  %v8898_v40 = vld [vmem:[%s11809_s1 + $0x580] sm:$0xff]  ;;  %v8925_v44 = vld [vmem:[%s11809_s1 + $0x658] sm:$0xff] }
  0x98   :  { %2845 = vmatpush.bf16.msrb.mxu2 %v8876_v21  ;;  %6417 = vst.msk [vmem:[%s11811_s2 + $0x6] sm:$0x3] %vm6413_vm1, %v1449_v41  ;;  %v53_v21 = vld [vmem:[%s11810_s0 + $0x52] sm:$0x3]  ;;  %v183_v33 = vpack.c.bf16 %v55_v25, %v55_v25  ;;  %v8902_v41 = vld [vmem:[%s11809_s1 + $0x5a0] sm:$0xff]  ;;  %v8929_v45 = vld [vmem:[%s11809_s1 + $0x678] sm:$0xff] }
  0x99   :  { %2885 = vmatpush.bf16.msrb.mxu3 %v8880_v22  ;;  %v8900_v22 = vld [vmem:[%s11809_s1 + $0x590] sm:$0xff]  ;;  %v181_v29 = vpack.c.bf16 %v53_v21, %v53_v21  ;;  %v61_v21 = vld [vmem:[%s11810_s0 + $0x62] sm:$0x3]  ;;  %v62_v24 = vld [vmem:[%s11810_s0 + $0x64] sm:$0x3] }
  0x9a   :  { %2766 = vmatpush.bf16.msrb.mxu0 %v8867_v36  ;;  %v8899_v36 = vld [vmem:[%s11809_s1 + $0x588] sm:$0xff]  ;;  %v63_v25 = vld [vmem:[%s11810_s0 + $0x66] sm:$0x3] }
  0x9b   :  { %2806 = vmatpush.bf16.msrb.mxu1 %v8871_v37  ;;  %v8903_v37 = vld [vmem:[%s11809_s1 + $0x5a8] sm:$0xff] }
  0x9c   :  { %2846 = vmatpush.bf16.msrb.mxu2 %v8875_v34  ;;  %v8907_v34 = vld [vmem:[%s11809_s1 + $0x5c8] sm:$0xff] }
  0x9d   :  { %2886 = vmatpush.bf16.msrb.mxu3 %v8879_v35  ;;  %v8911_v35 = vld [vmem:[%s11809_s1 + $0x5e8] sm:$0xff] }
  0x9e   :  { %2767 = vmatpush.bf16.msrb.mxu0 %v8866_v42  ;;  %v1411_v58 = vpop.f32.mrf.mxu2  ;;  %v1489_v62 = vpop.f32.mrf.mxu0 }
  0x9f   :  { %2807 = vmatpush.bf16.msrb.mxu1 %v8870_v43  ;;  %v1451_v59 = vpop.f32.mrf.mxu3  ;;  %v1529_v63 = vpop.f32.mrf.mxu1  ;;  %6418 = vst.msk [vmem:[%s11811_s2 + $0x8] sm:$0x3] %vm6413_vm1, %v1489_v62 }
  0xa0   :  { %2847 = vmatpush.bf16.msrb.mxu2 %v8874_v38  ;;  %6419 = vst.msk [vmem:[%s11811_s2 + $0xa] sm:$0x3] %vm6413_vm1, %v1529_v63  ;;  %v8906_v38 = vld [vmem:[%s11809_s1 + $0x5c0] sm:$0xff] }
  0xa1   :  { %2887 = vmatpush.bf16.msrb.mxu3 %v8878_v39  ;;  %7174 = vmatmul.msk.bf16.vlgmr.msrb.gmra.mxu0 %vm1316_vm0, %v176_v60  ;;  %v8910_v39 = vld [vmem:[%s11809_s1 + $0x5e0] sm:$0xff]  ;;  %v184_v60 = vpack.c.bf16 %v56_v50, %v56_v50  ;;  %v64_v50 = vld [vmem:[%s11810_s0 + $0x68] sm:$0x3] }
  0xa2   :  { %2924 = vmatpush.bf16.msra.mxu0 %v8885_v48  ;;  %7191 = vmatmul.msk.bf16.vlgmr.msrb.gmra.mxu1 %vm1316_vm0, %v177_v61  ;;  %v8917_v48 = vld [vmem:[%s11809_s1 + $0x618] sm:$0xff]  ;;  %v185_v61 = vpack.c.bf16 %v57_v53, %v57_v53  ;;  %v65_v53 = vld [vmem:[%s11810_s0 + $0x6a] sm:$0x3] }
  0xa3   :  { %2964 = vmatpush.bf16.msra.mxu1 %v8889_v49  ;;  %7208 = vmatmul.msk.bf16.vlgmr.msrb.gmra.mxu2 %vm1316_vm0, %v178_v0  ;;  %v8921_v49 = vld [vmem:[%s11809_s1 + $0x638] sm:$0xff]  ;;  %v186_v0 = vpack.c.bf16 %v58_v56, %v58_v56  ;;  %v66_v56 = vld [vmem:[%s11810_s0 + $0x6c] sm:$0x3] }
  0xa4   :  { %3004 = vmatpush.bf16.msra.mxu2 %v8893_v46  ;;  %7225 = vmatmul.msk.bf16.vlgmr.msrb.gmra.mxu3 %vm1316_vm0, %v179_v1  ;;  %v187_v1 = vpack.c.bf16 %v59_v57, %v59_v57  ;;  %v67_v57 = vld [vmem:[%s11810_s0 + $0x6e] sm:$0x3] }
  0xa5   :  { %3044 = vmatpush.bf16.msra.mxu3 %v8897_v47 }
  0xa6   :  { %2925 = vmatpush.bf16.msra.mxu0 %v8884_v54  ;;  %v1569_v10 = vpop.f32.mrf.mxu2  ;;  %v1491_v14 = vpop.f32.mrf.mxu0  ;;  %v8916_v54 = vld [vmem:[%s11809_s1 + $0x610] sm:$0xff] }
  0xa7   :  { %2965 = vmatpush.bf16.msra.mxu1 %v8888_v55  ;;  %v1609_v11 = vpop.f32.mrf.mxu3  ;;  %6420 = vst.msk [vmem:[%s11811_s2 + $0xc] sm:$0x3] %vm6413_vm1, %v1569_v10  ;;  %v1531_v15 = vpop.f32.mrf.mxu1  ;;  %v8920_v55 = vld [vmem:[%s11809_s1 + $0x630] sm:$0xff] }
  0xa8   :  { %3005 = vmatpush.bf16.msra.mxu2 %v8892_v51  ;;  %6421 = vst.msk [vmem:[%s11811_s2 + $0xe] sm:$0x3] %vm6413_vm1, %v1609_v11  ;;  %v8924_v51 = vld [vmem:[%s11809_s1 + $0x650] sm:$0xff] }
  0xa9   :  { %3045 = vmatpush.bf16.msra.mxu3 %v8896_v52  ;;  %v8928_v52 = vld [vmem:[%s11809_s1 + $0x670] sm:$0xff] }
  0xaa   :  { %2926 = vmatpush.bf16.msra.mxu0 %v8883_v4  ;;  %v8915_v4 = vld [vmem:[%s11809_s1 + $0x608] sm:$0xff] }
  0xab   :  { %2966 = vmatpush.bf16.msra.mxu1 %v8887_v5  ;;  %v8919_v5 = vld [vmem:[%s11809_s1 + $0x628] sm:$0xff] }
  0xac   :  { %3006 = vmatpush.bf16.msra.mxu2 %v8891_v2  ;;  %v8923_v2 = vld [vmem:[%s11809_s1 + $0x648] sm:$0xff] }
  0xad   :  { %3046 = vmatpush.bf16.msra.mxu3 %v8895_v3  ;;  %v8927_v3 = vld [vmem:[%s11809_s1 + $0x668] sm:$0xff] }
  0xae   :  { %2927 = vmatpush.bf16.msra.mxu0 %v8882_v8  ;;  %v1571_v26 = vpop.f32.mrf.mxu2  ;;  %v1649_v30 = vpop.f32.mrf.mxu0  ;;  %v8914_v8 = vld [vmem:[%s11809_s1 + $0x600] sm:$0xff] }
  0xaf   :  { %2967 = vmatpush.bf16.msra.mxu1 %v8886_v9  ;;  %v1611_v27 = vpop.f32.mrf.mxu3  ;;  %v1689_v31 = vpop.f32.mrf.mxu1  ;;  %6422 = vst.msk [vmem:[%s11811_s2 + $0x10] sm:$0x3] %vm6413_vm1, %v1649_v30  ;;  %v8918_v9 = vld [vmem:[%s11809_s1 + $0x620] sm:$0xff] }
  0xb0   :  { %3007 = vmatpush.bf16.msra.mxu2 %v8890_v6  ;;  %6423 = vst.msk [vmem:[%s11811_s2 + $0x12] sm:$0x3] %vm6413_vm1, %v1689_v31  ;;  %v8922_v6 = vld [vmem:[%s11809_s1 + $0x640] sm:$0xff] }
  0xb1   :  { %3047 = vmatpush.bf16.msra.mxu3 %v8894_v7  ;;  %7242 = vmatmul.msk.bf16.vlgmr.msra.gmra.mxu0 %vm1316_vm0, %v180_v28  ;;  %v8926_v7 = vld [vmem:[%s11809_s1 + $0x660] sm:$0xff]  ;;  %v188_v28 = vpack.c.bf16 %v60_v18, %v60_v18  ;;  %v68_v18 = vld [vmem:[%s11810_s0 + $0x70] sm:$0x3] }
  0xb2   :  { %3084 = vmatpush.bf16.msrb.mxu0 %v8901_v16  ;;  %7259 = vmatmul.msk.bf16.vlgmr.msra.gmra.mxu1 %vm1316_vm0, %v181_v29  ;;  %v8933_v16 = vld [vmem:[%s11809_s1 + $0x698] sm:$0xff]  ;;  %v189_v29 = vpack.c.bf16 %v61_v21, %v61_v21  ;;  %v69_v21 = vld [vmem:[%s11810_s0 + $0x72] sm:$0x3] }
  0xb3   :  { %3124 = vmatpush.bf16.msrb.mxu1 %v8905_v17  ;;  %7276 = vmatmul.msk.bf16.vlgmr.msra.gmra.mxu2 %vm1316_vm0, %v182_v32  ;;  %v8937_v17 = vld [vmem:[%s11809_s1 + $0x6b8] sm:$0xff]  ;;  %v190_v32 = vpack.c.bf16 %v62_v24, %v62_v24  ;;  %v70_v24 = vld [vmem:[%s11810_s0 + $0x74] sm:$0x3] }
  0xb4   :  { %3164 = vmatpush.bf16.msrb.mxu2 %v8909_v12  ;;  %7293 = vmatmul.msk.bf16.vlgmr.msra.gmra.mxu3 %vm1316_vm0, %v183_v33  ;;  %v8941_v12 = vld [vmem:[%s11809_s1 + $0x6d8] sm:$0xff]  ;;  %v191_v33 = vpack.c.bf16 %v63_v25, %v63_v25  ;;  %v71_v25 = vld [vmem:[%s11810_s0 + $0x76] sm:$0x3] }
  0xb5   :  { %3204 = vmatpush.bf16.msrb.mxu3 %v8913_v13  ;;  %v8945_v13 = vld [vmem:[%s11809_s1 + $0x6f8] sm:$0xff] }
  0xb6   :  { %3085 = vmatpush.bf16.msrb.mxu0 %v8900_v22  ;;  %v1729_v42 = vpop.f32.mrf.mxu2  ;;  %v1651_v46 = vpop.f32.mrf.mxu0  ;;  %v8932_v22 = vld [vmem:[%s11809_s1 + $0x690] sm:$0xff] }
  0xb7   :  { %3125 = vmatpush.bf16.msrb.mxu1 %v8904_v23  ;;  %v1769_v43 = vpop.f32.mrf.mxu3  ;;  %6424 = vst.msk [vmem:[%s11811_s2 + $0x14] sm:$0x3] %vm6413_vm1, %v1729_v42  ;;  %v1691_v47 = vpop.f32.mrf.mxu1  ;;  %v8936_v23 = vld [vmem:[%s11809_s1 + $0x6b0] sm:$0xff] }
  0xb8   :  { %3165 = vmatpush.bf16.msrb.mxu2 %v8908_v19  ;;  %6425 = vst.msk [vmem:[%s11811_s2 + $0x16] sm:$0x3] %vm6413_vm1, %v1769_v43  ;;  %v8940_v19 = vld [vmem:[%s11809_s1 + $0x6d0] sm:$0xff] }
  0xb9   :  { %3205 = vmatpush.bf16.msrb.mxu3 %v8912_v20  ;;  %v8944_v20 = vld [vmem:[%s11809_s1 + $0x6f0] sm:$0xff] }
  0xba   :  { %3086 = vmatpush.bf16.msrb.mxu0 %v8899_v36  ;;  %v8931_v36 = vld [vmem:[%s11809_s1 + $0x688] sm:$0xff] }
  0xbb   :  { %3126 = vmatpush.bf16.msrb.mxu1 %v8903_v37  ;;  %v8935_v37 = vld [vmem:[%s11809_s1 + $0x6a8] sm:$0xff] }
  0xbc   :  { %3166 = vmatpush.bf16.msrb.mxu2 %v8907_v34  ;;  %v8939_v34 = vld [vmem:[%s11809_s1 + $0x6c8] sm:$0xff] }
  0xbd   :  { %3206 = vmatpush.bf16.msrb.mxu3 %v8911_v35  ;;  %v8943_v35 = vld [vmem:[%s11809_s1 + $0x6e8] sm:$0xff] }
  0xbe   :  { %3087 = vmatpush.bf16.msrb.mxu0 %v8898_v40  ;;  %v1731_v58 = vpop.f32.mrf.mxu2  ;;  %v1809_v62 = vpop.f32.mrf.mxu0  ;;  %v8930_v40 = vld [vmem:[%s11809_s1 + $0x680] sm:$0xff] }
  0xbf   :  { %3127 = vmatpush.bf16.msrb.mxu1 %v8902_v41  ;;  %v1771_v59 = vpop.f32.mrf.mxu3  ;;  %v1849_v63 = vpop.f32.mrf.mxu1  ;;  %6426 = vst.msk [vmem:[%s11811_s2 + $0x18] sm:$0x3] %vm6413_vm1, %v1809_v62  ;;  %v8934_v41 = vld [vmem:[%s11809_s1 + $0x6a0] sm:$0xff] }
  0xc0   :  { %3167 = vmatpush.bf16.msrb.mxu2 %v8906_v38  ;;  %6427 = vst.msk [vmem:[%s11811_s2 + $0x1a] sm:$0x3] %vm6413_vm1, %v1849_v63  ;;  %v8938_v38 = vld [vmem:[%s11809_s1 + $0x6c0] sm:$0xff] }
  0xc1   :  { %3207 = vmatpush.bf16.msrb.mxu3 %v8910_v39  ;;  %7310 = vmatmul.msk.bf16.vlgmr.msrb.gmra.mxu0 %vm1316_vm0, %v184_v60  ;;  %v8942_v39 = vld [vmem:[%s11809_s1 + $0x6e0] sm:$0xff]  ;;  %v192_v60 = vpack.c.bf16 %v64_v50, %v64_v50  ;;  %v72_v50 = vld [vmem:[%s11810_s0 + $0x78] sm:$0x3] }
  0xc2   :  { %3244 = vmatpush.bf16.msra.mxu0 %v8917_v48  ;;  %7327 = vmatmul.msk.bf16.vlgmr.msrb.gmra.mxu1 %vm1316_vm0, %v185_v61  ;;  %v8949_v48 = vld [vmem:[%s11809_s1 + $0x718] sm:$0xff]  ;;  %v193_v61 = vpack.c.bf16 %v65_v53, %v65_v53 }
  0xc3   :  { %3284 = vmatpush.bf16.msra.mxu1 %v8921_v49  ;;  %7344 = vmatmul.msk.bf16.vlgmr.msrb.gmra.mxu2 %vm1316_vm0, %v186_v0  ;;  %v8953_v49 = vld [vmem:[%s11809_s1 + $0x738] sm:$0xff]  ;;  %v194_v0 = vpack.c.bf16 %v66_v56, %v66_v56 }
  0xc4   :  { %3324 = vmatpush.bf16.msra.mxu2 %v8925_v44  ;;  %7361 = vmatmul.msk.bf16.vlgmr.msrb.gmra.mxu3 %vm1316_vm0, %v187_v1  ;;  %v8957_v44 = vld [vmem:[%s11809_s1 + $0x758] sm:$0xff]  ;;  %v195_v1 = vpack.c.bf16 %v67_v57, %v67_v57 }
  0xc5   :  { %3364 = vmatpush.bf16.msra.mxu3 %v8929_v45  ;;  %v8961_v45 = vld [vmem:[%s11809_s1 + $0x778] sm:$0xff] }
  0xc6   :  { %3245 = vmatpush.bf16.msra.mxu0 %v8916_v54  ;;  %v1889_v10 = vpop.f32.mrf.mxu2  ;;  %v1811_v14 = vpop.f32.mrf.mxu0  ;;  %v8948_v54 = vld [vmem:[%s11809_s1 + $0x710] sm:$0xff]  ;;  %v73_v53 = vld [vmem:[%s11810_s0 + $0x7a] sm:$0x3]  ;;  %v74_v56 = vld [vmem:[%s11810_s0 + $0x7c] sm:$0x3] }
  0xc7   :  { %3285 = vmatpush.bf16.msra.mxu1 %v8920_v55  ;;  %v1929_v11 = vpop.f32.mrf.mxu3  ;;  %6428 = vst.msk [vmem:[%s11811_s2 + $0x1c] sm:$0x3] %vm6413_vm1, %v1889_v10  ;;  %v1851_v15 = vpop.f32.mrf.mxu1  ;;  %v8952_v55 = vld [vmem:[%s11809_s1 + $0x730] sm:$0xff]  ;;  %v75_v57 = vld [vmem:[%s11810_s0 + $0x7e] sm:$0x3] }
  0xc8   :  { %3325 = vmatpush.bf16.msra.mxu2 %v8924_v51  ;;  %6429 = vst.msk [vmem:[%s11811_s2 + $0x1e] sm:$0x3] %vm6413_vm1, %v1929_v11  ;;  %v8956_v51 = vld [vmem:[%s11809_s1 + $0x750] sm:$0xff] }
  0xc9   :  { %3365 = vmatpush.bf16.msra.mxu3 %v8928_v52  ;;  %v8960_v52 = vld [vmem:[%s11809_s1 + $0x770] sm:$0xff] }
  0xca   :  { %3246 = vmatpush.bf16.msra.mxu0 %v8915_v4  ;;  %v8947_v4 = vld [vmem:[%s11809_s1 + $0x708] sm:$0xff] }
  0xcb   :  { %3286 = vmatpush.bf16.msra.mxu1 %v8919_v5  ;;  %v8951_v5 = vld [vmem:[%s11809_s1 + $0x728] sm:$0xff] }
  0xcc   :  { %3326 = vmatpush.bf16.msra.mxu2 %v8923_v2  ;;  %v8955_v2 = vld [vmem:[%s11809_s1 + $0x748] sm:$0xff] }
  0xcd   :  { %3366 = vmatpush.bf16.msra.mxu3 %v8927_v3  ;;  %v8959_v3 = vld [vmem:[%s11809_s1 + $0x768] sm:$0xff] }
  0xce   :  { %3247 = vmatpush.bf16.msra.mxu0 %v8914_v8  ;;  %v1891_v26 = vpop.f32.mrf.mxu2  ;;  %v1969_v30 = vpop.f32.mrf.mxu0  ;;  %v8946_v8 = vld [vmem:[%s11809_s1 + $0x700] sm:$0xff] }
  0xcf   :  { %3287 = vmatpush.bf16.msra.mxu1 %v8918_v9  ;;  %v1931_v27 = vpop.f32.mrf.mxu3  ;;  %v2009_v31 = vpop.f32.mrf.mxu1  ;;  %6430 = vst.msk [vmem:[%s11811_s2 + $0x20] sm:$0x3] %vm6413_vm1, %v1969_v30  ;;  %v8950_v9 = vld [vmem:[%s11809_s1 + $0x720] sm:$0xff] }
  0xd0   :  { %3327 = vmatpush.bf16.msra.mxu2 %v8922_v6  ;;  %6431 = vst.msk [vmem:[%s11811_s2 + $0x22] sm:$0x3] %vm6413_vm1, %v2009_v31  ;;  %v8954_v6 = vld [vmem:[%s11809_s1 + $0x740] sm:$0xff] }
  0xd1   :  { %3367 = vmatpush.bf16.msra.mxu3 %v8926_v7  ;;  %7378 = vmatmul.msk.bf16.vlgmr.msra.gmra.mxu0 %vm1316_vm0, %v188_v28  ;;  %v8958_v7 = vld [vmem:[%s11809_s1 + $0x760] sm:$0xff]  ;;  %v196_v28 = vpack.c.bf16 %v68_v18, %v68_v18 }
  0xd2   :  { %3404 = vmatpush.bf16.msrb.mxu0 %v8933_v16  ;;  %7395 = vmatmul.msk.bf16.vlgmr.msra.gmra.mxu1 %vm1316_vm0, %v189_v29  ;;  %v8965_v16 = vld [vmem:[%s11809_s1 + $0x798] sm:$0xff]  ;;  %v197_v29 = vpack.c.bf16 %v69_v21, %v69_v21  ;;  %v76_v18 = vld [vmem:[%s11810_s0 + $0x80] sm:$0x3]  ;;  %v77_v21 = vld [vmem:[%s11810_s0 + $0x82] sm:$0x3] }
  0xd3   :  { %3444 = vmatpush.bf16.msrb.mxu1 %v8937_v17  ;;  %7412 = vmatmul.msk.bf16.vlgmr.msra.gmra.mxu2 %vm1316_vm0, %v190_v32  ;;  %v8969_v17 = vld [vmem:[%s11809_s1 + $0x7b8] sm:$0xff]  ;;  %v198_v32 = vpack.c.bf16 %v70_v24, %v70_v24  ;;  %v78_v24 = vld [vmem:[%s11810_s0 + $0x84] sm:$0x3] }
  0xd4   :  { %3484 = vmatpush.bf16.msrb.mxu2 %v8941_v12  ;;  %7429 = vmatmul.msk.bf16.vlgmr.msra.gmra.mxu3 %vm1316_vm0, %v191_v33  ;;  %v8973_v12 = vld [vmem:[%s11809_s1 + $0x7d8] sm:$0xff]  ;;  %v199_v33 = vpack.c.bf16 %v71_v25, %v71_v25  ;;  %v79_v25 = vld [vmem:[%s11810_s0 + $0x86] sm:$0x3] }
  0xd5   :  { %3524 = vmatpush.bf16.msrb.mxu3 %v8945_v13  ;;  %v8977_v13 = vld [vmem:[%s11809_s1 + $0x7f8] sm:$0xff] }
  0xd6   :  { %3405 = vmatpush.bf16.msrb.mxu0 %v8932_v22  ;;  %v2049_v42 = vpop.f32.mrf.mxu2  ;;  %v1971_v46 = vpop.f32.mrf.mxu0  ;;  %v8964_v22 = vld [vmem:[%s11809_s1 + $0x790] sm:$0xff] }
  0xd7   :  { %3445 = vmatpush.bf16.msrb.mxu1 %v8936_v23  ;;  %v2089_v43 = vpop.f32.mrf.mxu3  ;;  %6432 = vst.msk [vmem:[%s11811_s2 + $0x24] sm:$0x3] %vm6413_vm1, %v2049_v42  ;;  %v2011_v47 = vpop.f32.mrf.mxu1  ;;  %v8968_v23 = vld [vmem:[%s11809_s1 + $0x7b0] sm:$0xff] }
  0xd8   :  { %3485 = vmatpush.bf16.msrb.mxu2 %v8940_v19  ;;  %6433 = vst.msk [vmem:[%s11811_s2 + $0x26] sm:$0x3] %vm6413_vm1, %v2089_v43  ;;  %v8972_v19 = vld [vmem:[%s11809_s1 + $0x7d0] sm:$0xff] }
  0xd9   :  { %3525 = vmatpush.bf16.msrb.mxu3 %v8944_v20  ;;  %v8976_v20 = vld [vmem:[%s11809_s1 + $0x7f0] sm:$0xff] }
  0xda   :  { %3406 = vmatpush.bf16.msrb.mxu0 %v8931_v36  ;;  %v8963_v36 = vld [vmem:[%s11809_s1 + $0x788] sm:$0xff] }
  0xdb   :  { %3446 = vmatpush.bf16.msrb.mxu1 %v8935_v37  ;;  %v8967_v37 = vld [vmem:[%s11809_s1 + $0x7a8] sm:$0xff] }
  0xdc   :  { %3486 = vmatpush.bf16.msrb.mxu2 %v8939_v34  ;;  %v8971_v34 = vld [vmem:[%s11809_s1 + $0x7c8] sm:$0xff] }
  0xdd   :  { %3526 = vmatpush.bf16.msrb.mxu3 %v8943_v35  ;;  %v8975_v35 = vld [vmem:[%s11809_s1 + $0x7e8] sm:$0xff] }
  0xde   :  { %3407 = vmatpush.bf16.msrb.mxu0 %v8930_v40  ;;  %v2051_v58 = vpop.f32.mrf.mxu2  ;;  %v2129_v62 = vpop.f32.mrf.mxu0  ;;  %v8962_v40 = vld [vmem:[%s11809_s1 + $0x780] sm:$0xff] }
  0xdf   :  { %3447 = vmatpush.bf16.msrb.mxu1 %v8934_v41  ;;  %v2091_v59 = vpop.f32.mrf.mxu3  ;;  %v2169_v63 = vpop.f32.mrf.mxu1  ;;  %6434 = vst.msk [vmem:[%s11811_s2 + $0x28] sm:$0x3] %vm6413_vm1, %v2129_v62  ;;  %v8966_v41 = vld [vmem:[%s11809_s1 + $0x7a0] sm:$0xff] }
  0xe0   :  { %3487 = vmatpush.bf16.msrb.mxu2 %v8938_v38  ;;  %6435 = vst.msk [vmem:[%s11811_s2 + $0x2a] sm:$0x3] %vm6413_vm1, %v2169_v63  ;;  %v8970_v38 = vld [vmem:[%s11809_s1 + $0x7c0] sm:$0xff] }
  0xe1   :  { %3527 = vmatpush.bf16.msrb.mxu3 %v8942_v39  ;;  %7446 = vmatmul.msk.bf16.vlgmr.msrb.gmra.mxu0 %vm1316_vm0, %v192_v60  ;;  %v8974_v39 = vld [vmem:[%s11809_s1 + $0x7e0] sm:$0xff]  ;;  %v200_v60 = vpack.c.bf16 %v72_v50, %v72_v50  ;;  %v80_v50 = vld [vmem:[%s11810_s0 + $0x88] sm:$0x3] }
  0xe2   :  { %3564 = vmatpush.bf16.msra.mxu0 %v8949_v48  ;;  %7463 = vmatmul.msk.bf16.vlgmr.msrb.gmra.mxu1 %vm1316_vm0, %v193_v61  ;;  %v8981_v48 = vld [vmem:[%s11809_s1 + $0x818] sm:$0xff]  ;;  %v201_v61 = vpack.c.bf16 %v73_v53, %v73_v53  ;;  %v81_v53 = vld [vmem:[%s11810_s0 + $0x8a] sm:$0x3] }
  0xe3   :  { %3604 = vmatpush.bf16.msra.mxu1 %v8953_v49  ;;  %7480 = vmatmul.msk.bf16.vlgmr.msrb.gmra.mxu2 %vm1316_vm0, %v194_v0  ;;  %v8985_v49 = vld [vmem:[%s11809_s1 + $0x838] sm:$0xff]  ;;  %v202_v0 = vpack.c.bf16 %v74_v56, %v74_v56  ;;  %v82_v56 = vld [vmem:[%s11810_s0 + $0x8c] sm:$0x3] }
  0xe4   :  { %3644 = vmatpush.bf16.msra.mxu2 %v8957_v44  ;;  %7497 = vmatmul.msk.bf16.vlgmr.msrb.gmra.mxu3 %vm1316_vm0, %v195_v1  ;;  %v8989_v44 = vld [vmem:[%s11809_s1 + $0x858] sm:$0xff]  ;;  %v203_v1 = vpack.c.bf16 %v75_v57, %v75_v57  ;;  %v83_v57 = vld [vmem:[%s11810_s0 + $0x8e] sm:$0x3] }
  0xe5   :  { %3684 = vmatpush.bf16.msra.mxu3 %v8961_v45  ;;  %v8993_v45 = vld [vmem:[%s11809_s1 + $0x878] sm:$0xff] }
  0xe6   :  { %3565 = vmatpush.bf16.msra.mxu0 %v8948_v54  ;;  %v2209_v10 = vpop.f32.mrf.mxu2  ;;  %v2131_v14 = vpop.f32.mrf.mxu0  ;;  %v8980_v54 = vld [vmem:[%s11809_s1 + $0x810] sm:$0xff] }
  0xe7   :  { %3605 = vmatpush.bf16.msra.mxu1 %v8952_v55  ;;  %v2249_v11 = vpop.f32.mrf.mxu3  ;;  %6436 = vst.msk [vmem:[%s11811_s2 + $0x2c] sm:$0x3] %vm6413_vm1, %v2209_v10  ;;  %v2171_v15 = vpop.f32.mrf.mxu1  ;;  %v8984_v55 = vld [vmem:[%s11809_s1 + $0x830] sm:$0xff] }
  0xe8   :  { %3645 = vmatpush.bf16.msra.mxu2 %v8956_v51  ;;  %6437 = vst.msk [vmem:[%s11811_s2 + $0x2e] sm:$0x3] %vm6413_vm1, %v2249_v11  ;;  %v8988_v51 = vld [vmem:[%s11809_s1 + $0x850] sm:$0xff] }
  0xe9   :  { %3685 = vmatpush.bf16.msra.mxu3 %v8960_v52  ;;  %v8992_v52 = vld [vmem:[%s11809_s1 + $0x870] sm:$0xff] }
  0xea   :  { %3566 = vmatpush.bf16.msra.mxu0 %v8947_v4  ;;  %v8979_v4 = vld [vmem:[%s11809_s1 + $0x808] sm:$0xff] }
  0xeb   :  { %3606 = vmatpush.bf16.msra.mxu1 %v8951_v5  ;;  %v8983_v5 = vld [vmem:[%s11809_s1 + $0x828] sm:$0xff] }
  0xec   :  { %3646 = vmatpush.bf16.msra.mxu2 %v8955_v2  ;;  %v8987_v2 = vld [vmem:[%s11809_s1 + $0x848] sm:$0xff] }
  0xed   :  { %3686 = vmatpush.bf16.msra.mxu3 %v8959_v3  ;;  %v8991_v3 = vld [vmem:[%s11809_s1 + $0x868] sm:$0xff] }
  0xee   :  { %3567 = vmatpush.bf16.msra.mxu0 %v8946_v8  ;;  %v2211_v26 = vpop.f32.mrf.mxu2  ;;  %v2289_v30 = vpop.f32.mrf.mxu0  ;;  %v8978_v8 = vld [vmem:[%s11809_s1 + $0x800] sm:$0xff] }
  0xef   :  { %3607 = vmatpush.bf16.msra.mxu1 %v8950_v9  ;;  %v2251_v27 = vpop.f32.mrf.mxu3  ;;  %v2329_v31 = vpop.f32.mrf.mxu1  ;;  %6438 = vst.msk [vmem:[%s11811_s2 + $0x30] sm:$0x3] %vm6413_vm1, %v2289_v30  ;;  %v8982_v9 = vld [vmem:[%s11809_s1 + $0x820] sm:$0xff] }
  0xf0   :  { %3647 = vmatpush.bf16.msra.mxu2 %v8954_v6  ;;  %6439 = vst.msk [vmem:[%s11811_s2 + $0x32] sm:$0x3] %vm6413_vm1, %v2329_v31  ;;  %v8986_v6 = vld [vmem:[%s11809_s1 + $0x840] sm:$0xff] }
  0xf1   :  { %3687 = vmatpush.bf16.msra.mxu3 %v8958_v7  ;;  %7514 = vmatmul.msk.bf16.vlgmr.msra.gmra.mxu0 %vm1316_vm0, %v196_v28  ;;  %v8990_v7 = vld [vmem:[%s11809_s1 + $0x860] sm:$0xff]  ;;  %v204_v28 = vpack.c.bf16 %v76_v18, %v76_v18  ;;  %v84_v18 = vld [vmem:[%s11810_s0 + $0x90] sm:$0x3] }
  0xf2   :  { %3724 = vmatpush.bf16.msrb.mxu0 %v8965_v16  ;;  %7531 = vmatmul.msk.bf16.vlgmr.msra.gmra.mxu1 %vm1316_vm0, %v197_v29  ;;  %v8997_v16 = vld [vmem:[%s11809_s1 + $0x898] sm:$0xff]  ;;  %v205_v29 = vpack.c.bf16 %v77_v21, %v77_v21  ;;  %v85_v21 = vld [vmem:[%s11810_s0 + $0x92] sm:$0x3] }
  0xf3   :  { %3764 = vmatpush.bf16.msrb.mxu1 %v8969_v17  ;;  %7548 = vmatmul.msk.bf16.vlgmr.msra.gmra.mxu2 %vm1316_vm0, %v198_v32  ;;  %v9001_v17 = vld [vmem:[%s11809_s1 + $0x8b8] sm:$0xff]  ;;  %v206_v32 = vpack.c.bf16 %v78_v24, %v78_v24  ;;  %v86_v24 = vld [vmem:[%s11810_s0 + $0x94] sm:$0x3] }
  0xf4   :  { %3804 = vmatpush.bf16.msrb.mxu2 %v8973_v12  ;;  %7565 = vmatmul.msk.bf16.vlgmr.msra.gmra.mxu3 %vm1316_vm0, %v199_v33  ;;  %v9005_v12 = vld [vmem:[%s11809_s1 + $0x8d8] sm:$0xff]  ;;  %v207_v33 = vpack.c.bf16 %v79_v25, %v79_v25  ;;  %v87_v25 = vld [vmem:[%s11810_s0 + $0x96] sm:$0x3] }
  0xf5   :  { %3844 = vmatpush.bf16.msrb.mxu3 %v8977_v13  ;;  %v9009_v13 = vld [vmem:[%s11809_s1 + $0x8f8] sm:$0xff] }
  0xf6   :  { %3725 = vmatpush.bf16.msrb.mxu0 %v8964_v22  ;;  %v2369_v42 = vpop.f32.mrf.mxu2  ;;  %v2291_v46 = vpop.f32.mrf.mxu0  ;;  %v8996_v22 = vld [vmem:[%s11809_s1 + $0x890] sm:$0xff] }
  0xf7   :  { %3765 = vmatpush.bf16.msrb.mxu1 %v8968_v23  ;;  %v2409_v43 = vpop.f32.mrf.mxu3  ;;  %6440 = vst.msk [vmem:[%s11811_s2 + $0x34] sm:$0x3] %vm6413_vm1, %v2369_v42  ;;  %v2331_v47 = vpop.f32.mrf.mxu1  ;;  %v9000_v23 = vld [vmem:[%s11809_s1 + $0x8b0] sm:$0xff] }
  0xf8   :  { %3805 = vmatpush.bf16.msrb.mxu2 %v8972_v19  ;;  %6441 = vst.msk [vmem:[%s11811_s2 + $0x36] sm:$0x3] %vm6413_vm1, %v2409_v43  ;;  %v9004_v19 = vld [vmem:[%s11809_s1 + $0x8d0] sm:$0xff] }
  0xf9   :  { %3845 = vmatpush.bf16.msrb.mxu3 %v8976_v20  ;;  %v9008_v20 = vld [vmem:[%s11809_s1 + $0x8f0] sm:$0xff] }
  0xfa   :  { %3726 = vmatpush.bf16.msrb.mxu0 %v8963_v36  ;;  %v8995_v36 = vld [vmem:[%s11809_s1 + $0x888] sm:$0xff] }
  0xfb   :  { %3766 = vmatpush.bf16.msrb.mxu1 %v8967_v37  ;;  %v8999_v37 = vld [vmem:[%s11809_s1 + $0x8a8] sm:$0xff] }
  0xfc   :  { %3806 = vmatpush.bf16.msrb.mxu2 %v8971_v34  ;;  %v9003_v34 = vld [vmem:[%s11809_s1 + $0x8c8] sm:$0xff] }
  0xfd   :  { %3846 = vmatpush.bf16.msrb.mxu3 %v8975_v35  ;;  %v9007_v35 = vld [vmem:[%s11809_s1 + $0x8e8] sm:$0xff] }
  0xfe   :  { %3727 = vmatpush.bf16.msrb.mxu0 %v8962_v40  ;;  %v2371_v58 = vpop.f32.mrf.mxu2  ;;  %v2449_v62 = vpop.f32.mrf.mxu0  ;;  %v8994_v40 = vld [vmem:[%s11809_s1 + $0x880] sm:$0xff] }
  0xff   :  { %3767 = vmatpush.bf16.msrb.mxu1 %v8966_v41  ;;  %v2411_v59 = vpop.f32.mrf.mxu3  ;;  %v2489_v63 = vpop.f32.mrf.mxu1  ;;  %6442 = vst.msk [vmem:[%s11811_s2 + $0x38] sm:$0x3] %vm6413_vm1, %v2449_v62  ;;  %v8998_v41 = vld [vmem:[%s11809_s1 + $0x8a0] sm:$0xff] }
 0x100   :  { %3807 = vmatpush.bf16.msrb.mxu2 %v8970_v38  ;;  %6443 = vst.msk [vmem:[%s11811_s2 + $0x3a] sm:$0x3] %vm6413_vm1, %v2489_v63  ;;  %v9002_v38 = vld [vmem:[%s11809_s1 + $0x8c0] sm:$0xff] }
 0x101   :  { %3847 = vmatpush.bf16.msrb.mxu3 %v8974_v39  ;;  %7582 = vmatmul.msk.bf16.vlgmr.msrb.gmra.mxu0 %vm1316_vm0, %v200_v60  ;;  %v9006_v39 = vld [vmem:[%s11809_s1 + $0x8e0] sm:$0xff]  ;;  %v208_v60 = vpack.c.bf16 %v80_v50, %v80_v50  ;;  %v88_v50 = vld [vmem:[%s11810_s0 + $0x98] sm:$0x3] }
 0x102   :  { %3884 = vmatpush.bf16.msra.mxu0 %v8981_v48  ;;  %7599 = vmatmul.msk.bf16.vlgmr.msrb.gmra.mxu1 %vm1316_vm0, %v201_v61  ;;  %v9013_v48 = vld [vmem:[%s11809_s1 + $0x918] sm:$0xff]  ;;  %v209_v61 = vpack.c.bf16 %v81_v53, %v81_v53 }
 0x103   :  { %3924 = vmatpush.bf16.msra.mxu1 %v8985_v49  ;;  %7616 = vmatmul.msk.bf16.vlgmr.msrb.gmra.mxu2 %vm1316_vm0, %v202_v0  ;;  %v9017_v49 = vld [vmem:[%s11809_s1 + $0x938] sm:$0xff]  ;;  %v210_v0 = vpack.c.bf16 %v82_v56, %v82_v56 }
 0x104   :  { %3964 = vmatpush.bf16.msra.mxu2 %v8989_v44  ;;  %7633 = vmatmul.msk.bf16.vlgmr.msrb.gmra.mxu3 %vm1316_vm0, %v203_v1  ;;  %v9021_v44 = vld [vmem:[%s11809_s1 + $0x958] sm:$0xff]  ;;  %v211_v1 = vpack.c.bf16 %v83_v57, %v83_v57 }
 0x105   :  { %4004 = vmatpush.bf16.msra.mxu3 %v8993_v45  ;;  %v9025_v45 = vld [vmem:[%s11809_s1 + $0x978] sm:$0xff] }
 0x106   :  { %3885 = vmatpush.bf16.msra.mxu0 %v8980_v54  ;;  %v2529_v10 = vpop.f32.mrf.mxu2  ;;  %v2451_v14 = vpop.f32.mrf.mxu0  ;;  %v9012_v54 = vld [vmem:[%s11809_s1 + $0x910] sm:$0xff]  ;;  %v89_v53 = vld [vmem:[%s11810_s0 + $0x9a] sm:$0x3]  ;;  %v90_v56 = vld [vmem:[%s11810_s0 + $0x9c] sm:$0x3] }
 0x107   :  { %3925 = vmatpush.bf16.msra.mxu1 %v8984_v55  ;;  %v2569_v11 = vpop.f32.mrf.mxu3  ;;  %6444 = vst.msk [vmem:[%s11811_s2 + $0x3c] sm:$0x3] %vm6413_vm1, %v2529_v10  ;;  %v2491_v15 = vpop.f32.mrf.mxu1  ;;  %v9016_v55 = vld [vmem:[%s11809_s1 + $0x930] sm:$0xff]  ;;  %v91_v57 = vld [vmem:[%s11810_s0 + $0x9e] sm:$0x3] }
 0x108   :  { %3965 = vmatpush.bf16.msra.mxu2 %v8988_v51  ;;  %6445 = vst.msk [vmem:[%s11811_s2 + $0x3e] sm:$0x3] %vm6413_vm1, %v2569_v11  ;;  %v9020_v51 = vld [vmem:[%s11809_s1 + $0x950] sm:$0xff] }
 0x109   :  { %4005 = vmatpush.bf16.msra.mxu3 %v8992_v52  ;;  %v9024_v52 = vld [vmem:[%s11809_s1 + $0x970] sm:$0xff] }
 0x10a   :  { %3886 = vmatpush.bf16.msra.mxu0 %v8979_v4  ;;  %v9011_v4 = vld [vmem:[%s11809_s1 + $0x908] sm:$0xff] }
 0x10b   :  { %3926 = vmatpush.bf16.msra.mxu1 %v8983_v5  ;;  %v9015_v5 = vld [vmem:[%s11809_s1 + $0x928] sm:$0xff] }
 0x10c   :  { %3966 = vmatpush.bf16.msra.mxu2 %v8987_v2  ;;  %v9019_v2 = vld [vmem:[%s11809_s1 + $0x948] sm:$0xff] }
 0x10d   :  { %4006 = vmatpush.bf16.msra.mxu3 %v8991_v3  ;;  %v9023_v3 = vld [vmem:[%s11809_s1 + $0x968] sm:$0xff] }
 0x10e   :  { %3887 = vmatpush.bf16.msra.mxu0 %v8978_v8  ;;  %v2531_v26 = vpop.f32.mrf.mxu2  ;;  %v2609_v30 = vpop.f32.mrf.mxu0  ;;  %v9010_v8 = vld [vmem:[%s11809_s1 + $0x900] sm:$0xff] }
 0x10f   :  { %3927 = vmatpush.bf16.msra.mxu1 %v8982_v9  ;;  %v2571_v27 = vpop.f32.mrf.mxu3  ;;  %v2649_v31 = vpop.f32.mrf.mxu1  ;;  %6446 = vst.msk [vmem:[%s11811_s2 + $0x40] sm:$0x3] %vm6413_vm1, %v2609_v30  ;;  %v9014_v9 = vld [vmem:[%s11809_s1 + $0x920] sm:$0xff] }
 0x110   :  { %3967 = vmatpush.bf16.msra.mxu2 %v8986_v6  ;;  %6447 = vst.msk [vmem:[%s11811_s2 + $0x42] sm:$0x3] %vm6413_vm1, %v2649_v31  ;;  %v9018_v6 = vld [vmem:[%s11809_s1 + $0x940] sm:$0xff] }
 0x111   :  { %4007 = vmatpush.bf16.msra.mxu3 %v8990_v7  ;;  %7650 = vmatmul.msk.bf16.vlgmr.msra.gmra.mxu0 %vm1316_vm0, %v204_v28  ;;  %v9022_v7 = vld [vmem:[%s11809_s1 + $0x960] sm:$0xff]  ;;  %v212_v28 = vpack.c.bf16 %v84_v18, %v84_v18 }
 0x112   :  { %4044 = vmatpush.bf16.msrb.mxu0 %v8997_v16  ;;  %7667 = vmatmul.msk.bf16.vlgmr.msra.gmra.mxu1 %vm1316_vm0, %v205_v29  ;;  %v9029_v16 = vld [vmem:[%s11809_s1 + $0x998] sm:$0xff]  ;;  %v213_v29 = vpack.c.bf16 %v85_v21, %v85_v21  ;;  %v92_v18 = vld [vmem:[%s11810_s0 + $0xa0] sm:$0x3]  ;;  %v93_v21 = vld [vmem:[%s11810_s0 + $0xa2] sm:$0x3] }
 0x113   :  { %4084 = vmatpush.bf16.msrb.mxu1 %v9001_v17  ;;  %7684 = vmatmul.msk.bf16.vlgmr.msra.gmra.mxu2 %vm1316_vm0, %v206_v32  ;;  %v9033_v17 = vld [vmem:[%s11809_s1 + $0x9b8] sm:$0xff]  ;;  %v214_v32 = vpack.c.bf16 %v86_v24, %v86_v24  ;;  %v94_v24 = vld [vmem:[%s11810_s0 + $0xa4] sm:$0x3] }
 0x114   :  { %4124 = vmatpush.bf16.msrb.mxu2 %v9005_v12  ;;  %7701 = vmatmul.msk.bf16.vlgmr.msra.gmra.mxu3 %vm1316_vm0, %v207_v33  ;;  %v9037_v12 = vld [vmem:[%s11809_s1 + $0x9d8] sm:$0xff]  ;;  %v215_v33 = vpack.c.bf16 %v87_v25, %v87_v25  ;;  %v95_v25 = vld [vmem:[%s11810_s0 + $0xa6] sm:$0x3] }
 0x115   :  { %4164 = vmatpush.bf16.msrb.mxu3 %v9009_v13  ;;  %v9041_v13 = vld [vmem:[%s11809_s1 + $0x9f8] sm:$0xff] }
 0x116   :  { %4045 = vmatpush.bf16.msrb.mxu0 %v8996_v22  ;;  %v2689_v42 = vpop.f32.mrf.mxu2  ;;  %v2611_v46 = vpop.f32.mrf.mxu0  ;;  %v9028_v22 = vld [vmem:[%s11809_s1 + $0x990] sm:$0xff] }
 0x117   :  { %4085 = vmatpush.bf16.msrb.mxu1 %v9000_v23  ;;  %v2729_v43 = vpop.f32.mrf.mxu3  ;;  %6448 = vst.msk [vmem:[%s11811_s2 + $0x44] sm:$0x3] %vm6413_vm1, %v2689_v42  ;;  %v2651_v47 = vpop.f32.mrf.mxu1  ;;  %v9032_v23 = vld [vmem:[%s11809_s1 + $0x9b0] sm:$0xff] }
 0x118   :  { %4125 = vmatpush.bf16.msrb.mxu2 %v9004_v19  ;;  %6449 = vst.msk [vmem:[%s11811_s2 + $0x46] sm:$0x3] %vm6413_vm1, %v2729_v43  ;;  %v9036_v19 = vld [vmem:[%s11809_s1 + $0x9d0] sm:$0xff] }
 0x119   :  { %4165 = vmatpush.bf16.msrb.mxu3 %v9008_v20  ;;  %v9040_v20 = vld [vmem:[%s11809_s1 + $0x9f0] sm:$0xff] }
 0x11a   :  { %4046 = vmatpush.bf16.msrb.mxu0 %v8995_v36  ;;  %v9027_v36 = vld [vmem:[%s11809_s1 + $0x988] sm:$0xff] }
 0x11b   :  { %4086 = vmatpush.bf16.msrb.mxu1 %v8999_v37  ;;  %v9031_v37 = vld [vmem:[%s11809_s1 + $0x9a8] sm:$0xff] }
 0x11c   :  { %4126 = vmatpush.bf16.msrb.mxu2 %v9003_v34  ;;  %v9035_v34 = vld [vmem:[%s11809_s1 + $0x9c8] sm:$0xff] }
 0x11d   :  { %4166 = vmatpush.bf16.msrb.mxu3 %v9007_v35  ;;  %v9039_v35 = vld [vmem:[%s11809_s1 + $0x9e8] sm:$0xff] }
 0x11e   :  { %4047 = vmatpush.bf16.msrb.mxu0 %v8994_v40  ;;  %v2691_v58 = vpop.f32.mrf.mxu2  ;;  %v2769_v62 = vpop.f32.mrf.mxu0  ;;  %v9026_v40 = vld [vmem:[%s11809_s1 + $0x980] sm:$0xff] }
 0x11f   :  { %4087 = vmatpush.bf16.msrb.mxu1 %v8998_v41  ;;  %v2731_v59 = vpop.f32.mrf.mxu3  ;;  %v2809_v63 = vpop.f32.mrf.mxu1  ;;  %6450 = vst.msk [vmem:[%s11811_s2 + $0x48] sm:$0x3] %vm6413_vm1, %v2769_v62  ;;  %v9030_v41 = vld [vmem:[%s11809_s1 + $0x9a0] sm:$0xff] }
 0x120   :  { %4127 = vmatpush.bf16.msrb.mxu2 %v9002_v38  ;;  %6451 = vst.msk [vmem:[%s11811_s2 + $0x4a] sm:$0x3] %vm6413_vm1, %v2809_v63  ;;  %v9034_v38 = vld [vmem:[%s11809_s1 + $0x9c0] sm:$0xff] }
 0x121   :  { %4167 = vmatpush.bf16.msrb.mxu3 %v9006_v39  ;;  %7718 = vmatmul.msk.bf16.vlgmr.msrb.gmra.mxu0 %vm1316_vm0, %v208_v60  ;;  %v9038_v39 = vld [vmem:[%s11809_s1 + $0x9e0] sm:$0xff]  ;;  %v216_v60 = vpack.c.bf16 %v88_v50, %v88_v50  ;;  %v96_v50 = vld [vmem:[%s11810_s0 + $0xa8] sm:$0x3] }
 0x122   :  { %4204 = vmatpush.bf16.msra.mxu0 %v9013_v48  ;;  %7735 = vmatmul.msk.bf16.vlgmr.msrb.gmra.mxu1 %vm1316_vm0, %v209_v61  ;;  %v9045_v48 = vld [vmem:[%s11809_s1 + $0xa18] sm:$0xff]  ;;  %v217_v61 = vpack.c.bf16 %v89_v53, %v89_v53  ;;  %v97_v53 = vld [vmem:[%s11810_s0 + $0xaa] sm:$0x3] }
 0x123   :  { %4244 = vmatpush.bf16.msra.mxu1 %v9017_v49  ;;  %7752 = vmatmul.msk.bf16.vlgmr.msrb.gmra.mxu2 %vm1316_vm0, %v210_v0  ;;  %v9049_v49 = vld [vmem:[%s11809_s1 + $0xa38] sm:$0xff]  ;;  %v218_v0 = vpack.c.bf16 %v90_v56, %v90_v56  ;;  %v98_v56 = vld [vmem:[%s11810_s0 + $0xac] sm:$0x3] }
 0x124   :  { %4284 = vmatpush.bf16.msra.mxu2 %v9021_v44  ;;  %7769 = vmatmul.msk.bf16.vlgmr.msrb.gmra.mxu3 %vm1316_vm0, %v211_v1  ;;  %v9053_v44 = vld [vmem:[%s11809_s1 + $0xa58] sm:$0xff]  ;;  %v219_v1 = vpack.c.bf16 %v91_v57, %v91_v57  ;;  %v99_v57 = vld [vmem:[%s11810_s0 + $0xae] sm:$0x3] }
 0x125   :  { %4324 = vmatpush.bf16.msra.mxu3 %v9025_v45  ;;  %v9057_v45 = vld [vmem:[%s11809_s1 + $0xa78] sm:$0xff] }
 0x126   :  { %4205 = vmatpush.bf16.msra.mxu0 %v9012_v54  ;;  %v2849_v10 = vpop.f32.mrf.mxu2  ;;  %v2771_v14 = vpop.f32.mrf.mxu0  ;;  %v9044_v54 = vld [vmem:[%s11809_s1 + $0xa10] sm:$0xff] }
 0x127   :  { %4245 = vmatpush.bf16.msra.mxu1 %v9016_v55  ;;  %v2889_v11 = vpop.f32.mrf.mxu3  ;;  %6452 = vst.msk [vmem:[%s11811_s2 + $0x4c] sm:$0x3] %vm6413_vm1, %v2849_v10  ;;  %v2811_v15 = vpop.f32.mrf.mxu1  ;;  %v9048_v55 = vld [vmem:[%s11809_s1 + $0xa30] sm:$0xff] }
 0x128   :  { %4285 = vmatpush.bf16.msra.mxu2 %v9020_v51  ;;  %6453 = vst.msk [vmem:[%s11811_s2 + $0x4e] sm:$0x3] %vm6413_vm1, %v2889_v11  ;;  %v9052_v51 = vld [vmem:[%s11809_s1 + $0xa50] sm:$0xff] }
 0x129   :  { %4325 = vmatpush.bf16.msra.mxu3 %v9024_v52  ;;  %v9056_v52 = vld [vmem:[%s11809_s1 + $0xa70] sm:$0xff] }
 0x12a   :  { %4206 = vmatpush.bf16.msra.mxu0 %v9011_v4  ;;  %v9043_v4 = vld [vmem:[%s11809_s1 + $0xa08] sm:$0xff] }
 0x12b   :  { %4246 = vmatpush.bf16.msra.mxu1 %v9015_v5  ;;  %v9047_v5 = vld [vmem:[%s11809_s1 + $0xa28] sm:$0xff] }
 0x12c   :  { %4286 = vmatpush.bf16.msra.mxu2 %v9019_v2  ;;  %v9051_v2 = vld [vmem:[%s11809_s1 + $0xa48] sm:$0xff] }
 0x12d   :  { %4326 = vmatpush.bf16.msra.mxu3 %v9023_v3  ;;  %v9055_v3 = vld [vmem:[%s11809_s1 + $0xa68] sm:$0xff] }
 0x12e   :  { %4207 = vmatpush.bf16.msra.mxu0 %v9010_v8  ;;  %v2851_v26 = vpop.f32.mrf.mxu2  ;;  %v2929_v30 = vpop.f32.mrf.mxu0  ;;  %v9042_v8 = vld [vmem:[%s11809_s1 + $0xa00] sm:$0xff] }
 0x12f   :  { %4247 = vmatpush.bf16.msra.mxu1 %v9014_v9  ;;  %v2891_v27 = vpop.f32.mrf.mxu3  ;;  %v2969_v31 = vpop.f32.mrf.mxu1  ;;  %6454 = vst.msk [vmem:[%s11811_s2 + $0x50] sm:$0x3] %vm6413_vm1, %v2929_v30  ;;  %v9046_v9 = vld [vmem:[%s11809_s1 + $0xa20] sm:$0xff] }
 0x130   :  { %4287 = vmatpush.bf16.msra.mxu2 %v9018_v6  ;;  %6455 = vst.msk [vmem:[%s11811_s2 + $0x52] sm:$0x3] %vm6413_vm1, %v2969_v31  ;;  %v9050_v6 = vld [vmem:[%s11809_s1 + $0xa40] sm:$0xff] }
 0x131   :  { %4327 = vmatpush.bf16.msra.mxu3 %v9022_v7  ;;  %7786 = vmatmul.msk.bf16.vlgmr.msra.gmra.mxu0 %vm1316_vm0, %v212_v28  ;;  %v9054_v7 = vld [vmem:[%s11809_s1 + $0xa60] sm:$0xff]  ;;  %v220_v28 = vpack.c.bf16 %v92_v18, %v92_v18  ;;  %v100_v18 = vld [vmem:[%s11810_s0 + $0xb0] sm:$0x3] }
 0x132   :  { %4364 = vmatpush.bf16.msrb.mxu0 %v9029_v16  ;;  %7803 = vmatmul.msk.bf16.vlgmr.msra.gmra.mxu1 %vm1316_vm0, %v213_v29  ;;  %v9061_v16 = vld [vmem:[%s11809_s1 + $0xa98] sm:$0xff]  ;;  %v221_v29 = vpack.c.bf16 %v93_v21, %v93_v21  ;;  %v101_v21 = vld [vmem:[%s11810_s0 + $0xb2] sm:$0x3] }
 0x133   :  { %4404 = vmatpush.bf16.msrb.mxu1 %v9033_v17  ;;  %7820 = vmatmul.msk.bf16.vlgmr.msra.gmra.mxu2 %vm1316_vm0, %v214_v32  ;;  %v9065_v17 = vld [vmem:[%s11809_s1 + $0xab8] sm:$0xff]  ;;  %v222_v32 = vpack.c.bf16 %v94_v24, %v94_v24  ;;  %v102_v24 = vld [vmem:[%s11810_s0 + $0xb4] sm:$0x3] }
 0x134   :  { %4444 = vmatpush.bf16.msrb.mxu2 %v9037_v12  ;;  %7837 = vmatmul.msk.bf16.vlgmr.msra.gmra.mxu3 %vm1316_vm0, %v215_v33  ;;  %v9069_v12 = vld [vmem:[%s11809_s1 + $0xad8] sm:$0xff]  ;;  %v223_v33 = vpack.c.bf16 %v95_v25, %v95_v25  ;;  %v103_v25 = vld [vmem:[%s11810_s0 + $0xb6] sm:$0x3] }
 0x135   :  { %4484 = vmatpush.bf16.msrb.mxu3 %v9041_v13  ;;  %v9073_v13 = vld [vmem:[%s11809_s1 + $0xaf8] sm:$0xff] }
 0x136   :  { %4365 = vmatpush.bf16.msrb.mxu0 %v9028_v22  ;;  %v3009_v42 = vpop.f32.mrf.mxu2  ;;  %v2931_v46 = vpop.f32.mrf.mxu0  ;;  %v9060_v22 = vld [vmem:[%s11809_s1 + $0xa90] sm:$0xff] }
 0x137   :  { %4405 = vmatpush.bf16.msrb.mxu1 %v9032_v23  ;;  %v3049_v43 = vpop.f32.mrf.mxu3  ;;  %6456 = vst.msk [vmem:[%s11811_s2 + $0x54] sm:$0x3] %vm6413_vm1, %v3009_v42  ;;  %v2971_v47 = vpop.f32.mrf.mxu1  ;;  %v9064_v23 = vld [vmem:[%s11809_s1 + $0xab0] sm:$0xff] }
 0x138   :  { %4445 = vmatpush.bf16.msrb.mxu2 %v9036_v19  ;;  %6457 = vst.msk [vmem:[%s11811_s2 + $0x56] sm:$0x3] %vm6413_vm1, %v3049_v43  ;;  %v9068_v19 = vld [vmem:[%s11809_s1 + $0xad0] sm:$0xff] }
 0x139   :  { %4485 = vmatpush.bf16.msrb.mxu3 %v9040_v20  ;;  %v9072_v20 = vld [vmem:[%s11809_s1 + $0xaf0] sm:$0xff] }
 0x13a   :  { %4366 = vmatpush.bf16.msrb.mxu0 %v9027_v36  ;;  %v9059_v36 = vld [vmem:[%s11809_s1 + $0xa88] sm:$0xff] }
 0x13b   :  { %4406 = vmatpush.bf16.msrb.mxu1 %v9031_v37  ;;  %v9063_v37 = vld [vmem:[%s11809_s1 + $0xaa8] sm:$0xff] }
 0x13c   :  { %4446 = vmatpush.bf16.msrb.mxu2 %v9035_v34  ;;  %v9067_v34 = vld [vmem:[%s11809_s1 + $0xac8] sm:$0xff] }
 0x13d   :  { %4486 = vmatpush.bf16.msrb.mxu3 %v9039_v35  ;;  %v9071_v35 = vld [vmem:[%s11809_s1 + $0xae8] sm:$0xff] }
 0x13e   :  { %4367 = vmatpush.bf16.msrb.mxu0 %v9026_v40  ;;  %v3011_v58 = vpop.f32.mrf.mxu2  ;;  %v3089_v62 = vpop.f32.mrf.mxu0  ;;  %v9058_v40 = vld [vmem:[%s11809_s1 + $0xa80] sm:$0xff] }
 0x13f   :  { %4407 = vmatpush.bf16.msrb.mxu1 %v9030_v41  ;;  %v3051_v59 = vpop.f32.mrf.mxu3  ;;  %v3129_v63 = vpop.f32.mrf.mxu1  ;;  %6458 = vst.msk [vmem:[%s11811_s2 + $0x58] sm:$0x3] %vm6413_vm1, %v3089_v62  ;;  %v9062_v41 = vld [vmem:[%s11809_s1 + $0xaa0] sm:$0xff] }
 0x140   :  { %4447 = vmatpush.bf16.msrb.mxu2 %v9034_v38  ;;  %6459 = vst.msk [vmem:[%s11811_s2 + $0x5a] sm:$0x3] %vm6413_vm1, %v3129_v63  ;;  %v9066_v38 = vld [vmem:[%s11809_s1 + $0xac0] sm:$0xff] }
 0x141   :  { %4487 = vmatpush.bf16.msrb.mxu3 %v9038_v39  ;;  %7854 = vmatmul.msk.bf16.vlgmr.msrb.gmra.mxu0 %vm1316_vm0, %v216_v60  ;;  %v9070_v39 = vld [vmem:[%s11809_s1 + $0xae0] sm:$0xff]  ;;  %v224_v60 = vpack.c.bf16 %v96_v50, %v96_v50  ;;  %v104_v50 = vld [vmem:[%s11810_s0 + $0xb8] sm:$0x3] }
 0x142   :  { %4524 = vmatpush.bf16.msra.mxu0 %v9045_v48  ;;  %7871 = vmatmul.msk.bf16.vlgmr.msrb.gmra.mxu1 %vm1316_vm0, %v217_v61  ;;  %v9077_v48 = vld [vmem:[%s11809_s1 + $0xb18] sm:$0xff]  ;;  %v225_v61 = vpack.c.bf16 %v97_v53, %v97_v53 }
 0x143   :  { %4564 = vmatpush.bf16.msra.mxu1 %v9049_v49  ;;  %7888 = vmatmul.msk.bf16.vlgmr.msrb.gmra.mxu2 %vm1316_vm0, %v218_v0  ;;  %v9081_v49 = vld [vmem:[%s11809_s1 + $0xb38] sm:$0xff]  ;;  %v226_v0 = vpack.c.bf16 %v98_v56, %v98_v56 }
 0x144   :  { %4604 = vmatpush.bf16.msra.mxu2 %v9053_v44  ;;  %7905 = vmatmul.msk.bf16.vlgmr.msrb.gmra.mxu3 %vm1316_vm0, %v219_v1  ;;  %v9085_v44 = vld [vmem:[%s11809_s1 + $0xb58] sm:$0xff]  ;;  %v227_v1 = vpack.c.bf16 %v99_v57, %v99_v57 }
 0x145   :  { %4644 = vmatpush.bf16.msra.mxu3 %v9057_v45  ;;  %v9089_v45 = vld [vmem:[%s11809_s1 + $0xb78] sm:$0xff] }
 0x146   :  { %4525 = vmatpush.bf16.msra.mxu0 %v9044_v54  ;;  %v3169_v10 = vpop.f32.mrf.mxu2  ;;  %v3091_v14 = vpop.f32.mrf.mxu0  ;;  %v9076_v54 = vld [vmem:[%s11809_s1 + $0xb10] sm:$0xff]  ;;  %v105_v53 = vld [vmem:[%s11810_s0 + $0xba] sm:$0x3]  ;;  %v106_v56 = vld [vmem:[%s11810_s0 + $0xbc] sm:$0x3] }
 0x147   :  { %4565 = vmatpush.bf16.msra.mxu1 %v9048_v55  ;;  %v3209_v11 = vpop.f32.mrf.mxu3  ;;  %6460 = vst.msk [vmem:[%s11811_s2 + $0x5c] sm:$0x3] %vm6413_vm1, %v3169_v10  ;;  %v3131_v15 = vpop.f32.mrf.mxu1  ;;  %v9080_v55 = vld [vmem:[%s11809_s1 + $0xb30] sm:$0xff]  ;;  %v107_v57 = vld [vmem:[%s11810_s0 + $0xbe] sm:$0x3] }
 0x148   :  { %4605 = vmatpush.bf16.msra.mxu2 %v9052_v51  ;;  %6461 = vst.msk [vmem:[%s11811_s2 + $0x5e] sm:$0x3] %vm6413_vm1, %v3209_v11  ;;  %v9084_v51 = vld [vmem:[%s11809_s1 + $0xb50] sm:$0xff] }
 0x149   :  { %4645 = vmatpush.bf16.msra.mxu3 %v9056_v52  ;;  %v9088_v52 = vld [vmem:[%s11809_s1 + $0xb70] sm:$0xff] }
 0x14a   :  { %4526 = vmatpush.bf16.msra.mxu0 %v9043_v4  ;;  %v9075_v4 = vld [vmem:[%s11809_s1 + $0xb08] sm:$0xff] }
 0x14b   :  { %4566 = vmatpush.bf16.msra.mxu1 %v9047_v5  ;;  %v9079_v5 = vld [vmem:[%s11809_s1 + $0xb28] sm:$0xff] }
 0x14c   :  { %4606 = vmatpush.bf16.msra.mxu2 %v9051_v2  ;;  %v9083_v2 = vld [vmem:[%s11809_s1 + $0xb48] sm:$0xff] }
 0x14d   :  { %4646 = vmatpush.bf16.msra.mxu3 %v9055_v3  ;;  %v9087_v3 = vld [vmem:[%s11809_s1 + $0xb68] sm:$0xff] }
 0x14e   :  { %4527 = vmatpush.bf16.msra.mxu0 %v9042_v8  ;;  %v3171_v26 = vpop.f32.mrf.mxu2  ;;  %v3249_v30 = vpop.f32.mrf.mxu0  ;;  %v9074_v8 = vld [vmem:[%s11809_s1 + $0xb00] sm:$0xff] }
 0x14f   :  { %4567 = vmatpush.bf16.msra.mxu1 %v9046_v9  ;;  %v3211_v27 = vpop.f32.mrf.mxu3  ;;  %v3289_v31 = vpop.f32.mrf.mxu1  ;;  %6462 = vst.msk [vmem:[%s11811_s2 + $0x60] sm:$0x3] %vm6413_vm1, %v3249_v30  ;;  %v9078_v9 = vld [vmem:[%s11809_s1 + $0xb20] sm:$0xff] }
 0x150   :  { %4607 = vmatpush.bf16.msra.mxu2 %v9050_v6  ;;  %6463 = vst.msk [vmem:[%s11811_s2 + $0x62] sm:$0x3] %vm6413_vm1, %v3289_v31  ;;  %v9082_v6 = vld [vmem:[%s11809_s1 + $0xb40] sm:$0xff] }
 0x151   :  { %4647 = vmatpush.bf16.msra.mxu3 %v9054_v7  ;;  %7922 = vmatmul.msk.bf16.vlgmr.msra.gmra.mxu0 %vm1316_vm0, %v220_v28  ;;  %v9086_v7 = vld [vmem:[%s11809_s1 + $0xb60] sm:$0xff]  ;;  %v228_v28 = vpack.c.bf16 %v100_v18, %v100_v18 }
 0x152   :  { %4684 = vmatpush.bf16.msrb.mxu0 %v9061_v16  ;;  %7939 = vmatmul.msk.bf16.vlgmr.msra.gmra.mxu1 %vm1316_vm0, %v221_v29  ;;  %v9093_v16 = vld [vmem:[%s11809_s1 + $0xb98] sm:$0xff]  ;;  %v229_v29 = vpack.c.bf16 %v101_v21, %v101_v21  ;;  %v108_v18 = vld [vmem:[%s11810_s0 + $0xc0] sm:$0x3]  ;;  %v109_v21 = vld [vmem:[%s11810_s0 + $0xc2] sm:$0x3] }
 0x153   :  { %4724 = vmatpush.bf16.msrb.mxu1 %v9065_v17  ;;  %7956 = vmatmul.msk.bf16.vlgmr.msra.gmra.mxu2 %vm1316_vm0, %v222_v32  ;;  %v9097_v17 = vld [vmem:[%s11809_s1 + $0xbb8] sm:$0xff]  ;;  %v230_v32 = vpack.c.bf16 %v102_v24, %v102_v24  ;;  %v110_v24 = vld [vmem:[%s11810_s0 + $0xc4] sm:$0x3] }
 0x154   :  { %4764 = vmatpush.bf16.msrb.mxu2 %v9069_v12  ;;  %7973 = vmatmul.msk.bf16.vlgmr.msra.gmra.mxu3 %vm1316_vm0, %v223_v33  ;;  %v9101_v12 = vld [vmem:[%s11809_s1 + $0xbd8] sm:$0xff]  ;;  %v231_v33 = vpack.c.bf16 %v103_v25, %v103_v25  ;;  %v111_v25 = vld [vmem:[%s11810_s0 + $0xc6] sm:$0x3] }
 0x155   :  { %4804 = vmatpush.bf16.msrb.mxu3 %v9073_v13  ;;  %v9105_v13 = vld [vmem:[%s11809_s1 + $0xbf8] sm:$0xff] }
 0x156   :  { %4685 = vmatpush.bf16.msrb.mxu0 %v9060_v22  ;;  %v3329_v42 = vpop.f32.mrf.mxu2  ;;  %v3251_v46 = vpop.f32.mrf.mxu0  ;;  %v9092_v22 = vld [vmem:[%s11809_s1 + $0xb90] sm:$0xff] }
 0x157   :  { %4725 = vmatpush.bf16.msrb.mxu1 %v9064_v23  ;;  %v3369_v43 = vpop.f32.mrf.mxu3  ;;  %6464 = vst.msk [vmem:[%s11811_s2 + $0x64] sm:$0x3] %vm6413_vm1, %v3329_v42  ;;  %v3291_v47 = vpop.f32.mrf.mxu1  ;;  %v9096_v23 = vld [vmem:[%s11809_s1 + $0xbb0] sm:$0xff] }
 0x158   :  { %4765 = vmatpush.bf16.msrb.mxu2 %v9068_v19  ;;  %6465 = vst.msk [vmem:[%s11811_s2 + $0x66] sm:$0x3] %vm6413_vm1, %v3369_v43  ;;  %v9100_v19 = vld [vmem:[%s11809_s1 + $0xbd0] sm:$0xff] }
 0x159   :  { %4805 = vmatpush.bf16.msrb.mxu3 %v9072_v20  ;;  %v9104_v20 = vld [vmem:[%s11809_s1 + $0xbf0] sm:$0xff] }
 0x15a   :  { %4686 = vmatpush.bf16.msrb.mxu0 %v9059_v36  ;;  %v9091_v36 = vld [vmem:[%s11809_s1 + $0xb88] sm:$0xff] }
 0x15b   :  { %4726 = vmatpush.bf16.msrb.mxu1 %v9063_v37  ;;  %v9095_v37 = vld [vmem:[%s11809_s1 + $0xba8] sm:$0xff] }
 0x15c   :  { %4766 = vmatpush.bf16.msrb.mxu2 %v9067_v34  ;;  %v9099_v34 = vld [vmem:[%s11809_s1 + $0xbc8] sm:$0xff] }
 0x15d   :  { %4806 = vmatpush.bf16.msrb.mxu3 %v9071_v35  ;;  %v9103_v35 = vld [vmem:[%s11809_s1 + $0xbe8] sm:$0xff] }
 0x15e   :  { %4687 = vmatpush.bf16.msrb.mxu0 %v9058_v40  ;;  %v3331_v58 = vpop.f32.mrf.mxu2  ;;  %v3409_v62 = vpop.f32.mrf.mxu0  ;;  %v9090_v40 = vld [vmem:[%s11809_s1 + $0xb80] sm:$0xff] }
 0x15f   :  { %4727 = vmatpush.bf16.msrb.mxu1 %v9062_v41  ;;  %v3371_v59 = vpop.f32.mrf.mxu3  ;;  %v3449_v63 = vpop.f32.mrf.mxu1  ;;  %6466 = vst.msk [vmem:[%s11811_s2 + $0x68] sm:$0x3] %vm6413_vm1, %v3409_v62  ;;  %v9094_v41 = vld [vmem:[%s11809_s1 + $0xba0] sm:$0xff] }
 0x160   :  { %4767 = vmatpush.bf16.msrb.mxu2 %v9066_v38  ;;  %6467 = vst.msk [vmem:[%s11811_s2 + $0x6a] sm:$0x3] %vm6413_vm1, %v3449_v63  ;;  %v9098_v38 = vld [vmem:[%s11809_s1 + $0xbc0] sm:$0xff] }
 0x161   :  { %4807 = vmatpush.bf16.msrb.mxu3 %v9070_v39  ;;  %7990 = vmatmul.msk.bf16.vlgmr.msrb.gmra.mxu0 %vm1316_vm0, %v224_v60  ;;  %v9102_v39 = vld [vmem:[%s11809_s1 + $0xbe0] sm:$0xff]  ;;  %v232_v60 = vpack.c.bf16 %v104_v50, %v104_v50  ;;  %v112_v50 = vld [vmem:[%s11810_s0 + $0xc8] sm:$0x3] }
 0x162   :  { %4844 = vmatpush.bf16.msra.mxu0 %v9077_v48  ;;  %8007 = vmatmul.msk.bf16.vlgmr.msrb.gmra.mxu1 %vm1316_vm0, %v225_v61  ;;  %v9109_v48 = vld [vmem:[%s11809_s1 + $0xc18] sm:$0xff]  ;;  %v233_v61 = vpack.c.bf16 %v105_v53, %v105_v53  ;;  %v113_v53 = vld [vmem:[%s11810_s0 + $0xca] sm:$0x3] }
 0x163   :  { %4884 = vmatpush.bf16.msra.mxu1 %v9081_v49  ;;  %8024 = vmatmul.msk.bf16.vlgmr.msrb.gmra.mxu2 %vm1316_vm0, %v226_v0  ;;  %v9113_v49 = vld [vmem:[%s11809_s1 + $0xc38] sm:$0xff]  ;;  %v234_v0 = vpack.c.bf16 %v106_v56, %v106_v56  ;;  %v114_v56 = vld [vmem:[%s11810_s0 + $0xcc] sm:$0x3] }
 0x164   :  { %4924 = vmatpush.bf16.msra.mxu2 %v9085_v44  ;;  %8041 = vmatmul.msk.bf16.vlgmr.msrb.gmra.mxu3 %vm1316_vm0, %v227_v1  ;;  %v9117_v44 = vld [vmem:[%s11809_s1 + $0xc58] sm:$0xff]  ;;  %v235_v1 = vpack.c.bf16 %v107_v57, %v107_v57  ;;  %v115_v57 = vld [vmem:[%s11810_s0 + $0xce] sm:$0x3] }
 0x165   :  { %4964 = vmatpush.bf16.msra.mxu3 %v9089_v45  ;;  %v9121_v45 = vld [vmem:[%s11809_s1 + $0xc78] sm:$0xff] }
 0x166   :  { %4845 = vmatpush.bf16.msra.mxu0 %v9076_v54  ;;  %v3489_v10 = vpop.f32.mrf.mxu2  ;;  %v3411_v14 = vpop.f32.mrf.mxu0  ;;  %v9108_v54 = vld [vmem:[%s11809_s1 + $0xc10] sm:$0xff] }
 0x167   :  { %4885 = vmatpush.bf16.msra.mxu1 %v9080_v55  ;;  %v3529_v11 = vpop.f32.mrf.mxu3  ;;  %6468 = vst.msk [vmem:[%s11811_s2 + $0x6c] sm:$0x3] %vm6413_vm1, %v3489_v10  ;;  %v3451_v15 = vpop.f32.mrf.mxu1  ;;  %v9112_v55 = vld [vmem:[%s11809_s1 + $0xc30] sm:$0xff] }
 0x168   :  { %4925 = vmatpush.bf16.msra.mxu2 %v9084_v51  ;;  %6469 = vst.msk [vmem:[%s11811_s2 + $0x6e] sm:$0x3] %vm6413_vm1, %v3529_v11  ;;  %v9116_v51 = vld [vmem:[%s11809_s1 + $0xc50] sm:$0xff] }
 0x169   :  { %4965 = vmatpush.bf16.msra.mxu3 %v9088_v52  ;;  %v9120_v52 = vld [vmem:[%s11809_s1 + $0xc70] sm:$0xff] }
 0x16a   :  { %4846 = vmatpush.bf16.msra.mxu0 %v9075_v4  ;;  %v9107_v4 = vld [vmem:[%s11809_s1 + $0xc08] sm:$0xff] }
 0x16b   :  { %4886 = vmatpush.bf16.msra.mxu1 %v9079_v5  ;;  %v9111_v5 = vld [vmem:[%s11809_s1 + $0xc28] sm:$0xff] }
 0x16c   :  { %4926 = vmatpush.bf16.msra.mxu2 %v9083_v2  ;;  %v9115_v2 = vld [vmem:[%s11809_s1 + $0xc48] sm:$0xff] }
 0x16d   :  { %4966 = vmatpush.bf16.msra.mxu3 %v9087_v3  ;;  %v9119_v3 = vld [vmem:[%s11809_s1 + $0xc68] sm:$0xff] }
 0x16e   :  { %4847 = vmatpush.bf16.msra.mxu0 %v9074_v8  ;;  %v3491_v26 = vpop.f32.mrf.mxu2  ;;  %v3569_v30 = vpop.f32.mrf.mxu0  ;;  %v9106_v8 = vld [vmem:[%s11809_s1 + $0xc00] sm:$0xff] }
 0x16f   :  { %4887 = vmatpush.bf16.msra.mxu1 %v9078_v9  ;;  %v3531_v27 = vpop.f32.mrf.mxu3  ;;  %v3609_v31 = vpop.f32.mrf.mxu1  ;;  %6470 = vst.msk [vmem:[%s11811_s2 + $0x70] sm:$0x3] %vm6413_vm1, %v3569_v30  ;;  %v9110_v9 = vld [vmem:[%s11809_s1 + $0xc20] sm:$0xff] }
 0x170   :  { %4927 = vmatpush.bf16.msra.mxu2 %v9082_v6  ;;  %6471 = vst.msk [vmem:[%s11811_s2 + $0x72] sm:$0x3] %vm6413_vm1, %v3609_v31  ;;  %v9114_v6 = vld [vmem:[%s11809_s1 + $0xc40] sm:$0xff] }
 0x171   :  { %4967 = vmatpush.bf16.msra.mxu3 %v9086_v7  ;;  %8058 = vmatmul.msk.bf16.vlgmr.msra.gmra.mxu0 %vm1316_vm0, %v228_v28  ;;  %v9118_v7 = vld [vmem:[%s11809_s1 + $0xc60] sm:$0xff]  ;;  %v236_v28 = vpack.c.bf16 %v108_v18, %v108_v18  ;;  %v116_v18 = vld [vmem:[%s11810_s0 + $0xd0] sm:$0x3] }
 0x172   :  { %5004 = vmatpush.bf16.msrb.mxu0 %v9093_v16  ;;  %8075 = vmatmul.msk.bf16.vlgmr.msra.gmra.mxu1 %vm1316_vm0, %v229_v29  ;;  %v9125_v16 = vld [vmem:[%s11809_s1 + $0xc98] sm:$0xff]  ;;  %v237_v29 = vpack.c.bf16 %v109_v21, %v109_v21  ;;  %v117_v21 = vld [vmem:[%s11810_s0 + $0xd2] sm:$0x3] }
 0x173   :  { %5044 = vmatpush.bf16.msrb.mxu1 %v9097_v17  ;;  %8092 = vmatmul.msk.bf16.vlgmr.msra.gmra.mxu2 %vm1316_vm0, %v230_v32  ;;  %v9129_v17 = vld [vmem:[%s11809_s1 + $0xcb8] sm:$0xff]  ;;  %v238_v32 = vpack.c.bf16 %v110_v24, %v110_v24  ;;  %v118_v24 = vld [vmem:[%s11810_s0 + $0xd4] sm:$0x3] }
 0x174   :  { %5084 = vmatpush.bf16.msrb.mxu2 %v9101_v12  ;;  %8109 = vmatmul.msk.bf16.vlgmr.msra.gmra.mxu3 %vm1316_vm0, %v231_v33  ;;  %v9133_v12 = vld [vmem:[%s11809_s1 + $0xcd8] sm:$0xff]  ;;  %v239_v33 = vpack.c.bf16 %v111_v25, %v111_v25  ;;  %v119_v25 = vld [vmem:[%s11810_s0 + $0xd6] sm:$0x3] }
 0x175   :  { %5124 = vmatpush.bf16.msrb.mxu3 %v9105_v13  ;;  %v9137_v13 = vld [vmem:[%s11809_s1 + $0xcf8] sm:$0xff] }
 0x176   :  { %5005 = vmatpush.bf16.msrb.mxu0 %v9092_v22  ;;  %v3649_v42 = vpop.f32.mrf.mxu2  ;;  %v3571_v46 = vpop.f32.mrf.mxu0  ;;  %v9124_v22 = vld [vmem:[%s11809_s1 + $0xc90] sm:$0xff] }
 0x177   :  { %5045 = vmatpush.bf16.msrb.mxu1 %v9096_v23  ;;  %v3689_v43 = vpop.f32.mrf.mxu3  ;;  %6472 = vst.msk [vmem:[%s11811_s2 + $0x74] sm:$0x3] %vm6413_vm1, %v3649_v42  ;;  %v3611_v47 = vpop.f32.mrf.mxu1  ;;  %v9128_v23 = vld [vmem:[%s11809_s1 + $0xcb0] sm:$0xff] }
 0x178   :  { %5085 = vmatpush.bf16.msrb.mxu2 %v9100_v19  ;;  %6473 = vst.msk [vmem:[%s11811_s2 + $0x76] sm:$0x3] %vm6413_vm1, %v3689_v43  ;;  %v9132_v19 = vld [vmem:[%s11809_s1 + $0xcd0] sm:$0xff] }
 0x179   :  { %5125 = vmatpush.bf16.msrb.mxu3 %v9104_v20  ;;  %v9136_v20 = vld [vmem:[%s11809_s1 + $0xcf0] sm:$0xff] }
 0x17a   :  { %5006 = vmatpush.bf16.msrb.mxu0 %v9091_v36  ;;  %v9123_v36 = vld [vmem:[%s11809_s1 + $0xc88] sm:$0xff] }
 0x17b   :  { %5046 = vmatpush.bf16.msrb.mxu1 %v9095_v37  ;;  %v9127_v37 = vld [vmem:[%s11809_s1 + $0xca8] sm:$0xff] }
 0x17c   :  { %5086 = vmatpush.bf16.msrb.mxu2 %v9099_v34  ;;  %v9131_v34 = vld [vmem:[%s11809_s1 + $0xcc8] sm:$0xff] }
 0x17d   :  { %5126 = vmatpush.bf16.msrb.mxu3 %v9103_v35  ;;  %v9135_v35 = vld [vmem:[%s11809_s1 + $0xce8] sm:$0xff] }
 0x17e   :  { %5007 = vmatpush.bf16.msrb.mxu0 %v9090_v40  ;;  %v3651_v58 = vpop.f32.mrf.mxu2  ;;  %v3729_v62 = vpop.f32.mrf.mxu0  ;;  %v9122_v40 = vld [vmem:[%s11809_s1 + $0xc80] sm:$0xff] }
 0x17f   :  { %5047 = vmatpush.bf16.msrb.mxu1 %v9094_v41  ;;  %v3691_v59 = vpop.f32.mrf.mxu3  ;;  %v3769_v63 = vpop.f32.mrf.mxu1  ;;  %6474 = vst.msk [vmem:[%s11811_s2 + $0x78] sm:$0x3] %vm6413_vm1, %v3729_v62  ;;  %v9126_v41 = vld [vmem:[%s11809_s1 + $0xca0] sm:$0xff] }
 0x180   :  { %5087 = vmatpush.bf16.msrb.mxu2 %v9098_v38  ;;  %6475 = vst.msk [vmem:[%s11811_s2 + $0x7a] sm:$0x3] %vm6413_vm1, %v3769_v63  ;;  %v9130_v38 = vld [vmem:[%s11809_s1 + $0xcc0] sm:$0xff] }
 0x181   :  { %5127 = vmatpush.bf16.msrb.mxu3 %v9102_v39  ;;  %8126 = vmatmul.msk.bf16.vlgmr.msrb.gmra.mxu0 %vm1316_vm0, %v232_v60  ;;  %v9134_v39 = vld [vmem:[%s11809_s1 + $0xce0] sm:$0xff]  ;;  %v240_v60 = vpack.c.bf16 %v112_v50, %v112_v50  ;;  %v120_v50 = vld [vmem:[%s11810_s0 + $0xd8] sm:$0x3] }
 0x182   :  { %5164 = vmatpush.bf16.msra.mxu0 %v9109_v48  ;;  %8143 = vmatmul.msk.bf16.vlgmr.msrb.gmra.mxu1 %vm1316_vm0, %v233_v61  ;;  %v9141_v48 = vld [vmem:[%s11809_s1 + $0xd18] sm:$0xff]  ;;  %v241_v61 = vpack.c.bf16 %v113_v53, %v113_v53 }
 0x183   :  { %5204 = vmatpush.bf16.msra.mxu1 %v9113_v49  ;;  %8160 = vmatmul.msk.bf16.vlgmr.msrb.gmra.mxu2 %vm1316_vm0, %v234_v0  ;;  %v9145_v49 = vld [vmem:[%s11809_s1 + $0xd38] sm:$0xff]  ;;  %v242_v0 = vpack.c.bf16 %v114_v56, %v114_v56 }
 0x184   :  { %5244 = vmatpush.bf16.msra.mxu2 %v9117_v44  ;;  %8177 = vmatmul.msk.bf16.vlgmr.msrb.gmra.mxu3 %vm1316_vm0, %v235_v1  ;;  %v9149_v44 = vld [vmem:[%s11809_s1 + $0xd58] sm:$0xff]  ;;  %v243_v1 = vpack.c.bf16 %v115_v57, %v115_v57 }
 0x185   :  { %5284 = vmatpush.bf16.msra.mxu3 %v9121_v45  ;;  %v9153_v45 = vld [vmem:[%s11809_s1 + $0xd78] sm:$0xff] }
 0x186   :  { %5165 = vmatpush.bf16.msra.mxu0 %v9108_v54  ;;  %v3809_v10 = vpop.f32.mrf.mxu2  ;;  %v3731_v14 = vpop.f32.mrf.mxu0  ;;  %v9140_v54 = vld [vmem:[%s11809_s1 + $0xd10] sm:$0xff]  ;;  %v121_v53 = vld [vmem:[%s11810_s0 + $0xda] sm:$0x3]  ;;  %v122_v56 = vld [vmem:[%s11810_s0 + $0xdc] sm:$0x3] }
 0x187   :  { %5205 = vmatpush.bf16.msra.mxu1 %v9112_v55  ;;  %v3849_v11 = vpop.f32.mrf.mxu3  ;;  %6476 = vst.msk [vmem:[%s11811_s2 + $0x7c] sm:$0x3] %vm6413_vm1, %v3809_v10  ;;  %v3771_v15 = vpop.f32.mrf.mxu1  ;;  %v9144_v55 = vld [vmem:[%s11809_s1 + $0xd30] sm:$0xff]  ;;  %v123_v57 = vld [vmem:[%s11810_s0 + $0xde] sm:$0x3] }
 0x188   :  { %5245 = vmatpush.bf16.msra.mxu2 %v9116_v51  ;;  %6477 = vst.msk [vmem:[%s11811_s2 + $0x7e] sm:$0x3] %vm6413_vm1, %v3849_v11  ;;  %v9148_v51 = vld [vmem:[%s11809_s1 + $0xd50] sm:$0xff] }
 0x189   :  { %5285 = vmatpush.bf16.msra.mxu3 %v9120_v52  ;;  %v9152_v52 = vld [vmem:[%s11809_s1 + $0xd70] sm:$0xff] }
 0x18a   :  { %5166 = vmatpush.bf16.msra.mxu0 %v9107_v4  ;;  %v9139_v4 = vld [vmem:[%s11809_s1 + $0xd08] sm:$0xff] }
 0x18b   :  { %5206 = vmatpush.bf16.msra.mxu1 %v9111_v5  ;;  %v9143_v5 = vld [vmem:[%s11809_s1 + $0xd28] sm:$0xff] }
 0x18c   :  { %5246 = vmatpush.bf16.msra.mxu2 %v9115_v2  ;;  %v9147_v2 = vld [vmem:[%s11809_s1 + $0xd48] sm:$0xff] }
 0x18d   :  { %5286 = vmatpush.bf16.msra.mxu3 %v9119_v3  ;;  %v9151_v3 = vld [vmem:[%s11809_s1 + $0xd68] sm:$0xff] }
 0x18e   :  { %5167 = vmatpush.bf16.msra.mxu0 %v9106_v8  ;;  %v3811_v26 = vpop.f32.mrf.mxu2  ;;  %v3889_v30 = vpop.f32.mrf.mxu0  ;;  %v9138_v8 = vld [vmem:[%s11809_s1 + $0xd00] sm:$0xff] }
 0x18f   :  { %5207 = vmatpush.bf16.msra.mxu1 %v9110_v9  ;;  %v3851_v27 = vpop.f32.mrf.mxu3  ;;  %v3929_v31 = vpop.f32.mrf.mxu1  ;;  %6478 = vst.msk [vmem:[%s11811_s2 + $0x80] sm:$0x3] %vm6413_vm1, %v3889_v30  ;;  %v9142_v9 = vld [vmem:[%s11809_s1 + $0xd20] sm:$0xff] }
 0x190   :  { %5247 = vmatpush.bf16.msra.mxu2 %v9114_v6  ;;  %6479 = vst.msk [vmem:[%s11811_s2 + $0x82] sm:$0x3] %vm6413_vm1, %v3929_v31  ;;  %v9146_v6 = vld [vmem:[%s11809_s1 + $0xd40] sm:$0xff] }
 0x191   :  { %5287 = vmatpush.bf16.msra.mxu3 %v9118_v7  ;;  %8194 = vmatmul.msk.bf16.vlgmr.msra.gmra.mxu0 %vm1316_vm0, %v236_v28  ;;  %v9150_v7 = vld [vmem:[%s11809_s1 + $0xd60] sm:$0xff]  ;;  %v244_v28 = vpack.c.bf16 %v116_v18, %v116_v18 }
 0x192   :  { %5324 = vmatpush.bf16.msrb.mxu0 %v9125_v16  ;;  %8211 = vmatmul.msk.bf16.vlgmr.msra.gmra.mxu1 %vm1316_vm0, %v237_v29  ;;  %v9157_v16 = vld [vmem:[%s11809_s1 + $0xd98] sm:$0xff]  ;;  %v245_v29 = vpack.c.bf16 %v117_v21, %v117_v21  ;;  %v124_v18 = vld [vmem:[%s11810_s0 + $0xe0] sm:$0x3]  ;;  %v125_v21 = vld [vmem:[%s11810_s0 + $0xe2] sm:$0x3] }
 0x193   :  { %5364 = vmatpush.bf16.msrb.mxu1 %v9129_v17  ;;  %8228 = vmatmul.msk.bf16.vlgmr.msra.gmra.mxu2 %vm1316_vm0, %v238_v32  ;;  %v9161_v17 = vld [vmem:[%s11809_s1 + $0xdb8] sm:$0xff]  ;;  %v246_v32 = vpack.c.bf16 %v118_v24, %v118_v24  ;;  %v126_v24 = vld [vmem:[%s11810_s0 + $0xe4] sm:$0x3] }
 0x194   :  { %5404 = vmatpush.bf16.msrb.mxu2 %v9133_v12  ;;  %8245 = vmatmul.msk.bf16.vlgmr.msra.gmra.mxu3 %vm1316_vm0, %v239_v33  ;;  %v9165_v12 = vld [vmem:[%s11809_s1 + $0xdd8] sm:$0xff]  ;;  %v247_v33 = vpack.c.bf16 %v119_v25, %v119_v25  ;;  %v127_v25 = vld [vmem:[%s11810_s0 + $0xe6] sm:$0x3] }
 0x195   :  { %5444 = vmatpush.bf16.msrb.mxu3 %v9137_v13  ;;  %v9169_v13 = vld [vmem:[%s11809_s1 + $0xdf8] sm:$0xff] }
 0x196   :  { %5325 = vmatpush.bf16.msrb.mxu0 %v9124_v22  ;;  %v3969_v42 = vpop.f32.mrf.mxu2  ;;  %v3891_v46 = vpop.f32.mrf.mxu0  ;;  %v9156_v22 = vld [vmem:[%s11809_s1 + $0xd90] sm:$0xff] }
 0x197   :  { %5365 = vmatpush.bf16.msrb.mxu1 %v9128_v23  ;;  %v4009_v43 = vpop.f32.mrf.mxu3  ;;  %6480 = vst.msk [vmem:[%s11811_s2 + $0x84] sm:$0x3] %vm6413_vm1, %v3969_v42  ;;  %v3931_v47 = vpop.f32.mrf.mxu1  ;;  %v9160_v23 = vld [vmem:[%s11809_s1 + $0xdb0] sm:$0xff] }
 0x198   :  { %5405 = vmatpush.bf16.msrb.mxu2 %v9132_v19  ;;  %6481 = vst.msk [vmem:[%s11811_s2 + $0x86] sm:$0x3] %vm6413_vm1, %v4009_v43  ;;  %v9164_v19 = vld [vmem:[%s11809_s1 + $0xdd0] sm:$0xff] }
 0x199   :  { %5445 = vmatpush.bf16.msrb.mxu3 %v9136_v20  ;;  %v9168_v20 = vld [vmem:[%s11809_s1 + $0xdf0] sm:$0xff] }
 0x19a   :  { %5326 = vmatpush.bf16.msrb.mxu0 %v9123_v36  ;;  %v9155_v36 = vld [vmem:[%s11809_s1 + $0xd88] sm:$0xff] }
 0x19b   :  { %5366 = vmatpush.bf16.msrb.mxu1 %v9127_v37  ;;  %v9159_v37 = vld [vmem:[%s11809_s1 + $0xda8] sm:$0xff] }
 0x19c   :  { %5406 = vmatpush.bf16.msrb.mxu2 %v9131_v34  ;;  %v9163_v34 = vld [vmem:[%s11809_s1 + $0xdc8] sm:$0xff] }
 0x19d   :  { %5446 = vmatpush.bf16.msrb.mxu3 %v9135_v35  ;;  %v9167_v35 = vld [vmem:[%s11809_s1 + $0xde8] sm:$0xff] }
 0x19e   :  { %5327 = vmatpush.bf16.msrb.mxu0 %v9122_v40  ;;  %v3971_v58 = vpop.f32.mrf.mxu2  ;;  %v4049_v62 = vpop.f32.mrf.mxu0  ;;  %v9154_v40 = vld [vmem:[%s11809_s1 + $0xd80] sm:$0xff] }
 0x19f   :  { %5367 = vmatpush.bf16.msrb.mxu1 %v9126_v41  ;;  %v4011_v59 = vpop.f32.mrf.mxu3  ;;  %v4089_v63 = vpop.f32.mrf.mxu1  ;;  %6482 = vst.msk [vmem:[%s11811_s2 + $0x88] sm:$0x3] %vm6413_vm1, %v4049_v62  ;;  %v9158_v41 = vld [vmem:[%s11809_s1 + $0xda0] sm:$0xff] }
 0x1a0   :  { %5407 = vmatpush.bf16.msrb.mxu2 %v9130_v38  ;;  %6483 = vst.msk [vmem:[%s11811_s2 + $0x8a] sm:$0x3] %vm6413_vm1, %v4089_v63  ;;  %v9162_v38 = vld [vmem:[%s11809_s1 + $0xdc0] sm:$0xff] }
 0x1a1   :  { %5447 = vmatpush.bf16.msrb.mxu3 %v9134_v39  ;;  %8262 = vmatmul.msk.bf16.vlgmr.msrb.gmra.mxu0 %vm1316_vm0, %v240_v60  ;;  %v9166_v39 = vld [vmem:[%s11809_s1 + $0xde0] sm:$0xff]  ;;  %v248_v60 = vpack.c.bf16 %v120_v50, %v120_v50  ;;  %v128_v50 = vld [vmem:[%s11810_s0 + $0xe8] sm:$0x3] }
 0x1a2   :  { %5484 = vmatpush.bf16.msra.mxu0 %v9141_v48  ;;  %8279 = vmatmul.msk.bf16.vlgmr.msrb.gmra.mxu1 %vm1316_vm0, %v241_v61  ;;  %v9173_v48 = vld [vmem:[%s11809_s1 + $0xe18] sm:$0xff]  ;;  %v249_v61 = vpack.c.bf16 %v121_v53, %v121_v53  ;;  %v129_v53 = vld [vmem:[%s11810_s0 + $0xea] sm:$0x3] }
 0x1a3   :  { %5524 = vmatpush.bf16.msra.mxu1 %v9145_v49  ;;  %8296 = vmatmul.msk.bf16.vlgmr.msrb.gmra.mxu2 %vm1316_vm0, %v242_v0  ;;  %v9177_v49 = vld [vmem:[%s11809_s1 + $0xe38] sm:$0xff]  ;;  %v250_v0 = vpack.c.bf16 %v122_v56, %v122_v56  ;;  %v130_v56 = vld [vmem:[%s11810_s0 + $0xec] sm:$0x3] }
 0x1a4   :  { %5564 = vmatpush.bf16.msra.mxu2 %v9149_v44  ;;  %8313 = vmatmul.msk.bf16.vlgmr.msrb.gmra.mxu3 %vm1316_vm0, %v243_v1  ;;  %v9181_v44 = vld [vmem:[%s11809_s1 + $0xe58] sm:$0xff]  ;;  %v251_v1 = vpack.c.bf16 %v123_v57, %v123_v57  ;;  %v131_v57 = vld [vmem:[%s11810_s0 + $0xee] sm:$0x3] }
 0x1a5   :  { %5604 = vmatpush.bf16.msra.mxu3 %v9153_v45  ;;  %v9185_v45 = vld [vmem:[%s11809_s1 + $0xe78] sm:$0xff] }
 0x1a6   :  { %5485 = vmatpush.bf16.msra.mxu0 %v9140_v54  ;;  %v4129_v10 = vpop.f32.mrf.mxu2  ;;  %v4051_v14 = vpop.f32.mrf.mxu0  ;;  %v9172_v54 = vld [vmem:[%s11809_s1 + $0xe10] sm:$0xff] }
 0x1a7   :  { %5525 = vmatpush.bf16.msra.mxu1 %v9144_v55  ;;  %v4169_v11 = vpop.f32.mrf.mxu3  ;;  %6484 = vst.msk [vmem:[%s11811_s2 + $0x8c] sm:$0x3] %vm6413_vm1, %v4129_v10  ;;  %v4091_v15 = vpop.f32.mrf.mxu1  ;;  %v9176_v55 = vld [vmem:[%s11809_s1 + $0xe30] sm:$0xff] }
 0x1a8   :  { %5565 = vmatpush.bf16.msra.mxu2 %v9148_v51  ;;  %6485 = vst.msk [vmem:[%s11811_s2 + $0x8e] sm:$0x3] %vm6413_vm1, %v4169_v11  ;;  %v9180_v51 = vld [vmem:[%s11809_s1 + $0xe50] sm:$0xff] }
 0x1a9   :  { %5605 = vmatpush.bf16.msra.mxu3 %v9152_v52  ;;  %v9184_v52 = vld [vmem:[%s11809_s1 + $0xe70] sm:$0xff] }
 0x1aa   :  { %5486 = vmatpush.bf16.msra.mxu0 %v9139_v4  ;;  %v9171_v4 = vld [vmem:[%s11809_s1 + $0xe08] sm:$0xff] }
 0x1ab   :  { %5526 = vmatpush.bf16.msra.mxu1 %v9143_v5  ;;  %v9175_v5 = vld [vmem:[%s11809_s1 + $0xe28] sm:$0xff] }
 0x1ac   :  { %5566 = vmatpush.bf16.msra.mxu2 %v9147_v2  ;;  %v9179_v2 = vld [vmem:[%s11809_s1 + $0xe48] sm:$0xff] }
 0x1ad   :  { %5606 = vmatpush.bf16.msra.mxu3 %v9151_v3  ;;  %v9183_v3 = vld [vmem:[%s11809_s1 + $0xe68] sm:$0xff] }
 0x1ae   :  { %5487 = vmatpush.bf16.msra.mxu0 %v9138_v8  ;;  %v4131_v26 = vpop.f32.mrf.mxu2  ;;  %v4209_v30 = vpop.f32.mrf.mxu0  ;;  %v9170_v8 = vld [vmem:[%s11809_s1 + $0xe00] sm:$0xff] }
 0x1af   :  { %5527 = vmatpush.bf16.msra.mxu1 %v9142_v9  ;;  %v4171_v27 = vpop.f32.mrf.mxu3  ;;  %v4249_v31 = vpop.f32.mrf.mxu1  ;;  %6486 = vst.msk [vmem:[%s11811_s2 + $0x90] sm:$0x3] %vm6413_vm1, %v4209_v30  ;;  %v9174_v9 = vld [vmem:[%s11809_s1 + $0xe20] sm:$0xff] }
 0x1b0   :  { %5567 = vmatpush.bf16.msra.mxu2 %v9146_v6  ;;  %6487 = vst.msk [vmem:[%s11811_s2 + $0x92] sm:$0x3] %vm6413_vm1, %v4249_v31  ;;  %v9178_v6 = vld [vmem:[%s11809_s1 + $0xe40] sm:$0xff] }
 0x1b1   :  { %5607 = vmatpush.bf16.msra.mxu3 %v9150_v7  ;;  %8330 = vmatmul.msk.bf16.vlgmr.msra.gmra.mxu0 %vm1316_vm0, %v244_v28  ;;  %v9182_v7 = vld [vmem:[%s11809_s1 + $0xe60] sm:$0xff]  ;;  %v252_v28 = vpack.c.bf16 %v124_v18, %v124_v18  ;;  %v132_v18 = vld [vmem:[%s11810_s0 + $0xf0] sm:$0x3] }
 0x1b2   :  { %5644 = vmatpush.bf16.msrb.mxu0 %v9157_v16  ;;  %8347 = vmatmul.msk.bf16.vlgmr.msra.gmra.mxu1 %vm1316_vm0, %v245_v29  ;;  %v9189_v16 = vld [vmem:[%s11809_s1 + $0xe98] sm:$0xff]  ;;  %v253_v29 = vpack.c.bf16 %v125_v21, %v125_v21  ;;  %v133_v21 = vld [vmem:[%s11810_s0 + $0xf2] sm:$0x3] }
 0x1b3   :  { %5684 = vmatpush.bf16.msrb.mxu1 %v9161_v17  ;;  %8364 = vmatmul.msk.bf16.vlgmr.msra.gmra.mxu2 %vm1316_vm0, %v246_v32  ;;  %v9193_v17 = vld [vmem:[%s11809_s1 + $0xeb8] sm:$0xff]  ;;  %v254_v32 = vpack.c.bf16 %v126_v24, %v126_v24  ;;  %v134_v24 = vld [vmem:[%s11810_s0 + $0xf4] sm:$0x3] }
 0x1b4   :  { %5724 = vmatpush.bf16.msrb.mxu2 %v9165_v12  ;;  %8381 = vmatmul.msk.bf16.vlgmr.msra.gmra.mxu3 %vm1316_vm0, %v247_v33  ;;  %v9197_v12 = vld [vmem:[%s11809_s1 + $0xed8] sm:$0xff]  ;;  %v255_v33 = vpack.c.bf16 %v127_v25, %v127_v25  ;;  %v135_v25 = vld [vmem:[%s11810_s0 + $0xf6] sm:$0x3] }
 0x1b5   :  { %5764 = vmatpush.bf16.msrb.mxu3 %v9169_v13  ;;  %v9201_v13 = vld [vmem:[%s11809_s1 + $0xef8] sm:$0xff] }
 0x1b6   :  { %5645 = vmatpush.bf16.msrb.mxu0 %v9156_v22  ;;  %v4289_v42 = vpop.f32.mrf.mxu2  ;;  %v4211_v46 = vpop.f32.mrf.mxu0  ;;  %v9188_v22 = vld [vmem:[%s11809_s1 + $0xe90] sm:$0xff] }
 0x1b7   :  { %5685 = vmatpush.bf16.msrb.mxu1 %v9160_v23  ;;  %v4329_v43 = vpop.f32.mrf.mxu3  ;;  %6488 = vst.msk [vmem:[%s11811_s2 + $0x94] sm:$0x3] %vm6413_vm1, %v4289_v42  ;;  %v4251_v47 = vpop.f32.mrf.mxu1  ;;  %v9192_v23 = vld [vmem:[%s11809_s1 + $0xeb0] sm:$0xff] }
 0x1b8   :  { %5725 = vmatpush.bf16.msrb.mxu2 %v9164_v19  ;;  %6489 = vst.msk [vmem:[%s11811_s2 + $0x96] sm:$0x3] %vm6413_vm1, %v4329_v43  ;;  %v9196_v19 = vld [vmem:[%s11809_s1 + $0xed0] sm:$0xff] }
 0x1b9   :  { %5765 = vmatpush.bf16.msrb.mxu3 %v9168_v20  ;;  %v9200_v20 = vld [vmem:[%s11809_s1 + $0xef0] sm:$0xff] }
 0x1ba   :  { %5646 = vmatpush.bf16.msrb.mxu0 %v9155_v36  ;;  %v9187_v36 = vld [vmem:[%s11809_s1 + $0xe88] sm:$0xff] }
 0x1bb   :  { %5686 = vmatpush.bf16.msrb.mxu1 %v9159_v37  ;;  %v9191_v37 = vld [vmem:[%s11809_s1 + $0xea8] sm:$0xff] }
 0x1bc   :  { %5726 = vmatpush.bf16.msrb.mxu2 %v9163_v34  ;;  %v9195_v34 = vld [vmem:[%s11809_s1 + $0xec8] sm:$0xff] }
 0x1bd   :  { %5766 = vmatpush.bf16.msrb.mxu3 %v9167_v35  ;;  %v9199_v35 = vld [vmem:[%s11809_s1 + $0xee8] sm:$0xff] }
 0x1be   :  { %5647 = vmatpush.bf16.msrb.mxu0 %v9154_v40  ;;  %v4291_v58 = vpop.f32.mrf.mxu2  ;;  %v4369_v62 = vpop.f32.mrf.mxu0  ;;  %v9186_v40 = vld [vmem:[%s11809_s1 + $0xe80] sm:$0xff] }
 0x1bf   :  { %5687 = vmatpush.bf16.msrb.mxu1 %v9158_v41  ;;  %v4331_v59 = vpop.f32.mrf.mxu3  ;;  %v4409_v63 = vpop.f32.mrf.mxu1  ;;  %6490 = vst.msk [vmem:[%s11811_s2 + $0x98] sm:$0x3] %vm6413_vm1, %v4369_v62  ;;  %v9190_v41 = vld [vmem:[%s11809_s1 + $0xea0] sm:$0xff] }
 0x1c0   :  { %5727 = vmatpush.bf16.msrb.mxu2 %v9162_v38  ;;  %6491 = vst.msk [vmem:[%s11811_s2 + $0x9a] sm:$0x3] %vm6413_vm1, %v4409_v63  ;;  %v9194_v38 = vld [vmem:[%s11809_s1 + $0xec0] sm:$0xff] }
 0x1c1   :  { %5767 = vmatpush.bf16.msrb.mxu3 %v9166_v39  ;;  %8398 = vmatmul.msk.bf16.vlgmr.msrb.gmra.mxu0 %vm1316_vm0, %v248_v60  ;;  %v9198_v39 = vld [vmem:[%s11809_s1 + $0xee0] sm:$0xff]  ;;  %v256_v60 = vpack.c.bf16 %v128_v50, %v128_v50 }
 0x1c2   :  { %5804 = vmatpush.bf16.msra.mxu0 %v9173_v48  ;;  %8415 = vmatmul.msk.bf16.vlgmr.msrb.gmra.mxu1 %vm1316_vm0, %v249_v61  ;;  %v9205_v48 = vld [vmem:[%s11809_s1 + $0xf18] sm:$0xff]  ;;  %v257_v61 = vpack.c.bf16 %v129_v53, %v129_v53 }
 0x1c3   :  { %5844 = vmatpush.bf16.msra.mxu1 %v9177_v49  ;;  %8432 = vmatmul.msk.bf16.vlgmr.msrb.gmra.mxu2 %vm1316_vm0, %v250_v0  ;;  %v9209_v49 = vld [vmem:[%s11809_s1 + $0xf38] sm:$0xff]  ;;  %v258_v0 = vpack.c.bf16 %v130_v56, %v130_v56 }
 0x1c4   :  { %5884 = vmatpush.bf16.msra.mxu2 %v9181_v44  ;;  %8449 = vmatmul.msk.bf16.vlgmr.msrb.gmra.mxu3 %vm1316_vm0, %v251_v1  ;;  %v9213_v44 = vld [vmem:[%s11809_s1 + $0xf58] sm:$0xff]  ;;  %v259_v1 = vpack.c.bf16 %v131_v57, %v131_v57 }
 0x1c5   :  { %5924 = vmatpush.bf16.msra.mxu3 %v9185_v45  ;;  %v9217_v45 = vld [vmem:[%s11809_s1 + $0xf78] sm:$0xff] }
 0x1c6   :  { %5805 = vmatpush.bf16.msra.mxu0 %v9172_v54  ;;  %v4449_v10 = vpop.f32.mrf.mxu2  ;;  %v4371_v14 = vpop.f32.mrf.mxu0  ;;  %v9204_v54 = vld [vmem:[%s11809_s1 + $0xf10] sm:$0xff] }
 0x1c7   :  { %5845 = vmatpush.bf16.msra.mxu1 %v9176_v55  ;;  %v4489_v11 = vpop.f32.mrf.mxu3  ;;  %6492 = vst.msk [vmem:[%s11811_s2 + $0x9c] sm:$0x3] %vm6413_vm1, %v4449_v10  ;;  %v4411_v15 = vpop.f32.mrf.mxu1  ;;  %v9208_v55 = vld [vmem:[%s11809_s1 + $0xf30] sm:$0xff] }
 0x1c8   :  { %5885 = vmatpush.bf16.msra.mxu2 %v9180_v51  ;;  %6493 = vst.msk [vmem:[%s11811_s2 + $0x9e] sm:$0x3] %vm6413_vm1, %v4489_v11  ;;  %v9212_v51 = vld [vmem:[%s11809_s1 + $0xf50] sm:$0xff] }
 0x1c9   :  { %5925 = vmatpush.bf16.msra.mxu3 %v9184_v52  ;;  %v9216_v52 = vld [vmem:[%s11809_s1 + $0xf70] sm:$0xff] }
 0x1ca   :  { %5806 = vmatpush.bf16.msra.mxu0 %v9171_v4  ;;  %v9203_v4 = vld [vmem:[%s11809_s1 + $0xf08] sm:$0xff] }
 0x1cb   :  { %5846 = vmatpush.bf16.msra.mxu1 %v9175_v5  ;;  %v9207_v5 = vld [vmem:[%s11809_s1 + $0xf28] sm:$0xff] }
 0x1cc   :  { %5886 = vmatpush.bf16.msra.mxu2 %v9179_v2  ;;  %v9211_v2 = vld [vmem:[%s11809_s1 + $0xf48] sm:$0xff] }
 0x1cd   :  { %5926 = vmatpush.bf16.msra.mxu3 %v9183_v3  ;;  %v9215_v3 = vld [vmem:[%s11809_s1 + $0xf68] sm:$0xff] }
 0x1ce   :  { %5807 = vmatpush.bf16.msra.mxu0 %v9170_v8  ;;  %v4451_v26 = vpop.f32.mrf.mxu2  ;;  %v4529_v30 = vpop.f32.mrf.mxu0  ;;  %v9202_v8 = vld [vmem:[%s11809_s1 + $0xf00] sm:$0xff] }
 0x1cf   :  { %5847 = vmatpush.bf16.msra.mxu1 %v9174_v9  ;;  %v4491_v27 = vpop.f32.mrf.mxu3  ;;  %v4569_v31 = vpop.f32.mrf.mxu1  ;;  %6494 = vst.msk [vmem:[%s11811_s2 + $0xa0] sm:$0x3] %vm6413_vm1, %v4529_v30  ;;  %v9206_v9 = vld [vmem:[%s11809_s1 + $0xf20] sm:$0xff] }
 0x1d0   :  { %5887 = vmatpush.bf16.msra.mxu2 %v9178_v6  ;;  %6495 = vst.msk [vmem:[%s11811_s2 + $0xa2] sm:$0x3] %vm6413_vm1, %v4569_v31  ;;  %v9210_v6 = vld [vmem:[%s11809_s1 + $0xf40] sm:$0xff] }
 0x1d1   :  { %5927 = vmatpush.bf16.msra.mxu3 %v9182_v7  ;;  %8466 = vmatmul.msk.bf16.vlgmr.msra.gmra.mxu0 %vm1316_vm0, %v252_v28  ;;  %v9214_v7 = vld [vmem:[%s11809_s1 + $0xf60] sm:$0xff]  ;;  %v260_v28 = vpack.c.bf16 %v132_v18, %v132_v18 }
 0x1d2   :  { %5964 = vmatpush.bf16.msrb.mxu0 %v9189_v16  ;;  %8483 = vmatmul.msk.bf16.vlgmr.msra.gmra.mxu1 %vm1316_vm0, %v253_v29  ;;  %v9221_v16 = vld [vmem:[%s11809_s1 + $0xf98] sm:$0xff]  ;;  %v261_v29 = vpack.c.bf16 %v133_v21, %v133_v21 }
 0x1d3   :  { %6004 = vmatpush.bf16.msrb.mxu1 %v9193_v17  ;;  %8500 = vmatmul.msk.bf16.vlgmr.msra.gmra.mxu2 %vm1316_vm0, %v254_v32  ;;  %v9225_v17 = vld [vmem:[%s11809_s1 + $0xfb8] sm:$0xff]  ;;  %v262_v32 = vpack.c.bf16 %v134_v24, %v134_v24 }
 0x1d4   :  { %6044 = vmatpush.bf16.msrb.mxu2 %v9197_v12  ;;  %8517 = vmatmul.msk.bf16.vlgmr.msra.gmra.mxu3 %vm1316_vm0, %v255_v33  ;;  %v9229_v12 = vld [vmem:[%s11809_s1 + $0xfd8] sm:$0xff]  ;;  %v263_v33 = vpack.c.bf16 %v135_v25, %v135_v25 }
 0x1d5   :  { %6084 = vmatpush.bf16.msrb.mxu3 %v9201_v13  ;;  %v9233_v13 = vld [vmem:[%s11809_s1 + $0xff8] sm:$0xff] }
 0x1d6   :  { %5965 = vmatpush.bf16.msrb.mxu0 %v9188_v22  ;;  %v4609_v42 = vpop.f32.mrf.mxu2  ;;  %v4531_v46 = vpop.f32.mrf.mxu0  ;;  %v9220_v22 = vld [vmem:[%s11809_s1 + $0xf90] sm:$0xff] }
 0x1d7   :  { %6005 = vmatpush.bf16.msrb.mxu1 %v9192_v23  ;;  %v4649_v43 = vpop.f32.mrf.mxu3  ;;  %6496 = vst.msk [vmem:[%s11811_s2 + $0xa4] sm:$0x3] %vm6413_vm1, %v4609_v42  ;;  %v4571_v47 = vpop.f32.mrf.mxu1  ;;  %v9224_v23 = vld [vmem:[%s11809_s1 + $0xfb0] sm:$0xff]  ;;  %v136_v46 = vld [vmem:[%s11810_s0 + $0xf8] sm:$0x3] }
 0x1d8   :  { %6045 = vmatpush.bf16.msrb.mxu2 %v9196_v19  ;;  %6497 = vst.msk [vmem:[%s11811_s2 + $0xa6] sm:$0x3] %vm6413_vm1, %v4649_v43  ;;  %v9228_v19 = vld [vmem:[%s11809_s1 + $0xfd0] sm:$0xff]  ;;  %v137_v47 = vld [vmem:[%s11810_s0 + $0xfa] sm:$0x3] }
 0x1d9   :  { %6085 = vmatpush.bf16.msrb.mxu3 %v9200_v20  ;;  %v9232_v20 = vld [vmem:[%s11809_s1 + $0xff0] sm:$0xff]  ;;  %v265_v53 = vpack.c.bf16 %v137_v47, %v137_v47 }
 0x1da   :  { %5966 = vmatpush.bf16.msrb.mxu0 %v9187_v36  ;;  %v9219_v36 = vld [vmem:[%s11809_s1 + $0xf88] sm:$0xff] }
 0x1db   :  { %6006 = vmatpush.bf16.msrb.mxu1 %v9191_v37  ;;  %v9223_v37 = vld [vmem:[%s11809_s1 + $0xfa8] sm:$0xff] }
 0x1dc   :  { %6046 = vmatpush.bf16.msrb.mxu2 %v9195_v34  ;;  %v9227_v34 = vld [vmem:[%s11809_s1 + $0xfc8] sm:$0xff] }
 0x1dd   :  { %6086 = vmatpush.bf16.msrb.mxu3 %v9199_v35  ;;  %v9231_v35 = vld [vmem:[%s11809_s1 + $0xfe8] sm:$0xff] }
 0x1de   :  { %5967 = vmatpush.bf16.msrb.mxu0 %v9186_v40  ;;  %v4611_v58 = vpop.f32.mrf.mxu2  ;;  %v4689_v62 = vpop.f32.mrf.mxu0  ;;  %v9218_v40 = vld [vmem:[%s11809_s1 + $0xf80] sm:$0xff] }
 0x1df   :  { %6007 = vmatpush.bf16.msrb.mxu1 %v9190_v41  ;;  %v4651_v59 = vpop.f32.mrf.mxu3  ;;  %v4729_v63 = vpop.f32.mrf.mxu1  ;;  %6498 = vst.msk [vmem:[%s11811_s2 + $0xa8] sm:$0x3] %vm6413_vm1, %v4689_v62  ;;  %v9222_v41 = vld [vmem:[%s11809_s1 + $0xfa0] sm:$0xff] }
 0x1e0   :  { %6047 = vmatpush.bf16.msrb.mxu2 %v9194_v38  ;;  %6499 = vst.msk [vmem:[%s11811_s2 + $0xaa] sm:$0x3] %vm6413_vm1, %v4729_v63  ;;  %v9226_v38 = vld [vmem:[%s11809_s1 + $0xfc0] sm:$0xff] }
 0x1e1   :  { %6087 = vmatpush.bf16.msrb.mxu3 %v9198_v39  ;;  %8534 = vmatmul.msk.bf16.vlgmr.msrb.gmra.mxu0 %vm1316_vm0, %v256_v60  ;;  %v9230_v39 = vld [vmem:[%s11809_s1 + $0xfe0] sm:$0xff] }
 0x1e2   :  { %6124 = vmatpush.bf16.msra.mxu0 %v9205_v48  ;;  %8551 = vmatmul.msk.bf16.vlgmr.msrb.gmra.mxu1 %vm1316_vm0, %v257_v61  ;;  %v138_v48 = vld [vmem:[%s11810_s0 + $0xfc] sm:$0x3] }
 0x1e3   :  { %6164 = vmatpush.bf16.msra.mxu1 %v9209_v49  ;;  %8568 = vmatmul.msk.bf16.vlgmr.msrb.gmra.mxu2 %vm1316_vm0, %v258_v0  ;;  %v139_v49 = vld [vmem:[%s11810_s0 + $0xfe] sm:$0x3]  ;;  %v266_v56 = vpack.c.bf16 %v138_v48, %v138_v48 }
 0x1e4   :  { %6204 = vmatpush.bf16.msra.mxu2 %v9213_v44  ;;  %8585 = vmatmul.msk.bf16.vlgmr.msrb.gmra.mxu3 %vm1316_vm0, %v259_v1  ;;  %v267_v57 = vpack.c.bf16 %v139_v49, %v139_v49 }
 0x1e5   :  { %6244 = vmatpush.bf16.msra.mxu3 %v9217_v45 }
 0x1e6   :  { %6125 = vmatpush.bf16.msra.mxu0 %v9204_v54  ;;  %v4769_v10 = vpop.f32.mrf.mxu2  ;;  %v4691_v14 = vpop.f32.mrf.mxu0 }
 0x1e7   :  { %6165 = vmatpush.bf16.msra.mxu1 %v9208_v55  ;;  %v4809_v11 = vpop.f32.mrf.mxu3  ;;  %6500 = vst.msk [vmem:[%s11811_s2 + $0xac] sm:$0x3] %vm6413_vm1, %v4769_v10  ;;  %v4731_v15 = vpop.f32.mrf.mxu1 }
 0x1e8   :  { %6205 = vmatpush.bf16.msra.mxu2 %v9212_v51  ;;  %6501 = vst.msk [vmem:[%s11811_s2 + $0xae] sm:$0x3] %vm6413_vm1, %v4809_v11 }
 0x1e9   :  { %6245 = vmatpush.bf16.msra.mxu3 %v9216_v52  ;;  %v264_v52 = vpack.c.bf16 %v136_v46, %v136_v46 }
 0x1ea   :  { %6126 = vmatpush.bf16.msra.mxu0 %v9203_v4 }
 0x1eb   :  { %6166 = vmatpush.bf16.msra.mxu1 %v9207_v5 }
 0x1ec   :  { %6206 = vmatpush.bf16.msra.mxu2 %v9211_v2 }
 0x1ed   :  { %6246 = vmatpush.bf16.msra.mxu3 %v9215_v3 }
 0x1ee   :  { %6127 = vmatpush.bf16.msra.mxu0 %v9202_v8  ;;  %v4771_v26 = vpop.f32.mrf.mxu2  ;;  %v4849_v30 = vpop.f32.mrf.mxu0 }
 0x1ef   :  { %6167 = vmatpush.bf16.msra.mxu1 %v9206_v9  ;;  %v4811_v27 = vpop.f32.mrf.mxu3  ;;  %v4889_v31 = vpop.f32.mrf.mxu1  ;;  %6502 = vst.msk [vmem:[%s11811_s2 + $0xb0] sm:$0x3] %vm6413_vm1, %v4849_v30 }
 0x1f0   :  { %6207 = vmatpush.bf16.msra.mxu2 %v9210_v6  ;;  %6503 = vst.msk [vmem:[%s11811_s2 + $0xb2] sm:$0x3] %vm6413_vm1, %v4889_v31 }
 0x1f1   :  { %6247 = vmatpush.bf16.msra.mxu3 %v9214_v7  ;;  %8602 = vmatmul.msk.bf16.vlgmr.msra.gmra.mxu0 %vm1316_vm0, %v260_v28 }
 0x1f2   :  { %6284 = vmatpush.bf16.msrb.mxu0 %v9221_v16  ;;  %8619 = vmatmul.msk.bf16.vlgmr.msra.gmra.mxu1 %vm1316_vm0, %v261_v29 }
 0x1f3   :  { %6324 = vmatpush.bf16.msrb.mxu1 %v9225_v17  ;;  %8636 = vmatmul.msk.bf16.vlgmr.msra.gmra.mxu2 %vm1316_vm0, %v262_v32 }
 0x1f4   :  { %6364 = vmatpush.bf16.msrb.mxu2 %v9229_v12  ;;  %8653 = vmatmul.msk.bf16.vlgmr.msra.gmra.mxu3 %vm1316_vm0, %v263_v33 }
 0x1f5   :  { %6404 = vmatpush.bf16.msrb.mxu3 %v9233_v13 }
 0x1f6   :  { %6285 = vmatpush.bf16.msrb.mxu0 %v9220_v22  ;;  %v4929_v42 = vpop.f32.mrf.mxu2  ;;  %v4851_v44 = vpop.f32.mrf.mxu0 }
 0x1f7   :  { %6325 = vmatpush.bf16.msrb.mxu1 %v9224_v23  ;;  %v4969_v43 = vpop.f32.mrf.mxu3  ;;  %6504 = vst.msk [vmem:[%s11811_s2 + $0xb4] sm:$0x3] %vm6413_vm1, %v4929_v42  ;;  %v4891_v45 = vpop.f32.mrf.mxu1 }
 0x1f8   :  { %6365 = vmatpush.bf16.msrb.mxu2 %v9228_v19  ;;  %6505 = vst.msk [vmem:[%s11811_s2 + $0xb6] sm:$0x3] %vm6413_vm1, %v4969_v43 }
 0x1f9   :  { %6405 = vmatpush.bf16.msrb.mxu3 %v9232_v20 }
 0x1fa   :  { %6286 = vmatpush.bf16.msrb.mxu0 %v9219_v36 }
 0x1fb   :  { %6326 = vmatpush.bf16.msrb.mxu1 %v9223_v37 }
 0x1fc   :  { %6366 = vmatpush.bf16.msrb.mxu2 %v9227_v34 }
 0x1fd   :  { %6406 = vmatpush.bf16.msrb.mxu3 %v9231_v35 }
 0x1fe   :  { %6287 = vmatpush.bf16.msrb.mxu0 %v9218_v40  ;;  %v4931_v50 = vpop.f32.mrf.mxu2  ;;  %v5009_v54 = vpop.f32.mrf.mxu0 }
 0x1ff   :  { %6327 = vmatpush.bf16.msrb.mxu1 %v9222_v41  ;;  %v4971_v51 = vpop.f32.mrf.mxu3  ;;  %v5049_v55 = vpop.f32.mrf.mxu1  ;;  %6506 = vst.msk [vmem:[%s11811_s2 + $0xb8] sm:$0x3] %vm6413_vm1, %v5009_v54 }
 0x200   :  { %6367 = vmatpush.bf16.msrb.mxu2 %v9226_v38  ;;  %6507 = vst.msk [vmem:[%s11811_s2 + $0xba] sm:$0x3] %vm6413_vm1, %v5049_v55 }
 0x201   :  { %6407 = vmatpush.bf16.msrb.mxu3 %v9230_v39  ;;  %8670 = vmatmul.msk.bf16.vlgmr.msrb.gmra.mxu0 %vm1316_vm0, %v264_v52 }
 0x202   :  { %8687 = vmatmul.msk.bf16.vlgmr.msrb.gmra.mxu1 %vm1316_vm0, %v265_v53 }
 0x203   :  { %8704 = vmatmul.msk.bf16.vlgmr.msrb.gmra.mxu2 %vm1316_vm0, %v266_v56 }
 0x204   :  { %8721 = vmatmul.msk.bf16.vlgmr.msrb.gmra.mxu3 %vm1316_vm0, %v267_v57 }
 0x206   :  { %v5089_v58 = vpop.f32.mrf.mxu2  ;;  %v5011_v60 = vpop.f32.mrf.mxu0 }
 0x207   :  { %v5129_v59 = vpop.f32.mrf.mxu3  ;;  %6508 = vst.msk [vmem:[%s11811_s2 + $0xbc] sm:$0x3] %vm6413_vm1, %v5089_v58  ;;  %v5051_v61 = vpop.f32.mrf.mxu1 }
 0x208   :  { %6509 = vst.msk [vmem:[%s11811_s2 + $0xbe] sm:$0x3] %vm6413_vm1, %v5129_v59 }
 0x20e   :  { %v5091_v62 = vpop.f32.mrf.mxu2  ;;  %v5169_v0 = vpop.f32.mrf.mxu0 }
 0x20f   :  { %v5131_v63 = vpop.f32.mrf.mxu3  ;;  %v5209_v1 = vpop.f32.mrf.mxu1  ;;  %6510 = vst.msk [vmem:[%s11811_s2 + $0xc0] sm:$0x3] %vm6413_vm1, %v5169_v0 }
 0x210   :  { %6511 = vst.msk [vmem:[%s11811_s2 + $0xc2] sm:$0x3] %vm6413_vm1, %v5209_v1 }
 0x216   :  { %v5249_v2 = vpop.f32.mrf.mxu2  ;;  %v5171_v4 = vpop.f32.mrf.mxu0 }
 0x217   :  { %v5289_v3 = vpop.f32.mrf.mxu3  ;;  %6512 = vst.msk [vmem:[%s11811_s2 + $0xc4] sm:$0x3] %vm6413_vm1, %v5249_v2  ;;  %v5211_v5 = vpop.f32.mrf.mxu1 }
 0x218   :  { %6513 = vst.msk [vmem:[%s11811_s2 + $0xc6] sm:$0x3] %vm6413_vm1, %v5289_v3 }
 0x21e   :  { %v5251_v6 = vpop.f32.mrf.mxu2  ;;  %v5329_v8 = vpop.f32.mrf.mxu0 }
 0x21f   :  { %v5291_v7 = vpop.f32.mrf.mxu3  ;;  %v5369_v9 = vpop.f32.mrf.mxu1  ;;  %6514 = vst.msk [vmem:[%s11811_s2 + $0xc8] sm:$0x3] %vm6413_vm1, %v5329_v8 }
 0x220   :  { %6515 = vst.msk [vmem:[%s11811_s2 + $0xca] sm:$0x3] %vm6413_vm1, %v5369_v9 }
 0x226   :  { %v5409_v10 = vpop.f32.mrf.mxu2  ;;  %v5331_v12 = vpop.f32.mrf.mxu0 }
 0x227   :  { %v5449_v11 = vpop.f32.mrf.mxu3  ;;  %6516 = vst.msk [vmem:[%s11811_s2 + $0xcc] sm:$0x3] %vm6413_vm1, %v5409_v10  ;;  %v5371_v13 = vpop.f32.mrf.mxu1 }
 0x228   :  { %6517 = vst.msk [vmem:[%s11811_s2 + $0xce] sm:$0x3] %vm6413_vm1, %v5449_v11 }
 0x22e   :  { %v5411_v14 = vpop.f32.mrf.mxu2  ;;  %v5489_v16 = vpop.f32.mrf.mxu0 }
 0x22f   :  { %v5451_v15 = vpop.f32.mrf.mxu3  ;;  %v5529_v17 = vpop.f32.mrf.mxu1  ;;  %6518 = vst.msk [vmem:[%s11811_s2 + $0xd0] sm:$0x3] %vm6413_vm1, %v5489_v16 }
 0x230   :  { %6519 = vst.msk [vmem:[%s11811_s2 + $0xd2] sm:$0x3] %vm6413_vm1, %v5529_v17 }
 0x236   :  { %v5569_v18 = vpop.f32.mrf.mxu2  ;;  %v5491_v20 = vpop.f32.mrf.mxu0 }
 0x237   :  { %v5609_v19 = vpop.f32.mrf.mxu3  ;;  %6520 = vst.msk [vmem:[%s11811_s2 + $0xd4] sm:$0x3] %vm6413_vm1, %v5569_v18  ;;  %v5531_v21 = vpop.f32.mrf.mxu1 }
 0x238   :  { %6521 = vst.msk [vmem:[%s11811_s2 + $0xd6] sm:$0x3] %vm6413_vm1, %v5609_v19 }
 0x23e   :  { %v5571_v22 = vpop.f32.mrf.mxu2  ;;  %v5649_v24 = vpop.f32.mrf.mxu0 }
 0x23f   :  { %v5611_v23 = vpop.f32.mrf.mxu3  ;;  %v5689_v25 = vpop.f32.mrf.mxu1  ;;  %6522 = vst.msk [vmem:[%s11811_s2 + $0xd8] sm:$0x3] %vm6413_vm1, %v5649_v24 }
 0x240   :  { %6523 = vst.msk [vmem:[%s11811_s2 + $0xda] sm:$0x3] %vm6413_vm1, %v5689_v25 }
 0x246   :  { %v5729_v26 = vpop.f32.mrf.mxu2  ;;  %v5651_v28 = vpop.f32.mrf.mxu0 }
 0x247   :  { %v5769_v27 = vpop.f32.mrf.mxu3  ;;  %6524 = vst.msk [vmem:[%s11811_s2 + $0xdc] sm:$0x3] %vm6413_vm1, %v5729_v26  ;;  %v5691_v29 = vpop.f32.mrf.mxu1 }
 0x248   :  { %6525 = vst.msk [vmem:[%s11811_s2 + $0xde] sm:$0x3] %vm6413_vm1, %v5769_v27 }
 0x24e   :  { %v5731_v30 = vpop.f32.mrf.mxu2  ;;  %v5809_v32 = vpop.f32.mrf.mxu0 }
 0x24f   :  { %v5771_v31 = vpop.f32.mrf.mxu3  ;;  %v5849_v33 = vpop.f32.mrf.mxu1  ;;  %6526 = vst.msk [vmem:[%s11811_s2 + $0xe0] sm:$0x3] %vm6413_vm1, %v5809_v32 }
 0x250   :  { %6527 = vst.msk [vmem:[%s11811_s2 + $0xe2] sm:$0x3] %vm6413_vm1, %v5849_v33 }
 0x256   :  { %v5889_v34 = vpop.f32.mrf.mxu2  ;;  %v5811_v36 = vpop.f32.mrf.mxu0 }
 0x257   :  { %v5929_v35 = vpop.f32.mrf.mxu3  ;;  %6528 = vst.msk [vmem:[%s11811_s2 + $0xe4] sm:$0x3] %vm6413_vm1, %v5889_v34  ;;  %v5851_v37 = vpop.f32.mrf.mxu1 }
 0x258   :  { %6529 = vst.msk [vmem:[%s11811_s2 + $0xe6] sm:$0x3] %vm6413_vm1, %v5929_v35 }
 0x25e   :  { %v5891_v38 = vpop.f32.mrf.mxu2  ;;  %v5969_v40 = vpop.f32.mrf.mxu0 }
 0x25f   :  { %v5931_v39 = vpop.f32.mrf.mxu3  ;;  %v6009_v41 = vpop.f32.mrf.mxu1  ;;  %6530 = vst.msk [vmem:[%s11811_s2 + $0xe8] sm:$0x3] %vm6413_vm1, %v5969_v40 }
 0x260   :  { %6531 = vst.msk [vmem:[%s11811_s2 + $0xea] sm:$0x3] %vm6413_vm1, %v6009_v41 }
 0x266   :  { %v6049_v42 = vpop.f32.mrf.mxu2  ;;  %v5971_v44 = vpop.f32.mrf.mxu0 }
 0x267   :  { %v6089_v43 = vpop.f32.mrf.mxu3  ;;  %6532 = vst.msk [vmem:[%s11811_s2 + $0xec] sm:$0x3] %vm6413_vm1, %v6049_v42  ;;  %v6011_v45 = vpop.f32.mrf.mxu1 }
 0x268   :  { %6533 = vst.msk [vmem:[%s11811_s2 + $0xee] sm:$0x3] %vm6413_vm1, %v6089_v43 }
 0x26e   :  { %v6051_v46 = vpop.f32.mrf.mxu2  ;;  %v6129_v48 = vpop.f32.mrf.mxu0 }
 0x26f   :  { %v6091_v47 = vpop.f32.mrf.mxu3  ;;  %v6169_v49 = vpop.f32.mrf.mxu1  ;;  %6534 = vst.msk [vmem:[%s11811_s2 + $0xf0] sm:$0x3] %vm6413_vm1, %v6129_v48 }
 0x270   :  { %6535 = vst.msk [vmem:[%s11811_s2 + $0xf2] sm:$0x3] %vm6413_vm1, %v6169_v49 }
 0x276   :  { %v6209_v50 = vpop.f32.mrf.mxu2  ;;  %v6131_v52 = vpop.f32.mrf.mxu0 }
 0x277   :  { %v6249_v51 = vpop.f32.mrf.mxu3  ;;  %6536 = vst.msk [vmem:[%s11811_s2 + $0xf4] sm:$0x3] %vm6413_vm1, %v6209_v50  ;;  %v6171_v53 = vpop.f32.mrf.mxu1 }
 0x278   :  { %6537 = vst.msk [vmem:[%s11811_s2 + $0xf6] sm:$0x3] %vm6413_vm1, %v6249_v51 }
 0x27e   :  { %v6211_v54 = vpop.f32.mrf.mxu2  ;;  %v6289_v56 = vpop.f32.mrf.mxu0 }
 0x27f   :  { %v6251_v55 = vpop.f32.mrf.mxu3  ;;  %v6329_v57 = vpop.f32.mrf.mxu1  ;;  %6538 = vst.msk [vmem:[%s11811_s2 + $0xf8] sm:$0x3] %vm6413_vm1, %v6289_v56 }
 0x280   :  { %6539 = vst.msk [vmem:[%s11811_s2 + $0xfa] sm:$0x3] %vm6413_vm1, %v6329_v57 }
 0x286   :  { %v6369_v58 = vpop.f32.mrf.mxu2  ;;  %v6291_v60 = vpop.f32.mrf.mxu0 }
 0x287   :  { %v6409_v59 = vpop.f32.mrf.mxu3  ;;  %6540 = vst.msk [vmem:[%s11811_s2 + $0xfc] sm:$0x3] %vm6413_vm1, %v6369_v58  ;;  %v6331_v61 = vpop.f32.mrf.mxu1 }
 0x288   :  { %6541 = vst.msk [vmem:[%s11811_s2 + $0xfe] sm:$0x3] %vm6413_vm1, %v6409_v59 }
 0x28e   :  { %v6371_v62 = vpop.f32.mrf.mxu2 }
 0x28f   :  { %v6411_v63 = vpop.f32.mrf.mxu3 }

// kernel: fno_forward.7
= control target key start
LH: loop header
LB: loop body
LE: loop exit
PB: predicated region body
PF: predicated region fallthrough
CT: control target
= control target key end

     0   :  { %s1907_s15 = smov 0   ;;  %s3068_s0 = inlined_call_operand.vmem [shape: f32[512,32], index: 0, kind: input, shape index: {}]   ;;  %s3069_s1 = inlined_call_operand.vmem [shape: f32[512,32], index: 1, kind: input, shape index: {}]   ;;  %s3070_s2 = inlined_call_operand.vmem [shape: bf16[32,32], index: 2, kind: input, shape index: {}]   ;;  %s3071_s3 = inlined_call_operand.vmem [shape: f32[3,32], index: 3, kind: input, shape index: {}]   ;;  %s3072_s4 = inlined_call_operand.vmem [shape: f32[512,32], index: 4, kind: output, shape index: {}]  }
   0x1 LB: > { %s1689_s16 = sadd.s32 4294967295, %s1879_s15   ;;  %p1693_p0 = scmp.ge.s32.totalorder %s1879_s15, 1  ;;  %s1879_s15 = sphi %s1907_s15, %s14_s15  }
   0x2   : > { %p174_p1 = scmp.lt.s32.totalorder %s1879_s15, 3 }
   0x4   : > { %p175_p2 = pnand %p1693_p0, %p174_p1 }
   0x5   : > { %s1694_s19 = sshll.u32 (!%p175_p2), %s1689_s16, 5 }
   0x6   : > { %178 = sbr.rel (%p175_p2) target bundleno = 609 (0x261), region = 36  ;;  %p206_p3 = scmp.lt.s32.totalorder (!%p175_p2), %s1694_s19, 63 }
   0xb   : > { %v1727_v0 = vld [vmem:[%s3070_s2 + $0x8] sm:$0xff]  ;;  %v1726_v1 = vld [vmem:[%s3070_s2] sm:$0xff]  ;;  %s3074_s19 = smov (!%p206_p3, %s1694_s19), 63  ;;  %vm288_vm0 = vcmask 261120  }
   0xc   : > { %343 = vmatpush.bf16.msra.mxu0 %v1727_v0  ;;  %1728 = vmatpush.bf16.msra.mxu1 %v1727_v0  ;;  %s1921_s22 = sshll.u32 %s3074_s19, 3  ;;  %v1986_v50 = vld [vmem:[%s3071_s3] sm:$0x7] }
   0xd   : > { %1729 = vmatpush.bf16.msra.mxu2 %v1727_v0  ;;  %1730 = vmatpush.bf16.msra.mxu3 %v1727_v0  ;;  %s1927_s25 = scalar_lea.vmem %s3068_s0, %s1921_s22  ;;  %s1981_s28 = scalar_lea.vmem %s3069_s1, %s1921_s22  ;;  %v1991_v53 = vperm.slane %v1986_v50, 0 }
   0xe   : > { %v224_v2 = vld [vmem:[%s1927_s25] sm:$0xff]  ;;  %v225_v3 = vld [vmem:[%s1927_s25 + $0x8] sm:$0xff]  ;;  %v226_v14 = vld [vmem:[%s1927_s25 + $0x10] sm:$0xff]  ;;  %s2501_s7 = scalar_lea.vmem %s3072_s4, %s1921_s22 }
   0xf   : > { %v232_v4 = vld [vmem:[%s1927_s25 + $0x40] sm:$0xff]  ;;  %v256_v5 = vpack.c.bf16 %v225_v3, %v224_v2  ;;  %v233_v6 = vld [vmem:[%s1927_s25 + $0x48] sm:$0xff]  ;;  %v227_v15 = vld [vmem:[%s1927_s25 + $0x18] sm:$0xff] }
  0x10   : > { %344 = vmatpush.bf16.msra.mxu0 %v1726_v1  ;;  %1731 = vmatpush.bf16.msra.mxu1 %v1726_v1  ;;  %v240_v7 = vld [vmem:[%s1927_s25 + $0x80] sm:$0xff]  ;;  %v241_v8 = vld [vmem:[%s1927_s25 + $0x88] sm:$0xff]  ;;  %v260_v9 = vpack.c.bf16 %v233_v6, %v232_v4  ;;  %v234_v16 = vld [vmem:[%s1927_s25 + $0x50] sm:$0xff]  ;;  %v257_v22 = vpack.c.bf16 %v227_v15, %v226_v14 }
  0x11   : > { %1732 = vmatpush.bf16.msra.mxu2 %v1726_v1  ;;  %1733 = vmatpush.bf16.msra.mxu3 %v1726_v1  ;;  %v264_v10 = vpack.c.bf16 %v241_v8, %v240_v7  ;;  %v248_v11 = vld [vmem:[%s1927_s25 + $0xc0] sm:$0xff]  ;;  %v249_v12 = vld [vmem:[%s1927_s25 + $0xc8] sm:$0xff]  ;;  %v235_v17 = vld [vmem:[%s1927_s25 + $0x58] sm:$0xff] }
  0x12   : > { %v268_v13 = vpack.c.bf16 %v249_v12, %v248_v11  ;;  %v242_v18 = vld [vmem:[%s1927_s25 + $0x90] sm:$0xff]  ;;  %v243_v19 = vld [vmem:[%s1927_s25 + $0x98] sm:$0xff]  ;;  %v261_v23 = vpack.c.bf16 %v235_v17, %v234_v16  ;;  %v228_v26 = vld [vmem:[%s1927_s25 + $0x20] sm:$0xff] }
  0x13   : > { %1708 = vmatmul.msk.bf16.vlgmr.msra.gmra.mxu0 %vm288_vm0, %v256_v5  ;;  %1712 = vmatmul.msk.bf16.vlgmr.msra.gmra.mxu1 %vm288_vm0, %v260_v9  ;;  %v250_v20 = vld [vmem:[%s1927_s25 + $0xd0] sm:$0xff]  ;;  %v251_v21 = vld [vmem:[%s1927_s25 + $0xd8] sm:$0xff]  ;;  %v265_v24 = vpack.c.bf16 %v243_v19, %v242_v18  ;;  %v229_v27 = vld [vmem:[%s1927_s25 + $0x28] sm:$0xff] }
  0x14   : > { %1716 = vmatmul.msk.bf16.vlgmr.msra.gmra.mxu2 %vm288_vm0, %v264_v10  ;;  %1720 = vmatmul.msk.bf16.vlgmr.msra.gmra.mxu3 %vm288_vm0, %v268_v13  ;;  %v269_v25 = vpack.c.bf16 %v251_v21, %v250_v20  ;;  %v244_v28 = vld [vmem:[%s1927_s25 + $0xa0] sm:$0xff]  ;;  %v245_v29 = vld [vmem:[%s1927_s25 + $0xa8] sm:$0xff]  ;;  %v258_v34 = vpack.c.bf16 %v229_v27, %v228_v26  ;;  %v230_v38 = vld [vmem:[%s1927_s25 + $0x30] sm:$0xff] }
  0x15   : > { %v236_v30 = vld [vmem:[%s1927_s25 + $0x60] sm:$0xff]  ;;  %v237_v31 = vld [vmem:[%s1927_s25 + $0x68] sm:$0xff]  ;;  %v266_v35 = vpack.c.bf16 %v245_v29, %v244_v28  ;;  %v231_v39 = vld [vmem:[%s1927_s25 + $0x38] sm:$0xff] }
  0x16   : > { %v252_v32 = vld [vmem:[%s1927_s25 + $0xe0] sm:$0xff]  ;;  %v253_v33 = vld [vmem:[%s1927_s25 + $0xe8] sm:$0xff]  ;;  %v262_v36 = vpack.c.bf16 %v237_v31, %v236_v30  ;;  %v246_v40 = vld [vmem:[%s1927_s25 + $0xb0] sm:$0xff]  ;;  %v259_v46 = vpack.c.bf16 %v231_v39, %v230_v38 }
  0x17   : > { %v270_v37 = vpack.c.bf16 %v253_v33, %v252_v32  ;;  %v247_v41 = vld [vmem:[%s1927_s25 + $0xb8] sm:$0xff]  ;;  %v238_v42 = vld [vmem:[%s1927_s25 + $0x70] sm:$0xff]  ;;  %v427_v51 = vld [vmem:[%s1981_s28] sm:$0xff] }
  0x18   : > { %v239_v43 = vld [vmem:[%s1927_s25 + $0x78] sm:$0xff]  ;;  %v254_v44 = vld [vmem:[%s1927_s25 + $0xf0] sm:$0xff]  ;;  %v267_v47 = vpack.c.bf16 %v247_v41, %v246_v40  ;;  %v435_v52 = vld [vmem:[%s1981_s28 + $0x40] sm:$0xff] }
  0x19   : > { %v255_v45 = vld [vmem:[%s1927_s25 + $0xf8] sm:$0xff]  ;;  %v263_v48 = vpack.c.bf16 %v239_v43, %v238_v42  ;;  %v443_v60 = vld [vmem:[%s1981_s28 + $0x80] sm:$0xff]  ;;  %v428_v6 = vld [vmem:[%s1981_s28 + $0x8] sm:$0xff] }
  0x1a   : > { %v271_v49 = vpack.c.bf16 %v255_v45, %v254_v44  ;;  %v451_v62 = vld [vmem:[%s1981_s28 + $0xc0] sm:$0xff]  ;;  %v444_v11 = vld [vmem:[%s1981_s28 + $0x88] sm:$0xff]  ;;  %v429_v18 = vld [vmem:[%s1981_s28 + $0x10] sm:$0xff] }
  0x1b   : > { %v452_v13 = vld [vmem:[%s1981_s28 + $0xc8] sm:$0xff]  ;;  %v453_v30 = vld [vmem:[%s1981_s28 + $0xd0] sm:$0xff] }
  0x1c   : > { %v437_v33 = vld [vmem:[%s1981_s28 + $0x50] sm:$0xff] }
  0x1d   : > { %v445_v39 = vld [vmem:[%s1981_s28 + $0x90] sm:$0xff] }
  0x23   : > { %1709 = vmatmul.msk.bf16.gmra.mxu0 %vm288_vm0, %v257_v22  ;;  %1713 = vmatmul.msk.bf16.gmra.mxu1 %vm288_vm0, %v261_v23  ;;  %v436_v23 = vld [vmem:[%s1981_s28 + $0x48] sm:$0xff] }
  0x24   : > { %1717 = vmatmul.msk.bf16.gmra.mxu2 %vm288_vm0, %v265_v24  ;;  %1721 = vmatmul.msk.bf16.gmra.mxu3 %vm288_vm0, %v269_v25 }
  0x33   : > { %1710 = vmatmul.msk.bf16.gmra.mxu0 %vm288_vm0, %v258_v34  ;;  %1714 = vmatmul.msk.bf16.gmra.mxu1 %vm288_vm0, %v262_v36  ;;  %v438_v36 = vld [vmem:[%s1981_s28 + $0x58] sm:$0xff] }
  0x34   : > { %1718 = vmatmul.msk.bf16.gmra.mxu2 %vm288_vm0, %v266_v35  ;;  %1722 = vmatmul.msk.bf16.gmra.mxu3 %vm288_vm0, %v270_v37 }
  0x43   : > { %1711 = vmatmul.msk.bf16.gmra.mxu0 %vm288_vm0, %v259_v46  ;;  %1715 = vmatmul.msk.bf16.gmra.mxu1 %vm288_vm0, %v263_v48 }
  0x44   : > { %1719 = vmatmul.msk.bf16.gmra.mxu2 %vm288_vm0, %v267_v47  ;;  %1723 = vmatmul.msk.bf16.gmra.mxu3 %vm288_vm0, %v271_v49 }
  0x90   : > { %v346_v54 = vpop.f32.mrf.mxu0  ;;  %v366_v56 = vpop.f32.mrf.mxu1 }
  0x91   : > { %v459_v55 = vadd.f32 %v427_v51, %v346_v54  ;;  %v467_v57 = vadd.f32 %v435_v52, %v366_v56  ;;  %v430_v56 = vld [vmem:[%s1981_s28 + $0x18] sm:$0xff] }
  0x93   : > { %v1994_v58 = vadd.f32 %v1991_v53, %v459_v55  ;;  %v1997_v59 = vadd.f32 %v1991_v53, %v467_v57  ;;  %v431_v55 = vld [vmem:[%s1981_s28 + $0x20] sm:$0xff] }
  0x95   : > { %v524_v61 = vsel %vm288_vm0, %v1994_v58, 0.0  ;;  %v548_v63 = vsel %vm288_vm0, %v1997_v59, 0.0 }
  0x96   : > { %525 = vadd.xlane.f32.xlu0 %v524_v61  ;;  %549 = vadd.xlane.f32.xlu2 %v548_v63 }
  0x97   : > { %v386_v0 = vpop.f32.mrf.mxu2  ;;  %v406_v2 = vpop.f32.mrf.mxu3 }
  0x98   : > { %v475_v1 = vadd.f32 %v443_v60, %v386_v0  ;;  %v348_v3 = vpop.f32.mrf.mxu0  ;;  %v483_v4 = vadd.f32 %v451_v62, %v406_v2  ;;  %v368_v5 = vpop.f32.mrf.mxu1  ;;  %v454_v60 = vld [vmem:[%s1981_s28 + $0xd8] sm:$0xff] }
  0x99   : > { %v460_v10 = vadd.f32 %v428_v6, %v348_v3  ;;  %v468_v29 = vadd.f32 %v436_v23, %v368_v5  ;;  %v447_v5 = vld [vmem:[%s1981_s28 + $0xa0] sm:$0xff] }
  0x9a   : > { %v2007_v7 = vadd.f32 %v1991_v53, %v475_v1  ;;  %v2010_v8 = vadd.f32 %v1991_v53, %v483_v4  ;;  %v455_v23 = vld [vmem:[%s1981_s28 + $0xe0] sm:$0xff] }
  0x9b   : > { %v2020_v21 = vadd.f32 %v1991_v53, %v460_v10  ;;  %v2043_v40 = vadd.f32 %v1991_v53, %v468_v29  ;;  %v446_v10 = vld [vmem:[%s1981_s28 + $0x98] sm:$0xff] }
  0x9c   : > { %v572_v9 = vsel %vm288_vm0, %v2007_v7, 0.0  ;;  %v596_v12 = vsel %vm288_vm0, %v2010_v8, 0.0 }
  0x9d   : > { %573 = vadd.xlane.f32.xlu1 %v572_v9  ;;  %v527_v28 = vsel %vm288_vm0, %v2020_v21, 0.0  ;;  %v551_v47 = vsel %vm288_vm0, %v2043_v40, 0.0  ;;  %v439_v9 = vld [vmem:[%s1981_s28 + $0x60] sm:$0xff] }
  0x9e   : > { %597 = vadd.xlane.f32.xlu0 %v596_v12 }
  0x9f   : > { %v388_v14 = vpop.f32.mrf.mxu2  ;;  %v408_v16 = vpop.f32.mrf.mxu3 }
  0xa0   : > { %v476_v15 = vadd.f32 %v444_v11, %v388_v14  ;;  %v351_v17 = vpop.f32.mrf.mxu0  ;;  %v484_v19 = vadd.f32 %v452_v13, %v408_v16  ;;  %v371_v20 = vpop.f32.mrf.mxu1 }
  0xa1   : > { %v461_v24 = vadd.f32 %v429_v18, %v351_v17  ;;  %v469_v41 = vadd.f32 %v437_v33, %v371_v20 }
  0xa2   : > { %v2023_v22 = vadd.f32 %v1991_v53, %v476_v15  ;;  %v2027_v25 = vadd.f32 %v1991_v53, %v484_v19 }
  0xa3   : > { %v2037_v31 = vadd.f32 %v1991_v53, %v461_v24  ;;  %v2058_v49 = vadd.f32 %v1991_v53, %v469_v41 }
  0xa4   : > { %v575_v26 = vsel %vm288_vm0, %v2023_v22, 0.0  ;;  %v599_v27 = vsel %vm288_vm0, %v2027_v25, 0.0 }
  0xa5   : > { %576 = vadd.xlane.f32.xlu2 %v575_v26  ;;  %600 = vadd.xlane.f32.xlu1 %v599_v27  ;;  %v530_v43 = vsel %vm288_vm0, %v2037_v31, 0.0  ;;  %v554_v62 = vsel %vm288_vm0, %v2058_v49, 0.0 }
  0xa6   : > { %528 = vadd.xlane.f32.xlu0 %v527_v28  ;;  %v432_v28 = vld [vmem:[%s1981_s28 + $0x28] sm:$0xff] }
  0xa7   : > { %v391_v32 = vpop.f32.mrf.mxu2  ;;  %v411_v34 = vpop.f32.mrf.mxu3 }
  0xa8   : > { %v353_v35 = vpop.f32.mrf.mxu0  ;;  %v485_v37 = vadd.f32 %v453_v30, %v411_v34  ;;  %v373_v38 = vpop.f32.mrf.mxu1  ;;  %v477_v45 = vadd.f32 %v445_v39, %v391_v32  ;;  %v448_v32 = vld [vmem:[%s1981_s28 + $0xa8] sm:$0xff] }
  0xa9   : > { %v470_v44 = vadd.f32 %v438_v36, %v373_v38  ;;  %v462_v1 = vadd.f32 %v430_v56, %v353_v35 }
  0xaa   : > { %v2046_v42 = vadd.f32 %v1991_v53, %v485_v37  ;;  %v2061_v52 = vadd.f32 %v1991_v53, %v477_v45  ;;  %v433_v45 = vld [vmem:[%s1981_s28 + $0x30] sm:$0xff] }
  0xab   : > { %v2055_v48 = vadd.f32 %v1991_v53, %v470_v44  ;;  %v2077_v6 = vadd.f32 %v1991_v53, %v462_v1  ;;  %v441_v1 = vld [vmem:[%s1981_s28 + $0x70] sm:$0xff] }
  0xac   : > { %v602_v46 = vsel %vm288_vm0, %v2046_v42, 0.0  ;;  %v578_v0 = vsel %vm288_vm0, %v2061_v52, 0.0 }
  0xad   : > { %603 = vadd.xlane.f32.xlu2 %v602_v46  ;;  %531 = vadd.xlane.f32.xlu1 %v530_v43  ;;  %v557_v61 = vsel %vm288_vm0, %v2055_v48, 0.0  ;;  %v533_v17 = vsel %vm288_vm0, %v2077_v6, 0.0  ;;  %v456_v43 = vld [vmem:[%s1981_s28 + $0xe8] sm:$0xff] }
  0xae   : > { %552 = vadd.xlane.f32.xlu0 %v551_v47  ;;  %v440_v46 = vld [vmem:[%s1981_s28 + $0x68] sm:$0xff] }
  0xaf   : > { %v393_v51 = vpop.f32.mrf.mxu2  ;;  %v413_v57 = vpop.f32.mrf.mxu3 }
  0xb0   : > { %v356_v54 = vpop.f32.mrf.mxu0  ;;  %v486_v2 = vadd.f32 %v454_v60, %v413_v57  ;;  %v376_v13 = vpop.f32.mrf.mxu1  ;;  %v478_v16 = vadd.f32 %v446_v10, %v393_v51 }
  0xb1   : > { %v463_v63 = vadd.f32 %v431_v55, %v356_v54  ;;  %v471_v15 = vadd.f32 %v439_v9, %v376_v13  ;;  %v457_v9 = vld [vmem:[%s1981_s28 + $0xf0] sm:$0xff] }
  0xb2   : > { %v2082_v11 = vadd.f32 %v1991_v53, %v486_v2  ;;  %v2098_v26 = vadd.f32 %v1991_v53, %v478_v16  ;;  %v449_v2 = vld [vmem:[%s1981_s28 + $0xb0] sm:$0xff] }
  0xb3   : > { %v2073_v3 = vadd.f32 %v1991_v53, %v463_v63  ;;  %v2095_v24 = vadd.f32 %v1991_v53, %v471_v15 }
  0xb4   : > { %v605_v18 = vsel %vm288_vm0, %v2082_v11, 0.0  ;;  %v581_v36 = vsel %vm288_vm0, %v2098_v26, 0.0 }
  0xb5   : > { %558 = vadd.xlane.f32.xlu2 %v557_v61  ;;  %555 = vadd.xlane.f32.xlu1 %v554_v62  ;;  %v536_v12 = vsel %vm288_vm0, %v2073_v3, 0.0  ;;  %v560_v34 = vsel %vm288_vm0, %v2095_v24, 0.0 }
  0xb6   : > { %579 = vadd.xlane.f32.xlu0 %v578_v0 }
  0xb7   : > { %v396_v4 = vpop.f32.mrf.mxu2  ;;  %v416_v19 = vpop.f32.mrf.mxu3 }
  0xb8   : > { %v479_v14 = vadd.f32 %v447_v5, %v396_v4  ;;  %v358_v27 = vpop.f32.mrf.mxu0  ;;  %v487_v33 = vadd.f32 %v455_v23, %v416_v19  ;;  %v378_v39 = vpop.f32.mrf.mxu1 }
  0xb9   : > { %v464_v35 = vadd.f32 %v432_v28, %v358_v27  ;;  %v472_v57 = vadd.f32 %v440_v46, %v378_v39  ;;  %v450_v27 = vld [vmem:[%s1981_s28 + $0xb8] sm:$0xff] }
  0xba   : > { %v2091_v20 = vadd.f32 %v1991_v53, %v479_v14  ;;  %v2109_v38 = vadd.f32 %v1991_v53, %v487_v33 }
  0xbb   : > { %v2113_v44 = vadd.f32 %v1991_v53, %v464_v35  ;;  %v2135_v5 = vadd.f32 %v1991_v53, %v472_v57  ;;  %v442_v35 = vld [vmem:[%s1981_s28 + $0x78] sm:$0xff] }
  0xbc   : > { %v584_v29 = vsel %vm288_vm0, %v2091_v20, 0.0  ;;  %v608_v51 = vsel %vm288_vm0, %v2109_v38, 0.0 }
  0xbd   : > { %534 = vadd.xlane.f32.xlu1 %v533_v17  ;;  %537 = vadd.xlane.f32.xlu2 %v536_v12  ;;  %v539_v60 = vsel %vm288_vm0, %v2113_v44, 0.0  ;;  %v563_v17 = vsel %vm288_vm0, %v2135_v5, 0.0 }
  0xbe   : > { %606 = vadd.xlane.f32.xlu0 %v605_v18 }
  0xbf   : > { %v398_v30 = vpop.f32.mrf.mxu2  ;;  %v418_v41 = vpop.f32.mrf.mxu3 }
  0xc0   : > { %v480_v37 = vadd.f32 %v448_v32, %v398_v30  ;;  %v488_v54 = vadd.f32 %v456_v43, %v418_v41  ;;  %v361_v55 = vpop.f32.mrf.mxu0  ;;  %v381_v0 = vpop.f32.mrf.mxu1  ;;  %v434_v30 = vld [vmem:[%s1981_s28 + $0x38] sm:$0xff] }
  0xc1   : > { %v465_v56 = vadd.f32 %v433_v45, %v361_v55  ;;  %v473_v12 = vadd.f32 %v441_v1, %v381_v0  ;;  %v1881_v0 = vmov 32.0  }
  0xc2   : > { %v2118_v47 = vadd.f32 %v1991_v53, %v480_v37  ;;  %v2127_v63 = vadd.f32 %v1991_v53, %v488_v54  ;;  %1743 = vrcp.f32 %v1881_v0 }
  0xc3   : > { %v2132_v4 = vadd.f32 %v1991_v53, %v465_v56  ;;  %v2148_v19 = vadd.f32 %v1991_v53, %v473_v12 }
  0xc4   : > { %v587_v61 = vsel %vm288_vm0, %v2118_v47, 0.0  ;;  %v611_v10 = vsel %vm288_vm0, %v2127_v63, 0.0 }
  0xc5   : > { %582 = vadd.xlane.f32.xlu1 %v581_v36  ;;  %585 = vadd.xlane.f32.xlu2 %v584_v29  ;;  %v542_v16 = vsel %vm288_vm0, %v2132_v4, 0.0  ;;  %v566_v33 = vsel %vm288_vm0, %v2148_v19, 0.0 }
  0xc6   : > { %561 = vadd.xlane.f32.xlu0 %v560_v34 }
  0xc7   : > { %v401_v62 = vpop.f32.mrf.mxu2  ;;  %v421_v14 = vpop.f32.mrf.mxu3 }
  0xc8   : > { %v481_v13 = vadd.f32 %v449_v2, %v401_v62  ;;  %v489_v15 = vadd.f32 %v457_v9, %v421_v14  ;;  %v363_v29 = vpop.f32.mrf.mxu0  ;;  %v383_v34 = vpop.f32.mrf.mxu1 }
  0xc9   : > { %v466_v39 = vadd.f32 %v434_v30, %v363_v29  ;;  %v474_v41 = vadd.f32 %v442_v35, %v383_v34  ;;  %v1744_v1 = vpop.eup %1743 }
  0xca   : > { %v2145_v18 = vadd.f32 %v1991_v53, %v481_v13  ;;  %v2152_v28 = vadd.f32 %v1991_v53, %v489_v15  ;;  %v621_v2 = vmul.f32 32.0, %v1744_v1  ;;  %vm625_vm1 = vweird.f32 %v1744_v1 }
  0xcb   : > { %v2166_v45 = vadd.f32 %v1991_v53, %v466_v39  ;;  %v2170_v54 = vadd.f32 %v1991_v53, %v474_v41 }
  0xcc   : > { %v590_v32 = vsel %vm288_vm0, %v2145_v18, 0.0  ;;  %v614_v37 = vsel %vm288_vm0, %v2152_v28, 0.0  ;;  %v622_v9 = vsub.f32 1.0, %v621_v2 }
  0xcd   : > { %609 = vadd.xlane.f32.xlu1 %v608_v51  ;;  %540 = vadd.xlane.f32.xlu2 %v539_v60  ;;  %v458_v51 = vld [vmem:[%s1981_s28 + $0xf8] sm:$0xff]  ;;  %v545_v57 = vsel %vm288_vm0, %v2166_v45, 0.0  ;;  %v569_v60 = vsel %vm288_vm0, %v2170_v54, 0.0 }
  0xce   : > { %588 = vadd.xlane.f32.xlu0 %v587_v61 }
  0xcf   : > { %v403_v23 = vpop.f32.mrf.mxu2  ;;  %v423_v46 = vpop.f32.mrf.mxu3 }
  0xd0   : > { %v482_v36 = vadd.f32 %v450_v27, %v403_v23  ;;  %v490_v56 = vadd.f32 %v458_v51, %v423_v46 }
  0xd2   : > { %v2163_v43 = vadd.f32 %v1991_v53, %v482_v36  ;;  %v2179_v61 = vadd.f32 %v1991_v53, %v490_v56 }
  0xd4   : > { %v593_v55 = vsel %vm288_vm0, %v2163_v43, 0.0  ;;  %v617_v62 = vsel %vm288_vm0, %v2179_v61, 0.0 }
  0xd5   : > { %564 = vadd.xlane.f32.xlu1 %v563_v17  ;;  %612 = vadd.xlane.f32.xlu2 %v611_v10  ;;  %v623_v10 = vmul.f32 %v1744_v1, %v622_v9 }
  0xd6   : > { %543 = vadd.xlane.f32.xlu0 %v542_v16 }
  0xd7   : > { %v624_v12 = vadd.f32 %v1744_v1, %v623_v10 }
  0xd9   : > { %v2183_v13 = vsel %vm625_vm1, %v1744_v1, %v624_v12 }
  0xdd   : > { %591 = vadd.xlane.f32.xlu1 %v590_v32  ;;  %567 = vadd.xlane.f32.xlu2 %v566_v33 }
  0xde   : > { %615 = vadd.xlane.f32.xlu0 %v614_v37 }
  0xe5   : > { %594 = vadd.xlane.f32.xlu2 %v593_v55  ;;  %546 = vadd.xlane.f32.xlu1 %v545_v57 }
  0xe6   : > { %570 = vadd.xlane.f32.xlu0 %v569_v60 }
  0xed   : > { %618 = vadd.xlane.f32.xlu1 %v617_v62 }
 0x109   : > { %v526_v14 = vpop.xlane.xlu0 %525  ;;  %v550_v15 = vpop.xlane.xlu2 %549 }
 0x10a   : > { %v627_v16 = vmul.f32 %v2183_v13, %v526_v14  ;;  %v635_v53 = vmul.f32 %v2183_v13, %v550_v15 }
 0x10c   : > { %v2188_v17 = vsub.f32 %v1994_v58, %v627_v16  ;;  %v2191_v23 = vsub.f32 %v1997_v59, %v635_v53 }
 0x10e   : > { %v691_v27 = vmul.f32 %v2188_v17, %v2188_v17  ;;  %v699_v29 = vmul.f32 %v2191_v23, %v2191_v23 }
 0x110   : > { %v574_v30 = vpop.xlane.xlu1 %573  ;;  %v723_v32 = vsel %vm288_vm0, %v691_v27, 0.0  ;;  %v747_v35 = vsel %vm288_vm0, %v699_v29, 0.0 }
 0x111   : > { %v643_v33 = vmul.f32 %v2183_v13, %v574_v30  ;;  %v598_v34 = vpop.xlane.xlu0 %597  ;;  %724 = vadd.xlane.f32.xlu2 %v723_v32  ;;  %748 = vadd.xlane.f32.xlu1 %v747_v35 }
 0x112   : > { %v651_v58 = vmul.f32 %v2183_v13, %v598_v34 }
 0x113   : > { %v2202_v59 = vsub.f32 %v2007_v7, %v643_v33 }
 0x114   : > { %v2205_v36 = vsub.f32 %v2010_v8, %v651_v58 }
 0x115   : > { %v707_v37 = vmul.f32 %v2202_v59, %v2202_v59 }
 0x116   : > { %v715_v39 = vmul.f32 %v2205_v36, %v2205_v36 }
 0x117   : > { %v771_v41 = vsel %vm288_vm0, %v707_v37, 0.0 }
 0x118   : > { %v577_v46 = vpop.xlane.xlu2 %576  ;;  %772 = vadd.xlane.f32.xlu0 %v771_v41  ;;  %v795_v51 = vsel %vm288_vm0, %v715_v39, 0.0  ;;  %v601_v55 = vpop.xlane.xlu1 %600 }
 0x119   : > { %v644_v56 = vmul.f32 %v2183_v13, %v577_v46  ;;  %v529_v7 = vpop.xlane.xlu0 %528  ;;  %796 = vadd.xlane.f32.xlu2 %v795_v51  ;;  %v652_v60 = vmul.f32 %v2183_v13, %v601_v55 }
 0x11a   : > { %v628_v8 = vmul.f32 %v2183_v13, %v529_v7 }
 0x11b   : > { %v2216_v57 = vsub.f32 %v2023_v22, %v644_v56  ;;  %v2228_v9 = vsub.f32 %v2027_v25, %v652_v60 }
 0x11c   : > { %v2220_v62 = vsub.f32 %v2020_v21, %v628_v8 }
 0x11d   : > { %v708_v0 = vmul.f32 %v2216_v57, %v2216_v57  ;;  %v716_v25 = vmul.f32 %v2228_v9, %v2228_v9 }
 0x11e   : > { %v692_v1 = vmul.f32 %v2220_v62, %v2220_v62 }
 0x11f   : > { %v774_v2 = vsel %vm288_vm0, %v708_v0, 0.0 }
 0x120   : > { %775 = vadd.xlane.f32.xlu1 %v774_v2  ;;  %v726_v22 = vsel %vm288_vm0, %v692_v1, 0.0  ;;  %v604_v10 = vpop.xlane.xlu2 %603  ;;  %v532_v12 = vpop.xlane.xlu1 %531 }
 0x121   : > { %727 = vadd.xlane.f32.xlu0 %v726_v22  ;;  %v629_v21 = vmul.f32 %v2183_v13, %v532_v12  ;;  %v553_v14 = vpop.xlane.xlu0 %552  ;;  %v653_v16 = vmul.f32 %v2183_v13, %v604_v10 }
 0x122   : > { %v636_v15 = vmul.f32 %v2183_v13, %v553_v14 }
 0x123   : > { %v2235_v53 = vsub.f32 %v2037_v31, %v629_v21  ;;  %v2247_v32 = vsub.f32 %v2046_v42, %v653_v16  ;;  %v798_v31 = vsel %vm288_vm0, %v716_v25, 0.0 }
 0x124   : > { %v2240_v27 = vsub.f32 %v2043_v40, %v636_v15 }
 0x125   : > { %v693_v29 = vmul.f32 %v2235_v53, %v2235_v53  ;;  %v717_v46 = vmul.f32 %v2247_v32, %v2247_v32 }
 0x126   : > { %v700_v30 = vmul.f32 %v2240_v27, %v2240_v27 }
 0x127   : > { %v729_v33 = vsel %vm288_vm0, %v693_v29, 0.0  ;;  %v801_v8 = vsel %vm288_vm0, %v717_v46, 0.0 }
 0x128   : > { %v559_v34 = vpop.xlane.xlu2 %558  ;;  %v556_v35 = vpop.xlane.xlu1 %555  ;;  %730 = vadd.xlane.f32.xlu1 %v729_v33  ;;  %v750_v58 = vsel %vm288_vm0, %v700_v30, 0.0 }
 0x129   : > { %799 = vadd.xlane.f32.xlu0 %v798_v31  ;;  %v637_v40 = vmul.f32 %v2183_v13, %v556_v35  ;;  %v580_v37 = vpop.xlane.xlu0 %579  ;;  %751 = vadd.xlane.f32.xlu2 %v750_v58  ;;  %v638_v41 = vmul.f32 %v2183_v13, %v559_v34 }
 0x12a   : > { %v645_v39 = vmul.f32 %v2183_v13, %v580_v37 }
 0x12b   : > { %v2256_v42 = vsub.f32 %v2058_v49, %v637_v40  ;;  %v2268_v7 = vsub.f32 %v2055_v48, %v638_v41 }
 0x12c   : > { %v2261_v51 = vsub.f32 %v2061_v52, %v645_v39 }
 0x12d   : > { %v701_v55 = vmul.f32 %v2256_v42, %v2256_v42  ;;  %v702_v48 = vmul.f32 %v2268_v7, %v2268_v7 }
 0x12e   : > { %v709_v56 = vmul.f32 %v2261_v51, %v2261_v51 }
 0x12f   : > { %v753_v49 = vsel %vm288_vm0, %v701_v55, 0.0  ;;  %v756_v21 = vsel %vm288_vm0, %v702_v48, 0.0 }
 0x130   : > { %v535_v60 = vpop.xlane.xlu1 %534  ;;  %v538_v0 = vpop.xlane.xlu2 %537  ;;  %802 = vadd.xlane.f32.xlu1 %v801_v8  ;;  %v777_v1 = vsel %vm288_vm0, %v709_v56, 0.0 }
 0x131   : > { %754 = vadd.xlane.f32.xlu0 %v753_v49  ;;  %v630_v52 = vmul.f32 %v2183_v13, %v535_v60  ;;  %v607_v2 = vpop.xlane.xlu0 %606  ;;  %778 = vadd.xlane.f32.xlu2 %v777_v1  ;;  %v631_v33 = vmul.f32 %v2183_v13, %v538_v0 }
 0x132   : > { %v654_v10 = vmul.f32 %v2183_v13, %v607_v2 }
 0x133   : > { %v2275_v22 = vsub.f32 %v2077_v6, %v630_v52  ;;  %v2304_v37 = vsub.f32 %v2073_v3, %v631_v33 }
 0x134   : > { %v2284_v14 = vsub.f32 %v2082_v11, %v654_v10 }
 0x135   : > { %v694_v12 = vmul.f32 %v2275_v22, %v2275_v22  ;;  %v695_v60 = vmul.f32 %v2304_v37, %v2304_v37 }
 0x136   : > { %v718_v35 = vmul.f32 %v2284_v14, %v2284_v14 }
 0x137   : > { %v732_v25 = vsel %vm288_vm0, %v694_v12, 0.0  ;;  %v735_v2 = vsel %vm288_vm0, %v695_v60, 0.0 }
 0x138   : > { %v583_v15 = vpop.xlane.xlu1 %582  ;;  %v586_v16 = vpop.xlane.xlu2 %585  ;;  %757 = vadd.xlane.f32.xlu1 %v756_v21  ;;  %v804_v55 = vsel %vm288_vm0, %v718_v35, 0.0 }
 0x139   : > { %v646_v6 = vmul.f32 %v2183_v13, %v583_v15  ;;  %v647_v29 = vmul.f32 %v2183_v13, %v586_v16  ;;  %v562_v30 = vpop.xlane.xlu0 %561  ;;  %733 = vadd.xlane.f32.xlu2 %v732_v25 }
 0x13a   : > { %v639_v11 = vmul.f32 %v2183_v13, %v562_v30 }
 0x13b   : > { %v2291_v31 = vsub.f32 %v2098_v26, %v646_v6  ;;  %v2294_v34 = vsub.f32 %v2091_v20, %v647_v29 }
 0x13c   : > { %v2309_v20 = vsub.f32 %v2095_v24, %v639_v11 }
 0x13d   : > { %v710_v58 = vmul.f32 %v2291_v31, %v2291_v31  ;;  %v711_v40 = vmul.f32 %v2294_v34, %v2294_v34 }
 0x13e   : > { %v703_v0 = vmul.f32 %v2309_v20, %v2309_v20 }
 0x13f   : > { %v780_v26 = vsel %vm288_vm0, %v710_v58, 0.0  ;;  %v783_v39 = vsel %vm288_vm0, %v711_v40, 0.0 }
 0x140   : > { %v610_v41 = vpop.xlane.xlu1 %609  ;;  %v541_v46 = vpop.xlane.xlu2 %540  ;;  %781 = vadd.xlane.f32.xlu0 %v780_v26  ;;  %784 = vadd.xlane.f32.xlu1 %v783_v39  ;;  %v759_v21 = vsel %vm288_vm0, %v703_v0, 0.0 }
 0x141   : > { %v632_v56 = vmul.f32 %v2183_v13, %v541_v46  ;;  %v589_v8 = vpop.xlane.xlu0 %588  ;;  %805 = vadd.xlane.f32.xlu2 %v804_v55  ;;  %v655_v3 = vmul.f32 %v2183_v13, %v610_v41 }
 0x142   : > { %v648_v24 = vmul.f32 %v2183_v13, %v589_v8 }
 0x143   : > { %v2315_v49 = vsub.f32 %v2113_v44, %v632_v56  ;;  %v2325_v52 = vsub.f32 %v2109_v38, %v655_v3 }
 0x144   : > { %v2330_v44 = vsub.f32 %v2118_v47, %v648_v24 }
 0x145   : > { %v696_v1 = vmul.f32 %v2315_v49, %v2315_v49  ;;  %v719_v38 = vmul.f32 %v2325_v52, %v2325_v52 }
 0x146   : > { %v712_v6 = vmul.f32 %v2330_v44, %v2330_v44 }
 0x147   : > { %v738_v48 = vsel %vm288_vm0, %v696_v1, 0.0  ;;  %v807_v29 = vsel %vm288_vm0, %v719_v38, 0.0 }
 0x148   : > { %v565_v10 = vpop.xlane.xlu1 %564  ;;  %v613_v12 = vpop.xlane.xlu2 %612  ;;  %736 = vadd.xlane.f32.xlu0 %v735_v2  ;;  %739 = vadd.xlane.f32.xlu1 %v738_v48  ;;  %v786_v35 = vsel %vm288_vm0, %v712_v6, 0.0 }
 0x149   : > { %760 = vadd.xlane.f32.xlu2 %v759_v21  ;;  %v544_v15 = vpop.xlane.xlu0 %543  ;;  %v640_v16 = vmul.f32 %v2183_v13, %v565_v10  ;;  %v656_v1 = vmul.f32 %v2183_v13, %v613_v12 }
 0x14a   : > { %v633_v25 = vmul.f32 %v2183_v13, %v544_v15 }
 0x14b   : > { %v2340_v47 = vsub.f32 %v2135_v5, %v640_v16  ;;  %v2382_v12 = vsub.f32 %v2127_v63, %v656_v1 }
 0x14c   : > { %v2344_v30 = vsub.f32 %v2132_v4, %v633_v25 }
 0x14d   : > { %v704_v5 = vmul.f32 %v2340_v47, %v2340_v47  ;;  %v720_v63 = vmul.f32 %v2382_v12, %v2382_v12 }
 0x14e   : > { %v697_v4 = vmul.f32 %v2344_v30, %v2344_v30 }
 0x14f   : > { %v762_v55 = vsel %vm288_vm0, %v704_v5, 0.0 }
 0x150   : > { %v592_v33 = vpop.xlane.xlu1 %591  ;;  %v568_v11 = vpop.xlane.xlu2 %567  ;;  %808 = vadd.xlane.f32.xlu0 %v807_v29  ;;  %v741_v3 = vsel %vm288_vm0, %v697_v4, 0.0 }
 0x151   : > { %v641_v58 = vmul.f32 %v2183_v13, %v568_v11  ;;  %787 = vadd.xlane.f32.xlu2 %v786_v35  ;;  %v616_v40 = vpop.xlane.xlu0 %615  ;;  %v649_v26 = vmul.f32 %v2183_v13, %v592_v33  ;;  %v810_v35 = vsel %vm288_vm0, %v720_v63, 0.0 }
 0x152   : > { %v657_v10 = vmul.f32 %v2183_v13, %v616_v40 }
 0x153   : > { %v2350_v39 = vsub.f32 %v2148_v19, %v641_v58  ;;  %v2359_v46 = vsub.f32 %v2145_v18, %v649_v26 }
 0x154   : > { %v2390_v6 = vsub.f32 %v2152_v28, %v657_v10 }
 0x155   : > { %v705_v41 = vmul.f32 %v2350_v39, %v2350_v39  ;;  %v713_v48 = vmul.f32 %v2359_v46, %v2359_v46 }
 0x156   : > { %v721_v11 = vmul.f32 %v2390_v6, %v2390_v6 }
 0x157   : > { %v765_v56 = vsel %vm288_vm0, %v705_v41, 0.0  ;;  %v789_v38 = vsel %vm288_vm0, %v713_v48, 0.0 }
 0x158   : > { %v595_v8 = vpop.xlane.xlu2 %594  ;;  %763 = vadd.xlane.f32.xlu0 %v762_v55  ;;  %766 = vadd.xlane.f32.xlu1 %v765_v56  ;;  %v547_v19 = vpop.xlane.xlu1 %546  ;;  %v813_v40 = vsel %vm288_vm0, %v721_v11, 0.0 }
 0x159   : > { %v650_v60 = vmul.f32 %v2183_v13, %v595_v8  ;;  %742 = vadd.xlane.f32.xlu2 %v741_v3  ;;  %v571_v24 = vpop.xlane.xlu0 %570  ;;  %v634_v2 = vmul.f32 %v2183_v13, %v547_v19 }
 0x15a   : > { %v642_v0 = vmul.f32 %v2183_v13, %v571_v24 }
 0x15b   : > { %v2368_v18 = vsub.f32 %v2163_v43, %v650_v60  ;;  %v2385_v43 = vsub.f32 %v2166_v45, %v634_v2 }
 0x15c   : > { %v2375_v21 = vsub.f32 %v2170_v54, %v642_v0 }
 0x15d   : > { %v714_v15 = vmul.f32 %v2368_v18, %v2368_v18  ;;  %v698_v45 = vmul.f32 %v2385_v43, %v2385_v43 }
 0x15e   : > { %v706_v16 = vmul.f32 %v2375_v21, %v2375_v21 }
 0x15f   : > { %v792_v25 = vsel %vm288_vm0, %v714_v15, 0.0  ;;  %v744_v58 = vsel %vm288_vm0, %v698_v45, 0.0 }
 0x160   : > { %790 = vadd.xlane.f32.xlu0 %v789_v38  ;;  %793 = vadd.xlane.f32.xlu1 %v792_v25  ;;  %v619_v54 = vpop.xlane.xlu1 %618  ;;  %v768_v29 = vsel %vm288_vm0, %v706_v16, 0.0 }
 0x161   : > { %769 = vadd.xlane.f32.xlu2 %v768_v29  ;;  %v658_v33 = vmul.f32 %v2183_v13, %v619_v54 }
 0x163   : > { %v2401_v28 = vsub.f32 %v2179_v61, %v658_v33 }
 0x165   : > { %v722_v26 = vmul.f32 %v2401_v28, %v2401_v28 }
 0x167   : > { %v816_v5 = vsel %vm288_vm0, %v722_v26, 0.0 }
 0x168   : > { %811 = vadd.xlane.f32.xlu1 %v810_v35  ;;  %745 = vadd.xlane.f32.xlu0 %v744_v58  ;;  %v2419_v35 = vperm.slane %v1986_v50, 1 }
 0x169   : > { %814 = vadd.xlane.f32.xlu2 %v813_v40 }
 0x170   : > { %817 = vadd.xlane.f32.xlu0 %v816_v5 }
 0x184   : > { %v725_v4 = vpop.xlane.xlu2 %724  ;;  %v749_v61 = vpop.xlane.xlu1 %748 }
 0x185   : > { %v819_v41 = vmul.f32 %v725_v4, %v2183_v13  ;;  %v827_v55 = vmul.f32 %v749_v61, %v2183_v13 }
 0x187   : > { %v851_v56 = vadd.f32 1e-05, %v819_v41  ;;  %v859_v8 = vadd.f32 1e-05, %v827_v55 }
 0x189   : > { %1745 = vrsqrt.f32 %v851_v56  ;;  %vm889_vm4 = vweird.f32 %v851_v56  ;;  %vm969_vm6 = vweird.f32 %v859_v8 }
 0x18a   : > { %1747 = vrsqrt.f32 %v859_v8 }
 0x18b   : > { %v773_v19 = vpop.xlane.xlu0 %772 }
 0x18c   : > { %v835_v3 = vmul.f32 %v773_v19, %v2183_v13  ;;  %v797_v60 = vpop.xlane.xlu2 %796 }
 0x18d   : > { %v843_v24 = vmul.f32 %v797_v60, %v2183_v13 }
 0x18e   : > { %v867_v0 = vadd.f32 1e-05, %v835_v3 }
 0x18f   : > { %v1746_v1 = vpop.eup %1745  ;;  %v2413_v2 = vadd.f32 1e-05, %v843_v24 }
 0x190   : > { %v1748_v48 = vpop.eup %1747  ;;  %v884_v10 = vmul.f32 %v1746_v1, %v851_v56  ;;  %1749 = vrsqrt.f32 %v867_v0  ;;  %vm890_vm2 = vweird.f32 %v1746_v1  ;;  %vm1049_vm8 = vweird.f32 %v867_v0 }
 0x191   : > { %v964_v15 = vmul.f32 %v1748_v48, %v859_v8  ;;  %1751 = vrsqrt.f32 %v2413_v2  ;;  %vm970_vm3 = vweird.f32 %v1748_v48  ;;  %vm891_vm5 = vmor %vm889_vm4, %vm890_vm2  ;;  %vm1129_vm10 = vweird.f32 %v2413_v2 }
 0x192   : > { %v885_v16 = vmul.f32 %v1746_v1, %v884_v10  ;;  %vm971_vm7 = vmor %vm969_vm6, %vm970_vm3  ;;  %v2429_v10 = vperm.slane %v1986_v50, 2 }
 0x193   : > { %v965_v38 = vmul.f32 %v1748_v48, %v964_v15  ;;  %v776_v25 = vpop.xlane.xlu1 %775 }
 0x194   : > { %v886_v54 = vmul.f32 0.5, %v885_v16  ;;  %v836_v29 = vmul.f32 %v776_v25, %v2183_v13  ;;  %v728_v33 = vpop.xlane.xlu0 %727 }
 0x195   : > { %v966_v63 = vmul.f32 0.5, %v965_v38  ;;  %v820_v45 = vmul.f32 %v728_v33, %v2183_v13 }
 0x196   : > { %v1750_v11 = vpop.eup %1749  ;;  %v887_v58 = vsub.f32 1.5, %v886_v54  ;;  %v2421_v40 = vadd.f32 1e-05, %v836_v29 }
 0x197   : > { %v1752_v26 = vpop.eup %1751  ;;  %v967_v5 = vsub.f32 1.5, %v966_v63  ;;  %v1044_v4 = vmul.f32 %v1750_v11, %v867_v0  ;;  %v2423_v41 = vadd.f32 1e-05, %v820_v45  ;;  %vm1050_vm9 = vweird.f32 %v1750_v11 }
 0x198   : > { %v888_v61 = vmul.f32 %v1746_v1, %v887_v58  ;;  %v1124_v55 = vmul.f32 %v1752_v26, %v2413_v2  ;;  %1753 = vrsqrt.f32 %v2421_v40  ;;  %vm1130_vm11 = vweird.f32 %v1752_v26  ;;  %vm1051_vm12 = vmor %vm1049_vm8, %vm1050_vm9 }
 0x199   : > { %v968_v19 = vmul.f32 %v1748_v48, %v967_v5  ;;  %v1045_v3 = vmul.f32 %v1750_v11, %v1044_v4  ;;  %1755 = vrsqrt.f32 %v2423_v41  ;;  %vm1131_vm13 = vmor %vm1129_vm10, %vm1130_vm11  ;;  %vm1059_vm14 = vweird.f32 %v2421_v40 }
 0x19a   : > { %v892_v60 = vsel %vm891_vm5, %v1746_v1, %v888_v61  ;;  %v1125_v24 = vmul.f32 %v1752_v26, %v1124_v55  ;;  %vm899_vm3 = vweird.f32 %v2423_v41 }
 0x19b   : > { %v1203_v15 = vmul.f32 %v892_v60, %v2188_v17  ;;  %v972_v16 = vsel %vm971_vm7, %v1748_v48, %v968_v19  ;;  %v1046_v56 = vmul.f32 0.5, %v1045_v3  ;;  %v731_v54 = vpop.xlane.xlu1 %730 }
 0x19c   : > { %v1211_v38 = vmul.f32 %v972_v16, %v2191_v23  ;;  %v1126_v25 = vmul.f32 0.5, %v1125_v24  ;;  %v752_v33 = vpop.xlane.xlu2 %751  ;;  %v821_v58 = vmul.f32 %v731_v54, %v2183_v13 }
 0x19d   : > { %v1236_v29 = vmul.f32 %v2419_v35, %v1203_v15  ;;  %v1047_v8 = vsub.f32 1.5, %v1046_v56  ;;  %v828_v61 = vmul.f32 %v752_v33, %v2183_v13 }
 0x19e   : > { %v1754_v1 = vpop.eup %1753  ;;  %v1244_v63 = vmul.f32 %v2419_v35, %v1211_v38  ;;  %v1127_v45 = vsub.f32 1.5, %v1126_v25  ;;  %v800_v25 = vpop.xlane.xlu0 %799 }
 0x19f   : > { %v2436_v50 = vpop.eup %1755  ;;  %v1269_v17 = vadd.f32 %v2429_v10, %v1236_v29  ;;  %v1048_v23 = vmul.f32 %v1750_v11, %v1047_v8  ;;  %v1054_v48 = vmul.f32 %v1754_v1, %v2421_v40  ;;  %vm1060_vm15 = vweird.f32 %v1754_v1 }
 0x1a0   : > { %v1277_v0 = vadd.f32 %v2429_v10, %v1244_v63  ;;  %v1128_v5 = vmul.f32 %v1752_v26, %v1127_v45  ;;  %v894_v4 = vmul.f32 %v2436_v50, %v2423_v41  ;;  %v2452_v8 = vadd.f32 1e-05, %v828_v61  ;;  %vm1061_vm1 = vmor %vm1059_vm14, %vm1060_vm15 }
 0x1a1   : > { %v1333_v2 = vmul.f32 0.044715, %v1269_v17  ;;  %v1052_v55 = vsel %vm1051_vm12, %v1750_v11, %v1048_v23  ;;  %v1055_v19 = vmul.f32 %v1754_v1, %v1054_v48  ;;  %v2450_v11 = vadd.f32 1e-05, %v821_v58 }
 0x1a2   : > { %v1341_v3 = vmul.f32 0.044715, %v1277_v0  ;;  %v1219_v60 = vmul.f32 %v1052_v55, %v2202_v59  ;;  %v1132_v24 = vsel %vm1131_vm13, %v1752_v26, %v1128_v5  ;;  %v895_v38 = vmul.f32 %v2436_v50, %v894_v4 }
 0x1a3   : > { %v1365_v15 = vmul.f32 %v1333_v2, %v1269_v17  ;;  %v1227_v16 = vmul.f32 %v1132_v24, %v2205_v36  ;;  %v1056_v56 = vmul.f32 0.5, %v1055_v19  ;;  %1757 = vrsqrt.f32 %v2450_v11 }
 0x1a4   : > { %v1373_v54 = vmul.f32 %v1341_v3, %v1277_v0  ;;  %v1252_v29 = vmul.f32 %v2419_v35, %v1219_v60  ;;  %v896_v26 = vmul.f32 0.5, %v895_v38  ;;  %v844_v36 = vmul.f32 %v800_v25, %v2183_v13 }
 0x1a5   : > { %v1397_v33 = vmul.f32 %v1365_v15, %v1269_v17  ;;  %v1260_v63 = vmul.f32 %v2419_v35, %v1227_v16  ;;  %v1057_v59 = vsub.f32 1.5, %v1056_v56  ;;  %vm900_vm2 = vweird.f32 %v2436_v50 }
 0x1a6   : > { %v1405_v45 = vmul.f32 %v1373_v54, %v1277_v0  ;;  %v1285_v23 = vadd.f32 %v2429_v10, %v1252_v29  ;;  %v897_v58 = vsub.f32 1.5, %v896_v26  ;;  %1759 = vrsqrt.f32 %v2452_v8  ;;  %vm901_vm4 = vmor %vm899_vm3, %vm900_vm2 }
 0x1a7   : > { %v1429_v48 = vadd.f32 %v1397_v33, %v1269_v17  ;;  %v1293_v5 = vadd.f32 %v2429_v10, %v1260_v63  ;;  %v1058_v4 = vmul.f32 %v1754_v1, %v1057_v59  ;;  %v1301_v56 = vmul.f32 0.5, %v1269_v17 }
 0x1a8   : > { %v1437_v2 = vadd.f32 %v1405_v45, %v1277_v0  ;;  %v1349_v61 = vmul.f32 0.044715, %v1285_v23  ;;  %v898_v16 = vmul.f32 %v2436_v50, %v897_v58  ;;  %v2467_v40 = vadd.f32 1e-05, %v844_v36 }
 0x1a9   : > { %v1461_v55 = vmul.f32 0.7978846, %v1429_v48  ;;  %v1357_v19 = vmul.f32 0.044715, %v1293_v5  ;;  %v1062_v3 = vsel %vm1061_vm1, %v1754_v1, %v1058_v4  ;;  %v2469_v25 = vpop.eup %1757  ;;  %v1309_v29 = vmul.f32 0.5, %v1277_v0  ;;  %v803_v48 = vpop.xlane.xlu1 %802 }
 0x1aa   : > { %v1469_v60 = vmul.f32 0.7978846, %v1437_v2  ;;  %v1381_v24 = vmul.f32 %v1349_v61, %v1285_v23  ;;  %v1220_v15 = vmul.f32 %v1062_v3, %v2216_v57  ;;  %v902_v41 = vsel %vm901_vm4, %v2436_v50, %v898_v16 }
 0x1ab   : > { %1761 = vtanh.f32 %v1461_v55  ;;  %v1389_v38 = vmul.f32 %v1357_v19, %v1293_v5  ;;  %v1204_v57 = vmul.f32 %v902_v41, %v2220_v62  ;;  %v904_v17 = vmul.f32 %v2469_v25, %v2450_v11 }
 0x1ac   : > { %1763 = vtanh.f32 %v1469_v60  ;;  %v1413_v54 = vmul.f32 %v1381_v24, %v1285_v23  ;;  %v1253_v1 = vmul.f32 %v2419_v35, %v1220_v15  ;;  %v2476_v63 = vpop.eup %1759  ;;  %v2478_v59 = vmul.f32 0.5, %v1285_v23 }
 0x1ad   : > { %v1421_v33 = vmul.f32 %v1389_v38, %v1293_v5  ;;  %vm909_vm5 = vweird.f32 %v2450_v11  ;;  %1765 = vrsqrt.f32 %v2467_v40  ;;  %v1237_v0 = vmul.f32 %v2419_v35, %v1204_v57 }
 0x1ae   : > { %v1445_v26 = vadd.f32 %v1413_v54, %v1285_v23  ;;  %v2481_v45 = vadd.f32 %v2429_v10, %v1253_v1  ;;  %v905_v62 = vmul.f32 %v2469_v25, %v904_v17  ;;  %v974_v36 = vmul.f32 %v2476_v63, %v2452_v8  ;;  %v779_v17 = vpop.xlane.xlu2 %778 }
 0x1af   : > { %v1453_v50 = vadd.f32 %v1421_v33, %v1293_v5  ;;  %v1325_v58 = vmul.f32 0.5, %v1293_v5  ;;  %vm979_vm6 = vweird.f32 %v2452_v8  ;;  %v2492_v55 = vadd.f32 %v2429_v10, %v1237_v0 }
 0x1b0   : > { %v1477_v4 = vmul.f32 0.7978846, %v1445_v26  ;;  %v1350_v23 = vmul.f32 0.044715, %v2481_v45  ;;  %v906_v19 = vmul.f32 0.5, %v905_v62  ;;  %v975_v3 = vmul.f32 %v2476_v63, %v974_v36  ;;  %v755_v26 = vpop.xlane.xlu0 %754 }
 0x1b1   : > { %v1762_v2 = vpop.eup %1761  ;;  %v1485_v61 = vmul.f32 0.7978846, %v1453_v50  ;;  %v845_v16 = vmul.f32 %v803_v48, %v2183_v13  ;;  %v1334_v38 = vmul.f32 0.044715, %v2492_v55  ;;  %vm910_vm7 = vweird.f32 %v2469_v25 }
 0x1b2   : > { %v1764_v60 = vpop.eup %1763  ;;  %v1525_v24 = vadd.f32 1.0, %v1762_v2  ;;  %1767 = vtanh.f32 %v1477_v4  ;;  %v1382_v15 = vmul.f32 %v1350_v23, %v2481_v45  ;;  %v907_v33 = vsub.f32 1.5, %v906_v19  ;;  %vm911_vm9 = vmor %vm909_vm5, %vm910_vm7 }
 0x1b3   : > { %v1533_v5 = vadd.f32 1.0, %v1764_v60  ;;  %1769 = vtanh.f32 %v1485_v61  ;;  %v2505_v54 = vpop.eup %1765  ;;  %v976_v57 = vmul.f32 0.5, %v975_v3  ;;  %v1366_v0 = vmul.f32 %v1334_v38, %v2492_v55 }
 0x1b4   : > { %v1557_v1 = vmul.f32 %v1525_v24, %v1301_v56  ;;  %v1414_v41 = vmul.f32 %v1382_v15, %v2481_v45  ;;  %vm980_vm8 = vweird.f32 %v2476_v63  ;;  %v1134_v62 = vmul.f32 %v2505_v54, %v2467_v40 }
 0x1b5   : > { %v1565_v50 = vmul.f32 %v1533_v5, %v1309_v29  ;;  %v908_v56 = vmul.f32 %v2469_v25, %v907_v33  ;;  %v977_v48 = vsub.f32 1.5, %v976_v57  ;;  %v2516_v4 = vadd.f32 1e-05, %v845_v16  ;;  %vm981_vm10 = vmor %vm979_vm6, %vm980_vm8 }
 0x1b6   : > { %1589 = vst.msk [vmem:[%s2501_s7] sm:$0xff] %vm288_vm0, %v1557_v1  ;;  %v1446_v36 = vadd.f32 %v1414_v41, %v2481_v45  ;;  %v1398_v29 = vmul.f32 %v1366_v0, %v2492_v55  ;;  %v1135_v23 = vmul.f32 %v2505_v54, %v1134_v62  ;;  %v837_v2 = vmul.f32 %v779_v17, %v2183_v13  ;;  %v758_v41 = vpop.xlane.xlu1 %757 }
 0x1b7   : > { %1597 = vst.msk [vmem:[%s2501_s7 + $0x40] sm:$0xff] %vm288_vm0, %v1565_v50  ;;  %v829_v61 = vmul.f32 %v755_v26, %v2183_v13  ;;  %v912_v60 = vsel %vm911_vm9, %v2469_v25, %v908_v56  ;;  %v978_v24 = vmul.f32 %v2476_v63, %v977_v48  ;;  %1771 = vrsqrt.f32 %v2516_v4 }
 0x1b8   : > { %v1768_v19 = vpop.eup %1767  ;;  %v1478_v3 = vmul.f32 0.7978846, %v1446_v36  ;;  %v1430_v5 = vadd.f32 %v1398_v29, %v2492_v55  ;;  %v1205_v11 = vmul.f32 %v912_v60, %v2235_v53  ;;  %v1136_v38 = vmul.f32 0.5, %v1135_v23  ;;  %v734_v60 = vpop.xlane.xlu2 %733 }
 0x1b9   : > { %v1770_v15 = vpop.eup %1769  ;;  %v1541_v16 = vadd.f32 1.0, %v1768_v19  ;;  %v982_v25 = vsel %vm981_vm10, %v2476_v63, %v978_v24  ;;  %vm1140_vm11 = vweird.f32 %v2505_v54  ;;  %v2542_v50 = vadd.f32 1e-05, %v837_v2 }
 0x1ba   : > { %v1549_v1 = vadd.f32 1.0, %v1770_v15  ;;  %1773 = vtanh.f32 %v1478_v3  ;;  %v1462_v57 = vmul.f32 0.7978846, %v1430_v5  ;;  %v1238_v53 = vmul.f32 %v2419_v35, %v1205_v11 }
 0x1bb   : > { %v1573_v33 = vmul.f32 %v1541_v16, %v2478_v59  ;;  %v1212_v17 = vmul.f32 %v982_v25, %v2240_v27  ;;  %v1137_v8 = vsub.f32 1.5, %v1136_v38  ;;  %v2544_v0 = vadd.f32 1e-05, %v829_v61 }
 0x1bc   : > { %v1581_v26 = vmul.f32 %v1549_v1, %v1325_v58  ;;  %1775 = vtanh.f32 %v1462_v57  ;;  %v1271_v63 = vadd.f32 %v2429_v10, %v1238_v53  ;;  %v830_v59 = vmul.f32 %v758_v41, %v2183_v13 }
 0x1bd   : > { %1605 = vst.msk [vmem:[%s2501_s7 + $0x80] sm:$0xff] %vm288_vm0, %v1573_v33  ;;  %v1245_v62 = vmul.f32 %v2419_v35, %v1212_v17  ;;  %v2551_v36 = vpop.eup %1771  ;;  %v1138_v27 = vmul.f32 %v2505_v54, %v1137_v8  ;;  %vm1139_vm12 = vweird.f32 %v2467_v40  ;;  %1777 = vrsqrt.f32 %v2542_v50  ;;  %v782_v17 = vpop.xlane.xlu0 %781 }
 0x1be   : > { %1613 = vst.msk [vmem:[%s2501_s7 + $0xc0] sm:$0xff] %vm288_vm0, %v1581_v26  ;;  %v1335_v58 = vmul.f32 0.044715, %v1271_v63  ;;  %vm1141_vm13 = vmor %vm1139_vm12, %vm1140_vm11  ;;  %v1144_v48 = vmul.f32 %v2551_v36, %v2516_v4  ;;  %1779 = vrsqrt.f32 %v2544_v0  ;;  %v2567_v2 = vadd.f32 1e-05, %v830_v59 }
 0x1bf   : > { %v2559_v56 = vadd.f32 %v2429_v10, %v1245_v62  ;;  %v1142_v23 = vsel %vm1141_vm13, %v2505_v54, %v1138_v27  ;;  %v1318_v40 = vmul.f32 0.5, %v2481_v45  ;;  %v1302_v24 = vmul.f32 0.5, %v2492_v55 }
 0x1c0   : > { %v1774_v29 = vpop.eup %1773  ;;  %v1367_v19 = vmul.f32 %v1335_v58, %v1271_v63  ;;  %v1228_v15 = vmul.f32 %v1142_v23, %v2228_v9  ;;  %v1145_v16 = vmul.f32 %v2551_v36, %v1144_v48  ;;  %1781 = vrsqrt.f32 %v2567_v2 }
 0x1c1   : > { %v1542_v61 = vadd.f32 1.0, %v1774_v29  ;;  %v1342_v3 = vmul.f32 0.044715, %v2559_v56  ;;  %vm1149_vm14 = vweird.f32 %v2516_v4  ;;  %v822_v55 = vmul.f32 %v734_v60, %v2183_v13 }
 0x1c2   : > { %v1776_v54 = vpop.eup %1775  ;;  %v1399_v11 = vmul.f32 %v1367_v19, %v1271_v63  ;;  %v1261_v25 = vmul.f32 %v2419_v35, %v1228_v15  ;;  %v1146_v41 = vmul.f32 0.5, %v1145_v16  ;;  %v2583_v9 = vmul.f32 0.5, %v1271_v63 }
 0x1c3   : > { %v1574_v5 = vmul.f32 %v1542_v61, %v1318_v40  ;;  %v1374_v38 = vmul.f32 %v1342_v3, %v2559_v56  ;;  %v2577_v45 = vpop.eup %1777  ;;  %v1526_v1 = vadd.f32 1.0, %v1776_v54  ;;  %vm1069_vm15 = vweird.f32 %v2542_v50 }
 0x1c4   : > { %v1431_v33 = vadd.f32 %v1399_v11, %v1271_v63  ;;  %v1064_v53 = vmul.f32 %v2577_v45, %v2542_v50  ;;  %v2589_v26 = vpop.eup %1779  ;;  %v2592_v62 = vadd.f32 %v2429_v10, %v1261_v25  ;;  %v1147_v59 = vsub.f32 1.5, %v1146_v41 }
 0x1c5   : > { %1606 = vst.msk [vmem:[%s2501_s7 + $0x88] sm:$0xff] %vm288_vm0, %v1574_v5  ;;  %v1406_v57 = vmul.f32 %v1374_v38, %v2559_v56  ;;  %v1558_v8 = vmul.f32 %v1526_v1, %v1302_v24  ;;  %vm1150_vm1 = vweird.f32 %v2551_v36  ;;  %v984_v48 = vmul.f32 %v2589_v26, %v2544_v0  ;;  %v785_v1 = vpop.xlane.xlu1 %784 }
 0x1c6   : > { %v1463_v27 = vmul.f32 0.7978846, %v1431_v33  ;;  %v1065_v58 = vmul.f32 %v2577_v45, %v1064_v53  ;;  %vm989_vm2 = vweird.f32 %v2544_v0  ;;  %v2600_v29 = vpop.eup %1781  ;;  %v1358_v23 = vmul.f32 0.044715, %v2592_v62  ;;  %vm1151_vm3 = vmor %vm1149_vm14, %vm1150_vm1 }
 0x1c7   : > { %v1438_v63 = vadd.f32 %v1406_v57, %v2559_v56  ;;  %1590 = vst.msk [vmem:[%s2501_s7 + $0x8] sm:$0xff] %vm288_vm0, %v1558_v8  ;;  %v1148_v40 = vmul.f32 %v2551_v36, %v1147_v59  ;;  %v2606_v61 = vadd.f32 1e-05, %v822_v55  ;;  %v838_v19 = vmul.f32 %v782_v17, %v2183_v13 }
 0x1c8   : > { %1783 = vtanh.f32 %v1463_v27  ;;  %v1066_v60 = vmul.f32 0.5, %v1065_v58  ;;  %v985_v24 = vmul.f32 %v2589_v26, %v984_v48  ;;  %v1390_v15 = vmul.f32 %v1358_v23, %v2592_v62 }
 0x1c9   : > { %v1470_v3 = vmul.f32 0.7978846, %v1438_v63  ;;  %v1152_v16 = vsel %vm1151_vm3, %v2551_v36, %v1148_v40  ;;  %vm1070_vm4 = vweird.f32 %v2577_v45  ;;  %v994_v54 = vmul.f32 %v2600_v29, %v2567_v2 }
 0x1ca   : > { %v1229_v5 = vmul.f32 %v1152_v16, %v2247_v32  ;;  %v1067_v11 = vsub.f32 1.5, %v1066_v60  ;;  %v986_v38 = vmul.f32 0.5, %v985_v24  ;;  %v1422_v4 = vmul.f32 %v1390_v15, %v2592_v62  ;;  %vm1071_vm6 = vmor %vm1069_vm15, %vm1070_vm4 }
 0x1cb   : > { %1785 = vtanh.f32 %v1470_v3  ;;  %vm990_vm5 = vweird.f32 %v2589_v26  ;;  %v995_v25 = vmul.f32 %v2600_v29, %v994_v54  ;;  %v2624_v33 = vadd.f32 1e-05, %v838_v19  ;;  %v806_v54 = vpop.xlane.xlu2 %805 }
 0x1cc   : > { %1787 = vrsqrt.f32 %v2606_v61  ;;  %v1262_v36 = vmul.f32 %v2419_v35, %v1229_v5  ;;  %v1068_v41 = vmul.f32 %v2577_v45, %v1067_v11  ;;  %v987_v55 = vsub.f32 1.5, %v986_v38  ;;  %vm991_vm7 = vmor %vm989_vm2, %vm990_vm5 }
 0x1cd   : > { %v1310_v32 = vmul.f32 0.5, %v2559_v56  ;;  %v1454_v57 = vadd.f32 %v1422_v4, %v2592_v62  ;;  %v996_v53 = vmul.f32 0.5, %v995_v25  ;;  %v839_v17 = vmul.f32 %v785_v1, %v2183_v13 }
 0x1ce   : > { %v1784_v8 = vpop.eup %1783  ;;  %v2634_v59 = vadd.f32 %v2429_v10, %v1262_v36  ;;  %v1072_v27 = vsel %vm1071_vm6, %v2577_v45, %v1068_v41  ;;  %v988_v63 = vmul.f32 %v2589_v26, %v987_v55  ;;  %1789 = vrsqrt.f32 %v2624_v33 }
 0x1cf   : > { %v1527_v56 = vadd.f32 1.0, %v1784_v8  ;;  %v1486_v58 = vmul.f32 0.7978846, %v1454_v57  ;;  %v1221_v48 = vmul.f32 %v1072_v27, %v2261_v51  ;;  %v997_v50 = vsub.f32 1.5, %v996_v53 }
 0x1d0   : > { %v1359_v40 = vmul.f32 0.044715, %v2634_v59  ;;  %v992_v45 = vsel %vm991_vm7, %v2589_v26, %v988_v63  ;;  %vm999_vm8 = vweird.f32 %v2567_v2  ;;  %vm1000_vm9 = vweird.f32 %v2600_v29 }
 0x1d1   : > { %v1786_v23 = vpop.eup %1785  ;;  %v1559_v51 = vmul.f32 %v1527_v56, %v2583_v9  ;;  %1791 = vtanh.f32 %v1486_v58  ;;  %v1254_v0 = vmul.f32 %v2419_v35, %v1221_v48  ;;  %v1213_v24 = vmul.f32 %v992_v45, %v2256_v42  ;;  %vm1001_vm10 = vmor %vm999_vm8, %vm1000_vm9  ;;  %v737_v45 = vpop.xlane.xlu0 %736 }
 0x1d2   : > { %v2648_v19 = vpop.eup %1787  ;;  %v1534_v3 = vadd.f32 1.0, %v1786_v23  ;;  %v1391_v60 = vmul.f32 %v1359_v40, %v2634_v59  ;;  %v998_v15 = vmul.f32 %v2600_v29, %v997_v50  ;;  %v2662_v9 = vadd.f32 1e-05, %v839_v17 }
 0x1d3   : > { %v914_v2 = vmul.f32 %v2648_v19, %v2606_v61  ;;  %1591 = vst.msk [vmem:[%s2501_s7 + $0x10] sm:$0xff] %vm288_vm0, %v1559_v51  ;;  %v2660_v16 = vadd.f32 %v2429_v10, %v1254_v0  ;;  %v1246_v42 = vmul.f32 %v2419_v35, %v1213_v24  ;;  %v1326_v4 = vmul.f32 0.5, %v2592_v62 }
 0x1d4   : > { %v1566_v26 = vmul.f32 %v1534_v3, %v1310_v32  ;;  %v2664_v5 = vpop.eup %1789  ;;  %v1423_v11 = vmul.f32 %v1391_v60, %v2634_v59  ;;  %v1002_v38 = vsel %vm1001_vm10, %v2600_v29, %v998_v15  ;;  %v846_v29 = vmul.f32 %v806_v54, %v2183_v13  ;;  %v740_v15 = vpop.xlane.xlu1 %739 }
 0x1d5   : > { %v915_v1 = vmul.f32 %v2648_v19, %v914_v2  ;;  %v1351_v25 = vmul.f32 0.044715, %v2660_v16  ;;  %v1214_v36 = vmul.f32 %v1002_v38, %v2268_v7  ;;  %v1074_v41 = vmul.f32 %v2664_v5, %v2624_v33 }
 0x1d6   : > { %1598 = vst.msk [vmem:[%s2501_s7 + $0x48] sm:$0xff] %vm288_vm0, %v1566_v26  ;;  %v1455_v55 = vadd.f32 %v1423_v11, %v2634_v59  ;;  %v2679_v32 = vadd.f32 %v2429_v10, %v1246_v42  ;;  %1793 = vrsqrt.f32 %v2662_v9  ;;  %vm920_vm11 = vweird.f32 %v2648_v19 }
 0x1d7   : > { %v916_v57 = vmul.f32 0.5, %v915_v1  ;;  %v1792_v53 = vpop.eup %1791  ;;  %v1383_v17 = vmul.f32 %v1351_v25, %v2660_v16  ;;  %v1247_v62 = vmul.f32 %v2419_v35, %v1214_v36  ;;  %v1075_v8 = vmul.f32 %v2664_v5, %v1074_v41 }
 0x1d8   : > { %v1550_v7 = vadd.f32 1.0, %v1792_v53  ;;  %v1487_v27 = vmul.f32 0.7978846, %v1455_v55  ;;  %v1343_v63 = vmul.f32 0.044715, %v2679_v32  ;;  %vm919_vm12 = vweird.f32 %v2606_v61 }
 0x1d9   : > { %v1415_v56 = vmul.f32 %v1383_v17, %v2660_v16  ;;  %v2690_v58 = vadd.f32 %v2429_v10, %v1247_v62  ;;  %v917_v48 = vsub.f32 1.5, %v916_v57  ;;  %v1076_v50 = vmul.f32 0.5, %v1075_v8  ;;  %vm921_vm14 = vmor %vm919_vm12, %vm920_vm11 }
 0x1da   : > { %v1582_v23 = vmul.f32 %v1550_v7, %v1326_v4  ;;  %1795 = vtanh.f32 %v1487_v27  ;;  %v1375_v40 = vmul.f32 %v1343_v63, %v2679_v32  ;;  %vm1079_vm13 = vweird.f32 %v2624_v33 }
 0x1db   : > { %v1447_v51 = vadd.f32 %v1415_v56, %v2660_v16  ;;  %v1344_v3 = vmul.f32 0.044715, %v2690_v58  ;;  %v918_v0 = vmul.f32 %v2648_v19, %v917_v48  ;;  %v1077_v24 = vsub.f32 1.5, %v1076_v50 }
 0x1dc   : > { %1614 = vst.msk [vmem:[%s2501_s7 + $0xc8] sm:$0xff] %vm288_vm0, %v1582_v23  ;;  %v1407_v60 = vmul.f32 %v1375_v40, %v2679_v32  ;;  %vm1080_vm15 = vweird.f32 %v2664_v5  ;;  %v2704_v61 = vadd.f32 1e-05, %v846_v29  ;;  %v1794_v2 = vpop.eup %1793  ;;  %v823_v42 = vmul.f32 %v737_v45, %v2183_v13 }
 0x1dd   : > { %v1479_v26 = vmul.f32 0.7978846, %v1447_v51  ;;  %v1376_v54 = vmul.f32 %v1344_v3, %v2690_v58  ;;  %v922_v11 = vsel %vm921_vm14, %v2648_v19, %v918_v0  ;;  %v1078_v4 = vmul.f32 %v2664_v5, %v1077_v24  ;;  %vm1081_vm1 = vmor %vm1079_vm13, %vm1080_vm15 }
 0x1de   : > { %v1439_v38 = vadd.f32 %v1407_v60, %v2679_v32  ;;  %v1206_v1 = vmul.f32 %v922_v11, %v2275_v22  ;;  %v1084_v25 = vmul.f32 %v1794_v2, %v2662_v9  ;;  %v1327_v36 = vmul.f32 0.5, %v2634_v59 }
 0x1df   : > { %1797 = vtanh.f32 %v1479_v26  ;;  %v1408_v41 = vmul.f32 %v1376_v54, %v2690_v58  ;;  %v824_v19 = vmul.f32 %v740_v15, %v2183_v13  ;;  %v1082_v29 = vsel %vm1081_vm1, %v2664_v5, %v1078_v4  ;;  %v809_v54 = vpop.xlane.xlu0 %808 }
 0x1e0   : > { %v1796_v55 = vpop.eup %1795  ;;  %v1471_v57 = vmul.f32 0.7978846, %v1439_v38  ;;  %v1239_v22 = vmul.f32 %v2419_v35, %v1206_v1  ;;  %v1085_v53 = vmul.f32 %v1794_v2, %v1084_v25  ;;  %v1222_v62 = vmul.f32 %v1082_v29, %v2291_v31  ;;  %v761_v31 = vpop.xlane.xlu2 %760 }
 0x1e1   : > { %v1551_v17 = vadd.f32 1.0, %v1796_v55  ;;  %v1440_v59 = vadd.f32 %v1408_v41, %v2690_v58  ;;  %1799 = vrsqrt.f32 %v2704_v61  ;;  %v2726_v7 = vadd.f32 1e-05, %v823_v42 }
 0x1e2   : > { %1801 = vtanh.f32 %v1471_v57  ;;  %v1272_v33 = vadd.f32 %v2429_v10, %v1239_v22  ;;  %v1086_v8 = vmul.f32 0.5, %v1085_v53  ;;  %v1255_v56 = vmul.f32 %v2419_v35, %v1222_v62 }
 0x1e3   : > { %v1583_v27 = vmul.f32 %v1551_v17, %v1327_v36  ;;  %v1472_v63 = vmul.f32 0.7978846, %v1440_v59  ;;  %v2729_v5 = vadd.f32 1e-05, %v824_v19  ;;  %vm1090_vm2 = vweird.f32 %v1794_v2 }
 0x1e4   : > { %v1336_v48 = vmul.f32 0.044715, %v1272_v33  ;;  %v1087_v50 = vsub.f32 1.5, %v1086_v8  ;;  %1803 = vrsqrt.f32 %v2726_v7  ;;  %v1319_v40 = vmul.f32 0.5, %v2660_v16 }
 0x1e5   : > { %v1798_v23 = vpop.eup %1797  ;;  %1615 = vst.msk [vmem:[%s2501_s7 + $0xd0] sm:$0xff] %vm288_vm0, %v1583_v27  ;;  %1805 = vtanh.f32 %v1472_v63  ;;  %v2736_v45 = vadd.f32 %v2429_v10, %v1255_v56  ;;  %vm1089_vm3 = vweird.f32 %v2662_v9  ;;  %v1311_v24 = vmul.f32 0.5, %v2679_v32 }
 0x1e6   : > { %v1543_v51 = vadd.f32 1.0, %v1798_v23  ;;  %v1368_v3 = vmul.f32 %v1336_v48, %v1272_v33  ;;  %v1088_v0 = vmul.f32 %v1794_v2, %v1087_v50  ;;  %1807 = vrsqrt.f32 %v2729_v5  ;;  %vm1091_vm4 = vmor %vm1089_vm3, %vm1090_vm2 }
 0x1e7   : > { %v1800_v60 = vpop.eup %1799  ;;  %v1312_v15 = vmul.f32 0.5, %v2690_v58  ;;  %v1352_v26 = vmul.f32 0.044715, %v2736_v45  ;;  %v831_v16 = vmul.f32 %v761_v31, %v2183_v13  ;;  %vm1159_vm5 = vweird.f32 %v2704_v61 }
 0x1e8   : > { %v1802_v11 = vpop.eup %1801  ;;  %v1575_v9 = vmul.f32 %v1543_v51, %v1319_v40  ;;  %v1400_v42 = vmul.f32 %v1368_v3, %v1272_v33  ;;  %v1092_v38 = vsel %vm1091_vm4, %v1794_v2, %v1088_v0  ;;  %v1154_v1 = vmul.f32 %v1800_v60, %v2704_v61  ;;  %v788_v0 = vpop.xlane.xlu2 %787 }
 0x1e9   : > { %v1535_v4 = vadd.f32 1.0, %v1802_v11  ;;  %v1384_v25 = vmul.f32 %v1352_v26, %v2736_v45  ;;  %v1223_v32 = vmul.f32 %v1092_v38, %v2294_v34  ;;  %vm1160_vm6 = vweird.f32 %v1800_v60 }
 0x1ea   : > { %v1804_v58 = vpop.eup %1803  ;;  %1607 = vst.msk [vmem:[%s2501_s7 + $0x90] sm:$0xff] %vm288_vm0, %v1575_v9  ;;  %v1432_v36 = vadd.f32 %v1400_v42, %v1272_v33  ;;  %v1155_v41 = vmul.f32 %v1800_v60, %v1154_v1  ;;  %v847_v19 = vmul.f32 %v809_v54, %v2183_v13  ;;  %v2757_v62 = vadd.f32 1e-05, %v831_v16  ;;  %vm1161_vm8 = vmor %vm1159_vm5, %vm1160_vm6  ;;  %v764_v1 = vpop.xlane.xlu0 %763 }
 0x1eb   : > { %v1806_v55 = vpop.eup %1805  ;;  %v1567_v2 = vmul.f32 %v1535_v4, %v1311_v24  ;;  %v1416_v57 = vmul.f32 %v1384_v25, %v2736_v45  ;;  %v1256_v22 = vmul.f32 %v2419_v35, %v1223_v32  ;;  %v924_v29 = vmul.f32 %v1804_v58, %v2726_v7 }
 0x1ec   : > { %v2755_v34 = vpop.eup %1807  ;;  %v1536_v53 = vadd.f32 1.0, %v1806_v55  ;;  %v1464_v17 = vmul.f32 0.7978846, %v1432_v36  ;;  %v1156_v59 = vmul.f32 0.5, %v1155_v41  ;;  %v2765_v31 = vadd.f32 1e-05, %v847_v19 }
 0x1ed   : > { %1599 = vst.msk [vmem:[%s2501_s7 + $0x50] sm:$0xff] %vm288_vm0, %v1567_v2  ;;  %v1448_v8 = vadd.f32 %v1416_v57, %v2736_v45  ;;  %v1289_v27 = vadd.f32 %v2429_v10, %v1256_v22  ;;  %v925_v63 = vmul.f32 %v1804_v58, %v924_v29  ;;  %v934_v56 = vmul.f32 %v2755_v34, %v2729_v5 }
 0x1ee   : > { %v1568_v48 = vmul.f32 %v1536_v53, %v1312_v15  ;;  %1809 = vtanh.f32 %v1464_v17  ;;  %v1157_v50 = vsub.f32 1.5, %v1156_v59  ;;  %v1304_v23 = vmul.f32 0.5, %v1272_v33 }
 0x1ef   : > { %v1480_v40 = vmul.f32 0.7978846, %v1448_v8  ;;  %v1353_v51 = vmul.f32 0.044715, %v1289_v27  ;;  %v926_v3 = vmul.f32 0.5, %v925_v63  ;;  %vm929_vm7 = vweird.f32 %v2726_v7  ;;  %v767_v63 = vpop.xlane.xlu1 %766 }
 0x1f0   : > { %1600 = vst.msk [vmem:[%s2501_s7 + $0x58] sm:$0xff] %vm288_vm0, %v1568_v48  ;;  %v1158_v24 = vmul.f32 %v1800_v60, %v1157_v50  ;;  %v935_v26 = vmul.f32 %v2755_v34, %v934_v56  ;;  %1811 = vrsqrt.f32 %v2757_v62  ;;  %vm930_vm9 = vweird.f32 %v1804_v58  ;;  %v743_v48 = vpop.xlane.xlu2 %742 }
 0x1f1   : > { %1813 = vtanh.f32 %v1480_v40  ;;  %v1385_v15 = vmul.f32 %v1353_v51, %v1289_v27  ;;  %v927_v33 = vsub.f32 1.5, %v926_v3  ;;  %v840_v11 = vmul.f32 %v788_v0, %v2183_v13  ;;  %vm931_vm11 = vmor %vm929_vm7, %vm930_vm9 }
 0x1f2   : > { %v1162_v16 = vsel %vm1161_vm8, %v1800_v60, %v1158_v24  ;;  %v936_v54 = vmul.f32 0.5, %v935_v26  ;;  %1815 = vrsqrt.f32 %v2765_v31  ;;  %vm939_vm10 = vweird.f32 %v2729_v5 }
 0x1f3   : > { %v1417_v9 = vmul.f32 %v1385_v15, %v1289_v27  ;;  %v1230_v42 = vmul.f32 %v1162_v16, %v2284_v14  ;;  %v928_v38 = vmul.f32 %v1804_v58, %v927_v33  ;;  %v1320_v25 = vmul.f32 0.5, %v2736_v45 }
 0x1f4   : > { %v1810_v4 = vpop.eup %1809  ;;  %v937_v61 = vsub.f32 1.5, %v936_v54  ;;  %vm940_vm12 = vweird.f32 %v2755_v34  ;;  %v2783_v60 = vadd.f32 1e-05, %v840_v11  ;;  %v832_v7 = vmul.f32 %v764_v1, %v2183_v13 }
 0x1f5   : > { %v1528_v32 = vadd.f32 1.0, %v1810_v4  ;;  %v1449_v36 = vadd.f32 %v1417_v9, %v1289_v27  ;;  %v1263_v41 = vmul.f32 %v2419_v35, %v1230_v42  ;;  %v932_v14 = vsel %vm931_vm11, %v1804_v58, %v928_v38  ;;  %vm941_vm13 = vmor %vm939_vm10, %vm940_vm12 }
 0x1f6   : > { %v2786_v19 = vpop.eup %1811  ;;  %v1207_v55 = vmul.f32 %v932_v14, %v2304_v37  ;;  %v938_v45 = vmul.f32 %v2755_v34, %v937_v61  ;;  %1817 = vrsqrt.f32 %v2783_v60  ;;  %v1321_v17 = vmul.f32 0.5, %v1289_v27 }
 0x1f7   : > { %v1814_v2 = vpop.eup %1813  ;;  %v1560_v57 = vmul.f32 %v1528_v32, %v1304_v23  ;;  %v1481_v22 = vmul.f32 0.7978846, %v1449_v36  ;;  %v2793_v29 = vadd.f32 %v2429_v10, %v1263_v41  ;;  %v1004_v37 = vmul.f32 %v2786_v19, %v2757_v62 }
 0x1f8   : > { %v2801_v58 = vpop.eup %1815  ;;  %v1544_v53 = vadd.f32 1.0, %v1814_v2  ;;  %v1240_v59 = vmul.f32 %v2419_v35, %v1207_v55  ;;  %v942_v8 = vsel %vm941_vm13, %v2755_v34, %v938_v45  ;;  %vm1009_vm14 = vweird.f32 %v2757_v62  ;;  %v791_v62 = vpop.xlane.xlu0 %790 }
 0x1f9   : > { %1592 = vst.msk [vmem:[%s2501_s7 + $0x18] sm:$0xff] %vm288_vm0, %v1560_v57  ;;  %1819 = vtanh.f32 %v1481_v22  ;;  %v1360_v56 = vmul.f32 0.044715, %v2793_v29  ;;  %v1208_v5 = vmul.f32 %v942_v8, %v2315_v49  ;;  %v1005_v27 = vmul.f32 %v2786_v19, %v1004_v37 }
 0x1fa   : > { %v1576_v50 = vmul.f32 %v1544_v53, %v1320_v25  ;;  %v1273_v23 = vadd.f32 %v2429_v10, %v1240_v59  ;;  %v1164_v34 = vmul.f32 %v2801_v58, %v2765_v31  ;;  %vm1169_vm15 = vweird.f32 %v2765_v31 }
 0x1fb   : > { %v1392_v40 = vmul.f32 %v1360_v56, %v2793_v29  ;;  %v1241_v51 = vmul.f32 %v2419_v35, %v1208_v5  ;;  %v2817_v3 = vadd.f32 1e-05, %v832_v7  ;;  %v833_v49 = vmul.f32 %v767_v63, %v2183_v13 }
 0x1fc   : > { %v1818_v0 = vpop.eup %1817  ;;  %1608 = vst.msk [vmem:[%s2501_s7 + $0x98] sm:$0xff] %vm288_vm0, %v1576_v50  ;;  %v1337_v24 = vmul.f32 0.044715, %v1273_v23  ;;  %v1006_v26 = vmul.f32 0.5, %v1005_v27  ;;  %v1165_v15 = vmul.f32 %v2801_v58, %v1164_v34  ;;  %v825_v33 = vmul.f32 %v743_v48, %v2183_v13 }
 0x1fd   : > { %v1424_v16 = vmul.f32 %v1392_v40, %v2793_v29  ;;  %v1274_v54 = vadd.f32 %v2429_v10, %v1241_v51  ;;  %vm1010_vm1 = vweird.f32 %v2786_v19  ;;  %v1094_v11 = vmul.f32 %v1818_v0, %v2783_v60 }
 0x1fe   : > { %vm1099_vm2 = vweird.f32 %v2783_v60  ;;  %v1369_v9 = vmul.f32 %v1337_v24, %v1273_v23  ;;  %v1007_v42 = vsub.f32 1.5, %v1006_v26  ;;  %v1166_v38 = vmul.f32 0.5, %v1165_v15  ;;  %vm1011_vm4 = vmor %vm1009_vm14, %vm1010_vm1 }
 0x1ff   : > { %1821 = vrsqrt.f32 %v2817_v3  ;;  %v1820_v1 = vpop.eup %1819  ;;  %v1456_v4 = vadd.f32 %v1424_v16, %v2793_v29  ;;  %v1338_v25 = vmul.f32 0.044715, %v1274_v54  ;;  %vm1170_vm3 = vweird.f32 %v2801_v58 }
 0x200   : > { %v1095_v61 = vmul.f32 %v1818_v0, %v1094_v11  ;;  %v1545_v32 = vadd.f32 1.0, %v1820_v1  ;;  %v1401_v36 = vmul.f32 %v1369_v9, %v1273_v23  ;;  %v1008_v41 = vmul.f32 %v2786_v19, %v1007_v42  ;;  %vm1171_vm6 = vmor %vm1169_vm15, %vm1170_vm3 }
 0x201   : > { %v1167_v14 = vsub.f32 1.5, %v1166_v38  ;;  %v1488_v55 = vmul.f32 0.7978846, %v1456_v4  ;;  %v1370_v45 = vmul.f32 %v1338_v25, %v1274_v54  ;;  %vm1100_vm5 = vweird.f32 %v1818_v0 }
 0x202   : > { %v1096_v7 = vmul.f32 0.5, %v1095_v61  ;;  %v1577_v2 = vmul.f32 %v1545_v32, %v1321_v17  ;;  %v1433_v57 = vadd.f32 %v1401_v36, %v1273_v23  ;;  %v1012_v22 = vsel %vm1011_vm4, %v2786_v19, %v1008_v41  ;;  %vm1101_vm7 = vmor %vm1099_vm2, %vm1100_vm5  ;;  %v794_v41 = vpop.xlane.xlu1 %793 }
 0x203   : > { %v1168_v37 = vmul.f32 %v2801_v58, %v1167_v14  ;;  %1823 = vtanh.f32 %v1488_v55  ;;  %v1402_v53 = vmul.f32 %v1370_v45, %v1274_v54  ;;  %v1215_v59 = vmul.f32 %v1012_v22, %v2309_v20 }
 0x204   : > { %v1097_v8 = vsub.f32 1.5, %v1096_v7  ;;  %1609 = vst.msk [vmem:[%s2501_s7 + $0xa0] sm:$0xff] %vm288_vm0, %v1577_v2  ;;  %v1328_v17 = vmul.f32 0.5, %v2793_v29  ;;  %v1465_v19 = vmul.f32 0.7978846, %v1433_v57  ;;  %v1305_v27 = vmul.f32 0.5, %v1273_v23 }
 0x205   : > { %v2844_v63 = vpop.eup %1821  ;;  %v1172_v56 = vsel %vm1171_vm6, %v2801_v58, %v1168_v37  ;;  %v2850_v5 = vadd.f32 1e-05, %v833_v49  ;;  %v1434_v48 = vadd.f32 %v1402_v53, %v1274_v54  ;;  %v1248_v20 = vmul.f32 %v2419_v35, %v1215_v59 }
 0x206   : > { %v1231_v50 = vmul.f32 %v1172_v56, %v2325_v52  ;;  %v1098_v31 = vmul.f32 %v1818_v0, %v1097_v8  ;;  %1825 = vtanh.f32 %v1465_v19  ;;  %v1014_v29 = vmul.f32 %v2844_v63, %v2817_v3 }
 0x207   : > { %v841_v34 = vmul.f32 %v791_v62, %v2183_v13  ;;  %v1466_v58 = vmul.f32 0.7978846, %v1434_v48  ;;  %v1281_v40 = vadd.f32 %v2429_v10, %v1248_v20  ;;  %1827 = vrsqrt.f32 %v2850_v5 }
 0x208   : > { %v1264_v51 = vmul.f32 %v2419_v35, %v1231_v50  ;;  %v1102_v49 = vsel %vm1101_vm7, %v1818_v0, %v1098_v31  ;;  %v1015_v23 = vmul.f32 %v2844_v63, %v1014_v29  ;;  %v2865_v24 = vadd.f32 1e-05, %v825_v33 }
 0x209   : > { %v1224_v52 = vmul.f32 %v1102_v49, %v2330_v44  ;;  %v1824_v60 = vpop.eup %1823  ;;  %v1306_v26 = vmul.f32 0.5, %v1274_v54  ;;  %1829 = vtanh.f32 %v1466_v58  ;;  %v1345_v15 = vmul.f32 0.044715, %v1281_v40 }
 0x20a   : > { %v1297_v16 = vadd.f32 %v2429_v10, %v1264_v51  ;;  %v1552_v11 = vadd.f32 1.0, %v1824_v60  ;;  %v1016_v42 = vmul.f32 0.5, %v1015_v23  ;;  %1831 = vrsqrt.f32 %v2865_v24  ;;  %v770_v60 = vpop.xlane.xlu2 %769 }
 0x20b   : > { %v1257_v9 = vmul.f32 %v2419_v35, %v1224_v52  ;;  %v1377_v44 = vmul.f32 %v1345_v15, %v1281_v40  ;;  %vm1019_vm8 = vweird.f32 %v2817_v3  ;;  %vm1020_vm9 = vweird.f32 %v2844_v63 }
 0x20c   : > { %v1361_v0 = vmul.f32 0.044715, %v1297_v16  ;;  %v1826_v33 = vpop.eup %1825  ;;  %v1584_v38 = vmul.f32 %v1552_v11, %v1328_v17  ;;  %v1017_v1 = vsub.f32 1.5, %v1016_v42  ;;  %v2873_v4 = vadd.f32 1e-05, %v841_v34  ;;  %vm1021_vm10 = vmor %vm1019_vm8, %vm1020_vm9  ;;  %v746_v11 = vpop.xlane.xlu0 %745 }
 0x20d   : > { %v1290_v54 = vadd.f32 %v2429_v10, %v1257_v9  ;;  %v1529_v25 = vadd.f32 1.0, %v1826_v33  ;;  %v2875_v61 = vmul.f32 0.5, %v1281_v40  ;;  %v1409_v32 = vmul.f32 %v1377_v44, %v1281_v40  ;;  %v2877_v14 = vpop.eup %1827 }
 0x20e   : > { %v1393_v36 = vmul.f32 %v1361_v0, %v1297_v16  ;;  %1616 = vst.msk [vmem:[%s2501_s7 + $0xd8] sm:$0xff] %vm288_vm0, %v1584_v38  ;;  %v2881_v55 = vmul.f32 0.5, %v1297_v16  ;;  %v1018_v7 = vmul.f32 %v2844_v63, %v1017_v1  ;;  %1833 = vrsqrt.f32 %v2873_v4 }
 0x20f   : > { %v1354_v45 = vmul.f32 0.044715, %v1290_v54  ;;  %v1830_v2 = vpop.eup %1829  ;;  %v1561_v57 = vmul.f32 %v1529_v25, %v1305_v27  ;;  %v1441_v22 = vadd.f32 %v1409_v32, %v1281_v40  ;;  %v1024_v53 = vmul.f32 %v2877_v14, %v2850_v5 }
 0x210   : > { %v1425_v37 = vmul.f32 %v1393_v36, %v1297_v16  ;;  %vm1029_vm11 = vweird.f32 %v2850_v5  ;;  %v2892_v59 = vpop.eup %1831  ;;  %v1530_v8 = vadd.f32 1.0, %v1830_v2  ;;  %v1022_v17 = vsel %vm1021_vm10, %v2844_v63, %v1018_v7 }
 0x211   : > { %v1386_v62 = vmul.f32 %v1354_v45, %v1290_v54  ;;  %v842_v19 = vmul.f32 %v794_v41, %v2183_v13  ;;  %1593 = vst.msk [vmem:[%s2501_s7 + $0x20] sm:$0xff] %vm288_vm0, %v1561_v57  ;;  %v1473_v56 = vmul.f32 0.7978846, %v1441_v22  ;;  %v1216_v3 = vmul.f32 %v1022_v17, %v2340_v47  ;;  %v812_v22 = vpop.xlane.xlu1 %811 }
 0x212   : > { %v1457_v48 = vadd.f32 %v1425_v37, %v1297_v16  ;;  %v1025_v20 = vmul.f32 %v2877_v14, %v1024_v53  ;;  %v1562_v50 = vmul.f32 %v1530_v8, %v1306_v26  ;;  %v944_v27 = vmul.f32 %v2892_v59, %v2865_v24 }
 0x213   : > { %v1418_v31 = vmul.f32 %v1386_v62, %v1290_v54  ;;  %vm949_vm12 = vweird.f32 %v2865_v24  ;;  %1835 = vtanh.f32 %v1473_v56  ;;  %v1249_v29 = vmul.f32 %v2419_v35, %v1216_v3 }
 0x214   : > { %v1489_v63 = vmul.f32 0.7978846, %v1457_v48  ;;  %v1026_v34 = vmul.f32 0.5, %v1025_v20  ;;  %v2904_v58 = vpop.eup %1833  ;;  %1594 = vst.msk [vmem:[%s2501_s7 + $0x28] sm:$0xff] %vm288_vm0, %v1562_v50  ;;  %vm1030_vm13 = vweird.f32 %v2877_v14  ;;  %v945_v47 = vmul.f32 %v2892_v59, %v944_v27 }
 0x215   : > { %v1450_v40 = vadd.f32 %v1418_v31, %v1290_v54  ;;  %v2910_v51 = vadd.f32 1e-05, %v842_v19  ;;  %v2913_v49 = vadd.f32 %v2429_v10, %v1249_v29  ;;  %v1104_v23 = vmul.f32 %v2904_v58, %v2873_v4  ;;  %vm1031_vm15 = vmor %vm1029_vm11, %vm1030_vm13 }
 0x216   : > { %1837 = vtanh.f32 %v1489_v63  ;;  %v1027_v52 = vsub.f32 1.5, %v1026_v34  ;;  %v1322_v26 = vmul.f32 0.5, %v1290_v54  ;;  %v946_v16 = vmul.f32 0.5, %v945_v47  ;;  %v815_v34 = vpop.xlane.xlu2 %814 }
 0x217   : > { %v1482_v15 = vmul.f32 0.7978846, %v1450_v40  ;;  %1839 = vrsqrt.f32 %v2910_v51  ;;  %v1346_v9 = vmul.f32 0.044715, %v2913_v49  ;;  %vm950_vm14 = vweird.f32 %v2892_v59 }
 0x218   : > { %v1028_v42 = vmul.f32 %v2877_v14, %v1027_v52  ;;  %v1105_v44 = vmul.f32 %v2904_v58, %v1104_v23  ;;  %v947_v0 = vsub.f32 1.5, %v946_v16  ;;  %vm1109_vm1 = vweird.f32 %v2873_v4  ;;  %vm951_vm2 = vmor %vm949_vm12, %vm950_vm14 }
 0x219   : > { %1841 = vtanh.f32 %v1482_v15  ;;  %v834_v33 = vmul.f32 %v770_v60, %v2183_v13  ;;  %v1836_v38 = vpop.eup %1835  ;;  %v1378_v54 = vmul.f32 %v1346_v9, %v2913_v49  ;;  %v826_v32 = vmul.f32 %v746_v11, %v2183_v13 }
 0x21a   : > { %v1032_v1 = vsel %vm1031_vm15, %v2877_v14, %v1028_v42  ;;  %v1106_v25 = vmul.f32 0.5, %v1105_v44  ;;  %v1537_v36 = vadd.f32 1.0, %v1836_v38  ;;  %v948_v45 = vmul.f32 %v2892_v59, %v947_v0 }
 0x21b   : > { %v1217_v41 = vmul.f32 %v1032_v1, %v2350_v39  ;;  %v2933_v5 = vadd.f32 1e-05, %v834_v33  ;;  %v1410_v2 = vmul.f32 %v1378_v54, %v2913_v49  ;;  %vm1110_vm3 = vweird.f32 %v2904_v58 }
 0x21c   : > { %v1838_v7 = vpop.eup %1837  ;;  %v1107_v14 = vsub.f32 1.5, %v1106_v25  ;;  %v2941_v57 = vadd.f32 1e-05, %v826_v32  ;;  %v1569_v37 = vmul.f32 %v1537_v36, %v2875_v61  ;;  %v952_v62 = vsel %vm951_vm2, %v2892_v59, %v948_v45  ;;  %vm1111_vm4 = vmor %vm1109_vm1, %vm1110_vm3 }
 0x21d   : > { %v1840_v39 = vpop.eup %1839  ;;  %v1553_v53 = vadd.f32 1.0, %v1838_v7  ;;  %v1250_v8 = vmul.f32 %v2419_v35, %v1217_v41  ;;  %v1442_v17 = vadd.f32 %v1410_v2, %v2913_v49  ;;  %v1209_v24 = vmul.f32 %v952_v62, %v2344_v30 }
 0x21e   : > { %v1108_v19 = vmul.f32 %v2904_v58, %v1107_v14  ;;  %v1114_v56 = vmul.f32 %v1840_v39, %v2910_v51  ;;  %1601 = vst.msk [vmem:[%s2501_s7 + $0x60] sm:$0xff] %vm288_vm0, %v1569_v37  ;;  %1843 = vrsqrt.f32 %v2933_v5  ;;  %v848_v30 = vmul.f32 %v812_v22, %v2183_v13 }
 0x21f   : > { %v1842_v48 = vpop.eup %1841  ;;  %v1585_v3 = vmul.f32 %v1553_v53, %v2881_v55  ;;  %v1283_v61 = vadd.f32 %v2429_v10, %v1250_v8  ;;  %v1474_v20 = vmul.f32 0.7978846, %v1442_v17  ;;  %v1242_v50 = vmul.f32 %v2419_v35, %v1209_v24 }
 0x220   : > { %v1546_v59 = vadd.f32 1.0, %v1842_v48  ;;  %v1112_v31 = vsel %vm1111_vm4, %v2904_v58, %v1108_v19  ;;  %v1115_v63 = vmul.f32 %v1840_v39, %v1114_v56  ;;  %vm1120_vm5 = vweird.f32 %v1840_v39  ;;  %v818_v56 = vpop.xlane.xlu0 %817 }
 0x221   : > { %1617 = vst.msk [vmem:[%s2501_s7 + $0xe0] sm:$0xff] %vm288_vm0, %v1585_v3  ;;  %v1347_v55 = vmul.f32 0.044715, %v1283_v61  ;;  %v1225_v27 = vmul.f32 %v1112_v31, %v2359_v46  ;;  %1845 = vtanh.f32 %v1474_v20  ;;  %v1275_v4 = vadd.f32 %v2429_v10, %v1242_v50 }
 0x222   : > { %v1578_v29 = vmul.f32 %v1546_v59, %v1322_v26  ;;  %v1116_v52 = vmul.f32 0.5, %v1115_v63  ;;  %1847 = vrsqrt.f32 %v2941_v57  ;;  %v2970_v23 = vadd.f32 1e-05, %v848_v30 }
 0x223   : > { %v1379_v40 = vmul.f32 %v1347_v55, %v1283_v61  ;;  %v1258_v47 = vmul.f32 %v2419_v35, %v1225_v27  ;;  %v1339_v58 = vmul.f32 0.044715, %v1275_v4  ;;  %v849_v16 = vmul.f32 %v815_v34, %v2183_v13 }
 0x224   : > { %1610 = vst.msk [vmem:[%s2501_s7 + $0xa8] sm:$0xff] %vm288_vm0, %v1578_v29  ;;  %v1844_v60 = vpop.eup %1843  ;;  %v1117_v15 = vsub.f32 1.5, %v1116_v52  ;;  %v1314_v11 = vmul.f32 0.5, %v2913_v49  ;;  %1849 = vrsqrt.f32 %v2970_v23  ;;  %vm1119_vm6 = vweird.f32 %v2910_v51 }
 0x225   : > { %v1411_v46 = vmul.f32 %v1379_v40, %v1283_v61  ;;  %v2973_v26 = vadd.f32 %v2429_v10, %v1258_v47  ;;  %v1371_v9 = vmul.f32 %v1339_v58, %v1275_v4  ;;  %v1034_v42 = vmul.f32 %v1844_v60, %v2933_v5  ;;  %vm1121_vm7 = vmor %vm1119_vm6, %vm1120_vm5 }
 0x226   : > { %v1118_v33 = vmul.f32 %v1840_v39, %v1117_v15  ;;  %v1315_v54 = vmul.f32 0.5, %v1283_v61  ;;  %v2982_v32 = vadd.f32 1e-05, %v849_v16  ;;  %vm1040_vm8 = vweird.f32 %v1844_v60 }
 0x227   : > { %v1443_v44 = vadd.f32 %v1411_v46, %v1283_v61  ;;  %v1355_v0 = vmul.f32 0.044715, %v2973_v26  ;;  %v1846_v38 = vpop.eup %1845  ;;  %v1403_v1 = vmul.f32 %v1371_v9, %v1275_v4  ;;  %v1035_v25 = vmul.f32 %v1844_v60, %v1034_v42 }
 0x228   : > { %v1848_v49 = vpop.eup %1847  ;;  %v1538_v36 = vadd.f32 1.0, %v1846_v38  ;;  %v1122_v7 = vsel %vm1121_vm7, %v1840_v39, %v1118_v33  ;;  %vm1039_vm9 = vweird.f32 %v2933_v5  ;;  %v1307_v30 = vmul.f32 0.5, %v1275_v4 }
 0x229   : > { %v1475_v41 = vmul.f32 0.7978846, %v1443_v44  ;;  %v1387_v45 = vmul.f32 %v1355_v0, %v2973_v26  ;;  %v1435_v2 = vadd.f32 %v1403_v1, %v1275_v4  ;;  %v1226_v14 = vmul.f32 %v1122_v7, %v2368_v18  ;;  %vm1041_vm10 = vmor %vm1039_vm9, %vm1040_vm8 }
 0x22a   : > { %v1036_v22 = vmul.f32 0.5, %v1035_v25  ;;  %v954_v51 = vmul.f32 %v1848_v49, %v2941_v57  ;;  %v1570_v37 = vmul.f32 %v1538_v36, %v1314_v11  ;;  %v2988_v8 = vpop.eup %1849  ;;  %v850_v50 = vmul.f32 %v818_v56, %v2183_v13 }
 0x22b   : > { %1851 = vtanh.f32 %v1475_v41  ;;  %v1419_v53 = vmul.f32 %v1387_v45, %v2973_v26  ;;  %v1467_v62 = vmul.f32 0.7978846, %v1435_v2  ;;  %v1259_v17 = vmul.f32 %v2419_v35, %v1226_v14 }
 0x22c   : > { %v1037_v24 = vsub.f32 1.5, %v1036_v22  ;;  %v955_v19 = vmul.f32 %v1848_v49, %v954_v51  ;;  %1602 = vst.msk [vmem:[%s2501_s7 + $0x68] sm:$0xff] %vm288_vm0, %v1570_v37  ;;  %v1174_v39 = vmul.f32 %v2988_v8, %v2970_v23  ;;  %1853 = vrsqrt.f32 %v2982_v32 }
 0x22d   : > { %v1451_v18 = vadd.f32 %v1419_v53, %v2973_v26  ;;  %1855 = vtanh.f32 %v1467_v62  ;;  %v2999_v48 = vadd.f32 %v2429_v10, %v1259_v17  ;;  %vm960_vm11 = vweird.f32 %v1848_v49 }
 0x22e   : > { %v1038_v3 = vmul.f32 %v1844_v60, %v1037_v24  ;;  %v956_v61 = vmul.f32 0.5, %v955_v19  ;;  %v1175_v20 = vmul.f32 %v2988_v8, %v1174_v39  ;;  %v3006_v34 = vadd.f32 1e-05, %v850_v50 }
 0x22f   : > { %v1483_v59 = vmul.f32 0.7978846, %v1451_v18  ;;  %v1356_v5 = vmul.f32 0.044715, %v2999_v48  ;;  %vm959_vm12 = vweird.f32 %v2941_v57  ;;  %vm1180_vm14 = vweird.f32 %v2988_v8 }
 0x230   : > { %v1042_v31 = vsel %vm1041_vm10, %v1844_v60, %v1038_v3  ;;  %v957_v55 = vsub.f32 1.5, %v956_v61  ;;  %v1176_v29 = vmul.f32 0.5, %v1175_v20  ;;  %vm961_vm13 = vmor %vm959_vm12, %vm960_vm11  ;;  %vm1179_vm15 = vweird.f32 %v2970_v23 }
 0x231   : > { %v1852_v27 = vpop.eup %1851  ;;  %1857 = vtanh.f32 %v1483_v59  ;;  %v1218_v63 = vmul.f32 %v1042_v31, %v2375_v21  ;;  %v1388_v40 = vmul.f32 %v1356_v5, %v2999_v48  ;;  %vm1181_vm1 = vmor %vm1179_vm15, %vm1180_vm14  ;;  %vm1189_vm3 = vweird.f32 %v2982_v32 }
 0x232   : > { %v1539_v4 = vadd.f32 1.0, %v1852_v27  ;;  %v958_v47 = vmul.f32 %v1848_v49, %v957_v55  ;;  %v1854_v13 = vpop.eup %1853  ;;  %v1177_v58 = vsub.f32 1.5, %v1176_v29  ;;  %1859 = vrsqrt.f32 %v3006_v34 }
 0x233   : > { %v1251_v52 = vmul.f32 %v2419_v35, %v1218_v63  ;;  %v1856_v21 = vpop.eup %1855  ;;  %v1420_v46 = vmul.f32 %v1388_v40, %v2999_v48  ;;  %v1184_v16 = vmul.f32 %v1854_v13, %v2982_v32  ;;  %vm1190_vm2 = vweird.f32 %v1854_v13 }
 0x234   : > { %v1571_v60 = vmul.f32 %v1539_v4, %v1315_v54  ;;  %v962_v15 = vsel %vm961_vm13, %v1848_v49, %v958_v47  ;;  %v1531_v11 = vadd.f32 1.0, %v1856_v21  ;;  %v1178_v42 = vmul.f32 %v2988_v8, %v1177_v58  ;;  %vm1191_vm4 = vmor %vm1189_vm3, %vm1190_vm2 }
 0x235   : > { %v3016_v57 = vadd.f32 %v2429_v10, %v1251_v52  ;;  %v1210_v9 = vmul.f32 %v962_v15, %v2385_v43  ;;  %v1452_v44 = vadd.f32 %v1420_v46, %v2999_v48  ;;  %v1185_v0 = vmul.f32 %v1854_v13, %v1184_v16 }
 0x236   : > { %1603 = vst.msk [vmem:[%s2501_s7 + $0x70] sm:$0xff] %vm288_vm0, %v1571_v60  ;;  %v1563_v38 = vmul.f32 %v1531_v11, %v1307_v30  ;;  %v1323_v54 = vmul.f32 0.5, %v2973_v26  ;;  %v1182_v36 = vsel %vm1181_vm1, %v2988_v8, %v1178_v42  ;;  %v1324_v30 = vmul.f32 0.5, %v2999_v48 }
 0x237   : > { %v1858_v33 = vpop.eup %1857  ;;  %v1348_v1 = vmul.f32 0.044715, %v3016_v57  ;;  %v1243_v25 = vmul.f32 %v2419_v35, %v1210_v9  ;;  %v1484_v49 = vmul.f32 0.7978846, %v1452_v44  ;;  %v1186_v41 = vmul.f32 0.5, %v1185_v0 }
 0x238   : > { %v1547_v43 = vadd.f32 1.0, %v1858_v33  ;;  %v1860_v45 = vpop.eup %1859  ;;  %1595 = vst.msk [vmem:[%s2501_s7 + $0x30] sm:$0xff] %vm288_vm0, %v1563_v38  ;;  %v1232_v7 = vmul.f32 %v1182_v36, %v2382_v12  ;;  %vm1199_vm6 = vweird.f32 %v3006_v34 }
 0x239   : > { %v1380_v23 = vmul.f32 %v1348_v1, %v3016_v57  ;;  %v1276_v26 = vadd.f32 %v2429_v10, %v1243_v25  ;;  %1861 = vtanh.f32 %v1484_v49  ;;  %v1187_v14 = vsub.f32 1.5, %v1186_v41 }
 0x23a   : > { %v1579_v2 = vmul.f32 %v1547_v43, %v1323_v54  ;;  %v1194_v22 = vmul.f32 %v1860_v45, %v3006_v34  ;;  %v1265_v53 = vmul.f32 %v2419_v35, %v1232_v7  ;;  %vm1200_vm5 = vweird.f32 %v1860_v45 }
 0x23b   : > { %v1412_v51 = vmul.f32 %v1380_v23, %v3016_v57  ;;  %v1340_v37 = vmul.f32 0.044715, %v1276_v26  ;;  %v1188_v8 = vmul.f32 %v1854_v13, %v1187_v14  ;;  %vm1201_vm7 = vmor %vm1199_vm6, %vm1200_vm5  ;;  %v1316_v34 = vmul.f32 0.5, %v3016_v57 }
 0x23c   : > { %1611 = vst.msk [vmem:[%s2501_s7 + $0xb0] sm:$0xff] %vm288_vm0, %v1579_v2  ;;  %v1195_v62 = vmul.f32 %v1860_v45, %v1194_v22  ;;  %v1298_v24 = vadd.f32 %v2429_v10, %v1265_v53 }
 0x23d   : > { %v1444_v17 = vadd.f32 %v1412_v51, %v3016_v57  ;;  %v1372_v12 = vmul.f32 %v1340_v37, %v1276_v26  ;;  %v1192_v19 = vsel %vm1191_vm4, %v1854_v13, %v1188_v8 }
 0x23e   : > { %v1196_v56 = vmul.f32 0.5, %v1195_v62  ;;  %v1362_v3 = vmul.f32 0.044715, %v1298_v24  ;;  %v1233_v59 = vmul.f32 %v1192_v19, %v2390_v6  ;;  %v1330_v54 = vmul.f32 0.5, %v1298_v24 }
 0x23f   : > { %v1476_v18 = vmul.f32 0.7978846, %v1444_v17  ;;  %v1404_v39 = vmul.f32 %v1372_v12, %v1276_v26  ;;  %v1862_v61 = vpop.eup %1861 }
 0x240   : > { %v1197_v32 = vsub.f32 1.5, %v1196_v56  ;;  %v1548_v20 = vadd.f32 1.0, %v1862_v61  ;;  %v1394_v5 = vmul.f32 %v1362_v3, %v1298_v24  ;;  %v1266_v31 = vmul.f32 %v2419_v35, %v1233_v59 }
 0x241   : > { %1863 = vtanh.f32 %v1476_v18  ;;  %v1436_v50 = vadd.f32 %v1404_v39, %v1276_v26 }
 0x242   : > { %v1198_v55 = vmul.f32 %v1860_v45, %v1197_v32  ;;  %v1580_v27 = vmul.f32 %v1548_v20, %v1324_v30  ;;  %v1426_v29 = vmul.f32 %v1394_v5, %v1298_v24  ;;  %v1299_v48 = vadd.f32 %v2429_v10, %v1266_v31 }
 0x243   : > { %v1468_v63 = vmul.f32 0.7978846, %v1436_v50 }
 0x244   : > { %v1202_v4 = vsel %vm1201_vm7, %v1860_v45, %v1198_v55  ;;  %1612 = vst.msk [vmem:[%s2501_s7 + $0xb8] sm:$0xff] %vm288_vm0, %v1580_v27  ;;  %v1458_v6 = vadd.f32 %v1426_v29, %v1298_v24  ;;  %v1363_v47 = vmul.f32 0.044715, %v1299_v48  ;;  %v1331_v36 = vmul.f32 0.5, %v1299_v48 }
 0x245   : > { %1865 = vtanh.f32 %v1468_v63  ;;  %v1234_v40 = vmul.f32 %v1202_v4, %v2401_v28  ;;  %v1308_v28 = vmul.f32 0.5, %v1276_v26 }
 0x246   : > { %v1490_v52 = vmul.f32 0.7978846, %v1458_v6  ;;  %v1395_v60 = vmul.f32 %v1363_v47, %v1299_v48 }
 0x247   : > { %v1864_v13 = vpop.eup %1863  ;;  %v1267_v58 = vmul.f32 %v2419_v35, %v1234_v40 }
 0x248   : > { %v1540_v21 = vadd.f32 1.0, %v1864_v13  ;;  %1867 = vtanh.f32 %v1490_v52  ;;  %v1427_v16 = vmul.f32 %v1395_v60, %v1299_v48 }
 0x249   : > { %v1300_v46 = vadd.f32 %v2429_v10, %v1267_v58 }
 0x24a   : > { %v1572_v15 = vmul.f32 %v1540_v21, %v1316_v34  ;;  %v1459_v44 = vadd.f32 %v1427_v16, %v1299_v48 }
 0x24b   : > { %v1866_v11 = vpop.eup %1865  ;;  %v1364_v9 = vmul.f32 0.044715, %v1300_v46  ;;  %v1332_v26 = vmul.f32 0.5, %v1300_v46 }
 0x24c   : > { %1604 = vst.msk [vmem:[%s2501_s7 + $0x78] sm:$0xff] %vm288_vm0, %v1572_v15  ;;  %v1532_v42 = vadd.f32 1.0, %v1866_v11  ;;  %v1491_v33 = vmul.f32 0.7978846, %v1459_v44 }
 0x24d   : > { %v1396_v0 = vmul.f32 %v1364_v9, %v1300_v46 }
 0x24e   : > { %v1564_v35 = vmul.f32 %v1532_v42, %v1308_v28  ;;  %v1868_v57 = vpop.eup %1867  ;;  %1869 = vtanh.f32 %v1491_v33 }
 0x24f   : > { %v1428_v38 = vmul.f32 %v1396_v0, %v1300_v46  ;;  %v1554_v10 = vadd.f32 1.0, %v1868_v57 }
 0x250   : > { %1596 = vst.msk [vmem:[%s2501_s7 + $0x38] sm:$0xff] %vm288_vm0, %v1564_v35 }
 0x251   : > { %v1460_v1 = vadd.f32 %v1428_v38, %v1300_v46  ;;  %v1586_v25 = vmul.f32 %v1554_v10, %v1330_v54 }
 0x253   : > { %v1492_v43 = vmul.f32 0.7978846, %v1460_v1  ;;  %1618 = vst.msk [vmem:[%s2501_s7 + $0xe8] sm:$0xff] %vm288_vm0, %v1586_v25 }
 0x254   : > { %v1870_v49 = vpop.eup %1869 }
 0x255   : > { %1871 = vtanh.f32 %v1492_v43  ;;  %v1555_v41 = vadd.f32 1.0, %v1870_v49 }
 0x257   : > { %v1587_v45 = vmul.f32 %v1555_v41, %v1331_v36 }
 0x259   : > { %1619 = vst.msk [vmem:[%s2501_s7 + $0xf0] sm:$0xff] %vm288_vm0, %v1587_v45 }
 0x25b   : > { %v1872_v23 = vpop.eup %1871 }
 0x25c   : > { %v1556_v7 = vadd.f32 1.0, %v1872_v23 }
 0x25e   : > { %v1588_v2 = vmul.f32 %v1556_v7, %v1332_v26 }
 0x260   : > { %1620 = vst.msk [vmem:[%s2501_s7 + $0xf8] sm:$0xff] %vm288_vm0, %v1588_v2 }
 0x261 PF: > { %s14_s15 = sadd.s32 1, %s1879_s15  }
 0x262   : > { %p11_p4 = scmp.ge.s32.totalorder %s14_s15, 4  }
 0x264   :  { %13 = sbr.rel (!%p11_p4) target bundleno = 1 (0x1), region = 69 }

// kernel: fno_forward.9
= control target key start
LH: loop header
LB: loop body
LE: loop exit
PB: predicated region body
PF: predicated region fallthrough
CT: control target
= control target key end

     0   :  { %s2170_s21 = smov 0   ;;  %s3658_s0 = inlined_call_operand.vmem [shape: f32[512,32], index: 0, kind: input, shape index: {}]   ;;  %s3659_s1 = inlined_call_operand.vmem [shape: f32[512,32], index: 1, kind: input, shape index: {}]   ;;  %s3660_s2 = inlined_call_operand.vmem [shape: bf16[32,32], index: 2, kind: input, shape index: {}]   ;;  %s3661_s3 = inlined_call_operand.vmem [shape: f32[3,32], index: 3, kind: input, shape index: {}]   ;;  %s3662_s4 = inlined_call_operand.vmem [shape: bf16[32,3], index: 4, kind: input, shape index: {}]   ;;  %s3663_s5 = inlined_call_operand.vmem [shape: f32[1,3], index: 5, kind: input, shape index: {}]   ;;  %s3664_s6 = inlined_call_operand.vmem [shape: f32[512,3], index: 6, kind: output, shape index: {}]  }
   0x1 LB: > { %s1917_s22 = sadd.s32 4294967295, %s2132_s21   ;;  %p1921_p0 = scmp.ge.s32.totalorder %s2132_s21, 1  ;;  %s2132_s21 = sphi %s2170_s21, %s16_s21  }
   0x2   : > { %p224_p1 = scmp.lt.s32.totalorder %s2132_s21, 3 }
   0x4   : > { %p225_p2 = pnand %p1921_p0, %p224_p1 }
   0x6   : > { %228 = sbr.rel (%p225_p2) target bundleno = 809 (0x329), region = 44 }
   0xb   : > { %v1979_v0 = vld [vmem:[%s3660_s2 + $0x8] sm:$0xff]  ;;  %s1922_s25 = sshll.u32 %s1917_s22, 5  ;;  %v1978_v1 = vld [vmem:[%s3660_s2] sm:$0xff]  ;;  %vm342_vm0 = vcmask 261120  }
   0xc   : > { %p260_p3 = scmp.lt.s32.totalorder %s1922_s25, 63  ;;  %397 = vmatpush.bf16.msra.mxu0 %v1979_v0  ;;  %1982 = vmatpush.bf16.msra.mxu2 %v1979_v0  ;;  %v2237_v38 = vld [vmem:[%s3661_s3] sm:$0x7] }
   0xd   : > { %v2243_v43 = vperm.slane %v2237_v38, 0 }
   0xe   : > { %s3715_s25 = smov (!%p260_p3, %s1922_s25), 63 }
   0xf   : > { %s2184_s28 = sshll.u32 %s3715_s25, 3 }
  0x10   : > { %398 = vmatpush.bf16.msra.mxu0 %v1978_v1  ;;  %1983 = vmatpush.bf16.msra.mxu2 %v1978_v1  ;;  %s2190_s7 = scalar_lea.vmem %s3658_s0, %s2184_s28  ;;  %s2232_s10 = scalar_lea.vmem %s3659_s1, %s2184_s28 }
  0x11   : > { %v278_v2 = vld [vmem:[%s2190_s7] sm:$0xff]  ;;  %v279_v3 = vld [vmem:[%s2190_s7 + $0x8] sm:$0xff]  ;;  %v280_v8 = vld [vmem:[%s2190_s7 + $0x10] sm:$0xff]  ;;  %s3352_s22 = scalar_lea.vmem %s3664_s6, %s2184_s28 }
  0x12   : > { %v294_v4 = vld [vmem:[%s2190_s7 + $0x80] sm:$0xff]  ;;  %v310_v5 = vpack.c.bf16 %v279_v3, %v278_v2  ;;  %v295_v6 = vld [vmem:[%s2190_s7 + $0x88] sm:$0xff]  ;;  %v281_v9 = vld [vmem:[%s2190_s7 + $0x18] sm:$0xff] }
  0x13   : > { %v318_v7 = vpack.c.bf16 %v295_v6, %v294_v4  ;;  %v296_v10 = vld [vmem:[%s2190_s7 + $0x90] sm:$0xff]  ;;  %v297_v11 = vld [vmem:[%s2190_s7 + $0x98] sm:$0xff]  ;;  %v311_v12 = vpack.c.bf16 %v281_v9, %v280_v8  ;;  %v282_v14 = vld [vmem:[%s2190_s7 + $0x20] sm:$0xff] }
  0x14   : > { %1936 = vmatmul.msk.bf16.vlgmr.msra.gmra.mxu0 %vm342_vm0, %v310_v5  ;;  %v319_v13 = vpack.c.bf16 %v297_v11, %v296_v10  ;;  %v283_v15 = vld [vmem:[%s2190_s7 + $0x28] sm:$0xff]  ;;  %v298_v16 = vld [vmem:[%s2190_s7 + $0xa0] sm:$0xff]  ;;  %v284_v20 = vld [vmem:[%s2190_s7 + $0x30] sm:$0xff] }
  0x15   : > { %1944 = vmatmul.msk.bf16.vlgmr.msra.gmra.mxu2 %vm342_vm0, %v318_v7  ;;  %v299_v17 = vld [vmem:[%s2190_s7 + $0xa8] sm:$0xff]  ;;  %v312_v18 = vpack.c.bf16 %v283_v15, %v282_v14  ;;  %v285_v21 = vld [vmem:[%s2190_s7 + $0x38] sm:$0xff]  ;;  %v300_v22 = vld [vmem:[%s2190_s7 + $0xb0] sm:$0xff] }
  0x16   : > { %v320_v19 = vpack.c.bf16 %v299_v17, %v298_v16  ;;  %v301_v23 = vld [vmem:[%s2190_s7 + $0xb8] sm:$0xff]  ;;  %v313_v24 = vpack.c.bf16 %v285_v21, %v284_v20  ;;  %v286_v26 = vld [vmem:[%s2190_s7 + $0x40] sm:$0xff]  ;;  %v287_v27 = vld [vmem:[%s2190_s7 + $0x48] sm:$0xff] }
  0x17   : > { %v321_v25 = vpack.c.bf16 %v301_v23, %v300_v22  ;;  %v302_v28 = vld [vmem:[%s2190_s7 + $0xc0] sm:$0xff]  ;;  %v303_v29 = vld [vmem:[%s2190_s7 + $0xc8] sm:$0xff]  ;;  %v314_v30 = vpack.c.bf16 %v287_v27, %v286_v26  ;;  %v304_v32 = vld [vmem:[%s2190_s7 + $0xd0] sm:$0xff] }
  0x18   : > { %v322_v31 = vpack.c.bf16 %v303_v29, %v302_v28  ;;  %v305_v33 = vld [vmem:[%s2190_s7 + $0xd8] sm:$0xff]  ;;  %v288_v35 = vld [vmem:[%s2190_s7 + $0x50] sm:$0xff]  ;;  %v306_v39 = vld [vmem:[%s2190_s7 + $0xe0] sm:$0xff] }
  0x19   : > { %v323_v34 = vpack.c.bf16 %v305_v33, %v304_v32  ;;  %v289_v36 = vld [vmem:[%s2190_s7 + $0x58] sm:$0xff]  ;;  %v307_v40 = vld [vmem:[%s2190_s7 + $0xe8] sm:$0xff]  ;;  %v481_v42 = vld [vmem:[%s2232_s10] sm:$0xff] }
  0x1a   : > { %v315_v37 = vpack.c.bf16 %v289_v36, %v288_v35  ;;  %v324_v41 = vpack.c.bf16 %v307_v40, %v306_v39  ;;  %v497_v47 = vld [vmem:[%s2232_s10 + $0x80] sm:$0xff]  ;;  %v482_v49 = vld [vmem:[%s2232_s10 + $0x8] sm:$0xff]  ;;  %v483_v60 = vld [vmem:[%s2232_s10 + $0x10] sm:$0xff] }
  0x1b   : > { %v498_v57 = vld [vmem:[%s2232_s10 + $0x88] sm:$0xff]  ;;  %v290_v63 = vld [vmem:[%s2190_s7 + $0x60] sm:$0xff]  ;;  %v308_v5 = vld [vmem:[%s2190_s7 + $0xf0] sm:$0xff] }
  0x1c   : > { %v291_v0 = vld [vmem:[%s2190_s7 + $0x68] sm:$0xff]  ;;  %v309_v6 = vld [vmem:[%s2190_s7 + $0xf8] sm:$0xff]  ;;  %v499_v7 = vld [vmem:[%s2232_s10 + $0x90] sm:$0xff] }
  0x1d   : > { %v316_v3 = vpack.c.bf16 %v291_v0, %v290_v63  ;;  %v325_v8 = vpack.c.bf16 %v309_v6, %v308_v5  ;;  %v484_v9 = vld [vmem:[%s2232_s10 + $0x18] sm:$0xff]  ;;  %v485_v21 = vld [vmem:[%s2232_s10 + $0x20] sm:$0xff]  ;;  %v292_v35 = vld [vmem:[%s2190_s7 + $0x70] sm:$0xff] }
  0x1e   : > { %v501_v29 = vld [vmem:[%s2232_s10 + $0xa0] sm:$0xff]  ;;  %v293_v36 = vld [vmem:[%s2190_s7 + $0x78] sm:$0xff] }
  0x1f   : > { %v317_v39 = vpack.c.bf16 %v293_v36, %v292_v35  ;;  %v489_v6 = vld [vmem:[%s2232_s10 + $0x40] sm:$0xff]  ;;  %v507_v35 = vld [vmem:[%s2232_s10 + $0xd0] sm:$0xff] }
  0x24   : > { %1937 = vmatmul.msk.bf16.gmra.mxu0 %vm342_vm0, %v311_v12 }
  0x25   : > { %1945 = vmatmul.msk.bf16.gmra.mxu2 %vm342_vm0, %v319_v13 }
  0x34   : > { %1938 = vmatmul.msk.bf16.gmra.mxu0 %vm342_vm0, %v312_v18 }
  0x35   : > { %1946 = vmatmul.msk.bf16.gmra.mxu2 %vm342_vm0, %v320_v19  ;;  %v500_v19 = vld [vmem:[%s2232_s10 + $0x98] sm:$0xff] }
  0x44   : > { %1939 = vmatmul.msk.bf16.gmra.mxu0 %vm342_vm0, %v313_v24 }
  0x45   : > { %1947 = vmatmul.msk.bf16.gmra.mxu2 %vm342_vm0, %v321_v25 }
  0x54   : > { %1940 = vmatmul.msk.bf16.gmra.mxu0 %vm342_vm0, %v314_v30 }
  0x55   : > { %1948 = vmatmul.msk.bf16.gmra.mxu2 %vm342_vm0, %v322_v31 }
  0x64   : > { %1941 = vmatmul.msk.bf16.gmra.mxu0 %vm342_vm0, %v315_v37 }
  0x65   : > { %1949 = vmatmul.msk.bf16.gmra.mxu2 %vm342_vm0, %v323_v34  ;;  %v486_v34 = vld [vmem:[%s2232_s10 + $0x28] sm:$0xff] }
  0x74   : > { %1942 = vmatmul.msk.bf16.gmra.mxu0 %vm342_vm0, %v316_v3 }
  0x75   : > { %1950 = vmatmul.msk.bf16.gmra.mxu2 %vm342_vm0, %v324_v41 }
  0x84   : > { %1943 = vmatmul.msk.bf16.gmra.mxu0 %vm342_vm0, %v317_v39 }
  0x85   : > { %1951 = vmatmul.msk.bf16.gmra.mxu2 %vm342_vm0, %v325_v8 }
  0x91   : > { %v400_v44 = vpop.f32.mrf.mxu0 }
  0x92   : > { %v513_v45 = vadd.f32 %v481_v42, %v400_v44  ;;  %v502_v42 = vld [vmem:[%s2232_s10 + $0xa8] sm:$0xff] }
  0x94   : > { %v2247_v46 = vadd.f32 %v2243_v43, %v513_v45  ;;  %v487_v45 = vld [vmem:[%s2232_s10 + $0x30] sm:$0xff] }
  0x96   : > { %v578_v48 = vsel %vm342_vm0, %v2247_v46, 0.0 }
  0x97   : > { %579 = vadd.xlane.f32.xlu1 %v578_v48 }
  0x98   : > { %v440_v50 = vpop.f32.mrf.mxu2 }
  0x99   : > { %v529_v51 = vadd.f32 %v497_v47, %v440_v50  ;;  %v402_v52 = vpop.f32.mrf.mxu0 }
  0x9a   : > { %v514_v53 = vadd.f32 %v482_v49, %v402_v52 }
  0x9b   : > { %v2254_v54 = vadd.f32 %v2243_v43, %v529_v51 }
  0x9c   : > { %v2257_v55 = vadd.f32 %v2243_v43, %v514_v53 }
  0x9d   : > { %v626_v56 = vsel %vm342_vm0, %v2254_v54, 0.0 }
  0x9e   : > { %627 = vadd.xlane.f32.xlu0 %v626_v56  ;;  %v581_v58 = vsel %vm342_vm0, %v2257_v55, 0.0  ;;  %v503_v56 = vld [vmem:[%s2232_s10 + $0xb0] sm:$0xff] }
  0x9f   : > { %582 = vadd.xlane.f32.xlu1 %v581_v58 }
  0xa0   : > { %v442_v59 = vpop.f32.mrf.mxu2 }
  0xa1   : > { %v530_v61 = vadd.f32 %v498_v57, %v442_v59  ;;  %v405_v62 = vpop.f32.mrf.mxu0  ;;  %v488_v57 = vld [vmem:[%s2232_s10 + $0x38] sm:$0xff] }
  0xa2   : > { %v515_v1 = vadd.f32 %v483_v60, %v405_v62 }
  0xa3   : > { %v2268_v2 = vadd.f32 %v2243_v43, %v530_v61 }
  0xa4   : > { %v2278_v10 = vadd.f32 %v2243_v43, %v515_v1 }
  0xa5   : > { %v629_v4 = vsel %vm342_vm0, %v2268_v2, 0.0 }
  0xa6   : > { %630 = vadd.xlane.f32.xlu0 %v629_v4  ;;  %v584_v16 = vsel %vm342_vm0, %v2278_v10, 0.0  ;;  %v504_v4 = vld [vmem:[%s2232_s10 + $0xb8] sm:$0xff] }
  0xa8   : > { %v445_v11 = vpop.f32.mrf.mxu2 }
  0xa9   : > { %v531_v12 = vadd.f32 %v499_v7, %v445_v11  ;;  %v407_v13 = vpop.f32.mrf.mxu0 }
  0xaa   : > { %v516_v14 = vadd.f32 %v484_v9, %v407_v13 }
  0xab   : > { %v2282_v15 = vadd.f32 %v2243_v43, %v531_v12 }
  0xac   : > { %v2287_v17 = vadd.f32 %v2243_v43, %v516_v14 }
  0xad   : > { %v632_v18 = vsel %vm342_vm0, %v2282_v15, 0.0 }
  0xae   : > { %633 = vadd.xlane.f32.xlu2 %v632_v18  ;;  %585 = vadd.xlane.f32.xlu0 %v584_v16  ;;  %v587_v20 = vsel %vm342_vm0, %v2287_v17, 0.0  ;;  %v505_v16 = vld [vmem:[%s2232_s10 + $0xc0] sm:$0xff] }
  0xaf   : > { %588 = vadd.xlane.f32.xlu1 %v587_v20 }
  0xb0   : > { %v447_v22 = vpop.f32.mrf.mxu2 }
  0xb1   : > { %v532_v23 = vadd.f32 %v500_v19, %v447_v22  ;;  %v410_v24 = vpop.f32.mrf.mxu0  ;;  %v490_v19 = vld [vmem:[%s2232_s10 + $0x48] sm:$0xff] }
  0xb2   : > { %v517_v25 = vadd.f32 %v485_v21, %v410_v24 }
  0xb3   : > { %v2296_v26 = vadd.f32 %v2243_v43, %v532_v23 }
  0xb4   : > { %v2299_v27 = vadd.f32 %v2243_v43, %v517_v25 }
  0xb5   : > { %v635_v28 = vsel %vm342_vm0, %v2296_v26, 0.0 }
  0xb6   : > { %636 = vadd.xlane.f32.xlu2 %v635_v28  ;;  %v590_v30 = vsel %vm342_vm0, %v2299_v27, 0.0 }
  0xb7   : > { %591 = vadd.xlane.f32.xlu1 %v590_v30 }
  0xb8   : > { %v450_v31 = vpop.f32.mrf.mxu2 }
  0xb9   : > { %v533_v32 = vadd.f32 %v501_v29, %v450_v31  ;;  %v412_v33 = vpop.f32.mrf.mxu0  ;;  %v506_v29 = vld [vmem:[%s2232_s10 + $0xc8] sm:$0xff] }
  0xba   : > { %v518_v40 = vadd.f32 %v486_v34, %v412_v33 }
  0xbb   : > { %v2310_v37 = vadd.f32 %v2243_v43, %v533_v32 }
  0xbc   : > { %v2318_v49 = vadd.f32 %v2243_v43, %v518_v40 }
  0xbd   : > { %v638_v41 = vsel %vm342_vm0, %v2310_v37, 0.0 }
  0xbe   : > { %639 = vadd.xlane.f32.xlu2 %v638_v41  ;;  %v593_v53 = vsel %vm342_vm0, %v2318_v49, 0.0 }
  0xc0   : > { %v452_v44 = vpop.f32.mrf.mxu2 }
  0xc1   : > { %v534_v47 = vadd.f32 %v502_v42, %v452_v44  ;;  %v415_v48 = vpop.f32.mrf.mxu0  ;;  %v2134_v42 = vmov 32.0  }
  0xc2   : > { %v519_v50 = vadd.f32 %v487_v45, %v415_v48  ;;  %1996 = vrcp.f32 %v2134_v42 }
  0xc3   : > { %v2321_v51 = vadd.f32 %v2243_v43, %v534_v47 }
  0xc4   : > { %v2330_v58 = vadd.f32 %v2243_v43, %v519_v50 }
  0xc5   : > { %v641_v52 = vsel %vm342_vm0, %v2321_v51, 0.0 }
  0xc6   : > { %642 = vadd.xlane.f32.xlu0 %v641_v52  ;;  %594 = vadd.xlane.f32.xlu2 %v593_v53  ;;  %v596_v0 = vsel %vm342_vm0, %v2330_v58, 0.0 }
  0xc8   : > { %v455_v59 = vpop.f32.mrf.mxu2  ;;  %v1997_v44 = vpop.eup %1996 }
  0xc9   : > { %v535_v60 = vadd.f32 %v503_v56, %v455_v59  ;;  %v417_v61 = vpop.f32.mrf.mxu0  ;;  %v675_v45 = vmul.f32 32.0, %v1997_v44  ;;  %vm679_vm1 = vweird.f32 %v1997_v44 }
  0xca   : > { %v520_v62 = vadd.f32 %v488_v57, %v417_v61 }
  0xcb   : > { %v2333_v63 = vadd.f32 %v2243_v43, %v535_v60  ;;  %v676_v47 = vsub.f32 1.0, %v675_v45 }
  0xcc   : > { %v2338_v1 = vadd.f32 %v2243_v43, %v520_v62 }
  0xcd   : > { %v644_v3 = vsel %vm342_vm0, %v2333_v63, 0.0  ;;  %v677_v48 = vmul.f32 %v1997_v44, %v676_v47 }
  0xce   : > { %645 = vadd.xlane.f32.xlu2 %v644_v3  ;;  %597 = vadd.xlane.f32.xlu0 %v596_v0  ;;  %v599_v5 = vsel %vm342_vm0, %v2338_v1, 0.0 }
  0xcf   : > { %600 = vadd.xlane.f32.xlu1 %v599_v5  ;;  %v678_v50 = vadd.f32 %v1997_v44, %v677_v48 }
  0xd0   : > { %v457_v7 = vpop.f32.mrf.mxu2 }
  0xd1   : > { %v536_v8 = vadd.f32 %v504_v4, %v457_v7  ;;  %v420_v9 = vpop.f32.mrf.mxu0  ;;  %v2380_v52 = vsel %vm679_vm1, %v1997_v44, %v678_v50  ;;  %v492_v7 = vld [vmem:[%s2232_s10 + $0x58] sm:$0xff] }
  0xd2   : > { %v521_v11 = vadd.f32 %v489_v6, %v420_v9 }
  0xd3   : > { %v2347_v12 = vadd.f32 %v2243_v43, %v536_v8 }
  0xd4   : > { %v2350_v13 = vadd.f32 %v2243_v43, %v521_v11 }
  0xd5   : > { %v647_v14 = vsel %vm342_vm0, %v2347_v12, 0.0 }
  0xd6   : > { %648 = vadd.xlane.f32.xlu0 %v647_v14  ;;  %v602_v18 = vsel %vm342_vm0, %v2350_v13, 0.0 }
  0xd7   : > { %603 = vadd.xlane.f32.xlu2 %v602_v18 }
  0xd8   : > { %v460_v20 = vpop.f32.mrf.mxu2 }
  0xd9   : > { %v537_v21 = vadd.f32 %v505_v16, %v460_v20  ;;  %v422_v22 = vpop.f32.mrf.mxu0 }
  0xda   : > { %v522_v23 = vadd.f32 %v490_v19, %v422_v22 }
  0xdb   : > { %v2359_v24 = vadd.f32 %v2243_v43, %v537_v21  ;;  %v508_v21 = vld [vmem:[%s2232_s10 + $0xd8] sm:$0xff] }
  0xdc   : > { %v2362_v25 = vadd.f32 %v2243_v43, %v522_v23 }
  0xdd   : > { %v650_v28 = vsel %vm342_vm0, %v2359_v24, 0.0 }
  0xde   : > { %651 = vadd.xlane.f32.xlu1 %v650_v28  ;;  %v605_v30 = vsel %vm342_vm0, %v2362_v25, 0.0 }
  0xdf   : > { %606 = vadd.xlane.f32.xlu0 %v605_v30 }
  0xe0   : > { %v462_v31 = vpop.f32.mrf.mxu2 }
  0xe1   : > { %v538_v32 = vadd.f32 %v506_v29, %v462_v31  ;;  %v425_v56 = vpop.f32.mrf.mxu0 }
  0xe3   : > { %v2370_v33 = vadd.f32 %v2243_v43, %v538_v32 }
  0xe5   : > { %v653_v34 = vsel %vm342_vm0, %v2370_v33, 0.0 }
  0xe6   : > { %654 = vadd.xlane.f32.xlu2 %v653_v34 }
  0xe8   : > { %v465_v36 = vpop.f32.mrf.mxu2 }
  0xe9   : > { %v539_v39 = vadd.f32 %v507_v35, %v465_v36  ;;  %v427_v6 = vpop.f32.mrf.mxu0 }
  0xea   : > { %v524_v11 = vadd.f32 %v492_v7, %v427_v6 }
  0xeb   : > { %v2376_v40 = vadd.f32 %v2243_v43, %v539_v39 }
  0xec   : > { %v2406_v19 = vadd.f32 %v2243_v43, %v524_v11 }
  0xed   : > { %v656_v41 = vsel %vm342_vm0, %v2376_v40, 0.0 }
  0xee   : > { %657 = vadd.xlane.f32.xlu0 %v656_v41  ;;  %v611_v23 = vsel %vm342_vm0, %v2406_v19, 0.0  ;;  %v491_v41 = vld [vmem:[%s2232_s10 + $0x50] sm:$0xff] }
  0xef   : > { %v523_v45 = vadd.f32 %v491_v41, %v425_v56 }
  0xf0   : > { %v467_v20 = vpop.f32.mrf.mxu2 }
  0xf1   : > { %v540_v28 = vadd.f32 %v508_v21, %v467_v20 }
  0xf3   : > { %v2426_v39 = vadd.f32 %v2243_v43, %v540_v28  ;;  %v510_v28 = vld [vmem:[%s2232_s10 + $0xe8] sm:$0xff] }
  0xf5   : > { %v659_v47 = vsel %vm342_vm0, %v2426_v39, 0.0 }
  0xf8   : > { %v470_v7 = vpop.f32.mrf.mxu2 }
 0x100   : > { %v472_v21 = vpop.f32.mrf.mxu2 }
 0x10a   : > { %v580_v53 = vpop.xlane.xlu1 %579 }
 0x10b   : > { %v681_v57 = vmul.f32 %v2380_v52, %v580_v53 }
 0x10d   : > { %v2384_v59 = vsub.f32 %v2247_v46, %v681_v57 }
 0x10f   : > { %v745_v60 = vmul.f32 %v2384_v59, %v2384_v59 }
 0x111   : > { %v628_v61 = vpop.xlane.xlu0 %627  ;;  %v777_v62 = vsel %vm342_vm0, %v745_v60, 0.0 }
 0x112   : > { %v697_v0 = vmul.f32 %v2380_v52, %v628_v61  ;;  %v583_v3 = vpop.xlane.xlu1 %582  ;;  %778 = vadd.xlane.f32.xlu1 %v777_v62  ;;  %v2444_v61 = vadd.f32 %v2243_v43, %v523_v45  ;;  %v475_v45 = vpop.f32.mrf.mxu2 }
 0x113   : > { %v682_v4 = vmul.f32 %v2380_v52, %v583_v3 }
 0x114   : > { %v2392_v5 = vsub.f32 %v2254_v54, %v697_v0 }
 0x115   : > { %v2396_v46 = vsub.f32 %v2257_v55, %v682_v4 }
 0x116   : > { %v761_v8 = vmul.f32 %v2392_v5, %v2392_v5 }
 0x117   : > { %v746_v9 = vmul.f32 %v2396_v46, %v2396_v46 }
 0x118   : > { %v825_v14 = vsel %vm342_vm0, %v761_v8, 0.0 }
 0x119   : > { %v631_v16 = vpop.xlane.xlu0 %630  ;;  %826 = vadd.xlane.f32.xlu0 %v825_v14  ;;  %v780_v54 = vsel %vm342_vm0, %v746_v9, 0.0 }
 0x11a   : > { %v698_v18 = vmul.f32 %v2380_v52, %v631_v16  ;;  %781 = vadd.xlane.f32.xlu2 %v780_v54 }
 0x11c   : > { %v2409_v55 = vsub.f32 %v2268_v2, %v698_v18 }
 0x11e   : > { %v762_v22 = vmul.f32 %v2409_v55, %v2409_v55 }
 0x120   : > { %v828_v29 = vsel %vm342_vm0, %v762_v22, 0.0 }
 0x121   : > { %v634_v30 = vpop.xlane.xlu2 %633  ;;  %v586_v31 = vpop.xlane.xlu0 %585  ;;  %829 = vadd.xlane.f32.xlu1 %v828_v29  ;;  %v509_v29 = vld [vmem:[%s2232_s10 + $0xe0] sm:$0xff] }
 0x122   : > { %v699_v32 = vmul.f32 %v2380_v52, %v634_v30  ;;  %v683_v2 = vmul.f32 %v2380_v52, %v586_v31  ;;  %v589_v34 = vpop.xlane.xlu1 %588  ;;  %612 = vadd.xlane.f32.xlu2 %v611_v23 }
 0x123   : > { %v684_v60 = vmul.f32 %v2380_v52, %v589_v34  ;;  %v541_v34 = vadd.f32 %v509_v29, %v470_v7 }
 0x124   : > { %v2420_v35 = vsub.f32 %v2282_v15, %v699_v32  ;;  %v2423_v36 = vsub.f32 %v2278_v10, %v683_v2  ;;  %v542_v32 = vadd.f32 %v510_v28, %v472_v21 }
 0x125   : > { %v2454_v4 = vsub.f32 %v2287_v17, %v684_v60 }
 0x126   : > { %v747_v42 = vmul.f32 %v2423_v36, %v2423_v36  ;;  %v763_v44 = vmul.f32 %v2420_v35, %v2420_v35 }
 0x127   : > { %v748_v17 = vmul.f32 %v2454_v4, %v2454_v4 }
 0x128   : > { %v783_v15 = vsel %vm342_vm0, %v747_v42, 0.0  ;;  %v831_v10 = vsel %vm342_vm0, %v763_v44, 0.0 }
 0x129   : > { %v637_v48 = vpop.xlane.xlu2 %636  ;;  %660 = vadd.xlane.f32.xlu1 %v659_v47  ;;  %784 = vadd.xlane.f32.xlu0 %v783_v15  ;;  %v786_v14 = vsel %vm342_vm0, %v748_v17, 0.0  ;;  %v430_v47 = vpop.f32.mrf.mxu0  ;;  %v493_v15 = vld [vmem:[%s2232_s10 + $0x60] sm:$0xff] }
 0x12a   : > { %v700_v50 = vmul.f32 %v2380_v52, %v637_v48  ;;  %v592_v53 = vpop.xlane.xlu1 %591  ;;  %832 = vadd.xlane.f32.xlu2 %v831_v10  ;;  %v2492_v10 = vadd.f32 %v2243_v43, %v542_v32 }
 0x12b   : > { %v685_v57 = vmul.f32 %v2380_v52, %v592_v53  ;;  %v2496_v53 = vadd.f32 %v2243_v43, %v541_v34  ;;  %v511_v34 = vld [vmem:[%s2232_s10 + $0xf0] sm:$0xff] }
 0x12c   : > { %v2441_v56 = vsub.f32 %v2296_v26, %v700_v50  ;;  %v608_v26 = vsel %vm342_vm0, %v2444_v61, 0.0 }
 0x12d   : > { %v2447_v62 = vsub.f32 %v2299_v27, %v685_v57  ;;  %v525_v57 = vadd.f32 %v493_v15, %v430_v47  ;;  %v662_v7 = vsel %vm342_vm0, %v2496_v53, 0.0 }
 0x12e   : > { %v764_v0 = vmul.f32 %v2441_v56, %v2441_v56 }
 0x12f   : > { %v749_v3 = vmul.f32 %v2447_v62, %v2447_v62 }
 0x130   : > { %v834_v6 = vsel %vm342_vm0, %v764_v0, 0.0  ;;  %v665_v0 = vsel %vm342_vm0, %v2492_v10, 0.0 }
 0x131   : > { %v640_v8 = vpop.xlane.xlu2 %639  ;;  %835 = vadd.xlane.f32.xlu0 %v834_v6  ;;  %609 = vadd.xlane.f32.xlu1 %v608_v26  ;;  %v789_v27 = vsel %vm342_vm0, %v749_v3, 0.0 }
 0x132   : > { %790 = vadd.xlane.f32.xlu2 %v789_v27  ;;  %v701_v9 = vmul.f32 %v2380_v52, %v640_v8  ;;  %v2510_v27 = vadd.f32 %v2243_v43, %v525_v57 }
 0x134   : > { %v2464_v11 = vsub.f32 %v2310_v37, %v701_v9  ;;  %v614_v21 = vsel %vm342_vm0, %v2510_v27, 0.0 }
 0x136   : > { %v765_v37 = vmul.f32 %v2464_v11, %v2464_v11 }
 0x139   : > { %v643_v16 = vpop.xlane.xlu0 %642  ;;  %v595_v54 = vpop.xlane.xlu2 %594  ;;  %787 = vadd.xlane.f32.xlu1 %v786_v14 }
 0x13a   : > { %v702_v18 = vmul.f32 %v2380_v52, %v643_v16  ;;  %v686_v20 = vmul.f32 %v2380_v52, %v595_v54  ;;  %v477_v14 = vpop.f32.mrf.mxu2  ;;  %v432_v16 = vpop.f32.mrf.mxu0  ;;  %v494_v54 = vld [vmem:[%s2232_s10 + $0x68] sm:$0xff] }
 0x13c   : > { %v2470_v22 = vsub.f32 %v2321_v51, %v702_v18  ;;  %v2473_v23 = vsub.f32 %v2318_v49, %v686_v20  ;;  %v837_v51 = vsel %vm342_vm0, %v765_v37, 0.0 }
 0x13e   : > { %v750_v30 = vmul.f32 %v2473_v23, %v2473_v23  ;;  %v766_v31 = vmul.f32 %v2470_v22, %v2470_v22 }
 0x140   : > { %v792_v2 = vsel %vm342_vm0, %v750_v30, 0.0  ;;  %v840_v49 = vsel %vm342_vm0, %v766_v31, 0.0 }
 0x141   : > { %v598_v41 = vpop.xlane.xlu0 %597  ;;  %793 = vadd.xlane.f32.xlu0 %v792_v2  ;;  %838 = vadd.xlane.f32.xlu1 %v837_v51  ;;  %v646_v3 = vpop.xlane.xlu2 %645 }
 0x142   : > { %v687_v42 = vmul.f32 %v2380_v52, %v598_v41  ;;  %841 = vadd.xlane.f32.xlu2 %v840_v49  ;;  %v601_v44 = vpop.xlane.xlu1 %600  ;;  %v703_v9 = vmul.f32 %v2380_v52, %v646_v3 }
 0x143   : > { %v688_v50 = vmul.f32 %v2380_v52, %v601_v44  ;;  %v543_v44 = vadd.f32 %v511_v34, %v475_v45 }
 0x144   : > { %v2489_v48 = vsub.f32 %v2330_v58, %v687_v42  ;;  %v2525_v28 = vsub.f32 %v2333_v63, %v703_v9 }
 0x145   : > { %v2504_v6 = vsub.f32 %v2338_v1, %v688_v50  ;;  %v512_v1 = vld [vmem:[%s2232_s10 + $0xf8] sm:$0xff] }
 0x146   : > { %v751_v60 = vmul.f32 %v2489_v48, %v2489_v48  ;;  %v544_v37 = vadd.f32 %v512_v1, %v477_v14  ;;  %v767_v49 = vmul.f32 %v2525_v28, %v2525_v28 }
 0x147   : > { %v752_v18 = vmul.f32 %v2504_v6, %v2504_v6 }
 0x148   : > { %v795_v58 = vsel %vm342_vm0, %v751_v60, 0.0  ;;  %v2530_v2 = vadd.f32 %v2243_v43, %v544_v37  ;;  %v843_v15 = vsel %vm342_vm0, %v767_v49, 0.0 }
 0x149   : > { %v649_v26 = vpop.xlane.xlu0 %648  ;;  %666 = vadd.xlane.f32.xlu0 %v665_v0  ;;  %796 = vadd.xlane.f32.xlu1 %v795_v58  ;;  %v798_v31 = vsel %vm342_vm0, %v752_v18, 0.0  ;;  %v435_v58 = vpop.f32.mrf.mxu0 }
 0x14a   : > { %v704_v8 = vmul.f32 %v2380_v52, %v649_v26  ;;  %663 = vadd.xlane.f32.xlu2 %v662_v7  ;;  %v604_v30 = vpop.xlane.xlu2 %603  ;;  %v671_v42 = vsel %vm342_vm0, %v2530_v2, 0.0  ;;  %v2557_v7 = vadd.f32 %v2243_v43, %v543_v44 }
 0x14b   : > { %v689_v51 = vmul.f32 %v2380_v52, %v604_v30 }
 0x14c   : > { %v2514_v17 = vsub.f32 %v2347_v12, %v704_v8  ;;  %v526_v12 = vadd.f32 %v494_v54, %v432_v16  ;;  %v668_v16 = vsel %vm342_vm0, %v2557_v7, 0.0 }
 0x14d   : > { %v2543_v47 = vsub.f32 %v2350_v13, %v689_v51  ;;  %v495_v13 = vld [vmem:[%s2232_s10 + $0x70] sm:$0xff] }
 0x14e   : > { %v768_v20 = vmul.f32 %v2514_v17, %v2514_v17  ;;  %v2536_v63 = vadd.f32 %v2243_v43, %v526_v12  ;;  %v527_v8 = vadd.f32 %v495_v13, %v435_v58  ;;  %v496_v12 = vld [vmem:[%s2232_s10 + $0x78] sm:$0xff] }
 0x14f   : > { %v753_v26 = vmul.f32 %v2543_v47, %v2543_v47 }
 0x150   : > { %v846_v29 = vsel %vm342_vm0, %v768_v20, 0.0  ;;  %v617_v50 = vsel %vm342_vm0, %v2536_v63, 0.0  ;;  %v2572_v20 = vadd.f32 %v2243_v43, %v527_v8 }
 0x151   : > { %847 = vadd.xlane.f32.xlu1 %v846_v29  ;;  %615 = vadd.xlane.f32.xlu0 %v614_v21  ;;  %v652_v32 = vpop.xlane.xlu1 %651  ;;  %v801_v1 = vsel %vm342_vm0, %v753_v26, 0.0  ;;  %v437_v37 = vpop.f32.mrf.mxu0 }
 0x152   : > { %799 = vadd.xlane.f32.xlu2 %v798_v31  ;;  %v705_v41 = vmul.f32 %v2380_v52, %v652_v32  ;;  %v607_v60 = vpop.xlane.xlu0 %606  ;;  %v620_v29 = vsel %vm342_vm0, %v2572_v20, 0.0  ;;  %v528_v31 = vadd.f32 %v496_v12, %v437_v37 }
 0x153   : > { %v690_v3 = vmul.f32 %v2380_v52, %v607_v60 }
 0x154   : > { %v2549_v57 = vsub.f32 %v2359_v24, %v705_v41  ;;  %v2590_v34 = vadd.f32 %v2243_v43, %v528_v31  ;;  %v2612_v31 = vperm.slane %v2237_v38, 1 }
 0x155   : > { %v2562_v9 = vsub.f32 %v2362_v25, %v690_v3 }
 0x156   : > { %v769_v24 = vmul.f32 %v2549_v57, %v2549_v57 }
 0x157   : > { %v754_v21 = vmul.f32 %v2562_v9, %v2562_v9 }
 0x158   : > { %v849_v18 = vsel %vm342_vm0, %v769_v24, 0.0 }
 0x159   : > { %v655_v0 = vpop.xlane.xlu2 %654  ;;  %844 = vadd.xlane.f32.xlu0 %v843_v15  ;;  %618 = vadd.xlane.f32.xlu1 %v617_v50  ;;  %v804_v51 = vsel %vm342_vm0, %v754_v21, 0.0 }
 0x15a   : > { %672 = vadd.xlane.f32.xlu2 %v671_v42  ;;  %v706_v45 = vmul.f32 %v2380_v52, %v655_v0 }
 0x15c   : > { %v2565_v14 = vsub.f32 %v2370_v33, %v706_v45 }
 0x15e   : > { %v770_v33 = vmul.f32 %v2565_v14, %v2565_v14 }
 0x160   : > { %v852_v32 = vsel %vm342_vm0, %v770_v33, 0.0 }
 0x161   : > { %v658_v54 = vpop.xlane.xlu0 %657  ;;  %802 = vadd.xlane.f32.xlu0 %v801_v1  ;;  %669 = vadd.xlane.f32.xlu1 %v668_v16 }
 0x162   : > { %850 = vadd.xlane.f32.xlu2 %v849_v18  ;;  %v707_v25 = vmul.f32 %v2380_v52, %v658_v54 }
 0x164   : > { %v2583_v30 = vsub.f32 %v2376_v40, %v707_v25  ;;  %v623_v40 = vsel %vm342_vm0, %v2590_v34, 0.0 }
 0x166   : > { %v771_v49 = vmul.f32 %v2583_v30, %v2583_v30 }
 0x168   : > { %v855_v41 = vsel %vm342_vm0, %v771_v49, 0.0 }
 0x169   : > { %853 = vadd.xlane.f32.xlu0 %v852_v32  ;;  %805 = vadd.xlane.f32.xlu1 %v804_v51 }
 0x16a   : > { %621 = vadd.xlane.f32.xlu2 %v620_v29 }
 0x171   : > { %856 = vadd.xlane.f32.xlu1 %v855_v41  ;;  %624 = vadd.xlane.f32.xlu0 %v623_v40 }
 0x185   : > { %v779_v42 = vpop.xlane.xlu1 %778 }
 0x186   : > { %v873_v44 = vmul.f32 %v779_v42, %v2380_v52 }
 0x188   : > { %v905_v15 = vadd.f32 1e-05, %v873_v44 }
 0x18a   : > { %1998 = vrsqrt.f32 %v905_v15  ;;  %vm943_vm3 = vweird.f32 %v905_v15 }
 0x18c   : > { %v827_v50 = vpop.xlane.xlu0 %826 }
 0x18d   : > { %v889_v60 = vmul.f32 %v827_v50, %v2380_v52  ;;  %v782_v0 = vpop.xlane.xlu2 %781 }
 0x18e   : > { %v874_v58 = vmul.f32 %v782_v0, %v2380_v52 }
 0x18f   : > { %v2598_v43 = vadd.f32 1e-05, %v889_v60 }
 0x190   : > { %v1999_v3 = vpop.eup %1998  ;;  %v906_v45 = vadd.f32 1e-05, %v874_v58 }
 0x191   : > { %v938_v13 = vmul.f32 %v1999_v3, %v905_v15  ;;  %2000 = vrsqrt.f32 %v2598_v43  ;;  %vm944_vm2 = vweird.f32 %v1999_v3  ;;  %vm1103_vm9 = vweird.f32 %v2598_v43 }
 0x192   : > { %2002 = vrsqrt.f32 %v906_v45  ;;  %vm945_vm4 = vmor %vm943_vm3, %vm944_vm2  ;;  %vm953_vm6 = vweird.f32 %v906_v45 }
 0x193   : > { %v939_v26 = vmul.f32 %v1999_v3, %v938_v13 }
 0x194   : > { %v830_v24 = vpop.xlane.xlu1 %829 }
 0x195   : > { %v940_v8 = vmul.f32 0.5, %v939_v26  ;;  %v890_v1 = vmul.f32 %v830_v24, %v2380_v52  ;;  %v613_v16 = vpop.xlane.xlu2 %612 }
 0x196   : > { %v692_v54 = vmul.f32 %v2380_v52, %v613_v16 }
 0x197   : > { %v2603_v18 = vpop.eup %2000  ;;  %v941_v25 = vsub.f32 1.5, %v940_v8  ;;  %v2605_v33 = vadd.f32 1e-05, %v890_v1 }
 0x198   : > { %v2003_v21 = vpop.eup %2002  ;;  %v2608_v37 = vsub.f32 %v2406_v19, %v692_v54  ;;  %v1098_v49 = vmul.f32 %v2603_v18, %v2598_v43  ;;  %v2619_v19 = vperm.slane %v2237_v38, 2  ;;  %vm1104_vm8 = vweird.f32 %v2603_v18 }
 0x199   : > { %v942_v12 = vmul.f32 %v1999_v3, %v941_v25  ;;  %v948_v29 = vmul.f32 %v2003_v21, %v906_v45  ;;  %2004 = vrsqrt.f32 %v2605_v33  ;;  %vm954_vm5 = vweird.f32 %v2003_v21  ;;  %vm1105_vm10 = vmor %vm1103_vm9, %vm1104_vm8 }
 0x19a   : > { %3668 = vst [vmem:[#allocation2_spill] sm:$0xff] %v2608_v37  ;;  %v756_v32 = vmul.f32 %v2608_v37, %v2608_v37  ;;  %v1099_v26 = vmul.f32 %v2603_v18, %v1098_v49  ;;  %vm955_vm7 = vmor %vm953_vm6, %vm954_vm5  ;;  %vm1113_vm12 = vweird.f32 %v2605_v33 }
 0x19b   : > { %v946_v51 = vsel %vm945_vm4, %v1999_v3, %v942_v12  ;;  %v949_v41 = vmul.f32 %v2003_v21, %v948_v29  ;;  %v1981_v3 = vld [vmem:[%s3662_s4 + $0x8] sm:$0xff] }
 0x19c   : > { %v1257_v40 = vmul.f32 %v946_v51, %v2384_v59  ;;  %v661_v42 = vpop.xlane.xlu1 %660  ;;  %v785_v44 = vpop.xlane.xlu0 %784  ;;  %v810_v15 = vsel %vm342_vm0, %v756_v32, 0.0  ;;  %1733 = vmatpush.bf16.msra.mxu1 %v1981_v3  ;;  %1984 = vmatpush.bf16.msra.mxu3 %v1981_v3  ;;  %v1100_v32 = vmul.f32 0.5, %v1099_v26 }
 0x19d   : > { %v950_v50 = vmul.f32 0.5, %v949_v41  ;;  %v708_v60 = vmul.f32 %v2380_v52, %v661_v42  ;;  %v875_v0 = vmul.f32 %v785_v44, %v2380_v52  ;;  %v833_v58 = vpop.xlane.xlu2 %832  ;;  %811 = vadd.xlane.f32.xlu1 %v810_v15 }
 0x19e   : > { %v1290_v38 = vmul.f32 %v2612_v31, %v1257_v40  ;;  %v891_v59 = vmul.f32 %v833_v58, %v2380_v52  ;;  %v1101_v3 = vsub.f32 1.5, %v1100_v32 }
 0x19f   : > { %v2630_v13 = vpop.eup %2004  ;;  %v951_v24 = vsub.f32 1.5, %v950_v50  ;;  %v2634_v8 = vsub.f32 %v2426_v39, %v708_v60  ;;  %v2636_v1 = vadd.f32 1e-05, %v875_v0  ;;  %v1980_v39 = vld [vmem:[%s3662_s4] sm:$0xff] }
 0x1a0   : > { %v2639_v16 = vadd.f32 %v2619_v19, %v1290_v38  ;;  %v1108_v54 = vmul.f32 %v2630_v13, %v2605_v33  ;;  %v2644_v12 = vadd.f32 1e-05, %v891_v59  ;;  %1734 = vmatpush.bf16.msra.mxu1 %v1980_v39  ;;  %1985 = vmatpush.bf16.msra.mxu3 %v1980_v39  ;;  %vm1114_vm11 = vweird.f32 %v2630_v13 }
 0x1a1   : > { %3669 = vst [vmem:[#allocation3_spill] sm:$0xff] %v2634_v8  ;;  %v952_v25 = vmul.f32 %v2003_v21, %v951_v24  ;;  %2006 = vrsqrt.f32 %v2636_v1  ;;  %v772_v29 = vmul.f32 %v2634_v8, %v2634_v8  ;;  %vm1115_vm13 = vmor %vm1113_vm12, %vm1114_vm11  ;;  %vm963_vm14 = vweird.f32 %v2636_v1 }
 0x1a2   : > { %v1109_v49 = vmul.f32 %v2630_v13, %v1108_v54  ;;  %2008 = vrsqrt.f32 %v2644_v12  ;;  %v1387_v44 = vmul.f32 0.044715, %v2639_v16  ;;  %vm1123_vm1 = vweird.f32 %v2644_v12 }
 0x1a3   : > { %v956_v51 = vsel %vm955_vm7, %v2003_v21, %v952_v25  ;;  %v858_v42 = vsel %vm342_vm0, %v772_v29, 0.0 }
 0x1a4   : > { %v1258_v45 = vmul.f32 %v956_v51, %v2396_v46  ;;  %v836_v41 = vpop.xlane.xlu0 %835  ;;  %v610_v40 = vpop.xlane.xlu1 %609  ;;  %859 = vadd.xlane.f32.xlu2 %v858_v42  ;;  %v1110_v46 = vmul.f32 0.5, %v1109_v49  ;;  %v1419_v24 = vmul.f32 %v1387_v44, %v2639_v16 }
 0x1a5   : > { %v892_v15 = vmul.f32 %v836_v41, %v2380_v52  ;;  %v691_v50 = vmul.f32 %v2380_v52, %v610_v40  ;;  %v791_v21 = vpop.xlane.xlu2 %790 }
 0x1a6   : > { %v1291_v60 = vmul.f32 %v2612_v31, %v1258_v45  ;;  %v877_v0 = vmul.f32 %v791_v21, %v2380_v52  ;;  %v1111_v32 = vsub.f32 1.5, %v1110_v46  ;;  %v1451_v44 = vmul.f32 %v1419_v24, %v2639_v16 }
 0x1a7   : > { %v2661_v58 = vpop.eup %2006  ;;  %v2663_v38 = vadd.f32 1e-05, %v892_v15  ;;  %v2666_v59 = vsub.f32 %v2444_v61, %v691_v50  ;;  %v1102_v61 = vmul.f32 %v2603_v18, %v1101_v3 }
 0x1a8   : > { %v2669_v26 = vadd.f32 %v2619_v19, %v1291_v60  ;;  %v2672_v54 = vpop.eup %2008  ;;  %v958_v25 = vmul.f32 %v2661_v58, %v2636_v1  ;;  %v2677_v39 = vadd.f32 1e-05, %v877_v0  ;;  %v1112_v60 = vmul.f32 %v2630_v13, %v1111_v32 }
 0x1a9   : > { %3670 = vst [vmem:[#allocation4_spill] sm:$0xff] %v2666_v59  ;;  %2010 = vrsqrt.f32 %v2663_v38  ;;  %v755_v29 = vmul.f32 %v2666_v59, %v2666_v59  ;;  %v1118_v49 = vmul.f32 %v2672_v54, %v2644_v12  ;;  %v1106_v21 = vsel %vm1105_vm10, %v2603_v18, %v1102_v61 }
 0x1aa   : > { %2012 = vrsqrt.f32 %v2677_v39  ;;  %v1388_v41 = vmul.f32 0.044715, %v2669_v26  ;;  %v959_v40 = vmul.f32 %v2661_v58, %v958_v25  ;;  %v1483_v43 = vadd.f32 %v1451_v44, %v2639_v16 }
 0x1ab   : > { %v807_v51 = vsel %vm342_vm0, %v755_v29, 0.0  ;;  %v1119_v3 = vmul.f32 %v2672_v54, %v1118_v49  ;;  %v1273_v29 = vmul.f32 %v1106_v21, %v2392_v5  ;;  %v1116_v32 = vsel %vm1115_vm13, %v2630_v13, %v1112_v60 }
 0x1ac   : > { %v788_v45 = vpop.xlane.xlu1 %787  ;;  %808 = vadd.xlane.f32.xlu0 %v807_v51  ;;  %v1420_v15 = vmul.f32 %v1388_v41, %v2669_v26  ;;  %v960_v25 = vmul.f32 0.5, %v959_v40  ;;  %v1515_v33 = vmul.f32 0.7978846, %v1483_v43  ;;  %v1274_v13 = vmul.f32 %v1116_v32, %v2409_v55 }
 0x1ad   : > { %v876_v42 = vmul.f32 %v788_v45, %v2380_v52  ;;  %v1120_v45 = vmul.f32 0.5, %v1119_v3  ;;  %vm964_vm15 = vweird.f32 %v2661_v58  ;;  %vm1124_vm3 = vweird.f32 %v2672_v54 }
 0x1ae   : > { %v1452_v18 = vmul.f32 %v1420_v15, %v2669_v26  ;;  %vm2746_vm2 = vmor %vm963_vm14, %vm964_vm15  ;;  %vm1133_vm4 = vweird.f32 %v2663_v38  ;;  %vm983_vm6 = vweird.f32 %v2677_v39 }
 0x1af   : > { %v2694_v50 = vpop.eup %2010  ;;  %v2698_v0 = vadd.f32 1e-05, %v876_v42  ;;  %v961_v42 = vsub.f32 1.5, %v960_v25  ;;  %v1121_v3 = vsub.f32 1.5, %v1120_v45  ;;  %v1307_v45 = vmul.f32 %v2612_v31, %v1274_v13  ;;  %vm2773_vm7 = vmor %vm1123_vm1, %vm1124_vm3 }
 0x1b0   : > { %v1128_v46 = vmul.f32 %v2694_v50, %v2663_v38  ;;  %v2704_v24 = vpop.eup %2012  ;;  %v1484_v49 = vadd.f32 %v1452_v18, %v2669_v26  ;;  %vm1134_vm5 = vweird.f32 %v2694_v50 }
 0x1b1   : > { %2014 = vrsqrt.f32 %v2698_v0  ;;  %v978_v51 = vmul.f32 %v2704_v24, %v2677_v39  ;;  %vm2789_vm8 = vmor %vm1133_vm4, %vm1134_vm5  ;;  %vm984_vm9 = vweird.f32 %v2704_v24  ;;  %vm973_vm12 = vweird.f32 %v2698_v0 }
 0x1b2   : > { %v1129_v61 = vmul.f32 %v2694_v50, %v1128_v46  ;;  %v1306_v46 = vmul.f32 %v2612_v31, %v1273_v29  ;;  %v1516_v43 = vmul.f32 0.7978846, %v1484_v49  ;;  %2016 = vtanh.f32 %v1515_v33  ;;  %vm2829_vm11 = vmor %vm983_vm6, %vm984_vm9 }
 0x1b3   : > { %v979_v59 = vmul.f32 %v2704_v24, %v978_v51  ;;  %v962_v29 = vmul.f32 %v2661_v58, %v961_v42  ;;  %v1355_v49 = vmul.f32 0.5, %v2639_v16  ;;  %v1122_v42 = vmul.f32 %v2672_v54, %v1121_v3 }
 0x1b4   : > { %v794_v41 = vpop.xlane.xlu0 %793  ;;  %v839_v40 = vpop.xlane.xlu1 %838  ;;  %v1130_v44 = vmul.f32 0.5, %v1129_v61  ;;  %v2739_v33 = vadd.f32 %v2619_v19, %v1306_v46 }
 0x1b5   : > { %v878_v5 = vmul.f32 %v794_v41, %v2380_v52  ;;  %v893_v15 = vmul.f32 %v839_v40, %v2380_v52  ;;  %v842_v21 = vpop.xlane.xlu2 %841  ;;  %v980_v41 = vmul.f32 0.5, %v979_v59 }
 0x1b6   : > { %v1131_v61 = vsub.f32 1.5, %v1130_v44  ;;  %v894_v51 = vmul.f32 %v842_v21, %v2380_v52 }
 0x1b7   : > { %v2721_v60 = vpop.eup %2014  ;;  %v2724_v18 = vadd.f32 1e-05, %v878_v5  ;;  %v2732_v55 = vadd.f32 1e-05, %v893_v15  ;;  %v966_v5 = vsel %vm2746_vm2, %v2661_v58, %v962_v29  ;;  %v981_v29 = vsub.f32 1.5, %v980_v41 }
 0x1b8   : > { %v968_v25 = vmul.f32 %v2721_v60, %v2698_v0  ;;  %v2017_v59 = vpop.eup %2016  ;;  %v1132_v1 = vmul.f32 %v2694_v50, %v1131_v61  ;;  %v2760_v46 = vadd.f32 1e-05, %v894_v51  ;;  %v2778_v61 = vmul.f32 0.5, %v2739_v33 }
 0x1b9   : > { %2018 = vrsqrt.f32 %v2724_v18  ;;  %v1126_v51 = vsel %vm2773_vm7, %v2672_v54, %v1122_v42  ;;  %v1579_v41 = vadd.f32 1.0, %v2017_v59  ;;  %v982_v58 = vmul.f32 %v2704_v24, %v981_v29 }
 0x1ba   : > { %v969_v32 = vmul.f32 %v2721_v60, %v968_v25  ;;  %2020 = vtanh.f32 %v1516_v43  ;;  %v1356_v43 = vmul.f32 0.5, %v2669_v26  ;;  %v2767_v25 = vadd.f32 %v2619_v19, %v1307_v45 }
 0x1bb   : > { %2022 = vrsqrt.f32 %v2732_v55  ;;  %v1259_v26 = vmul.f32 %v966_v5, %v2423_v36  ;;  %v1136_v36 = vsel %vm2789_vm8, %v2694_v50, %v1132_v1  ;;  %v1275_v59 = vmul.f32 %v1126_v51, %v2420_v35 }
 0x1bc   : > { %v667_v16 = vpop.xlane.xlu0 %666  ;;  %v797_v44 = vpop.xlane.xlu1 %796  ;;  %v970_v15 = vmul.f32 0.5, %v969_v32  ;;  %v1403_v32 = vmul.f32 0.044715, %v2739_v33  ;;  %2024 = vrsqrt.f32 %v2760_v46  ;;  %vm974_vm10 = vweird.f32 %v2721_v60 }
 0x1bd   : > { %v664_v21 = vpop.xlane.xlu2 %663  ;;  %v879_v13 = vmul.f32 %v797_v44, %v2380_v52  ;;  %v710_v5 = vmul.f32 %v2380_v52, %v667_v16  ;;  %v1276_v50 = vmul.f32 %v1136_v36, %v2441_v56  ;;  %v1611_v1 = vmul.f32 %v1579_v41, %v1355_v49  ;;  %vm2854_vm13 = vmor %vm973_vm12, %vm974_vm10 }
 0x1be   : > { %v709_v45 = vmul.f32 %v2380_v52, %v664_v21  ;;  %v971_v44 = vsub.f32 1.5, %v970_v15  ;;  %v1404_v51 = vmul.f32 0.044715, %v2767_v25  ;;  %v2837_v41 = vmul.f32 0.5, %v2767_v25 }
 0x1bf   : > { %v2764_v3 = vpop.eup %2018  ;;  %v2798_v54 = vadd.f32 1e-05, %v879_v13  ;;  %v2816_v8 = vsub.f32 %v2492_v10, %v710_v5  ;;  %vm993_vm14 = vweird.f32 %v2724_v18  ;;  %vm1143_vm1 = vweird.f32 %v2732_v55 }
 0x1c0   : > { %v2021_v40 = vpop.eup %2020  ;;  %v988_v38 = vmul.f32 %v2764_v3, %v2724_v18  ;;  %v2812_v16 = vsub.f32 %v2496_v53, %v709_v45  ;;  %vm994_vm15 = vweird.f32 %v2764_v3  ;;  %vm1153_vm2 = vweird.f32 %v2760_v46 }
 0x1c1   : > { %v1580_v42 = vadd.f32 1.0, %v2021_v40  ;;  %v2804_v21 = vpop.eup %2022  ;;  %2026 = vrsqrt.f32 %v2798_v54  ;;  %v972_v40 = vmul.f32 %v2721_v60, %v971_v44  ;;  %v1308_v44 = vmul.f32 %v2612_v31, %v1275_v59  ;;  %vm2934_vm4 = vmor %vm993_vm14, %vm994_vm15 }
 0x1c2   : > { %v989_v37 = vmul.f32 %v2764_v3, %v988_v38  ;;  %v1138_v56 = vmul.f32 %v2804_v21, %v2732_v55  ;;  %v2839_v36 = vpop.eup %2024  ;;  %v773_v0 = vmul.f32 %v2812_v16, %v2812_v16  ;;  %v1436_v59 = vmul.f32 %v1404_v51, %v2767_v25 }
 0x1c3   : > { %v1612_v15 = vmul.f32 %v1580_v42, %v1356_v43  ;;  %v1292_v43 = vmul.f32 %v2612_v31, %v1259_v26  ;;  %v986_v26 = vsel %vm2829_vm11, %v2704_v24, %v982_v58  ;;  %v774_v24 = vmul.f32 %v2816_v8, %v2816_v8 }
 0x1c4   : > { %v848_v13 = vpop.xlane.xlu1 %847  ;;  %v616_v12 = vpop.xlane.xlu0 %615  ;;  %v1435_v42 = vmul.f32 %v1403_v32, %v2739_v33  ;;  %v1309_v58 = vmul.f32 %v2612_v31, %v1276_v50  ;;  %v2876_v51 = vadd.f32 %v2619_v19, %v1308_v44  ;;  %v1261_v50 = vmul.f32 %v986_v26, %v2447_v62 }
 0x1c5   : > { %v896_v35 = vmul.f32 %v848_v13, %v2380_v52  ;;  %v800_v29 = vpop.xlane.xlu2 %799  ;;  %v1643_v53 = vpack.c.bf16 %v1612_v15, %v1611_v1  ;;  %v976_v1 = vsel %vm2854_vm13, %v2721_v60, %v972_v40  ;;  %v990_v15 = vmul.f32 0.5, %v989_v37 }
 0x1c6   : > { %v880_v49 = vmul.f32 %v800_v29, %v2380_v52  ;;  %v1139_v13 = vmul.f32 %v2804_v21, %v1138_v56  ;;  %v1148_v29 = vmul.f32 %v2839_v36, %v2760_v46  ;;  %v693_v32 = vmul.f32 %v2380_v52, %v616_v12 }
 0x1c7   : > { %v2834_v45 = vadd.f32 1e-05, %v896_v35  ;;  %1960 = vmatmul.msk.bf16.vlgmr.msra.gmra.mxu1 %vm342_vm0, %v1643_v53  ;;  %v2850_v5 = vpop.eup %2026  ;;  %v2869_v35 = vadd.f32 %v2619_v19, %v1292_v43  ;;  %v861_v60 = vsel %vm342_vm0, %v773_v0, 0.0  ;;  %v1260_v53 = vmul.f32 %v976_v1, %v2454_v4 }
 0x1c8   : > { %v2846_v39 = vadd.f32 1e-05, %v880_v49  ;;  %v998_v37 = vmul.f32 %v2850_v5, %v2798_v54  ;;  %862 = vadd.xlane.f32.xlu2 %v861_v60  ;;  %v864_v49 = vsel %vm342_vm0, %v774_v24, 0.0  ;;  %v1467_v43 = vmul.f32 %v1435_v42, %v2739_v33 }
 0x1c9   : > { %2028 = vrsqrt.f32 %v2834_v45  ;;  %v1468_v12 = vmul.f32 %v1436_v59, %v2767_v25  ;;  %v2887_v44 = vadd.f32 %v2619_v19, %v1309_v58  ;;  %v991_v62 = vsub.f32 1.5, %v990_v15  ;;  %865 = vadd.xlane.f32.xlu0 %v864_v49 }
 0x1ca   : > { %2030 = vrsqrt.f32 %v2846_v39  ;;  %v1140_v26 = vmul.f32 0.5, %v1139_v13  ;;  %v1149_v4 = vmul.f32 %v2839_v36, %v1148_v29  ;;  %v2894_v38 = vsub.f32 %v2510_v27, %v693_v32 }
 0x1cb   : > { %v1499_v24 = vadd.f32 %v1467_v43, %v2739_v33  ;;  %v1500_v42 = vadd.f32 %v1468_v12, %v2767_v25  ;;  %v1294_v59 = vmul.f32 %v2612_v31, %v1261_v50  ;;  %v999_v58 = vmul.f32 %v2850_v5, %v998_v37 }
 0x1cc   : > { %v845_v40 = vpop.xlane.xlu0 %844  ;;  %v619_v56 = vpop.xlane.xlu1 %618  ;;  %v1293_v29 = vmul.f32 %v2612_v31, %v1260_v53  ;;  %v992_v33 = vmul.f32 %v2764_v3, %v991_v62  ;;  %v1141_v25 = vsub.f32 1.5, %v1140_v26  ;;  %v1150_v60 = vmul.f32 0.5, %v1149_v4 }
 0x1cd   : > { %v673_v10 = vpop.xlane.xlu2 %672  ;;  %v1531_v27 = vmul.f32 0.7978846, %v1499_v24  ;;  %v1532_v32 = vmul.f32 0.7978846, %v1500_v42  ;;  %v895_v49 = vmul.f32 %v845_v40, %v2380_v52  ;;  %v757_v53 = vmul.f32 %v2894_v38, %v2894_v38 }
 0x1ce   : > { %v712_v15 = vmul.f32 %v2380_v52, %v673_v10  ;;  %v1000_v43 = vmul.f32 0.5, %v999_v58  ;;  %v694_v40 = vmul.f32 %v2380_v52, %v619_v56  ;;  %v2925_v58 = vadd.f32 %v2619_v19, %v1294_v59 }
 0x1cf   : > { %v2890_v0 = vpop.eup %2028  ;;  %2032 = vtanh.f32 %v1531_v27  ;;  %v2920_v42 = vadd.f32 1e-05, %v895_v49  ;;  %v813_v4 = vsel %vm342_vm0, %v757_v53, 0.0  ;;  %vm1144_vm3 = vweird.f32 %v2804_v21 }
 0x1d0   : > { %v1168_v1 = vmul.f32 %v2890_v0, %v2834_v45  ;;  %v2903_v13 = vpop.eup %2030  ;;  %2034 = vtanh.f32 %v1532_v32  ;;  %v2916_v10 = vsub.f32 %v2530_v2, %v712_v15  ;;  %814 = vadd.xlane.f32.xlu1 %v813_v4  ;;  %v1151_v56 = vsub.f32 1.5, %v1150_v60  ;;  %vm2964_vm7 = vmor %vm1143_vm1, %vm1144_vm3 }
 0x1d1   : > { %v1008_v37 = vmul.f32 %v2903_v13, %v2846_v39  ;;  %vm1154_vm5 = vweird.f32 %v2839_v36  ;;  %vm1003_vm6 = vweird.f32 %v2798_v54  ;;  %2036 = vrsqrt.f32 %v2920_v42 }
 0x1d2   : > { %v1169_v50 = vmul.f32 %v2890_v0, %v1168_v1  ;;  %v2942_v59 = vsub.f32 %v2536_v63, %v694_v40  ;;  %v2945_v32 = vadd.f32 %v2619_v19, %v1293_v29  ;;  %v996_v18 = vsel %vm2934_vm4, %v2764_v3, %v992_v33  ;;  %vm2986_vm11 = vmor %vm1153_vm2, %vm1154_vm5 }
 0x1d3   : > { %v1009_v24 = vmul.f32 %v2903_v13, %v1008_v37  ;;  %v1001_v49 = vsub.f32 1.5, %v1000_v43  ;;  %v776_v4 = vmul.f32 %v2916_v10, %v2916_v10  ;;  %vm1004_vm8 = vweird.f32 %v2850_v5 }
 0x1d4   : > { %v1170_v12 = vmul.f32 0.5, %v1169_v50  ;;  %v803_v62 = vpop.xlane.xlu0 %802  ;;  %v670_v26 = vpop.xlane.xlu1 %669  ;;  %v1142_v50 = vmul.f32 %v2804_v21, %v1141_v25  ;;  %v758_v3 = vmul.f32 %v2942_v59, %v2942_v59  ;;  %v1152_v25 = vmul.f32 %v2839_v36, %v1151_v56  ;;  %vm3006_vm14 = vmor %vm1003_vm6, %vm1004_vm8 }
 0x1d5   : > { %v851_v1 = vpop.xlane.xlu2 %850  ;;  %v881_v15 = vmul.f32 %v803_v62, %v2380_v52  ;;  %v2033_v60 = vpop.eup %2032  ;;  %v1010_v62 = vmul.f32 0.5, %v1009_v24  ;;  %vm1173_vm9 = vweird.f32 %v2834_v45  ;;  %vm1174_vm10 = vweird.f32 %v2890_v0 }
 0x1d6   : > { %v897_v2 = vmul.f32 %v851_v1, %v2380_v52  ;;  %v1171_v53 = vsub.f32 1.5, %v1170_v12  ;;  %v2035_v63 = vpop.eup %2034  ;;  %v1595_v40 = vadd.f32 1.0, %v2033_v60  ;;  %v1262_v12 = vmul.f32 %v996_v18, %v2473_v23  ;;  %vm3021_vm15 = vmor %vm1173_vm9, %vm1174_vm10 }
 0x1d7   : > { %v2956_v29 = vadd.f32 1e-05, %v881_v15  ;;  %v1596_v43 = vadd.f32 1.0, %v2035_v63  ;;  %v1146_v24 = vsel %vm2964_vm7, %v2804_v21, %v1142_v50  ;;  %v870_v55 = vsel %vm342_vm0, %v776_v4, 0.0  ;;  %v2977_v1 = vpop.eup %2036 }
 0x1d8   : > { %v2951_v37 = vadd.f32 1e-05, %v897_v2  ;;  %v1002_v2 = vmul.f32 %v2850_v5, %v1001_v49  ;;  %v1011_v15 = vsub.f32 1.5, %v1010_v62  ;;  %v1627_v27 = vmul.f32 %v1595_v40, %v2778_v61  ;;  %871 = vadd.xlane.f32.xlu1 %v870_v55 }
 0x1d9   : > { %v1628_v56 = vmul.f32 %v1596_v43, %v2837_v41  ;;  %v1172_v21 = vmul.f32 %v2890_v0, %v1171_v53  ;;  %v1158_v18 = vmul.f32 %v2977_v1, %v2920_v42  ;;  %v816_v61 = vsel %vm342_vm0, %v758_v3, 0.0 }
 0x1da   : > { %2038 = vrsqrt.f32 %v2951_v37  ;;  %v1156_v50 = vsel %vm2986_vm11, %v2839_v36, %v1152_v25  ;;  %vm1013_vm12 = vweird.f32 %v2846_v39  ;;  %vm1014_vm13 = vweird.f32 %v2903_v13  ;;  %817 = vadd.xlane.f32.xlu2 %v816_v61 }
 0x1db   : > { %2040 = vrsqrt.f32 %v2956_v29  ;;  %v1651_v46 = vpack.c.bf16 %v1628_v56, %v1627_v27  ;;  %v711_v62 = vmul.f32 %v2380_v52, %v670_v26  ;;  %v1405_v36 = vmul.f32 0.044715, %v2876_v51  ;;  %vm3050_vm1 = vmor %vm1013_vm12, %vm1014_vm13 }
 0x1dc   : > { %v854_v60 = vpop.xlane.xlu0 %853  ;;  %v806_v41 = vpop.xlane.xlu1 %805  ;;  %v1406_v4 = vmul.f32 0.044715, %v2887_v44  ;;  %v1006_v40 = vsel %vm3006_vm14, %v2850_v5, %v1002_v2  ;;  %v1012_v26 = vmul.f32 %v2903_v13, %v1011_v15  ;;  %v1159_v3 = vmul.f32 %v2977_v1, %v1158_v18 }
 0x1dd   : > { %v898_v63 = vmul.f32 %v854_v60, %v2380_v52  ;;  %1968 = vmatmul.msk.bf16.vlgmr.msra.gmra.mxu3 %vm342_vm0, %v1651_v46  ;;  %v882_v33 = vmul.f32 %v806_v41, %v2380_v52  ;;  %v1277_v25 = vmul.f32 %v1146_v24, %v2464_v11  ;;  %v1278_v5 = vmul.f32 %v1156_v50, %v2470_v22 }
 0x1de   : > { %v1176_v45 = vsel %vm3021_vm15, %v2890_v0, %v1172_v21  ;;  %v1437_v43 = vmul.f32 %v1405_v36, %v2876_v51  ;;  %v1438_v2 = vmul.f32 %v1406_v4, %v2887_v44  ;;  %v1295_v11 = vmul.f32 %v2612_v31, %v1262_v12 }
 0x1df   : > { %v3038_v15 = vadd.f32 1e-05, %v898_v63  ;;  %v3040_v27 = vadd.f32 1e-05, %v882_v33  ;;  %v1263_v22 = vmul.f32 %v1006_v40, %v2489_v48  ;;  %v3055_v24 = vsub.f32 %v2557_v7, %v711_v62  ;;  %v622_v7 = vpop.xlane.xlu2 %621 }
 0x1e0   : > { %v3000_v49 = vpop.eup %2038  ;;  %v1469_v60 = vmul.f32 %v1437_v43, %v2876_v51  ;;  %v1016_v23 = vsel %vm3050_vm1, %v2903_v13, %v1012_v26  ;;  %v1160_v12 = vmul.f32 0.5, %v1159_v3  ;;  %v1470_v48 = vmul.f32 %v1438_v2, %v2887_v44 }
 0x1e1   : > { %v1178_v55 = vmul.f32 %v3000_v49, %v2951_v37  ;;  %v3042_v56 = vpop.eup %2040  ;;  %2042 = vrsqrt.f32 %v3038_v15  ;;  %v1310_v39 = vmul.f32 %v2612_v31, %v1277_v25  ;;  %v1280_v21 = vmul.f32 %v1176_v45, %v2514_v17 }
 0x1e2   : > { %v1501_v18 = vadd.f32 %v1469_v60, %v2876_v51  ;;  %2044 = vrsqrt.f32 %v3040_v27  ;;  %v1311_v61 = vmul.f32 %v2612_v31, %v1278_v5  ;;  %v1018_v13 = vmul.f32 %v3042_v56, %v2956_v29 }
 0x1e3   : > { %v1179_v41 = vmul.f32 %v3000_v49, %v1178_v55  ;;  %v1502_v50 = vadd.f32 %v1470_v48, %v2887_v44  ;;  %v1296_v46 = vmul.f32 %v2612_v31, %v1263_v22  ;;  %v1264_v53 = vmul.f32 %v1016_v23, %v2504_v6 }
 0x1e4   : > { %v1533_v62 = vmul.f32 0.7978846, %v1501_v18  ;;  %v775_v17 = vmul.f32 %v3055_v24, %v3055_v24  ;;  %v3077_v36 = vadd.f32 %v2619_v19, %v1295_v11  ;;  %v1161_v4 = vsub.f32 1.5, %v1160_v12 }
 0x1e5   : > { %v1534_v63 = vmul.f32 0.7978846, %v1502_v50  ;;  %v695_v40 = vmul.f32 %v2380_v52, %v622_v7  ;;  %v3081_v54 = vadd.f32 %v2619_v19, %v1310_v39  ;;  %v1313_v26 = vmul.f32 %v2612_v31, %v1280_v21 }
 0x1e6   : > { %2046 = vtanh.f32 %v1533_v62  ;;  %v867_v3 = vsel %vm342_vm0, %v775_v17, 0.0  ;;  %v1180_v33 = vmul.f32 0.5, %v1179_v41  ;;  %v1019_v25 = vmul.f32 %v3042_v56, %v1018_v13 }
 0x1e7   : > { %v3085_v6 = vpop.eup %2042  ;;  %2048 = vtanh.f32 %v1534_v63  ;;  %868 = vadd.xlane.f32.xlu0 %v867_v3  ;;  %v1389_v5 = vmul.f32 0.044715, %v2869_v35  ;;  %v3092_v43 = vadd.f32 %v2619_v19, %v1311_v61  ;;  %v3095_v55 = vadd.f32 %v2619_v19, %v1296_v46 }
 0x1e8   : > { %v3089_v45 = vpop.eup %2044  ;;  %v1297_v2 = vmul.f32 %v2612_v31, %v1264_v53  ;;  %vm1163_vm2 = vweird.f32 %v2920_v42  ;;  %v1162_v11 = vmul.f32 %v2977_v1, %v1161_v4  ;;  %vm1164_vm3 = vweird.f32 %v2977_v1 }
 0x1e9   : > { %vm1183_vm4 = vweird.f32 %v2951_v37  ;;  %v1028_v22 = vmul.f32 %v3089_v45, %v3040_v27  ;;  %v3105_v0 = vsub.f32 %v2572_v20, %v695_v40  ;;  %v1373_v60 = vmul.f32 0.5, %v2876_v51  ;;  %vm3121_vm5 = vmor %vm1163_vm2, %vm1164_vm3 }
 0x1ea   : > { %v1188_v23 = vmul.f32 %v3085_v6, %v3038_v15  ;;  %v1390_v12 = vmul.f32 0.044715, %v2945_v32  ;;  %v1421_v48 = vmul.f32 %v1389_v5, %v2869_v35  ;;  %v3113_v39 = vadd.f32 %v2619_v19, %v1313_v26  ;;  %v625_v26 = vpop.xlane.xlu0 %624 }
 0x1eb   : > { %v1181_v21 = vsub.f32 1.5, %v1180_v33  ;;  %v1020_v18 = vmul.f32 0.5, %v1019_v25  ;;  %v1029_v7 = vmul.f32 %v3089_v45, %v1028_v22  ;;  %v3117_v20 = vadd.f32 %v2619_v19, %v1297_v2 }
 0x1ec   : > { %v2047_v61 = vpop.eup %2046  ;;  %v1374_v41 = vmul.f32 0.5, %v2887_v44  ;;  %v1422_v13 = vmul.f32 %v1390_v12, %v2945_v32  ;;  %v1453_v50 = vmul.f32 %v1421_v48, %v2869_v35  ;;  %v1166_v53 = vsel %vm3121_vm5, %v2977_v1, %v1162_v11 }
 0x1ed   : > { %v2049_v46 = vpop.eup %2048  ;;  %vm1023_vm6 = vweird.f32 %v2956_v29  ;;  %v1597_v62 = vadd.f32 1.0, %v2047_v61  ;;  %v1030_v17 = vmul.f32 0.5, %v1029_v7  ;;  %v759_v42 = vmul.f32 %v3105_v0, %v3105_v0 }
 0x1ee   : > { %v1598_v4 = vadd.f32 1.0, %v2049_v46  ;;  %v1189_v63 = vmul.f32 %v3085_v6, %v1188_v23  ;;  %v1454_v44 = vmul.f32 %v1422_v13, %v2945_v32  ;;  %v1485_v40 = vadd.f32 %v1453_v50, %v2869_v35 }
 0x1ef   : > { %v1182_v3 = vmul.f32 %v3000_v49, %v1181_v21  ;;  %vm1184_vm7 = vweird.f32 %v3000_v49  ;;  %v1021_v1 = vsub.f32 1.5, %v1020_v18  ;;  %v1629_v33 = vmul.f32 %v1597_v62, %v1373_v60 }
 0x1f0   : > { %v1630_v25 = vmul.f32 %v1598_v4, %v1374_v41  ;;  %v1031_v5 = vsub.f32 1.5, %v1030_v17  ;;  %v1486_v2 = vadd.f32 %v1454_v44, %v2945_v32  ;;  %v1517_v11 = vmul.f32 0.7978846, %v1485_v40  ;;  %vm3146_vm9 = vmor %vm1183_vm4, %vm1184_vm7 }
 0x1f1   : > { %v1279_v22 = vmul.f32 %v1166_v53, %v2525_v28  ;;  %vm1024_vm8 = vweird.f32 %v3042_v56  ;;  %v819_v23 = vsel %vm342_vm0, %v759_v42, 0.0  ;;  %v696_v12 = vmul.f32 %v2380_v52, %v625_v26 }
 0x1f2   : > { %v1652_v60 = vpack.c.bf16 %v1630_v25, %v1629_v33  ;;  %v1190_v21 = vmul.f32 0.5, %v1189_v63  ;;  %v1518_v18 = vmul.f32 0.7978846, %v1486_v2  ;;  %2050 = vtanh.f32 %v1517_v11  ;;  %820 = vadd.xlane.f32.xlu2 %v819_v23  ;;  %vm3173_vm13 = vmor %vm1023_vm6, %vm1024_vm8 }
 0x1f3   : > { %v1186_v28 = vsel %vm3146_vm9, %v3000_v49, %v1182_v3  ;;  %v1022_v7 = vmul.f32 %v3042_v56, %v1021_v1  ;;  %vm1034_vm10 = vweird.f32 %v3089_v45  ;;  %v3156_v61 = vsub.f32 %v2590_v34, %v696_v12 }
 0x1f4   : > { %1969 = vmatmul.msk.bf16.gmra.mxu3 %vm342_vm0, %v1652_v60  ;;  %vm1193_vm11 = vweird.f32 %v3038_v15  ;;  %v1032_v37 = vmul.f32 %v3089_v45, %v1031_v5  ;;  %2052 = vtanh.f32 %v1518_v18  ;;  %v1407_v51 = vmul.f32 0.044715, %v3081_v54 }
 0x1f5   : > { %v1408_v41 = vmul.f32 0.044715, %v3092_v43  ;;  %v1312_v49 = vmul.f32 %v2612_v31, %v1279_v22  ;;  %vm1033_vm12 = vweird.f32 %v3040_v27  ;;  %v1357_v13 = vmul.f32 0.5, %v2869_v35 }
 0x1f6   : > { %v760_v34 = vmul.f32 %v3156_v61, %v3156_v61  ;;  %v1281_v50 = vmul.f32 %v1186_v28, %v2549_v57  ;;  %v1191_v53 = vsub.f32 1.5, %v1190_v21  ;;  %v1358_v62 = vmul.f32 0.5, %v2945_v32  ;;  %vm3184_vm14 = vmor %vm1033_vm12, %vm1034_vm10 }
 0x1f7   : > { %v1439_v27 = vmul.f32 %v1407_v51, %v3081_v54  ;;  %v1026_v35 = vsel %vm3173_vm13, %v3042_v56, %v1022_v7  ;;  %v1440_v29 = vmul.f32 %v1408_v41, %v3092_v43  ;;  %v1391_v42 = vmul.f32 0.044715, %v2925_v58 }
 0x1f8   : > { %v822_v17 = vsel %vm342_vm0, %v760_v34, 0.0  ;;  %v2051_v4 = vpop.eup %2050  ;;  %vm1194_vm15 = vweird.f32 %v3085_v6  ;;  %v1036_v32 = vsel %vm3184_vm14, %v3089_v45, %v1032_v37  ;;  %v1392_v63 = vmul.f32 0.044715, %v3077_v36 }
 0x1f9   : > { %v1471_v56 = vmul.f32 %v1439_v27, %v3081_v54  ;;  %823 = vadd.xlane.f32.xlu0 %v822_v17  ;;  %v3198_v44 = vadd.f32 %v2619_v19, %v1312_v49  ;;  %v1581_v40 = vadd.f32 1.0, %v2051_v4  ;;  %v1472_v26 = vmul.f32 %v1440_v29, %v3092_v43  ;;  %vm3215_vm1 = vmor %vm1193_vm11, %vm1194_vm15 }
 0x1fa   : > { %v1423_v3 = vmul.f32 %v1391_v42, %v2925_v58  ;;  %v2053_v1 = vpop.eup %2052  ;;  %v1265_v33 = vmul.f32 %v1026_v35, %v2543_v47  ;;  %v1192_v25 = vmul.f32 %v3085_v6, %v1191_v53  ;;  %v1424_v5 = vmul.f32 %v1392_v63, %v3077_v36  ;;  %v857_v53 = vpop.xlane.xlu1 %856 }
 0x1fb   : > { %v1503_v45 = vadd.f32 %v1471_v56, %v3081_v54  ;;  %v1266_v2 = vmul.f32 %v1036_v32, %v2562_v9  ;;  %v1582_v11 = vadd.f32 1.0, %v2053_v1  ;;  %v1504_v22 = vadd.f32 %v1472_v26, %v3092_v43 }
 0x1fc   : > { %v1455_v23 = vmul.f32 %v1423_v3, %v2925_v58  ;;  %v1613_v12 = vmul.f32 %v1581_v40, %v1357_v13  ;;  %v1456_v60 = vmul.f32 %v1424_v5, %v3077_v36  ;;  %v1393_v21 = vmul.f32 0.044715, %v3095_v55 }
 0x1fd   : > { %v1535_v48 = vmul.f32 0.7978846, %v1503_v45  ;;  %v1614_v9 = vmul.f32 %v1582_v11, %v1358_v62  ;;  %v1536_v18 = vmul.f32 0.7978846, %v1504_v22  ;;  %v1394_v7 = vmul.f32 0.044715, %v3117_v20 }
 0x1fe   : > { %v1487_v28 = vadd.f32 %v1455_v23, %v2925_v58  ;;  %v1196_v37 = vsel %vm3215_vm1, %v3085_v6, %v1192_v25  ;;  %v1488_v51 = vadd.f32 %v1456_v60, %v3077_v36  ;;  %v1425_v41 = vmul.f32 %v1393_v21, %v3095_v55 }
 0x1ff   : > { %2054 = vtanh.f32 %v1535_v48  ;;  %v1644_v15 = vpack.c.bf16 %v1614_v9, %v1613_v12  ;;  %v1426_v13 = vmul.f32 %v1394_v7, %v3117_v20  ;;  %v1298_v34 = vmul.f32 %v2612_v31, %v1265_v33 }
 0x200   : > { %2056 = vtanh.f32 %v1536_v18  ;;  %v1519_v49 = vmul.f32 0.7978846, %v1487_v28  ;;  %v1299_v46 = vmul.f32 %v2612_v31, %v1266_v2  ;;  %v1520_v62 = vmul.f32 0.7978846, %v1488_v51 }
 0x201   : > { %v1282_v27 = vmul.f32 %v1196_v37, %v2565_v14  ;;  %1961 = vmatmul.msk.bf16.gmra.mxu1 %vm342_vm0, %v1644_v15  ;;  %v1458_v6 = vmul.f32 %v1426_v13, %v3117_v20  ;;  %v1409_v35 = vmul.f32 0.044715, %v3198_v44  ;;  %v1410_v57 = vmul.f32 0.044715, %v3113_v39 }
 0x202   : > { %2058 = vtanh.f32 %v1519_v49  ;;  %v1314_v29 = vmul.f32 %v2612_v31, %v1281_v50  ;;  %v899_v17 = vmul.f32 %v857_v53, %v2380_v52  ;;  %v1457_v42 = vmul.f32 %v1425_v41, %v3095_v55 }
 0x203   : > { %2060 = vtanh.f32 %v1520_v62  ;;  %v3238_v32 = vadd.f32 %v2619_v19, %v1298_v34  ;;  %v3241_v14 = vadd.f32 %v2619_v19, %v1299_v46  ;;  %v1441_v56 = vmul.f32 %v1409_v35, %v3198_v44 }
 0x204   : > { %v1442_v63 = vmul.f32 %v1410_v57, %v3113_v39  ;;  %v1315_v26 = vmul.f32 %v2612_v31, %v1282_v27  ;;  %v1375_v50 = vmul.f32 0.5, %v3081_v54  ;;  %v1376_v3 = vmul.f32 0.5, %v3092_v43 }
 0x205   : > { %v2055_v4 = vpop.eup %2054  ;;  %v1490_v25 = vadd.f32 %v1458_v6, %v3117_v20  ;;  %v1473_v45 = vmul.f32 %v1441_v56, %v3198_v44  ;;  %v3252_v11 = vadd.f32 %v2619_v19, %v1314_v29  ;;  %v1360_v23 = vmul.f32 0.5, %v3077_v36 }
 0x206   : > { %v2057_v40 = vpop.eup %2056  ;;  %v1599_v1 = vadd.f32 1.0, %v2055_v4  ;;  %v1474_v5 = vmul.f32 %v1442_v63, %v3113_v39  ;;  %v1489_v12 = vadd.f32 %v1457_v42, %v3095_v55  ;;  %v1396_v21 = vmul.f32 0.044715, %v3241_v14 }
 0x207   : > { %v1600_v33 = vadd.f32 1.0, %v2057_v40  ;;  %v1505_v43 = vadd.f32 %v1473_v45, %v3198_v44  ;;  %v3260_v47 = vadd.f32 %v2619_v19, %v1315_v26  ;;  %v1395_v28 = vmul.f32 0.044715, %v3238_v32 }
 0x208   : > { %v2059_v2 = vpop.eup %2058  ;;  %v1631_v22 = vmul.f32 %v1599_v1, %v1375_v50  ;;  %v1506_v60 = vadd.f32 %v1474_v5, %v3113_v39  ;;  %v1522_v37 = vmul.f32 0.7978846, %v1490_v25  ;;  %v3263_v41 = vadd.f32 1e-05, %v899_v17 }
 0x209   : > { %v2061_v54 = vpop.eup %2060  ;;  %v1632_v48 = vmul.f32 %v1600_v33, %v1376_v3  ;;  %v1583_v9 = vadd.f32 1.0, %v2059_v2  ;;  %v1537_v36 = vmul.f32 0.7978846, %v1505_v43  ;;  %v1359_v15 = vmul.f32 0.5, %v2925_v58 }
 0x20a   : > { %v1584_v18 = vadd.f32 1.0, %v2061_v54  ;;  %v1538_v51 = vmul.f32 0.7978846, %v1506_v60  ;;  %v1411_v13 = vmul.f32 0.044715, %v3252_v11  ;;  %v1428_v46 = vmul.f32 %v1396_v21, %v3241_v14 }
 0x20b   : > { %v1653_v7 = vpack.c.bf16 %v1632_v48, %v1631_v22  ;;  %v1521_v34 = vmul.f32 0.7978846, %v1489_v12  ;;  %2062 = vtanh.f32 %v1537_v36  ;;  %v1615_v53 = vmul.f32 %v1583_v9, %v1359_v15 }
 0x20c   : > { %v1616_v49 = vmul.f32 %v1584_v18, %v1360_v23  ;;  %2064 = vtanh.f32 %v1538_v51  ;;  %v1427_v62 = vmul.f32 %v1395_v28, %v3238_v32  ;;  %v1412_v27 = vmul.f32 0.044715, %v3260_v47 }
 0x20d   : > { %1970 = vmatmul.msk.bf16.gmra.mxu3 %vm342_vm0, %v1653_v7  ;;  %2066 = vtanh.f32 %v1522_v37  ;;  %v1443_v58 = vmul.f32 %v1411_v13, %v3252_v11  ;;  %v1460_v35 = vmul.f32 %v1428_v46, %v3241_v14  ;;  %v1377_v26 = vmul.f32 0.5, %v3198_v44 }
 0x20e   : > { %2068 = vrsqrt.f32 %v3263_v41  ;;  %v1645_v6 = vpack.c.bf16 %v1616_v49, %v1615_v53  ;;  %v1444_v57 = vmul.f32 %v1412_v27, %v3260_v47  ;;  %v1459_v4 = vmul.f32 %v1427_v62, %v3238_v32 }
 0x20f   : > { %2070 = vtanh.f32 %v1521_v34  ;;  %v1475_v29 = vmul.f32 %v1443_v58, %v3252_v11  ;;  %v1378_v50 = vmul.f32 0.5, %v3113_v39  ;;  %v1492_v45 = vadd.f32 %v1460_v35, %v3241_v14 }
 0x210   : > { %v812_v17 = vpop.xlane.xlu1 %811  ;;  %v1476_v56 = vmul.f32 %v1444_v57, %v3260_v47  ;;  %v1491_v43 = vadd.f32 %v1459_v4, %v3238_v32  ;;  %v1362_v7 = vmul.f32 0.5, %v3117_v20  ;;  %v1361_v15 = vmul.f32 0.5, %v3095_v55 }
 0x211   : > { %1962 = vmatmul.msk.bf16.gmra.mxu1 %vm342_vm0, %v1645_v6  ;;  %v2063_v42 = vpop.eup %2062  ;;  %v884_v63 = vmul.f32 %v812_v17, %v2380_v52  ;;  %v1507_v1 = vadd.f32 %v1475_v29, %v3252_v11  ;;  %v1524_v28 = vmul.f32 0.7978846, %v1492_v45  ;;  %v1380_v17 = vmul.f32 0.5, %v3260_v47 }
 0x212   : > { %v2065_v40 = vpop.eup %2064  ;;  %v1601_v3 = vadd.f32 1.0, %v2063_v42  ;;  %v1508_v5 = vadd.f32 %v1476_v56, %v3260_v47  ;;  %v1523_v51 = vmul.f32 0.7978846, %v1491_v43  ;;  %vm1203_vm3 = vweird.f32 %v3263_v41 }
 0x213   : > { %v2067_v33 = vpop.eup %2066  ;;  %v1602_v25 = vadd.f32 1.0, %v2065_v40  ;;  %v3285_v2 = vadd.f32 1e-05, %v884_v63  ;;  %v1539_v54 = vmul.f32 0.7978846, %v1507_v1  ;;  %v1379_v63 = vmul.f32 0.5, %v3252_v11 }
 0x214   : > { %v3287_v23 = vpop.eup %2068  ;;  %v1633_v12 = vmul.f32 %v1601_v3, %v1377_v26  ;;  %v1540_v60 = vmul.f32 0.7978846, %v1508_v5  ;;  %v1586_v21 = vadd.f32 1.0, %v2067_v33  ;;  %v1363_v11 = vmul.f32 0.5, %v3238_v32 }
 0x215   : > { %v2071_v48 = vpop.eup %2070  ;;  %v1634_v39 = vmul.f32 %v1602_v25, %v1378_v50  ;;  %2072 = vrsqrt.f32 %v3285_v2  ;;  %v1198_v9 = vmul.f32 %v3287_v23, %v3263_v41  ;;  %v1364_v25 = vmul.f32 0.5, %v3241_v14 }
 0x216   : > { %2074 = vtanh.f32 %v1540_v60  ;;  %v1585_v37 = vadd.f32 1.0, %v2071_v48  ;;  %v1618_v49 = vmul.f32 %v1586_v21, %v1362_v7  ;;  %vm1204_vm2 = vweird.f32 %v3287_v23 }
 0x217   : > { %v860_v22 = vpop.xlane.xlu2 %859  ;;  %v1654_v18 = vpack.c.bf16 %v1634_v39, %v1633_v12  ;;  %2076 = vtanh.f32 %v1539_v54  ;;  %v1199_v53 = vmul.f32 %v3287_v23, %v1198_v9  ;;  %vm1205_vm4 = vmor %vm1203_vm3, %vm1204_vm2  ;;  %vm1053_vm6 = vweird.f32 %v3285_v2 }
 0x218   : > { %v900_v44 = vmul.f32 %v860_v22, %v2380_v52  ;;  %2078 = vtanh.f32 %v1524_v28  ;;  %v1617_v62 = vmul.f32 %v1585_v37, %v1361_v15  ;;  %vm1816_vm14 = vcmask 23552  }
 0x219   : > { %v1200_v57 = vmul.f32 0.5, %v1199_v53 }
 0x21a   : > { %v3295_v36 = vadd.f32 1e-05, %v900_v44  ;;  %v1646_v6 = vpack.c.bf16 %v1618_v49, %v1617_v62  ;;  %v3704_v62 = vld [vmem:[#allocation3_spill] sm:$0xff] }
 0x21b   : > { %v2073_v46 = vpop.eup %2072  ;;  %v1201_v50 = vsub.f32 1.5, %v1200_v57 }
 0x21c   : > { %2080 = vrsqrt.f32 %v3295_v36  ;;  %v2075_v20 = vpop.eup %2074  ;;  %v1048_v55 = vmul.f32 %v2073_v46, %v3285_v2  ;;  %vm1054_vm5 = vweird.f32 %v2073_v46  ;;  %vm1213_vm9 = vweird.f32 %v3295_v36 }
 0x21d   : > { %1971 = vmatmul.msk.bf16.gmra.mxu3 %vm342_vm0, %v1654_v18  ;;  %2082 = vtanh.f32 %v1523_v51  ;;  %v2077_v27 = vpop.eup %2076  ;;  %v1604_v58 = vadd.f32 1.0, %v2075_v20  ;;  %v1202_v47 = vmul.f32 %v3287_v23, %v1201_v50  ;;  %vm1055_vm7 = vmor %vm1053_vm6, %vm1054_vm5  ;;  %v3703_v51 = vld [vmem:[#allocation2_spill] sm:$0xff] }
 0x21e   : > { %v2079_v29 = vpop.eup %2078  ;;  %v1603_v42 = vadd.f32 1.0, %v2077_v27  ;;  %v1049_v26 = vmul.f32 %v2073_v46, %v1048_v55 }
 0x21f   : > { %v809_v13 = vpop.xlane.xlu0 %808  ;;  %v1636_v40 = vmul.f32 %v1604_v58, %v1380_v17  ;;  %v1588_v3 = vadd.f32 1.0, %v2079_v29  ;;  %v1206_v14 = vsel %vm1205_vm4, %v3287_v23, %v1202_v47 }
 0x220   : > { %v883_v34 = vmul.f32 %v809_v13, %v2380_v52  ;;  %v1635_v1 = vmul.f32 %v1603_v42, %v1379_v63  ;;  %v1050_v22 = vmul.f32 0.5, %v1049_v26  ;;  %v1283_v9 = vmul.f32 %v1206_v14, %v2583_v30 }
 0x221   : > { %1963 = vmatmul.msk.bf16.gmra.mxu1 %vm342_vm0, %v1646_v6  ;;  %v1620_v12 = vmul.f32 %v1588_v3, %v1364_v25 }
 0x222   : > { %v3303_v35 = vadd.f32 1e-05, %v883_v34  ;;  %v2081_v4 = vpop.eup %2080  ;;  %v1655_v5 = vpack.c.bf16 %v1636_v40, %v1635_v1  ;;  %v1051_v39 = vsub.f32 1.5, %v1050_v22  ;;  %v1316_v28 = vmul.f32 %v2612_v31, %v1283_v9  ;;  %v3705_v40 = vld [vmem:[#allocation4_spill] sm:$0xff] }
 0x223   : > { %v2083_v56 = vpop.eup %2082  ;;  %v1208_v33 = vmul.f32 %v2081_v4, %v3295_v36  ;;  %vm1214_vm8 = vweird.f32 %v2081_v4  ;;  %v3335_v36 = vld [vmem:[%s3663_s5] ss:$0 sm:$0xff] }
 0x224   : > { %2084 = vrsqrt.f32 %v3303_v35  ;;  %v1587_v45 = vadd.f32 1.0, %v2083_v56  ;;  %v1052_v18 = vmul.f32 %v2073_v46, %v1051_v39  ;;  %v3324_v49 = vadd.f32 %v2619_v19, %v1316_v28  ;;  %vm1215_vm10 = vmor %vm1213_vm9, %vm1214_vm8 }
 0x225   : > { %v1209_v44 = vmul.f32 %v2081_v4, %v1208_v33  ;;  %vm1043_vm12 = vweird.f32 %v3303_v35 }
 0x226   : > { %v1619_v48 = vmul.f32 %v1587_v45, %v1363_v11  ;;  %v1056_v7 = vsel %vm1055_vm7, %v2073_v46, %v1052_v18  ;;  %v1413_v53 = vmul.f32 0.044715, %v3324_v49 }
 0x227   : > { %v1210_v21 = vmul.f32 0.5, %v1209_v44  ;;  %v1268_v15 = vmul.f32 %v1056_v7, %v3703_v51 }
 0x228   : > { %v1647_v43 = vpack.c.bf16 %v1620_v12, %v1619_v48  ;;  %v1445_v17 = vmul.f32 %v1413_v53, %v3324_v49 }
 0x229   : > { %v1211_v41 = vsub.f32 1.5, %v1210_v21  ;;  %v1301_v2 = vmul.f32 %v2612_v31, %v1268_v15 }
 0x22a   : > { %v2085_v54 = vpop.eup %2084  ;;  %v1477_v50 = vmul.f32 %v1445_v17, %v3324_v49 }
 0x22b   : > { %v1038_v60 = vmul.f32 %v2085_v54, %v3303_v35  ;;  %v1212_v23 = vmul.f32 %v2081_v4, %v1211_v41  ;;  %vm1044_vm11 = vweird.f32 %v2085_v54  ;;  %v3338_v55 = vadd.f32 %v2619_v19, %v1301_v2 }
 0x22c   : > { %vm1045_vm13 = vmor %vm1043_vm12, %vm1044_vm11  ;;  %v1509_v12 = vadd.f32 %v1477_v50, %v3324_v49 }
 0x22d   : > { %1972 = vmatmul.msk.bf16.gmra.mxu3 %vm342_vm0, %v1655_v5  ;;  %v1039_v32 = vmul.f32 %v2085_v54, %v1038_v60  ;;  %v1216_v13 = vsel %vm1215_vm10, %v2081_v4, %v1212_v23  ;;  %v1398_v63 = vmul.f32 0.044715, %v3338_v55 }
 0x22e   : > { %v1284_v46 = vmul.f32 %v1216_v13, %v3704_v62  ;;  %v1541_v18 = vmul.f32 0.7978846, %v1509_v12 }
 0x22f   : > { %v1040_v37 = vmul.f32 0.5, %v1039_v32  ;;  %v1430_v45 = vmul.f32 %v1398_v63, %v3338_v55 }
 0x230   : > { %v1317_v42 = vmul.f32 %v2612_v31, %v1284_v46 }
 0x231   : > { %1964 = vmatmul.msk.bf16.gmra.mxu1 %vm342_vm0, %v1647_v43  ;;  %v1041_v30 = vsub.f32 1.5, %v1040_v37  ;;  %v1462_v21 = vmul.f32 %v1430_v45, %v3338_v55 }
 0x232   : > { %v3362_v3 = vadd.f32 %v2619_v19, %v1317_v42 }
 0x233   : > { %v1042_v20 = vmul.f32 %v2085_v54, %v1041_v30  ;;  %v1494_v30 = vadd.f32 %v1462_v21, %v3338_v55 }
 0x234   : > { %v1414_v48 = vmul.f32 0.044715, %v3362_v3 }
 0x235   : > { %v1046_v4 = vsel %vm1045_vm13, %v2085_v54, %v1042_v20 }
 0x236   : > { %v1267_v26 = vmul.f32 %v1046_v4, %v3705_v40  ;;  %v1446_v60 = vmul.f32 %v1414_v48, %v3362_v3 }
 0x238   : > { %v1300_v22 = vmul.f32 %v2612_v31, %v1267_v26  ;;  %v1478_v7 = vmul.f32 %v1446_v60, %v3362_v3 }
 0x23a   : > { %v3386_v9 = vadd.f32 %v2619_v19, %v1300_v22  ;;  %v1510_v15 = vadd.f32 %v1478_v7, %v3362_v3 }
 0x23b   : > { %v863_v34 = vpop.xlane.xlu2 %862 }
 0x23c   : > { %v901_v27 = vmul.f32 %v863_v34, %v2380_v52  ;;  %v866_v6 = vpop.xlane.xlu0 %865  ;;  %v1397_v34 = vmul.f32 0.044715, %v3386_v9 }
 0x23d   : > { %v902_v58 = vmul.f32 %v866_v6, %v2380_v52 }
 0x23e   : > { %v3341_v57 = vadd.f32 1e-05, %v901_v27  ;;  %v1542_v27 = vmul.f32 0.7978846, %v1510_v15  ;;  %v1429_v17 = vmul.f32 %v1397_v34, %v3386_v9 }
 0x23f   : > { %v3343_v29 = vadd.f32 1e-05, %v902_v58  ;;  %v1526_v58 = vmul.f32 0.7978846, %v1494_v30 }
 0x240   : > { %2086 = vrsqrt.f32 %v3341_v57  ;;  %vm1223_vm2 = vweird.f32 %v3341_v57  ;;  %v1461_v63 = vmul.f32 %v1429_v17, %v3386_v9 }
 0x241   : > { %2088 = vrsqrt.f32 %v3343_v29  ;;  %vm1233_vm4 = vweird.f32 %v3343_v29 }
 0x243   : > { %v815_v1 = vpop.xlane.xlu1 %814 }
 0x244   : > { %v1736_v56 = vpop.f32.mrf.mxu1  ;;  %v885_v33 = vmul.f32 %v815_v1, %v2380_v52  ;;  %v1493_v1 = vadd.f32 %v1461_v63, %v3386_v9 }
 0x245   : > { %v1737_v35 = vadd.f32 %v3335_v36, %v1736_v56 }
 0x246   : > { %v3365_v25 = vpop.eup %2086  ;;  %v3373_v11 = vadd.f32 1e-05, %v885_v33 }
 0x247   : > { %1817 = vst.msk [vmem:[%s3352_s22] sm:$0xff] %vm1816_vm14, %v1737_v35  ;;  %v3368_v5 = vpop.eup %2088  ;;  %v1218_v47 = vmul.f32 %v3365_v25, %v3341_v57  ;;  %vm1224_vm15 = vweird.f32 %v3365_v25 }
 0x248   : > { %v1228_v54 = vmul.f32 %v3368_v5, %v3343_v29  ;;  %2090 = vrsqrt.f32 %v3373_v11  ;;  %vm1234_vm1 = vweird.f32 %v3368_v5  ;;  %vm3414_vm3 = vmor %vm1223_vm2, %vm1224_vm15  ;;  %vm1063_vm7 = vweird.f32 %v3373_v11 }
 0x249   : > { %v1219_v39 = vmul.f32 %v3365_v25, %v1218_v47  ;;  %2092 = vtanh.f32 %v1541_v18  ;;  %vm3421_vm5 = vmor %vm1233_vm4, %vm1234_vm1 }
 0x24a   : > { %v1229_v43 = vmul.f32 %v3368_v5, %v1228_v54 }
 0x24b   : > { %v1220_v32 = vmul.f32 0.5, %v1219_v39  ;;  %v872_v28 = vpop.xlane.xlu1 %871  ;;  %v1525_v39 = vmul.f32 0.7978846, %v1493_v1 }
 0x24c   : > { %v1738_v44 = vpop.f32.mrf.mxu1  ;;  %v1230_v41 = vmul.f32 0.5, %v1229_v43  ;;  %v904_v37 = vmul.f32 %v872_v28, %v2380_v52 }
 0x24d   : > { %v1739_v14 = vadd.f32 %v3335_v36, %v1738_v44  ;;  %v818_v23 = vpop.xlane.xlu2 %817  ;;  %v1221_v53 = vsub.f32 1.5, %v1220_v32  ;;  %v1381_v44 = vmul.f32 0.5, %v3324_v49 }
 0x24e   : > { %v886_v51 = vmul.f32 %v818_v23, %v2380_v52  ;;  %v3395_v13 = vpop.eup %2090  ;;  %v3397_v2 = vadd.f32 1e-05, %v904_v37  ;;  %v1231_v62 = vsub.f32 1.5, %v1230_v41 }
 0x24f   : > { %1818 = vst.msk [vmem:[%s3352_s22 + $0x8] sm:$0xff] %vm1816_vm14, %v1739_v14  ;;  %v1058_v46 = vmul.f32 %v3395_v13, %v3373_v11  ;;  %v1222_v42 = vmul.f32 %v3365_v25, %v1221_v53  ;;  %v2093_v56 = vpop.eup %2092  ;;  %vm1064_vm6 = vweird.f32 %v3395_v13 }
 0x250   : > { %v3402_v20 = vadd.f32 1e-05, %v886_v51  ;;  %2094 = vrsqrt.f32 %v3397_v2  ;;  %v1232_v4 = vmul.f32 %v3368_v5, %v1231_v62  ;;  %v1605_v22 = vadd.f32 1.0, %v2093_v56  ;;  %vm1065_vm8 = vmor %vm1063_vm7, %vm1064_vm6 }
 0x251   : > { %v1059_v6 = vmul.f32 %v3395_v13, %v1058_v46  ;;  %v1226_v57 = vsel %vm3414_vm3, %v3365_v25, %v1222_v42  ;;  %v1382_v25 = vmul.f32 0.5, %v3362_v3  ;;  %vm1253_vm12 = vweird.f32 %v3397_v2 }
 0x252   : > { %2096 = vrsqrt.f32 %v3402_v20  ;;  %v1236_v45 = vsel %vm3421_vm5, %v3368_v5, %v1232_v4  ;;  %v1285_v60 = vmul.f32 %v1226_v57, %v2812_v16  ;;  %v1637_v41 = vmul.f32 %v1605_v22, %v1381_v44 }
 0x253   : > { %2098 = vtanh.f32 %v1542_v27  ;;  %v1060_v35 = vmul.f32 0.5, %v1059_v6  ;;  %v1286_v21 = vmul.f32 %v1236_v45, %v2816_v8  ;;  %v1366_v27 = vmul.f32 0.5, %v3338_v55 }
 0x254   : > { %2100 = vtanh.f32 %v1526_v58  ;;  %v1318_v8 = vmul.f32 %v2612_v31, %v1285_v60  ;;  %v1365_v6 = vmul.f32 0.5, %v3386_v9  ;;  %vm1073_vm11 = vweird.f32 %v3402_v20 }
 0x255   : > { %v1061_v12 = vsub.f32 1.5, %v1060_v35  ;;  %2102 = vtanh.f32 %v1525_v39  ;;  %v1319_v16 = vmul.f32 %v2612_v31, %v1286_v21 }
 0x256   : > { %v3419_v26 = vpop.eup %2094  ;;  %v3461_v11 = vadd.f32 %v2619_v19, %v1318_v8 }
 0x257   : > { %v1248_v29 = vmul.f32 %v3419_v26, %v3397_v2  ;;  %v1062_v7 = vmul.f32 %v3395_v13, %v1061_v12  ;;  %v3464_v17 = vadd.f32 %v2619_v19, %v1319_v16  ;;  %vm1254_vm10 = vweird.f32 %v3419_v26 }
 0x258   : > { %v3426_v33 = vpop.eup %2096  ;;  %vm3482_vm15 = vmor %vm1253_vm12, %vm1254_vm10 }
 0x259   : > { %v2099_v47 = vpop.eup %2098  ;;  %v1068_v54 = vmul.f32 %v3426_v33, %v3402_v20  ;;  %v1249_v14 = vmul.f32 %v3419_v26, %v1248_v29  ;;  %v1066_v62 = vsel %vm1065_vm8, %v3395_v13, %v1062_v7  ;;  %vm1074_vm9 = vweird.f32 %v3426_v33 }
 0x25a   : > { %v869_v48 = vpop.xlane.xlu0 %868  ;;  %v1606_v43 = vadd.f32 1.0, %v2099_v47  ;;  %v2101_v32 = vpop.eup %2100  ;;  %v1269_v56 = vmul.f32 %v1066_v62, %v2894_v38  ;;  %vm3475_vm13 = vmor %vm1073_vm11, %vm1074_vm9  ;;  %v1415_v47 = vmul.f32 0.044715, %v3461_v11  ;;  %v1416_v44 = vmul.f32 0.044715, %v3464_v17 }
 0x25b   : > { %v903_v5 = vmul.f32 %v869_v48, %v2380_v52  ;;  %v1069_v18 = vmul.f32 %v3426_v33, %v1068_v54  ;;  %v1250_v3 = vmul.f32 0.5, %v1249_v14  ;;  %v1590_v15 = vadd.f32 1.0, %v2101_v32  ;;  %v2103_v53 = vpop.eup %2102 }
 0x25c   : > { %v1638_v28 = vmul.f32 %v1606_v43, %v1382_v25  ;;  %v1589_v58 = vadd.f32 1.0, %v2103_v53  ;;  %v1302_v29 = vmul.f32 %v2612_v31, %v1269_v56  ;;  %v1448_v43 = vmul.f32 %v1416_v44, %v3464_v17 }
 0x25d   : > { %v3445_v49 = vadd.f32 1e-05, %v903_v5  ;;  %v1070_v37 = vmul.f32 0.5, %v1069_v18  ;;  %v1251_v46 = vsub.f32 1.5, %v1250_v3  ;;  %v1622_v42 = vmul.f32 %v1590_v15, %v1366_v27 }
 0x25e   : > { %v1656_v23 = vpack.c.bf16 %v1638_v28, %v1637_v41  ;;  %v1621_v55 = vmul.f32 %v1589_v58, %v1365_v6  ;;  %v3506_v60 = vadd.f32 %v2619_v19, %v1302_v29  ;;  %v1480_v32 = vmul.f32 %v1448_v43, %v3464_v17 }
 0x25f   : > { %2104 = vrsqrt.f32 %v3445_v49  ;;  %v1071_v30 = vsub.f32 1.5, %v1070_v37  ;;  %v1252_v63 = vmul.f32 %v3419_v26, %v1251_v46  ;;  %vm1243_vm2 = vweird.f32 %v3445_v49 }
 0x260   : > { %v1776_v51 = vpop.f32.mrf.mxu3  ;;  %1973 = vmatmul.msk.bf16.gmra.mxu3 %vm342_vm0, %v1656_v23  ;;  %v1648_v50 = vpack.c.bf16 %v1622_v42, %v1621_v55  ;;  %v1399_v8 = vmul.f32 0.044715, %v3506_v60  ;;  %v1383_v58 = vmul.f32 0.5, %v3461_v11 }
 0x261   : > { %v1777_v34 = vadd.f32 %v3335_v36, %v1776_v51  ;;  %v1072_v13 = vmul.f32 %v3426_v33, %v1071_v30  ;;  %v1256_v12 = vsel %vm3482_vm15, %v3419_v26, %v1252_v63 }
 0x262   : > { %1965 = vmatmul.msk.bf16.gmra.mxu1 %vm342_vm0, %v1648_v50  ;;  %v1288_v5 = vmul.f32 %v1256_v12, %v2916_v10  ;;  %v1512_v10 = vadd.f32 %v1480_v32, %v3464_v17  ;;  %v1431_v15 = vmul.f32 %v1399_v8, %v3506_v60 }
 0x263   : > { %1833 = vst.msk [vmem:[%s3352_s22 + $0x80] sm:$0xff] %vm1816_vm14, %v1777_v34  ;;  %v1076_v20 = vsel %vm3475_vm13, %v3426_v33, %v1072_v13  ;;  %v1447_v33 = vmul.f32 %v1415_v47, %v3461_v11 }
 0x264   : > { %v1270_v39 = vmul.f32 %v1076_v20, %v2942_v59  ;;  %v1321_v28 = vmul.f32 %v2612_v31, %v1288_v5  ;;  %v1544_v23 = vmul.f32 0.7978846, %v1512_v10  ;;  %v1463_v62 = vmul.f32 %v1431_v15, %v3506_v60 }
 0x265   : > { %v2105_v4 = vpop.eup %2104  ;;  %v821_v35 = vpop.xlane.xlu2 %820  ;;  %v1479_v26 = vmul.f32 %v1447_v33, %v3461_v11  ;;  %v1367_v15 = vmul.f32 0.5, %v3506_v60 }
 0x266   : > { %v1238_v9 = vmul.f32 %v2105_v4, %v3445_v49  ;;  %v887_v40 = vmul.f32 %v821_v35, %v2380_v52  ;;  %vm1244_vm1 = vweird.f32 %v2105_v4  ;;  %v1303_v41 = vmul.f32 %v2612_v31, %v1270_v39 }
 0x267   : > { %v1511_v59 = vadd.f32 %v1479_v26, %v3461_v11  ;;  %vm1245_vm3 = vmor %vm1243_vm2, %vm1244_vm1  ;;  %v3525_v30 = vadd.f32 %v2619_v19, %v1321_v28  ;;  %v1495_v56 = vadd.f32 %v1463_v62, %v3506_v60  ;;  %v1384_v11 = vmul.f32 0.5, %v3464_v17 }
 0x268   : > { %v1239_v1 = vmul.f32 %v2105_v4, %v1238_v9  ;;  %v1778_v57 = vpop.f32.mrf.mxu3  ;;  %v3479_v45 = vadd.f32 1e-05, %v887_v40  ;;  %v3520_v16 = vadd.f32 %v2619_v19, %v1303_v41 }
 0x269   : > { %v1779_v2 = vadd.f32 %v3335_v36, %v1778_v57  ;;  %v1543_v37 = vmul.f32 0.7978846, %v1511_v59  ;;  %v1418_v63 = vmul.f32 0.044715, %v3525_v30  ;;  %v1527_v38 = vmul.f32 0.7978846, %v1495_v56 }
 0x26a   : > { %v1240_v54 = vmul.f32 0.5, %v1239_v1  ;;  %2106 = vrsqrt.f32 %v3479_v45  ;;  %vm1083_vm5 = vweird.f32 %v3479_v45 }
 0x26b   : > { %1834 = vst.msk [vmem:[%s3352_s22 + $0x88] sm:$0xff] %vm1816_vm14, %v1779_v2  ;;  %v1450_v22 = vmul.f32 %v1418_v63, %v3525_v30 }
 0x26c   : > { %v824_v48 = vpop.xlane.xlu0 %823  ;;  %v1241_v14 = vsub.f32 1.5, %v1240_v54 }
 0x26d   : > { %v888_v25 = vmul.f32 %v824_v48, %v2380_v52  ;;  %v1482_v54 = vmul.f32 %v1450_v22, %v3525_v30 }
 0x26e   : > { %v1242_v21 = vmul.f32 %v2105_v4, %v1241_v14 }
 0x26f   : > { %v3508_v18 = vadd.f32 1e-05, %v888_v25  ;;  %v1514_v25 = vadd.f32 %v1482_v54, %v3525_v30 }
 0x270   : > { %v2107_v52 = vpop.eup %2106  ;;  %v1246_v7 = vsel %vm1245_vm3, %v2105_v4, %v1242_v21  ;;  %v1400_v4 = vmul.f32 0.044715, %v3520_v16 }
 0x271   : > { %2108 = vrsqrt.f32 %v3508_v18  ;;  %v1078_v3 = vmul.f32 %v2107_v52, %v3479_v45  ;;  %v1287_v51 = vmul.f32 %v1246_v7, %v3055_v24  ;;  %vm1084_vm4 = vweird.f32 %v2107_v52 }
 0x272   : > { %2110 = vtanh.f32 %v1543_v37  ;;  %vm1085_vm6 = vmor %vm1083_vm5, %vm1084_vm4  ;;  %v1432_v50 = vmul.f32 %v1400_v4, %v3520_v16  ;;  %vm1093_vm8 = vweird.f32 %v3508_v18  ;;  %v1546_v59 = vmul.f32 0.7978846, %v1514_v25 }
 0x273   : > { %v1079_v49 = vmul.f32 %v2107_v52, %v1078_v3  ;;  %2112 = vtanh.f32 %v1544_v23  ;;  %v1320_v24 = vmul.f32 %v2612_v31, %v1287_v51 }
 0x274   : > { %v1464_v47 = vmul.f32 %v1432_v50, %v3520_v16  ;;  %2114 = vtanh.f32 %v1527_v38 }
 0x275   : > { %v1080_v34 = vmul.f32 0.5, %v1079_v49  ;;  %v3542_v45 = vadd.f32 %v2619_v19, %v1320_v24 }
 0x276   : > { %v1496_v48 = vadd.f32 %v1464_v47, %v3520_v16 }
 0x277   : > { %v2109_v53 = vpop.eup %2108  ;;  %v1081_v46 = vsub.f32 1.5, %v1080_v34  ;;  %v1781_v27 = vpop.f32.mrf.mxu3  ;;  %v1385_v63 = vmul.f32 0.5, %v3542_v45 }
 0x278   : > { %v1088_v6 = vmul.f32 %v2109_v53, %v3508_v18  ;;  %v1782_v42 = vadd.f32 %v3335_v36, %v1781_v27  ;;  %v2111_v13 = vpop.eup %2110  ;;  %vm1094_vm7 = vweird.f32 %v2109_v53  ;;  %v1528_v26 = vmul.f32 0.7978846, %v1496_v48 }
 0x279   : > { %v1082_v55 = vmul.f32 %v2107_v52, %v1081_v46  ;;  %v2113_v9 = vpop.eup %2112  ;;  %v1607_v40 = vadd.f32 1.0, %v2111_v13  ;;  %vm1095_vm9 = vmor %vm1093_vm8, %vm1094_vm7  ;;  %v1417_v18 = vmul.f32 0.044715, %v3542_v45 }
 0x27a   : > { %v1089_v35 = vmul.f32 %v2109_v53, %v1088_v6  ;;  %1835 = vst.msk [vmem:[%s3352_s22 + $0x90] sm:$0xff] %vm1816_vm14, %v1782_v42  ;;  %v1608_v29 = vadd.f32 1.0, %v2113_v9  ;;  %2116 = vtanh.f32 %v1528_v26 }
 0x27b   : > { %v1086_v1 = vsel %vm1085_vm6, %v2107_v52, %v1082_v55  ;;  %v1639_v2 = vmul.f32 %v1607_v40, %v1383_v58  ;;  %v1449_v32 = vmul.f32 %v1417_v18, %v3542_v45  ;;  %v2115_v52 = vpop.eup %2114  ;;  %2118 = vtanh.f32 %v1546_v59 }
 0x27c   : > { %v1090_v57 = vmul.f32 0.5, %v1089_v35  ;;  %v1271_v20 = vmul.f32 %v1086_v1, %v3105_v0  ;;  %v1640_v17 = vmul.f32 %v1608_v29, %v1384_v11  ;;  %v1591_v37 = vadd.f32 1.0, %v2115_v52 }
 0x27d   : > { %v1481_v28 = vmul.f32 %v1449_v32, %v3542_v45 }
 0x27e   : > { %v1091_v12 = vsub.f32 1.5, %v1090_v57  ;;  %v1741_v44 = vpop.f32.mrf.mxu1  ;;  %v1657_v14 = vpack.c.bf16 %v1640_v17, %v1639_v2  ;;  %v1304_v43 = vmul.f32 %v2612_v31, %v1271_v20  ;;  %v1623_v46 = vmul.f32 %v1591_v37, %v1367_v15 }
 0x27f   : > { %v1742_v33 = vadd.f32 %v3335_v36, %v1741_v44  ;;  %v1783_v0 = vpop.f32.mrf.mxu3  ;;  %v1513_v23 = vadd.f32 %v1481_v28, %v3542_v45 }
 0x280   : > { %v1092_v39 = vmul.f32 %v2109_v53, %v1091_v12  ;;  %v1784_v5 = vadd.f32 %v3335_v36, %v1783_v0  ;;  %1974 = vmatmul.msk.bf16.gmra.mxu3 %vm342_vm0, %v1657_v14  ;;  %v3561_v41 = vadd.f32 %v2619_v19, %v1304_v43  ;;  %v2117_v8 = vpop.eup %2116 }
 0x281   : > { %1819 = vst.msk [vmem:[%s3352_s22 + $0x10] sm:$0xff] %vm1816_vm14, %v1742_v33  ;;  %v1592_v34 = vadd.f32 1.0, %v2117_v8  ;;  %v2119_v58 = vpop.eup %2118 }
 0x282   : > { %v1096_v21 = vsel %vm1095_vm9, %v2109_v53, %v1092_v39  ;;  %1836 = vst.msk [vmem:[%s3352_s22 + $0x98] sm:$0xff] %vm1816_vm14, %v1784_v5  ;;  %v1401_v51 = vmul.f32 0.044715, %v3561_v41  ;;  %v1545_v53 = vmul.f32 0.7978846, %v1513_v23  ;;  %v1610_v13 = vadd.f32 1.0, %v2119_v58 }
 0x283   : > { %v1272_v10 = vmul.f32 %v1096_v21, %v3156_v61  ;;  %v1368_v61 = vmul.f32 0.5, %v3520_v16  ;;  %v1369_v39 = vmul.f32 0.5, %v3561_v41 }
 0x284   : > { %v1433_v62 = vmul.f32 %v1401_v51, %v3561_v41  ;;  %2120 = vtanh.f32 %v1545_v53 }
 0x285   : > { %v1305_v49 = vmul.f32 %v2612_v31, %v1272_v10  ;;  %v1624_v27 = vmul.f32 %v1592_v34, %v1368_v61 }
 0x286   : > { %v1743_v7 = vpop.f32.mrf.mxu1  ;;  %v1465_v31 = vmul.f32 %v1433_v62, %v3561_v41 }
 0x287   : > { %v1744_v3 = vadd.f32 %v3335_v36, %v1743_v7  ;;  %v1338_v6 = vadd.f32 %v2619_v19, %v1305_v49  ;;  %v1649_v24 = vpack.c.bf16 %v1624_v27, %v1623_v46  ;;  %v1386_v19 = vmul.f32 0.5, %v3525_v30 }
 0x288   : > { %v1497_v60 = vadd.f32 %v1465_v31, %v3561_v41 }
 0x289   : > { %1820 = vst.msk [vmem:[%s3352_s22 + $0x18] sm:$0xff] %vm1816_vm14, %v1744_v3  ;;  %1966 = vmatmul.msk.bf16.gmra.mxu1 %vm342_vm0, %v1649_v24  ;;  %v1402_v55 = vmul.f32 0.044715, %v1338_v6  ;;  %v1642_v38 = vmul.f32 %v1610_v13, %v1386_v19  ;;  %v1370_v0 = vmul.f32 0.5, %v1338_v6 }
 0x28a   : > { %v2121_v35 = vpop.eup %2120  ;;  %v1529_v40 = vmul.f32 0.7978846, %v1497_v60 }
 0x28b   : > { %v1609_v9 = vadd.f32 1.0, %v2121_v35  ;;  %v1434_v11 = vmul.f32 %v1402_v55, %v1338_v6 }
 0x28c   : > { %2122 = vtanh.f32 %v1529_v40 }
 0x28d   : > { %v1641_v50 = vmul.f32 %v1609_v9, %v1385_v63  ;;  %v1466_v1 = vmul.f32 %v1434_v11, %v1338_v6 }
 0x28e   : > { %v1746_v42 = vpop.f32.mrf.mxu1 }
 0x28f   : > { %v1747_v16 = vadd.f32 %v3335_v36, %v1746_v42  ;;  %v1658_v29 = vpack.c.bf16 %v1642_v38, %v1641_v50  ;;  %v1498_v22 = vadd.f32 %v1466_v1, %v1338_v6 }
 0x290   : > { %v1786_v4 = vpop.f32.mrf.mxu3 }
 0x291   : > { %v1787_v56 = vadd.f32 %v3335_v36, %v1786_v4  ;;  %1821 = vst.msk [vmem:[%s3352_s22 + $0x20] sm:$0xff] %vm1816_vm14, %v1747_v16  ;;  %1975 = vmatmul.msk.bf16.gmra.mxu3 %vm342_vm0, %v1658_v29  ;;  %v1530_v45 = vmul.f32 0.7978846, %v1498_v22 }
 0x292   : > { %v2123_v47 = vpop.eup %2122 }
 0x293   : > { %1837 = vst.msk [vmem:[%s3352_s22 + $0xa0] sm:$0xff] %vm1816_vm14, %v1787_v56  ;;  %2124 = vtanh.f32 %v1530_v45  ;;  %v1593_v44 = vadd.f32 1.0, %v2123_v47 }
 0x295   : > { %v1625_v25 = vmul.f32 %v1593_v44, %v1369_v39 }
 0x296   : > { %v1748_v57 = vpop.f32.mrf.mxu1 }
 0x297   : > { %v1749_v30 = vadd.f32 %v3335_v36, %v1748_v57 }
 0x298   : > { %v1788_v20 = vpop.f32.mrf.mxu3 }
 0x299   : > { %v1789_v2 = vadd.f32 %v3335_v36, %v1788_v20  ;;  %1822 = vst.msk [vmem:[%s3352_s22 + $0x28] sm:$0xff] %vm1816_vm14, %v1749_v30  ;;  %v2125_v48 = vpop.eup %2124 }
 0x29a   : > { %v1594_v14 = vadd.f32 1.0, %v2125_v48 }
 0x29b   : > { %1838 = vst.msk [vmem:[%s3352_s22 + $0xa8] sm:$0xff] %vm1816_vm14, %v1789_v2 }
 0x29c   : > { %v1626_v43 = vmul.f32 %v1594_v14, %v1370_v0 }
 0x29e   : > { %v1751_v12 = vpop.f32.mrf.mxu1  ;;  %v1650_v5 = vpack.c.bf16 %v1626_v43, %v1625_v25 }
 0x29f   : > { %v1752_v17 = vadd.f32 %v3335_v36, %v1751_v12 }
 0x2a0   : > { %v1791_v54 = vpop.f32.mrf.mxu3  ;;  %1967 = vmatmul.msk.bf16.gmra.mxu1 %vm342_vm0, %v1650_v5 }
 0x2a1   : > { %v1792_v33 = vadd.f32 %v3335_v36, %v1791_v54  ;;  %1823 = vst.msk [vmem:[%s3352_s22 + $0x30] sm:$0xff] %vm1816_vm14, %v1752_v17 }
 0x2a3   : > { %1839 = vst.msk [vmem:[%s3352_s22 + $0xb0] sm:$0xff] %vm1816_vm14, %v1792_v33 }
 0x2a6   : > { %v1753_v26 = vpop.f32.mrf.mxu1 }
 0x2a7   : > { %v1754_v21 = vadd.f32 %v3335_v36, %v1753_v26 }
 0x2a8   : > { %v1793_v18 = vpop.f32.mrf.mxu3 }
 0x2a9   : > { %v1794_v32 = vadd.f32 %v3335_v36, %v1793_v18  ;;  %1824 = vst.msk [vmem:[%s3352_s22 + $0x38] sm:$0xff] %vm1816_vm14, %v1754_v21 }
 0x2ab   : > { %1840 = vst.msk [vmem:[%s3352_s22 + $0xb8] sm:$0xff] %vm1816_vm14, %v1794_v32 }
 0x2ae   : > { %v1756_v59 = vpop.f32.mrf.mxu1 }
 0x2af   : > { %v1757_v52 = vadd.f32 %v3335_v36, %v1756_v59 }
 0x2b0   : > { %v1796_v41 = vpop.f32.mrf.mxu3 }
 0x2b1   : > { %v1797_v10 = vadd.f32 %v3335_v36, %v1796_v41  ;;  %1825 = vst.msk [vmem:[%s3352_s22 + $0x40] sm:$0xff] %vm1816_vm14, %v1757_v52 }
 0x2b3   : > { %1841 = vst.msk [vmem:[%s3352_s22 + $0xc0] sm:$0xff] %vm1816_vm14, %v1797_v10 }
 0x2b6   : > { %v1758_v28 = vpop.f32.mrf.mxu1 }
 0x2b7   : > { %v1759_v7 = vadd.f32 %v3335_v36, %v1758_v28 }
 0x2b8   : > { %v1798_v3 = vpop.f32.mrf.mxu3 }
 0x2b9   : > { %v1799_v37 = vadd.f32 %v3335_v36, %v1798_v3  ;;  %1826 = vst.msk [vmem:[%s3352_s22 + $0x48] sm:$0xff] %vm1816_vm14, %v1759_v7 }
 0x2bb   : > { %1842 = vst.msk [vmem:[%s3352_s22 + $0xc8] sm:$0xff] %vm1816_vm14, %v1799_v37 }
 0x2df   : > { %v1761_v49 = vpop.f32.mrf.mxu1 }
 0x2e0   : > { %v1762_v51 = vadd.f32 %v3335_v36, %v1761_v49 }
 0x2e2   : > { %1827 = vst.msk [vmem:[%s3352_s22 + $0x50] sm:$0xff] %vm1816_vm14, %v1762_v51 }
 0x2e3   : > { %v1801_v23 = vpop.f32.mrf.mxu3 }
 0x2e4   : > { %v1802_v8 = vadd.f32 %v3335_v36, %v1801_v23 }
 0x2e6   : > { %1843 = vst.msk [vmem:[%s3352_s22 + $0xd0] sm:$0xff] %vm1816_vm14, %v1802_v8 }
 0x2e7   : > { %v1763_v34 = vpop.f32.mrf.mxu1 }
 0x2e8   : > { %v1764_v53 = vadd.f32 %v3335_v36, %v1763_v34 }
 0x2ea   : > { %1828 = vst.msk [vmem:[%s3352_s22 + $0x58] sm:$0xff] %vm1816_vm14, %v1764_v53 }
 0x2eb   : > { %v1803_v15 = vpop.f32.mrf.mxu3 }
 0x2ec   : > { %v1804_v61 = vadd.f32 %v3335_v36, %v1803_v15 }
 0x2ee   : > { %1844 = vst.msk [vmem:[%s3352_s22 + $0xd8] sm:$0xff] %vm1816_vm14, %v1804_v61 }
 0x303   : > { %v1806_v62 = vpop.f32.mrf.mxu3 }
 0x304   : > { %v1807_v46 = vadd.f32 %v3335_v36, %v1806_v62 }
 0x306   : > { %1845 = vst.msk [vmem:[%s3352_s22 + $0xe0] sm:$0xff] %vm1816_vm14, %v1807_v46  ;;  %v1766_v6 = vpop.f32.mrf.mxu1 }
 0x307   : > { %v1767_v58 = vadd.f32 %v3335_v36, %v1766_v6 }
 0x309   : > { %1829 = vst.msk [vmem:[%s3352_s22 + $0x60] sm:$0xff] %vm1816_vm14, %v1767_v58 }
 0x30b   : > { %v1808_v27 = vpop.f32.mrf.mxu3 }
 0x30c   : > { %v1809_v31 = vadd.f32 %v3335_v36, %v1808_v27 }
 0x30e   : > { %1846 = vst.msk [vmem:[%s3352_s22 + $0xe8] sm:$0xff] %vm1816_vm14, %v1809_v31  ;;  %v1768_v24 = vpop.f32.mrf.mxu1 }
 0x30f   : > { %v1769_v42 = vadd.f32 %v3335_v36, %v1768_v24 }
 0x311   : > { %1830 = vst.msk [vmem:[%s3352_s22 + $0x68] sm:$0xff] %vm1816_vm14, %v1769_v42 }
 0x314   : > { %v1811_v60 = vpop.f32.mrf.mxu3 }
 0x315   : > { %v1812_v4 = vadd.f32 %v3335_v36, %v1811_v60 }
 0x317   : > { %1847 = vst.msk [vmem:[%s3352_s22 + $0xf0] sm:$0xff] %vm1816_vm14, %v1812_v4 }
 0x31c   : > { %v1813_v16 = vpop.f32.mrf.mxu3 }
 0x31d   : > { %v1814_v56 = vadd.f32 %v3335_v36, %v1813_v16  ;;  %v1771_v13 = vpop.f32.mrf.mxu1 }
 0x31e   : > { %v1772_v55 = vadd.f32 %v3335_v36, %v1771_v13 }
 0x31f   : > { %1848 = vst.msk [vmem:[%s3352_s22 + $0xf8] sm:$0xff] %vm1816_vm14, %v1814_v56 }
 0x320   : > { %1831 = vst.msk [vmem:[%s3352_s22 + $0x70] sm:$0xff] %vm1816_vm14, %v1772_v55 }
 0x325   : > { %v1773_v35 = vpop.f32.mrf.mxu1 }
 0x326   : > { %v1774_v19 = vadd.f32 %v3335_v36, %v1773_v35 }
 0x328   : > { %1832 = vst.msk [vmem:[%s3352_s22 + $0x78] sm:$0xff] %vm1816_vm14, %v1774_v19 }
 0x329 PF: > { %s16_s21 = sadd.s32 1, %s2132_s21  }
 0x32a   : > { %p13_p4 = scmp.ge.s32.totalorder %s16_s21, 4  }
 0x32c   :  { %15 = sbr.rel (!%p13_p4) target bundleno = 1 (0x1), region = 77 }

</bundles_post_ra>
